<compile_context>
chip_gen: v6e
topology: v6e:2x2x1
jax: 0.10.0
libtpu: 0.0.40
codegen_flags: <defaults>
</compile_context>

<pallas_src>
import functools

import jax
import jax.numpy as jnp
from jax.experimental import pallas as pl
from jax.experimental.pallas import tpu as pltpu


_VMEM_LIMIT = 32 * 1024 * 1024  # explicit scoped-VMEM limit (safe on v5e/v6e/v7x)


# ----------------------------------------------------------------------------
# Pallas kernel: single-step matmul fused with bias + LeakyReLU epilogue
# (BatchNorm eval-mode scale is pre-folded into the weights.)
# ----------------------------------------------------------------------------
def fused_matmul_kernel(x_ref, w_ref, b_ref, o_ref, *, activation):
    y = jnp.dot(x_ref[...], w_ref[...], preferred_element_type=jnp.float32)
    y = y + b_ref[...]                      # folded BatchNorm bias (f32)
    if activation == "leaky_relu":
        y = jnp.where(y > 0, y, 0.2 * y)
    elif activation == "sigmoid":
        y = 1.0 / (1.0 + jnp.exp(-y))
    o_ref[...] = y.astype(o_ref.dtype)


def fused_matmul(x, w, bias, activation):
    """y = act(x @ w + bias); x:(M,K) bf16, w:(K,N) bf16, bias:(N,) f32."""
    M, K = x.shape
    Kw, Nc = w.shape
    assert K == Kw

    # Whole-K tile (single reduction step).  Keep >= 2 blocks along a
    # "parallel" axis so v7x's two TensorCores both get work, splitting the
    # larger of M / N while keeping blocks sublane/lane aligned.
    tm, tn = M, Nc
    if M >= 512 and (M // 2) % 8 == 0:
        tm = M // 2
    elif Nc >= 256 and (Nc // 2) % 128 == 0:
        tn = Nc // 2
    grid = (M // tm, Nc // tn)

    out_dtype = jnp.bfloat16 if activation == "leaky_relu" else jnp.float32
    bytes_accessed = (M * K * x.dtype.itemsize
                      + K * Nc * w.dtype.itemsize
                      + M * Nc * jnp.dtype(out_dtype).itemsize
                      + Nc * 4)

    kernel = functools.partial(fused_matmul_kernel, activation=activation)
    return pl.pallas_call(
        kernel,
        out_shape=jax.ShapeDtypeStruct((M, Nc), out_dtype),
        grid_spec=pltpu.PrefetchScalarGridSpec(
            num_scalar_prefetch=0,
            grid=grid,
            in_specs=[
                pl.BlockSpec((tm, K), lambda i, j: (i, 0)),
                pl.BlockSpec((K, tn), lambda i, j: (0, j)),
                pl.BlockSpec((1, tn), lambda i, j: (0, j)),
            ],
            out_specs=pl.BlockSpec((tm, tn), lambda i, j: (i, j)),
        ),
        compiler_params=pltpu.CompilerParams(
            dimension_semantics=("parallel", "parallel"),
            vmem_limit_bytes=_VMEM_LIMIT,
        ),
        cost_estimate=pl.CostEstimate(
            flops=2 * M * K * Nc, transcendentals=0,
            bytes_accessed=bytes_accessed),
    )(x, w, bias.reshape(1, Nc))


# ----------------------------------------------------------------------------
# Pallas kernel: final 512->1 "conv" head as a VPU multiply + lane reduction
# + sigmoid (avoids a degenerate 1-lane MXU matmul); single grid step.
# ----------------------------------------------------------------------------
def sigmoid_head_kernel(x_ref, w_ref, o_ref):
    prod = x_ref[...].astype(jnp.float32) * w_ref[...].astype(jnp.float32)
    y = jnp.sum(prod, axis=1, keepdims=True)        # (N, 1)
    o_ref[...] = 1.0 / (1.0 + jnp.exp(-y))          # sigmoid


def sigmoid_head(x, w):
    """sigmoid(x @ w) with x:(N,K) bf16, w:(K,1) bf16 -> (N,1) f32."""
    M, K = x.shape
    return pl.pallas_call(
        sigmoid_head_kernel,
        out_shape=jax.ShapeDtypeStruct((M, 1), jnp.float32),
        grid_spec=pltpu.PrefetchScalarGridSpec(
            num_scalar_prefetch=0,
            grid=(1,),
            in_specs=[
                pl.BlockSpec((M, K), lambda i: (0, 0)),
                pl.BlockSpec((1, K), lambda i: (0, 0)),
            ],
            out_specs=pl.BlockSpec((M, 1), lambda i: (0, 0)),
        ),
        compiler_params=pltpu.CompilerParams(
            dimension_semantics=("arbitrary",),
            vmem_limit_bytes=_VMEM_LIMIT,
        ),
        cost_estimate=pl.CostEstimate(
            flops=2 * M * K, transcendentals=M,
            bytes_accessed=(M * K + K) * x.dtype.itemsize + M * 4),
    )(x, w.reshape(1, K))


# ----------------------------------------------------------------------------
# Glue: im2col patch extraction (pure reshuffle, plain JAX, runs on bf16).
# Feature ordering is (kh, kw, Cin), matching the weight reshape below.
# ----------------------------------------------------------------------------
def im2col(x_nhwc, k, stride, pad):
    n, h, w, c = x_nhwc.shape
    xp = jnp.pad(x_nhwc, ((0, 0), (pad, pad), (pad, pad), (0, 0)))
    ho = (h + 2 * pad - k) // stride + 1
    wo = (w + 2 * pad - k) // stride + 1
    patches = []
    for i in range(k):
        for j in range(k):
            patches.append(
                xp[:, i : i + stride * ho : stride, j : j + stride * wo : stride, :]
            )
    p = jnp.stack(patches, axis=3)                 # (N, Ho, Wo, k*k, C)
    return p.reshape(n * ho * wo, k * k * c), (n, ho, wo)


# ----------------------------------------------------------------------------
# Parameter initialization (deterministic, synthetic).  BatchNorm eval-mode
# scale is folded into the (bf16) weights; only the bias remains per layer.
# ----------------------------------------------------------------------------
def init_params(key, in_channels):
    layers = []
    chans = [(in_channels, 64), (64, 128), (128, 256), (256, 512)]
    for idx, (ci, co) in enumerate(chans):
        key, k1, k2, k3, k4, k5 = jax.random.split(key, 6)
        w = 0.02 * jax.random.normal(k1, (4, 4, ci, co), jnp.float32)
        if idx == 0:
            scale = jnp.ones((co,), jnp.float32)
            bias = jnp.zeros((co,), jnp.float32)
        else:
            # BatchNorm2d eval mode folded to per-channel scale/bias
            gamma = 1.0 + 0.02 * jax.random.normal(k2, (co,), jnp.float32)
            beta = 0.02 * jax.random.normal(k3, (co,), jnp.float32)
            rmean = 0.01 * jax.random.normal(k4, (co,), jnp.float32)
            rvar = jnp.abs(1.0 + 0.02 * jax.random.normal(k5, (co,), jnp.float32))
            scale = gamma / jnp.sqrt(rvar + 1e-5)
            bias = beta - rmean * scale
        w_folded = (w * scale).reshape(16 * ci, co).astype(jnp.bfloat16)
        layers.append(dict(w=w_folded, bias=bias))
    key, k1 = jax.random.split(key)
    w = 0.02 * jax.random.normal(k1, (4, 4, 512, 1), jnp.float32)
    layers.append(dict(w=w.reshape(16 * 512, 1).astype(jnp.bfloat16)))
    return layers


# ----------------------------------------------------------------------------
# Forward passes
# ----------------------------------------------------------------------------
def discriminator_forward(x_nchw, params):
    x = jnp.transpose(x_nchw, (0, 2, 3, 1)).astype(jnp.bfloat16)   # NCHW -> NHWC
    for lyr in params[:-1]:                         # four stride-2 conv blocks
        co = lyr["w"].shape[1]
        cols, (n, ho, wo) = im2col(x, 4, 2, 1)
        y = fused_matmul(cols, lyr["w"], lyr["bias"], "leaky_relu")
        x = y.reshape(n, ho, wo, co)
    # Final conv(512->1, k4, s1, p0) on a 4x4 map == dot over the flattened
    # (h, w, c) features, which matches the (kh, kw, cin) weight layout.
    n = x.shape[0]
    cols = x.reshape(n, -1)                         # (N, 4*4*512)
    y = sigmoid_head(cols, params[-1]["w"])         # (N, 1) f32
    # torch: squeeze(y,3).squeeze(y,2) on (N,1,1,1) -> (N,1)
    return y


def reference_forward(x_nchw, params):
    x = jnp.transpose(x_nchw, (0, 2, 3, 1)).astype(jnp.bfloat16).astype(jnp.float32)
    n_layers = len(params)
    for idx, lyr in enumerate(params):
        w2d = lyr["w"].astype(jnp.float32)
        K, co = w2d.shape
        ci = K // 16
        w = w2d.reshape(4, 4, ci, co)
        s, p = (2, 1) if idx < n_layers - 1 else (1, 0)
        y = jax.lax.conv_general_dilated(
            x, w, window_strides=(s, s), padding=[(p, p), (p, p)],
            dimension_numbers=("NHWC", "HWIO", "NHWC"),
        )
        if idx < n_layers - 1:
            y = y + lyr["bias"]
            y = jnp.where(y > 0, y, 0.2 * y)
        else:
            y = jax.nn.sigmoid(y)
        x = y
    return x.reshape(x.shape[0], 1)


if __name__ == "__main__":
    key = jax.random.PRNGKey(0)
    kx, kp = jax.random.split(key)

    # Smallest spatial size consistent with the architecture is 64x64
    # (64 -> 32 -> 16 -> 8 -> 4 -> final 4x4 valid conv -> 1x1).
    N, C, H, W = 2, 3, 64, 64
    x = jax.random.normal(kx, (N, C, H, W), jnp.float32)
    params = init_params(kp, C)

    fwd = jax.jit(discriminator_forward)
    y = jax.block_until_ready(fwd(x, params))
    assert y.shape == (N, 1), y.shape

    y_ref = jax.block_until_ready(reference_forward(x, params))
    # bf16 activations/matmuls in the kernel path vs f32 reference -> loose tol.
    assert jnp.allclose(y, y_ref, rtol=2e-2, atol=2e-2), (y, y_ref)

    print("KERNEL_OK")
</pallas_src>

<mosaic_0001>
module attributes {stable_mosaic.version = 11 : i64} {
  func.func @fused_matmul_kernel(%arg0: i32, %arg1: i32, %arg2: memref<1024x48xbf16, #tpu.memory_space<vmem>>, %arg3: memref<48x64xbf16, #tpu.memory_space<vmem>>, %arg4: memref<1x64xf32, #tpu.memory_space<vmem>>, %arg5: memref<1024x64xbf16, #tpu.memory_space<vmem>>) attributes {dimension_semantics = [#tpu.dimension_semantics<parallel>, #tpu.dimension_semantics<parallel>], iteration_bounds = array<i64: 2, 1>, scalar_prefetch = 0 : i64, scratch_operands = 0 : i64, tpu.core_type = #tpu.core_type<tc>, window_params = [{transform_indices = @transform_0, window_bounds = array<i64: 1024, 48>}, {transform_indices = @transform_1, window_bounds = array<i64: 48, 64>}, {transform_indices = @transform_2, window_bounds = array<i64: 1, 64>}, {transform_indices = @transform_3, window_bounds = array<i64: 1024, 64>}]} {
    %c0 = arith.constant 0 : index
    %c0_0 = arith.constant 0 : index
    %0 = vector.load %arg2[%c0, %c0_0] : memref<1024x48xbf16, #tpu.memory_space<vmem>>, vector<1024x48xbf16>
    %c0_1 = arith.constant 0 : index
    %c0_2 = arith.constant 0 : index
    %1 = vector.load %arg3[%c0_1, %c0_2] : memref<48x64xbf16, #tpu.memory_space<vmem>>, vector<48x64xbf16>
    %cst = arith.constant dense<0.000000e+00> : vector<1024x64xf32>
    %2 = tpu.matmul %0, %1, %cst {dimension_numbers = #tpu.dot_dimension_numbers<[1], [0], [0], [1], [0, 0, 1, 1], [], []>} : vector<1024x48xbf16>, vector<48x64xbf16>, vector<1024x64xf32> -> vector<1024x64xf32>
    %c0_3 = arith.constant 0 : index
    %c0_4 = arith.constant 0 : index
    %3 = vector.load %arg4[%c0_3, %c0_4] : memref<1x64xf32, #tpu.memory_space<vmem>>, vector<1x64xf32>
    %4 = vector.broadcast %3 : vector<1x64xf32> to vector<1024x64xf32>
    %5 = arith.addf %2, %4 : vector<1024x64xf32>
    %cst_5 = arith.constant 0.000000e+00 : f32
    %6 = vector.broadcast %cst_5 : f32 to vector<1024x64xf32>
    %7 = arith.cmpf ogt, %5, %6 : vector<1024x64xf32>
    %cst_6 = arith.constant 2.000000e-01 : f32
    %8 = vector.broadcast %cst_6 : f32 to vector<1024x64xf32>
    %9 = arith.mulf %8, %5 : vector<1024x64xf32>
    %10 = arith.select %7, %5, %9 : vector<1024x64xi1>, vector<1024x64xf32>
    %11 = arith.truncf %10 : vector<1024x64xf32> to vector<1024x64xbf16>
    %c0_7 = arith.constant 0 : index
    %c0_8 = arith.constant 0 : index
    %12 = vector.load %arg5[%c0_7, %c0_8] : memref<1024x64xbf16, #tpu.memory_space<vmem>>, vector<1024x64xbf16>
    tpu.vector_store %arg5[%c0_7, %c0_8], %11 {strides = array<i32>} : memref<1024x64xbf16, #tpu.memory_space<vmem>>, vector<1024x64xbf16>,
    return
  }
  func.func @transform_0(%arg0: i32, %arg1: i32) -> (i32, i32) {
    %c0_i32 = arith.constant 0 : i32
    %c0_i32_0 = arith.constant 0 : i32
    return %arg0, %c0_i32 : i32, i32
  }
  func.func @transform_1(%arg0: i32, %arg1: i32) -> (i32, i32) {
    %c0_i32 = arith.constant 0 : i32
    %c0_i32_0 = arith.constant 0 : i32
    return %c0_i32, %arg1 : i32, i32
  }
  func.func @transform_2(%arg0: i32, %arg1: i32) -> (i32, i32) {
    %c0_i32 = arith.constant 0 : i32
    %c0_i32_0 = arith.constant 0 : i32
    return %c0_i32, %arg1 : i32, i32
  }
  func.func @transform_3(%arg0: i32, %arg1: i32) -> (i32, i32) {
    %c0_i32 = arith.constant 0 : i32
    return %arg0, %arg1 : i32, i32
  }
}

module attributes {stable_mosaic.version = 11 : i64} {
  func.func @fused_matmul_kernel(%arg0: i32, %arg1: i32, %arg2: memref<256x1024xbf16, #tpu.memory_space<vmem>>, %arg3: memref<1024x128xbf16, #tpu.memory_space<vmem>>, %arg4: memref<1x128xf32, #tpu.memory_space<vmem>>, %arg5: memref<256x128xbf16, #tpu.memory_space<vmem>>) attributes {dimension_semantics = [#tpu.dimension_semantics<parallel>, #tpu.dimension_semantics<parallel>], iteration_bounds = array<i64: 2, 1>, scalar_prefetch = 0 : i64, scratch_operands = 0 : i64, tpu.core_type = #tpu.core_type<tc>, window_params = [{transform_indices = @transform_0, window_bounds = array<i64: 256, 1024>}, {transform_indices = @transform_1, window_bounds = array<i64: 1024, 128>}, {transform_indices = @transform_2, window_bounds = array<i64: 1, 128>}, {transform_indices = @transform_3, window_bounds = array<i64: 256, 128>}]} {
    %c0 = arith.constant 0 : index
    %c0_0 = arith.constant 0 : index
    %0 = vector.load %arg2[%c0, %c0_0] : memref<256x1024xbf16, #tpu.memory_space<vmem>>, vector<256x1024xbf16>
    %c0_1 = arith.constant 0 : index
    %c0_2 = arith.constant 0 : index
    %1 = vector.load %arg3[%c0_1, %c0_2] : memref<1024x128xbf16, #tpu.memory_space<vmem>>, vector<1024x128xbf16>
    %cst = arith.constant dense<0.000000e+00> : vector<256x128xf32>
    %2 = tpu.matmul %0, %1, %cst {dimension_numbers = #tpu.dot_dimension_numbers<[1], [0], [0], [1], [0, 0, 1, 1], [], []>} : vector<256x1024xbf16>, vector<1024x128xbf16>, vector<256x128xf32> -> vector<256x128xf32>
    %c0_3 = arith.constant 0 : index
    %c0_4 = arith.constant 0 : index
    %3 = vector.load %arg4[%c0_3, %c0_4] : memref<1x128xf32, #tpu.memory_space<vmem>>, vector<1x128xf32>
    %4 = vector.broadcast %3 : vector<1x128xf32> to vector<256x128xf32>
    %5 = arith.addf %2, %4 : vector<256x128xf32>
    %cst_5 = arith.constant 0.000000e+00 : f32
    %6 = vector.broadcast %cst_5 : f32 to vector<256x128xf32>
    %7 = arith.cmpf ogt, %5, %6 : vector<256x128xf32>
    %cst_6 = arith.constant 2.000000e-01 : f32
    %8 = vector.broadcast %cst_6 : f32 to vector<256x128xf32>
    %9 = arith.mulf %8, %5 : vector<256x128xf32>
    %10 = arith.select %7, %5, %9 : vector<256x128xi1>, vector<256x128xf32>
    %11 = arith.truncf %10 : vector<256x128xf32> to vector<256x128xbf16>
    %c0_7 = arith.constant 0 : index
    %c0_8 = arith.constant 0 : index
    %12 = vector.load %arg5[%c0_7, %c0_8] : memref<256x128xbf16, #tpu.memory_space<vmem>>, vector<256x128xbf16>
    tpu.vector_store %arg5[%c0_7, %c0_8], %11 {strides = array<i32>} : memref<256x128xbf16, #tpu.memory_space<vmem>>, vector<256x128xbf16>,
    return
  }
  func.func @transform_0(%arg0: i32, %arg1: i32) -> (i32, i32) {
    %c0_i32 = arith.constant 0 : i32
    %c0_i32_0 = arith.constant 0 : i32
    return %arg0, %c0_i32 : i32, i32
  }
  func.func @transform_1(%arg0: i32, %arg1: i32) -> (i32, i32) {
    %c0_i32 = arith.constant 0 : i32
    %c0_i32_0 = arith.constant 0 : i32
    return %c0_i32, %arg1 : i32, i32
  }
  func.func @transform_2(%arg0: i32, %arg1: i32) -> (i32, i32) {
    %c0_i32 = arith.constant 0 : i32
    %c0_i32_0 = arith.constant 0 : i32
    return %c0_i32, %arg1 : i32, i32
  }
  func.func @transform_3(%arg0: i32, %arg1: i32) -> (i32, i32) {
    %c0_i32 = arith.constant 0 : i32
    return %arg0, %arg1 : i32, i32
  }
}

module attributes {stable_mosaic.version = 11 : i64} {
  func.func @fused_matmul_kernel(%arg0: i32, %arg1: i32, %arg2: memref<128x2048xbf16, #tpu.memory_space<vmem>>, %arg3: memref<2048x128xbf16, #tpu.memory_space<vmem>>, %arg4: memref<1x128xf32, #tpu.memory_space<vmem>>, %arg5: memref<128x128xbf16, #tpu.memory_space<vmem>>) attributes {dimension_semantics = [#tpu.dimension_semantics<parallel>, #tpu.dimension_semantics<parallel>], iteration_bounds = array<i64: 1, 2>, scalar_prefetch = 0 : i64, scratch_operands = 0 : i64, tpu.core_type = #tpu.core_type<tc>, window_params = [{transform_indices = @transform_0, window_bounds = array<i64: 128, 2048>}, {transform_indices = @transform_1, window_bounds = array<i64: 2048, 128>}, {transform_indices = @transform_2, window_bounds = array<i64: 1, 128>}, {transform_indices = @transform_3, window_bounds = array<i64: 128, 128>}]} {
    %c0 = arith.constant 0 : index
    %c0_0 = arith.constant 0 : index
    %0 = vector.load %arg2[%c0, %c0_0] : memref<128x2048xbf16, #tpu.memory_space<vmem>>, vector<128x2048xbf16>
    %c0_1 = arith.constant 0 : index
    %c0_2 = arith.constant 0 : index
    %1 = vector.load %arg3[%c0_1, %c0_2] : memref<2048x128xbf16, #tpu.memory_space<vmem>>, vector<2048x128xbf16>
    %cst = arith.constant dense<0.000000e+00> : vector<128x128xf32>
    %2 = tpu.matmul %0, %1, %cst {dimension_numbers = #tpu.dot_dimension_numbers<[1], [0], [0], [1], [0, 0, 1, 1], [], []>} : vector<128x2048xbf16>, vector<2048x128xbf16>, vector<128x128xf32> -> vector<128x128xf32>
    %c0_3 = arith.constant 0 : index
    %c0_4 = arith.constant 0 : index
    %3 = vector.load %arg4[%c0_3, %c0_4] : memref<1x128xf32, #tpu.memory_space<vmem>>, vector<1x128xf32>
    %4 = vector.broadcast %3 : vector<1x128xf32> to vector<128x128xf32>
    %5 = arith.addf %2, %4 : vector<128x128xf32>
    %cst_5 = arith.constant 0.000000e+00 : f32
    %6 = vector.broadcast %cst_5 : f32 to vector<128x128xf32>
    %7 = arith.cmpf ogt, %5, %6 : vector<128x128xf32>
    %cst_6 = arith.constant 2.000000e-01 : f32
    %8 = vector.broadcast %cst_6 : f32 to vector<128x128xf32>
    %9 = arith.mulf %8, %5 : vector<128x128xf32>
    %10 = arith.select %7, %5, %9 : vector<128x128xi1>, vector<128x128xf32>
    %11 = arith.truncf %10 : vector<128x128xf32> to vector<128x128xbf16>
    %c0_7 = arith.constant 0 : index
    %c0_8 = arith.constant 0 : index
    %12 = vector.load %arg5[%c0_7, %c0_8] : memref<128x128xbf16, #tpu.memory_space<vmem>>, vector<128x128xbf16>
    tpu.vector_store %arg5[%c0_7, %c0_8], %11 {strides = array<i32>} : memref<128x128xbf16, #tpu.memory_space<vmem>>, vector<128x128xbf16>,
    return
  }
  func.func @transform_0(%arg0: i32, %arg1: i32) -> (i32, i32) {
    %c0_i32 = arith.constant 0 : i32
    %c0_i32_0 = arith.constant 0 : i32
    return %arg0, %c0_i32 : i32, i32
  }
  func.func @transform_1(%arg0: i32, %arg1: i32) -> (i32, i32) {
    %c0_i32 = arith.constant 0 : i32
    %c0_i32_0 = arith.constant 0 : i32
    return %c0_i32, %arg1 : i32, i32
  }
  func.func @transform_2(%arg0: i32, %arg1: i32) -> (i32, i32) {
    %c0_i32 = arith.constant 0 : i32
    %c0_i32_0 = arith.constant 0 : i32
    return %c0_i32, %arg1 : i32, i32
  }
  func.func @transform_3(%arg0: i32, %arg1: i32) -> (i32, i32) {
    %c0_i32 = arith.constant 0 : i32
    return %arg0, %arg1 : i32, i32
  }
}

module attributes {stable_mosaic.version = 11 : i64} {
  func.func @fused_matmul_kernel(%arg0: i32, %arg1: i32, %arg2: memref<32x4096xbf16, #tpu.memory_space<vmem>>, %arg3: memref<4096x256xbf16, #tpu.memory_space<vmem>>, %arg4: memref<1x256xf32, #tpu.memory_space<vmem>>, %arg5: memref<32x256xbf16, #tpu.memory_space<vmem>>) attributes {dimension_semantics = [#tpu.dimension_semantics<parallel>, #tpu.dimension_semantics<parallel>], iteration_bounds = array<i64: 1, 2>, scalar_prefetch = 0 : i64, scratch_operands = 0 : i64, tpu.core_type = #tpu.core_type<tc>, window_params = [{transform_indices = @transform_0, window_bounds = array<i64: 32, 4096>}, {transform_indices = @transform_1, window_bounds = array<i64: 4096, 256>}, {transform_indices = @transform_2, window_bounds = array<i64: 1, 256>}, {transform_indices = @transform_3, window_bounds = array<i64: 32, 256>}]} {
    %c0 = arith.constant 0 : index
    %c0_0 = arith.constant 0 : index
    %0 = vector.load %arg2[%c0, %c0_0] : memref<32x4096xbf16, #tpu.memory_space<vmem>>, vector<32x4096xbf16>
    %c0_1 = arith.constant 0 : index
    %c0_2 = arith.constant 0 : index
    %1 = vector.load %arg3[%c0_1, %c0_2] : memref<4096x256xbf16, #tpu.memory_space<vmem>>, vector<4096x256xbf16>
    %cst = arith.constant dense<0.000000e+00> : vector<32x256xf32>
    %2 = tpu.matmul %0, %1, %cst {dimension_numbers = #tpu.dot_dimension_numbers<[1], [0], [0], [1], [0, 0, 1, 1], [], []>} : vector<32x4096xbf16>, vector<4096x256xbf16>, vector<32x256xf32> -> vector<32x256xf32>
    %c0_3 = arith.constant 0 : index
    %c0_4 = arith.constant 0 : index
    %3 = vector.load %arg4[%c0_3, %c0_4] : memref<1x256xf32, #tpu.memory_space<vmem>>, vector<1x256xf32>
    %4 = vector.broadcast %3 : vector<1x256xf32> to vector<32x256xf32>
    %5 = arith.addf %2, %4 : vector<32x256xf32>
    %cst_5 = arith.constant 0.000000e+00 : f32
    %6 = vector.broadcast %cst_5 : f32 to vector<32x256xf32>
    %7 = arith.cmpf ogt, %5, %6 : vector<32x256xf32>
    %cst_6 = arith.constant 2.000000e-01 : f32
    %8 = vector.broadcast %cst_6 : f32 to vector<32x256xf32>
    %9 = arith.mulf %8, %5 : vector<32x256xf32>
    %10 = arith.select %7, %5, %9 : vector<32x256xi1>, vector<32x256xf32>
    %11 = arith.truncf %10 : vector<32x256xf32> to vector<32x256xbf16>
    %c0_7 = arith.constant 0 : index
    %c0_8 = arith.constant 0 : index
    %12 = vector.load %arg5[%c0_7, %c0_8] : memref<32x256xbf16, #tpu.memory_space<vmem>>, vector<32x256xbf16>
    tpu.vector_store %arg5[%c0_7, %c0_8], %11 {strides = array<i32>} : memref<32x256xbf16, #tpu.memory_space<vmem>>, vector<32x256xbf16>,
    return
  }
  func.func @transform_0(%arg0: i32, %arg1: i32) -> (i32, i32) {
    %c0_i32 = arith.constant 0 : i32
    %c0_i32_0 = arith.constant 0 : i32
    return %arg0, %c0_i32 : i32, i32
  }
  func.func @transform_1(%arg0: i32, %arg1: i32) -> (i32, i32) {
    %c0_i32 = arith.constant 0 : i32
    %c0_i32_0 = arith.constant 0 : i32
    return %c0_i32, %arg1 : i32, i32
  }
  func.func @transform_2(%arg0: i32, %arg1: i32) -> (i32, i32) {
    %c0_i32 = arith.constant 0 : i32
    %c0_i32_0 = arith.constant 0 : i32
    return %c0_i32, %arg1 : i32, i32
  }
  func.func @transform_3(%arg0: i32, %arg1: i32) -> (i32, i32) {
    %c0_i32 = arith.constant 0 : i32
    return %arg0, %arg1 : i32, i32
  }
}

module attributes {stable_mosaic.version = 11 : i64} {
  func.func @sigmoid_head_kernel(%arg0: i32, %arg1: memref<2x8192xbf16, #tpu.memory_space<vmem>>, %arg2: memref<1x8192xbf16, #tpu.memory_space<vmem>>, %arg3: memref<2x1xf32, #tpu.memory_space<vmem>>) attributes {dimension_semantics = [#tpu.dimension_semantics<arbitrary>], iteration_bounds = array<i64: 1>, scalar_prefetch = 0 : i64, scratch_operands = 0 : i64, tpu.core_type = #tpu.core_type<tc>, window_params = [{pipeline_mode = #tpu.pipeline_mode<synchronous>, transform_indices = @transform_0, window_bounds = array<i64: 2, 8192>}, {pipeline_mode = #tpu.pipeline_mode<synchronous>, transform_indices = @transform_1, window_bounds = array<i64: 1, 8192>}, {pipeline_mode = #tpu.pipeline_mode<synchronous>, transform_indices = @transform_2, window_bounds = array<i64: 2, 1>}]} {
    %c0 = arith.constant 0 : index
    %c0_0 = arith.constant 0 : index
    %0 = vector.load %arg1[%c0, %c0_0] : memref<2x8192xbf16, #tpu.memory_space<vmem>>, vector<2x8192xbf16>
    %1 = arith.extf %0 : vector<2x8192xbf16> to vector<2x8192xf32>
    %c0_1 = arith.constant 0 : index
    %c0_2 = arith.constant 0 : index
    %2 = vector.load %arg2[%c0_1, %c0_2] : memref<1x8192xbf16, #tpu.memory_space<vmem>>, vector<1x8192xbf16>
    %3 = arith.extf %2 : vector<1x8192xbf16> to vector<1x8192xf32>
    %4 = vector.broadcast %3 : vector<1x8192xf32> to vector<2x8192xf32>
    %5 = arith.mulf %1, %4 : vector<2x8192xf32>
    %cst = arith.constant dense<0.000000e+00> : vector<2xf32>
    %6 = vector.multi_reduction <add>, %5, %cst [1] : vector<2x8192xf32> to vector<2xf32>
    %7 = vector.shape_cast %6 : vector<2xf32> to vector<2x1xf32>
    %cst_3 = arith.constant 0.000000e+00 : f32
    %8 = vector.broadcast %cst_3 : f32 to vector<2x1xf32>
    %9 = arith.subf %8, %7 : vector<2x1xf32>
    %10 = math.exp %9 : vector<2x1xf32>
    %cst_4 = arith.constant 1.000000e+00 : f32
    %11 = vector.broadcast %cst_4 : f32 to vector<2x1xf32>
    %12 = arith.addf %11, %10 : vector<2x1xf32>
    %cst_5 = arith.constant 1.000000e+00 : f32
    %13 = vector.broadcast %cst_5 : f32 to vector<2x1xf32>
    %14 = arith.divf %13, %12 : vector<2x1xf32>
    %c0_6 = arith.constant 0 : index
    %c0_7 = arith.constant 0 : index
    %15 = vector.load %arg3[%c0_6, %c0_7] : memref<2x1xf32, #tpu.memory_space<vmem>>, vector<2x1xf32>
    tpu.vector_store %arg3[%c0_6, %c0_7], %14 {strides = array<i32>} : memref<2x1xf32, #tpu.memory_space<vmem>>, vector<2x1xf32>,
    return
  }
  func.func @transform_0(%arg0: i32) -> (i32, i32) {
    %c0_i32 = arith.constant 0 : i32
    %c0_i32_0 = arith.constant 0 : i32
    %c0_i32_1 = arith.constant 0 : i32
    return %c0_i32, %c0_i32_0 : i32, i32
  }
  func.func @transform_1(%arg0: i32) -> (i32, i32) {
    %c0_i32 = arith.constant 0 : i32
    %c0_i32_0 = arith.constant 0 : i32
    %c0_i32_1 = arith.constant 0 : i32
    return %c0_i32, %c0_i32_0 : i32, i32
  }
  func.func @transform_2(%arg0: i32) -> (i32, i32) {
    %c0_i32 = arith.constant 0 : i32
    %c0_i32_0 = arith.constant 0 : i32
    %c0_i32_1 = arith.constant 0 : i32
    return %c0_i32, %c0_i32_0 : i32, i32
  }
}

</mosaic_0001>

<bundles_post_ra>
// kernel: discriminator_forward.5
= control target key start
LH: loop header
LB: loop body
LE: loop exit
PB: predicated region body
PF: predicated region fallthrough
CT: control target
= control target key end

     0   :  { %s3314_s12 = smov 0   ;;  %s3316_s13 = smov 0   ;;  %s4120_s0 = inlined_call_operand.vmem [shape: bf16[2048,48], index: 0, kind: input, shape index: {}]   ;;  %s4121_s1 = inlined_call_operand.vmem [shape: bf16[48,64], index: 1, kind: input, shape index: {}]   ;;  %s4122_s2 = inlined_call_operand.vmem [shape: f32[1,64], index: 2, kind: input, shape index: {}]   ;;  %s4123_s3 = inlined_call_operand.vmem [shape: bf16[2048,64], index: 3, kind: output, shape index: {}]  }
   0x1   :  { %s3318_s14 = smov 0  }
   0x2 LB: > { %s25_s15 = sadd.s32 1, %s3288_s13  ;;  %p2576_p0 = scmp.ge.s32.totalorder %s3292_s14, 1  ;;  %s3292_s14 = sphi %s3318_s14, %s13_s14   ;;  %s3288_s13 = sphi %s3316_s13, %s4125_s13   ;;  %s3284_s12 = sphi %s3314_s12, %s4124_s12  }
   0x3   : > { %p27_p1 = scmp.ge.s32.totalorder %s25_s15, 2  ;;  %p169_p2 = scmp.lt.s32.totalorder %s3292_s14, 3 }
   0x5   : > { %s4127_s15 = smov (%p27_p1, %s25_s15), 0  ;;  %p170_p3 = pnand %p2576_p0, %p169_p2 }
   0x6   : > { %s2577_s18 = sshll.u32 (!%p170_p3), %s3284_s12, 7 }
   0x7   : > { %173 = sbr.rel (%p170_p3) target bundleno = 385 (0x181), region = 32  ;;  %p204_p4 = scmp.lt.s32.totalorder (!%p170_p3), %s2577_s18, 255 }
   0xc   : > { %v3202_v0 = vld [vmem:[%s4121_s1 + $0x10] sm:$0xff]   ;;  %v3203_v1 = vld [vmem:[%s4121_s1 + $0x8] sm:$0xff]   ;;  %s4129_s18 = smov (!%p204_p4, %s2577_s18), 255  ;;  %v3204_v2 = vld [vmem:[%s4121_s1] sm:$0xff]   ;;  %vm705_vm0 = vcmask 392192   ;;  %vm2339_vm3 = vcmask 519168  }
   0xd   : > { %3038 = vmatprep.subr.bf16.mxu0 %v3202_v0  ;;  %3172 = vmatprep.subr.bf16.mxu1 %v3202_v0  ;;  %s2578_s23 = sshll.u32 %s4129_s18, 2 }
   0xe   : > { %3039 = vmatpush3.bf16.msra.mxu0 %v3202_v0  ;;  %3175 = vmatpush3.bf16.msra.mxu1 %v3202_v0  ;;  %s3349_s26 = scalar_lea.vmem %s4120_s0, %s2578_s23  ;;  %s3493_s4 = scalar_lea.vmem %s4123_s3, %s2578_s23 }
   0xf   : > { %3040 = vmatprep.subr.bf16.mxu0 %v3203_v1  ;;  %3173 = vmatprep.subr.bf16.mxu1 %v3203_v1  ;;  %v3205_v3 = vld [vmem:[%s3349_s26] sm:$0xff]   ;;  %v3207_v5 = vld [vmem:[%s3349_s26 + $0x8] sm:$0xff]   ;;  %v3209_v7 = vld [vmem:[%s3349_s26 + $0x10] sm:$0xff]  }
  0x10   : > { %v3206_v4 = vld [vmem:[%s3349_s26 + $0x100] sm:$0xff]   ;;  %3044 = vmatprep.mubr.msk.bf16.mxu0 %vm705_vm0, %v3205_v3  ;;  %v3208_v6 = vld [vmem:[%s3349_s26 + $0x108] sm:$0xff]   ;;  %v3210_v8 = vld [vmem:[%s3349_s26 + $0x110] sm:$0xff]  }
  0x11   : > { %3108 = vmatprep.mubr.msk.bf16.mxu1 %vm705_vm0, %v3206_v4  ;;  %v3211_v9 = vld [vmem:[%s3349_s26 + $0x18] sm:$0xff]   ;;  %v3213_v11 = vld [vmem:[%s3349_s26 + $0x20] sm:$0xff]   ;;  %v3215_v13 = vld [vmem:[%s3349_s26 + $0x28] sm:$0xff]  }
  0x12   : > { %3041 = vmatpush3.bf16.msra.mxu0 %v3203_v1  ;;  %3176 = vmatpush3.bf16.msra.mxu1 %v3203_v1  ;;  %v3212_v10 = vld [vmem:[%s3349_s26 + $0x118] sm:$0xff]   ;;  %v3214_v12 = vld [vmem:[%s3349_s26 + $0x120] sm:$0xff]   ;;  %v3216_v14 = vld [vmem:[%s3349_s26 + $0x128] sm:$0xff]  }
  0x13   : > { %3042 = vmatprep.subr.bf16.mxu0 %v3204_v2  ;;  %3174 = vmatprep.subr.bf16.mxu1 %v3204_v2  ;;  %v3217_v15 = vld [vmem:[%s3349_s26 + $0x30] sm:$0xff]   ;;  %v3219_v17 = vld [vmem:[%s3349_s26 + $0x38] sm:$0xff]   ;;  %v3221_v19 = vld [vmem:[%s3349_s26 + $0x40] sm:$0xff]  }
  0x14   : > { %v3218_v16 = vld [vmem:[%s3349_s26 + $0x130] sm:$0xff]   ;;  %v3220_v18 = vld [vmem:[%s3349_s26 + $0x138] sm:$0xff]   ;;  %v3222_v20 = vld [vmem:[%s3349_s26 + $0x140] sm:$0xff]  }
  0x15   : > { %v3223_v21 = vld [vmem:[%s3349_s26 + $0x48] sm:$0xff]   ;;  %v3225_v23 = vld [vmem:[%s3349_s26 + $0x50] sm:$0xff]   ;;  %v3227_v25 = vld [vmem:[%s3349_s26 + $0x58] sm:$0xff]  }
  0x16   : > { %3043 = vmatpush3.bf16.msra.mxu0 %v3204_v2  ;;  %3177 = vmatpush3.bf16.msra.mxu1 %v3204_v2  ;;  %v3224_v22 = vld [vmem:[%s3349_s26 + $0x148] sm:$0xff]   ;;  %v3226_v24 = vld [vmem:[%s3349_s26 + $0x150] sm:$0xff]   ;;  %v3228_v26 = vld [vmem:[%s3349_s26 + $0x158] sm:$0xff]  }
  0x17   : > { %v3229_v27 = vld [vmem:[%s3349_s26 + $0x60] sm:$0xff]   ;;  %v3231_v29 = vld [vmem:[%s3349_s26 + $0x68] sm:$0xff]   ;;  %v3233_v31 = vld [vmem:[%s3349_s26 + $0x70] sm:$0xff]  }
  0x18   : > { %v3230_v28 = vld [vmem:[%s3349_s26 + $0x160] sm:$0xff]   ;;  %v3232_v30 = vld [vmem:[%s3349_s26 + $0x168] sm:$0xff]   ;;  %v3234_v32 = vld [vmem:[%s3349_s26 + $0x170] sm:$0xff]  }
  0x19   : > { %3045 = vmatmul.mubr.msk.bf16.vlgmr.msra.gmra.mxu0 %vm705_vm0, %v3207_v5  ;;  %3109 = vmatmul.mubr.msk.bf16.vlgmr.msra.gmra.mxu1 %vm705_vm0, %v3208_v6  ;;  %v3235_v33 = vld [vmem:[%s3349_s26 + $0x78] sm:$0xff]   ;;  %v3237_v35 = vld [vmem:[%s3349_s26 + $0x80] sm:$0xff]   ;;  %v3239_v37 = vld [vmem:[%s3349_s26 + $0x88] sm:$0xff]  }
  0x1a   : > { %3048 = vmatprep.mubr.msk.bf16.mxu0 %vm705_vm0, %v3209_v7  ;;  %3112 = vmatprep.mubr.msk.bf16.mxu1 %vm705_vm0, %v3210_v8  ;;  %v3236_v34 = vld [vmem:[%s3349_s26 + $0x178] sm:$0xff]   ;;  %v3238_v36 = vld [vmem:[%s3349_s26 + $0x180] sm:$0xff]   ;;  %v3240_v38 = vld [vmem:[%s3349_s26 + $0x188] sm:$0xff]  }
  0x1b   : > { %v3241_v39 = vld [vmem:[%s3349_s26 + $0x90] sm:$0xff]   ;;  %v3243_v41 = vld [vmem:[%s3349_s26 + $0x98] sm:$0xff]   ;;  %v3245_v43 = vld [vmem:[%s3349_s26 + $0xa0] sm:$0xff]  }
  0x1c   : > { %v3242_v40 = vld [vmem:[%s3349_s26 + $0x190] sm:$0xff]   ;;  %v3244_v42 = vld [vmem:[%s3349_s26 + $0x198] sm:$0xff]   ;;  %v3246_v44 = vld [vmem:[%s3349_s26 + $0x1a0] sm:$0xff]  }
  0x1d   : > { %v3247_v45 = vld [vmem:[%s3349_s26 + $0xa8] sm:$0xff]   ;;  %v3249_v47 = vld [vmem:[%s3349_s26 + $0xb0] sm:$0xff]   ;;  %v3251_v49 = vld [vmem:[%s3349_s26 + $0xb8] sm:$0xff]  }
  0x1e   : > { %v3248_v46 = vld [vmem:[%s3349_s26 + $0x1a8] sm:$0xff]   ;;  %v3250_v48 = vld [vmem:[%s3349_s26 + $0x1b0] sm:$0xff]   ;;  %v3252_v50 = vld [vmem:[%s3349_s26 + $0x1b8] sm:$0xff]  }
  0x1f   : > { %v3253_v51 = vld [vmem:[%s3349_s26 + $0xc0] sm:$0xff]   ;;  %v3255_v53 = vld [vmem:[%s3349_s26 + $0xc8] sm:$0xff]   ;;  %v3257_v55 = vld [vmem:[%s3349_s26 + $0xd0] sm:$0xff]  }
  0x20   : > { %v3254_v52 = vld [vmem:[%s3349_s26 + $0x1c0] sm:$0xff]   ;;  %v3256_v54 = vld [vmem:[%s3349_s26 + $0x1c8] sm:$0xff]   ;;  %v3258_v56 = vld [vmem:[%s3349_s26 + $0x1d0] sm:$0xff]  }
  0x21   : > { %3049 = vmatmul.mubr.msk.bf16.gmra.mxu0 %vm705_vm0, %v3211_v9  ;;  %3113 = vmatmul.mubr.msk.bf16.gmra.mxu1 %vm705_vm0, %v3212_v10  ;;  %v3259_v57 = vld [vmem:[%s3349_s26 + $0xd8] sm:$0xff]   ;;  %v3261_v59 = vld [vmem:[%s3349_s26 + $0xe0] sm:$0xff]   ;;  %v3263_v61 = vld [vmem:[%s3349_s26 + $0xe8] sm:$0xff]  }
  0x22   : > { %3052 = vmatprep.mubr.msk.bf16.mxu0 %vm705_vm0, %v3213_v11  ;;  %3116 = vmatprep.mubr.msk.bf16.mxu1 %vm705_vm0, %v3214_v12  ;;  %v3260_v58 = vld [vmem:[%s3349_s26 + $0x1d8] sm:$0xff]   ;;  %v3262_v60 = vld [vmem:[%s3349_s26 + $0x1e0] sm:$0xff]   ;;  %v3264_v62 = vld [vmem:[%s3349_s26 + $0x1e8] sm:$0xff]  }
  0x23   : > { %v3265_v63 = vld [vmem:[%s3349_s26 + $0xf0] sm:$0xff]   ;;  %v3267_v1 = vld [vmem:[%s3349_s26 + $0xf8] sm:$0xff]   ;;  %v3482_v3 = vld [vmem:[%s4122_s2] ss:$0 sm:$0xff] }
  0x24   : > { %v3266_v0 = vld [vmem:[%s3349_s26 + $0x1f0] sm:$0xff]   ;;  %v3268_v2 = vld [vmem:[%s3349_s26 + $0x1f8] sm:$0xff]  }
  0x29   : > { %3053 = vmatmul.mubr.msk.bf16.gmra.mxu0 %vm705_vm0, %v3215_v13  ;;  %3117 = vmatmul.mubr.msk.bf16.gmra.mxu1 %vm705_vm0, %v3216_v14 }
  0x2a   : > { %3056 = vmatprep.mubr.msk.bf16.mxu0 %vm705_vm0, %v3217_v15  ;;  %3120 = vmatprep.mubr.msk.bf16.mxu1 %vm705_vm0, %v3218_v16 }
  0x31   : > { %3057 = vmatmul.mubr.msk.bf16.gmra.mxu0 %vm705_vm0, %v3219_v17  ;;  %3121 = vmatmul.mubr.msk.bf16.gmra.mxu1 %vm705_vm0, %v3220_v18 }
  0x32   : > { %3060 = vmatprep.mubr.msk.bf16.mxu0 %vm705_vm0, %v3221_v19  ;;  %3124 = vmatprep.mubr.msk.bf16.mxu1 %vm705_vm0, %v3222_v20 }
  0x39   : > { %3061 = vmatmul.mubr.msk.bf16.gmra.mxu0 %vm705_vm0, %v3223_v21  ;;  %3125 = vmatmul.mubr.msk.bf16.gmra.mxu1 %vm705_vm0, %v3224_v22 }
  0x3a   : > { %3064 = vmatprep.mubr.msk.bf16.mxu0 %vm705_vm0, %v3225_v23  ;;  %3128 = vmatprep.mubr.msk.bf16.mxu1 %vm705_vm0, %v3226_v24 }
  0x41   : > { %3065 = vmatmul.mubr.msk.bf16.gmra.mxu0 %vm705_vm0, %v3227_v25  ;;  %3129 = vmatmul.mubr.msk.bf16.gmra.mxu1 %vm705_vm0, %v3228_v26 }
  0x42   : > { %3068 = vmatprep.mubr.msk.bf16.mxu0 %vm705_vm0, %v3229_v27  ;;  %3132 = vmatprep.mubr.msk.bf16.mxu1 %vm705_vm0, %v3230_v28 }
  0x49   : > { %3069 = vmatmul.mubr.msk.bf16.gmra.mxu0 %vm705_vm0, %v3231_v29  ;;  %3133 = vmatmul.mubr.msk.bf16.gmra.mxu1 %vm705_vm0, %v3232_v30 }
  0x4a   : > { %3072 = vmatprep.mubr.msk.bf16.mxu0 %vm705_vm0, %v3233_v31  ;;  %3136 = vmatprep.mubr.msk.bf16.mxu1 %vm705_vm0, %v3234_v32 }
  0x51   : > { %3073 = vmatmul.mubr.msk.bf16.gmra.mxu0 %vm705_vm0, %v3235_v33  ;;  %3137 = vmatmul.mubr.msk.bf16.gmra.mxu1 %vm705_vm0, %v3236_v34 }
  0x52   : > { %3076 = vmatprep.mubr.msk.bf16.mxu0 %vm705_vm0, %v3237_v35  ;;  %3140 = vmatprep.mubr.msk.bf16.mxu1 %vm705_vm0, %v3238_v36 }
  0x59   : > { %3077 = vmatmul.mubr.msk.bf16.gmra.mxu0 %vm705_vm0, %v3239_v37  ;;  %3141 = vmatmul.mubr.msk.bf16.gmra.mxu1 %vm705_vm0, %v3240_v38 }
  0x5a   : > { %3080 = vmatprep.mubr.msk.bf16.mxu0 %vm705_vm0, %v3241_v39  ;;  %3144 = vmatprep.mubr.msk.bf16.mxu1 %vm705_vm0, %v3242_v40 }
  0x61   : > { %3081 = vmatmul.mubr.msk.bf16.gmra.mxu0 %vm705_vm0, %v3243_v41  ;;  %3145 = vmatmul.mubr.msk.bf16.gmra.mxu1 %vm705_vm0, %v3244_v42 }
  0x62   : > { %3084 = vmatprep.mubr.msk.bf16.mxu0 %vm705_vm0, %v3245_v43  ;;  %3148 = vmatprep.mubr.msk.bf16.mxu1 %vm705_vm0, %v3246_v44 }
  0x69   : > { %3085 = vmatmul.mubr.msk.bf16.gmra.mxu0 %vm705_vm0, %v3247_v45  ;;  %3149 = vmatmul.mubr.msk.bf16.gmra.mxu1 %vm705_vm0, %v3248_v46 }
  0x6a   : > { %3088 = vmatprep.mubr.msk.bf16.mxu0 %vm705_vm0, %v3249_v47  ;;  %3152 = vmatprep.mubr.msk.bf16.mxu1 %vm705_vm0, %v3250_v48 }
  0x71   : > { %3089 = vmatmul.mubr.msk.bf16.gmra.mxu0 %vm705_vm0, %v3251_v49  ;;  %3153 = vmatmul.mubr.msk.bf16.gmra.mxu1 %vm705_vm0, %v3252_v50 }
  0x72   : > { %3092 = vmatprep.mubr.msk.bf16.mxu0 %vm705_vm0, %v3253_v51  ;;  %3156 = vmatprep.mubr.msk.bf16.mxu1 %vm705_vm0, %v3254_v52 }
  0x79   : > { %3093 = vmatmul.mubr.msk.bf16.gmra.mxu0 %vm705_vm0, %v3255_v53  ;;  %3157 = vmatmul.mubr.msk.bf16.gmra.mxu1 %vm705_vm0, %v3256_v54 }
  0x7a   : > { %3096 = vmatprep.mubr.msk.bf16.mxu0 %vm705_vm0, %v3257_v55  ;;  %3160 = vmatprep.mubr.msk.bf16.mxu1 %vm705_vm0, %v3258_v56 }
  0x81   : > { %3097 = vmatmul.mubr.msk.bf16.gmra.mxu0 %vm705_vm0, %v3259_v57  ;;  %3161 = vmatmul.mubr.msk.bf16.gmra.mxu1 %vm705_vm0, %v3260_v58 }
  0x82   : > { %3100 = vmatprep.mubr.msk.bf16.mxu0 %vm705_vm0, %v3261_v59  ;;  %3164 = vmatprep.mubr.msk.bf16.mxu1 %vm705_vm0, %v3262_v60 }
  0x89   : > { %3101 = vmatmul.mubr.msk.bf16.gmra.mxu0 %vm705_vm0, %v3263_v61  ;;  %3165 = vmatmul.mubr.msk.bf16.gmra.mxu1 %vm705_vm0, %v3264_v62 }
  0x8a   : > { %3104 = vmatprep.mubr.msk.bf16.mxu0 %vm705_vm0, %v3265_v63  ;;  %3168 = vmatprep.mubr.msk.bf16.mxu1 %vm705_vm0, %v3266_v0 }
  0x91   : > { %3105 = vmatmul.mubr.msk.bf16.gmra.mxu0 %vm705_vm0, %v3267_v1  ;;  %3169 = vmatmul.mubr.msk.bf16.gmra.mxu1 %vm705_vm0, %v3268_v2 }
  0xd9   : > { %v3046_v4 = vpop.f32.mrf.mxu0  ;;  %v3110_v5 = vpop.f32.mrf.mxu1 }
  0xda   : > { %v941_v6 = vadd.f32 %v3046_v4, %v3482_v3  ;;  %v1197_v7 = vadd.f32 %v3110_v5, %v3482_v3 }
  0xdb   : > { %v932_v8 = vpop.f32.mrf.mxu0  ;;  %v1188_v9 = vpop.f32.mrf.mxu1 }
  0xdc   : > { %vm1445_vm1 = vcmp.gt.f32.partialorder %v941_v6, 0.0  ;;  %v1573_v10 = vmul.f32 0.2, %v941_v6  ;;  %vm1509_vm2 = vcmp.gt.f32.partialorder %v1197_v7, 0.0  ;;  %v1637_v11 = vmul.f32 0.2, %v1197_v7 }
  0xdd   : > { %v933_v12 = vadd.f32 %v3482_v3, %v932_v8  ;;  %v1189_v13 = vadd.f32 %v3482_v3, %v1188_v9  ;;  %v3047_v14 = vpop.f32.mrf.mxu0  ;;  %v3111_v15 = vpop.f32.mrf.mxu1 }
  0xde   : > { %v1701_v16 = vsel %vm1445_vm1, %v941_v6, %v1573_v10  ;;  %v1765_v17 = vsel %vm1509_vm2, %v1197_v7, %v1637_v11  ;;  %v944_v18 = vadd.f32 %v3047_v14, %v3482_v3  ;;  %v1200_v19 = vadd.f32 %v3111_v15, %v3482_v3 }
  0xdf   : > { %v2845_v20 = vpack.c.bf16 %v1701_v16, %v1701_v16  ;;  %v2909_v21 = vpack.c.bf16 %v1765_v17, %v1765_v17  ;;  %vm1443_vm4 = vcmp.gt.f32.partialorder %v933_v12, 0.0  ;;  %v1571_v22 = vmul.f32 0.2, %v933_v12  ;;  %v935_v23 = vpop.f32.mrf.mxu0  ;;  %v1191_v24 = vpop.f32.mrf.mxu1 }
  0xe0   : > { %vm1507_vm5 = vcmp.gt.f32.partialorder %v1189_v13, 0.0  ;;  %v1635_v25 = vmul.f32 0.2, %v1189_v13  ;;  %vm1446_vm6 = vcmp.gt.f32.partialorder %v944_v18, 0.0  ;;  %v1574_v26 = vmul.f32 0.2, %v944_v18 }
  0xe1   : > { %2342 = vst.msk [vmem:[%s3493_s4 + $0x8] sm:$0xf] %vm2339_vm3, %v2845_v20  ;;  %2406 = vst.msk [vmem:[%s3493_s4 + $0x108] sm:$0xf] %vm2339_vm3, %v2909_v21  ;;  %v1699_v27 = vsel %vm1443_vm4, %v933_v12, %v1571_v22  ;;  %vm1510_vm7 = vcmp.gt.f32.partialorder %v1200_v19, 0.0  ;;  %v936_v29 = vadd.f32 %v3482_v3, %v935_v23  ;;  %v3050_v30 = vpop.f32.mrf.mxu0  ;;  %v3114_v31 = vpop.f32.mrf.mxu1  ;;  %v1192_v35 = vadd.f32 %v3482_v3, %v1191_v24 }
  0xe2   : > { %v1638_v28 = vmul.f32 0.2, %v1200_v19  ;;  %v2843_v32 = vpack.c.bf16 %v1699_v27, %v1699_v27  ;;  %v1763_v33 = vsel %vm1507_vm5, %v1189_v13, %v1635_v25  ;;  %v1702_v34 = vsel %vm1446_vm6, %v944_v18, %v1574_v26 }
  0xe3   : > { %v2907_v36 = vpack.c.bf16 %v1763_v33, %v1763_v33  ;;  %v2846_v37 = vpack.c.bf16 %v1702_v34, %v1702_v34  ;;  %vm1444_vm8 = vcmp.gt.f32.partialorder %v936_v29, 0.0  ;;  %v948_v39 = vpop.f32.mrf.mxu0  ;;  %v1204_v40 = vpop.f32.mrf.mxu1  ;;  %v1572_v42 = vmul.f32 0.2, %v936_v29 }
  0xe4   : > { %v1766_v38 = vsel %vm1510_vm7, %v1200_v19, %v1638_v28  ;;  %2340 = vst.msk [vmem:[%s3493_s4] sm:$0xf] %vm2339_vm3, %v2843_v32  ;;  %vm1508_vm9 = vcmp.gt.f32.partialorder %v1192_v35, 0.0  ;;  %v1636_v43 = vmul.f32 0.2, %v1192_v35  ;;  %v957_v44 = vadd.f32 %v3050_v30, %v3482_v3 }
  0xe5   : > { %v2910_v41 = vpack.c.bf16 %v1766_v38, %v1766_v38  ;;  %2404 = vst.msk [vmem:[%s3493_s4 + $0x100] sm:$0xf] %vm2339_vm3, %v2907_v36  ;;  %2343 = vst.msk [vmem:[%s3493_s4 + $0xc] sm:$0xf] %vm2339_vm3, %v2846_v37  ;;  %v1213_v45 = vadd.f32 %v3114_v31, %v3482_v3  ;;  %v949_v46 = vadd.f32 %v3482_v3, %v948_v39  ;;  %v3051_v48 = vpop.f32.mrf.mxu0  ;;  %v3115_v49 = vpop.f32.mrf.mxu1 }
  0xe6   : > { %v1205_v47 = vadd.f32 %v3482_v3, %v1204_v40  ;;  %v1700_v50 = vsel %vm1444_vm8, %v936_v29, %v1572_v42  ;;  %v1764_v51 = vsel %vm1508_vm9, %v1192_v35, %v1636_v43  ;;  %v960_v52 = vadd.f32 %v3051_v48, %v3482_v3 }
  0xe7   : > { %2407 = vst.msk [vmem:[%s3493_s4 + $0x10c] sm:$0xf] %vm2339_vm3, %v2910_v41  ;;  %v1216_v53 = vadd.f32 %v3115_v49, %v3482_v3  ;;  %v2844_v54 = vpack.c.bf16 %v1700_v50, %v1700_v50  ;;  %v2908_v55 = vpack.c.bf16 %v1764_v51, %v1764_v51  ;;  %vm1449_vm10 = vcmp.gt.f32.partialorder %v957_v44, 0.0  ;;  %v951_v57 = vpop.f32.mrf.mxu0  ;;  %v1207_v58 = vpop.f32.mrf.mxu1 }
  0xe8   : > { %v1577_v56 = vmul.f32 0.2, %v957_v44  ;;  %vm1513_vm11 = vcmp.gt.f32.partialorder %v1213_v45, 0.0  ;;  %v1641_v59 = vmul.f32 0.2, %v1213_v45  ;;  %vm1447_vm12 = vcmp.gt.f32.partialorder %v949_v46, 0.0 }
  0xe9   : > { %v1575_v60 = vmul.f32 0.2, %v949_v46  ;;  %2341 = vst.msk [vmem:[%s3493_s4 + $0x4] sm:$0xf] %vm2339_vm3, %v2844_v54  ;;  %2405 = vst.msk [vmem:[%s3493_s4 + $0x104] sm:$0xf] %vm2339_vm3, %v2908_v55  ;;  %v3054_v63 = vpop.f32.mrf.mxu0  ;;  %v3118_v0 = vpop.f32.mrf.mxu1  ;;  %v952_v14 = vadd.f32 %v3482_v3, %v951_v57  ;;  %v1208_v16 = vadd.f32 %v3482_v3, %v1207_v58 }
  0xea   : > { %v1705_v61 = vsel %vm1449_vm10, %v957_v44, %v1577_v56  ;;  %vm1511_vm13 = vcmp.gt.f32.partialorder %v1205_v47, 0.0  ;;  %v1639_v62 = vmul.f32 0.2, %v1205_v47  ;;  %vm1450_vm14 = vcmp.gt.f32.partialorder %v960_v52, 0.0 }
  0xeb   : > { %v2849_v1 = vpack.c.bf16 %v1705_v61, %v1705_v61  ;;  %v1769_v2 = vsel %vm1513_vm11, %v1213_v45, %v1641_v59  ;;  %v1703_v4 = vsel %vm1447_vm12, %v949_v46, %v1575_v60  ;;  %v1578_v5 = vmul.f32 0.2, %v960_v52  ;;  %v964_v9 = vpop.f32.mrf.mxu0  ;;  %v1220_v10 = vpop.f32.mrf.mxu1 }
  0xec   : > { %v2913_v6 = vpack.c.bf16 %v1769_v2, %v1769_v2  ;;  %v2847_v7 = vpack.c.bf16 %v1703_v4, %v1703_v4  ;;  %v1767_v8 = vsel %vm1511_vm13, %v1205_v47, %v1639_v62  ;;  %vm1514_vm15 = vcmp.gt.f32.partialorder %v1216_v53, 0.0 }
  0xed   : > { %2346 = vst.msk [vmem:[%s3493_s4 + $0x18] sm:$0xf] %vm2339_vm3, %v2849_v1  ;;  %v2911_v11 = vpack.c.bf16 %v1767_v8, %v1767_v8  ;;  %v1706_v12 = vsel %vm1450_vm14, %v960_v52, %v1578_v5  ;;  %v1642_v13 = vmul.f32 0.2, %v1216_v53  ;;  %v973_v17 = vadd.f32 %v3054_v63, %v3482_v3  ;;  %v3055_v19 = vpop.f32.mrf.mxu0  ;;  %v3119_v20 = vpop.f32.mrf.mxu1 }
  0xee   : > { %2410 = vst.msk [vmem:[%s3493_s4 + $0x118] sm:$0xf] %vm2339_vm3, %v2913_v6  ;;  %2344 = vst.msk [vmem:[%s3493_s4 + $0x10] sm:$0xf] %vm2339_vm3, %v2847_v7  ;;  %v2850_v15 = vpack.c.bf16 %v1706_v12, %v1706_v12  ;;  %v1229_v18 = vadd.f32 %v3118_v0, %v3482_v3  ;;  %vm1448_vm0 = vcmp.gt.f32.partialorder %v952_v14, 0.0  ;;  %v965_v23 = vadd.f32 %v3482_v3, %v964_v9 }
  0xef   : > { %2408 = vst.msk [vmem:[%s3493_s4 + $0x110] sm:$0xf] %vm2339_vm3, %v2911_v11  ;;  %v1770_v21 = vsel %vm1514_vm15, %v1216_v53, %v1642_v13  ;;  %v1576_v22 = vmul.f32 0.2, %v952_v14  ;;  %vm1512_vm1 = vcmp.gt.f32.partialorder %v1208_v16, 0.0  ;;  %vm1453_vm2 = vcmp.gt.f32.partialorder %v973_v17, 0.0  ;;  %v967_v26 = vpop.f32.mrf.mxu0  ;;  %v1223_v27 = vpop.f32.mrf.mxu1 }
  0xf0   : > { %2347 = vst.msk [vmem:[%s3493_s4 + $0x1c] sm:$0xf] %vm2339_vm3, %v2850_v15  ;;  %v2914_v24 = vpack.c.bf16 %v1770_v21, %v1770_v21  ;;  %v1640_v25 = vmul.f32 0.2, %v1208_v16  ;;  %v1581_v29 = vmul.f32 0.2, %v973_v17  ;;  %v1221_v39 = vadd.f32 %v3482_v3, %v1220_v10 }
  0xf1   : > { %v1704_v28 = vsel %vm1448_vm0, %v952_v14, %v1576_v22  ;;  %vm1517_vm4 = vcmp.gt.f32.partialorder %v1229_v18, 0.0  ;;  %v1645_v30 = vmul.f32 0.2, %v1229_v18  ;;  %vm1451_vm5 = vcmp.gt.f32.partialorder %v965_v23, 0.0  ;;  %v3058_v34 = vpop.f32.mrf.mxu0  ;;  %v3122_v35 = vpop.f32.mrf.mxu1 }
  0xf2   : > { %2411 = vst.msk [vmem:[%s3493_s4 + $0x11c] sm:$0xf] %vm2339_vm3, %v2914_v24  ;;  %v2848_v31 = vpack.c.bf16 %v1704_v28, %v1704_v28  ;;  %v1768_v32 = vsel %vm1512_vm1, %v1208_v16, %v1640_v25  ;;  %v1579_v33 = vmul.f32 0.2, %v965_v23  ;;  %v1709_v37 = vsel %vm1453_vm2, %v973_v17, %v1581_v29 }
  0xf3   : > { %v2912_v36 = vpack.c.bf16 %v1768_v32, %v1768_v32  ;;  %v1773_v38 = vsel %vm1517_vm4, %v1229_v18, %v1645_v30  ;;  %v2853_v40 = vpack.c.bf16 %v1709_v37, %v1709_v37  ;;  %v976_v43 = vadd.f32 %v3055_v19, %v3482_v3  ;;  %v980_v44 = vpop.f32.mrf.mxu0  ;;  %v1236_v45 = vpop.f32.mrf.mxu1 }
  0xf4   : > { %2345 = vst.msk [vmem:[%s3493_s4 + $0x14] sm:$0xf] %vm2339_vm3, %v2848_v31  ;;  %v2917_v41 = vpack.c.bf16 %v1773_v38, %v1773_v38  ;;  %v1707_v42 = vsel %vm1451_vm5, %v965_v23, %v1579_v33  ;;  %vm1515_vm6 = vcmp.gt.f32.partialorder %v1221_v39, 0.0  ;;  %v1643_v47 = vmul.f32 0.2, %v1221_v39 }
  0xf5   : > { %2409 = vst.msk [vmem:[%s3493_s4 + $0x114] sm:$0xf] %vm2339_vm3, %v2912_v36  ;;  %v2851_v46 = vpack.c.bf16 %v1707_v42, %v1707_v42  ;;  %v1232_v48 = vadd.f32 %v3119_v20, %v3482_v3  ;;  %2350 = vst.msk [vmem:[%s3493_s4 + $0x28] sm:$0xf] %vm2339_vm3, %v2853_v40  ;;  %vm1454_vm7 = vcmp.gt.f32.partialorder %v976_v43, 0.0  ;;  %v968_v50 = vadd.f32 %v3482_v3, %v967_v26  ;;  %v3059_v52 = vpop.f32.mrf.mxu0  ;;  %v3123_v53 = vpop.f32.mrf.mxu1 }
  0xf6   : > { %2414 = vst.msk [vmem:[%s3493_s4 + $0x128] sm:$0xf] %vm2339_vm3, %v2917_v41  ;;  %v1582_v49 = vmul.f32 0.2, %v976_v43  ;;  %v1224_v51 = vadd.f32 %v3482_v3, %v1223_v27  ;;  %v1771_v54 = vsel %vm1515_vm6, %v1221_v39, %v1643_v47  ;;  %v989_v56 = vadd.f32 %v3058_v34, %v3482_v3 }
  0xf7   : > { %2348 = vst.msk [vmem:[%s3493_s4 + $0x20] sm:$0xf] %vm2339_vm3, %v2851_v46  ;;  %vm1518_vm8 = vcmp.gt.f32.partialorder %v1232_v48, 0.0  ;;  %v1646_v55 = vmul.f32 0.2, %v1232_v48  ;;  %v2915_v57 = vpack.c.bf16 %v1771_v54, %v1771_v54  ;;  %vm1452_vm9 = vcmp.gt.f32.partialorder %v968_v50, 0.0  ;;  %v983_v60 = vpop.f32.mrf.mxu0  ;;  %v1239_v61 = vpop.f32.mrf.mxu1 }
  0xf8   : > { %v1710_v58 = vsel %vm1454_vm7, %v976_v43, %v1582_v49  ;;  %v1580_v59 = vmul.f32 0.2, %v968_v50  ;;  %vm1516_vm10 = vcmp.gt.f32.partialorder %v1224_v51, 0.0  ;;  %v1644_v0 = vmul.f32 0.2, %v1224_v51 }
  0xf9   : > { %v2854_v62 = vpack.c.bf16 %v1710_v58, %v1710_v58  ;;  %v1774_v63 = vsel %vm1518_vm8, %v1232_v48, %v1646_v55  ;;  %2412 = vst.msk [vmem:[%s3493_s4 + $0x120] sm:$0xf] %vm2339_vm3, %v2915_v57  ;;  %vm1457_vm11 = vcmp.gt.f32.partialorder %v989_v56, 0.0  ;;  %v1585_v4 = vmul.f32 0.2, %v989_v56  ;;  %v3062_v5 = vpop.f32.mrf.mxu0  ;;  %v3126_v6 = vpop.f32.mrf.mxu1 }
  0xfa   : > { %v2918_v1 = vpack.c.bf16 %v1774_v63, %v1774_v63  ;;  %v1708_v2 = vsel %vm1452_vm9, %v968_v50, %v1580_v59  ;;  %v1772_v8 = vsel %vm1516_vm10, %v1224_v51, %v1644_v0  ;;  %v1245_v9 = vadd.f32 %v3122_v35, %v3482_v3 }
  0xfb   : > { %2351 = vst.msk [vmem:[%s3493_s4 + $0x2c] sm:$0xf] %vm2339_vm3, %v2854_v62  ;;  %v2852_v7 = vpack.c.bf16 %v1708_v2, %v1708_v2  ;;  %v981_v10 = vadd.f32 %v3482_v3, %v980_v44  ;;  %v2916_v11 = vpack.c.bf16 %v1772_v8, %v1772_v8  ;;  %v1713_v12 = vsel %vm1457_vm11, %v989_v56, %v1585_v4  ;;  %v996_v15 = vpop.f32.mrf.mxu0  ;;  %v1252_v16 = vpop.f32.mrf.mxu1 }
  0xfc   : > { %2415 = vst.msk [vmem:[%s3493_s4 + $0x12c] sm:$0xf] %vm2339_vm3, %v2918_v1  ;;  %v1237_v13 = vadd.f32 %v3482_v3, %v1236_v45  ;;  %v992_v14 = vadd.f32 %v3059_v52, %v3482_v3  ;;  %v2857_v17 = vpack.c.bf16 %v1713_v12, %v1713_v12  ;;  %vm1521_vm12 = vcmp.gt.f32.partialorder %v1245_v9, 0.0 }
  0xfd   : > { %2349 = vst.msk [vmem:[%s3493_s4 + $0x24] sm:$0xf] %vm2339_vm3, %v2852_v7  ;;  %v1649_v18 = vmul.f32 0.2, %v1245_v9  ;;  %vm1455_vm13 = vcmp.gt.f32.partialorder %v981_v10, 0.0  ;;  %v3063_v21 = vpop.f32.mrf.mxu0  ;;  %v3127_v22 = vpop.f32.mrf.mxu1  ;;  %v1248_v25 = vadd.f32 %v3123_v53, %v3482_v3  ;;  %v984_v26 = vadd.f32 %v3482_v3, %v983_v60 }
  0xfe   : > { %2413 = vst.msk [vmem:[%s3493_s4 + $0x124] sm:$0xf] %vm2339_vm3, %v2916_v11  ;;  %v1583_v19 = vmul.f32 0.2, %v981_v10  ;;  %vm1519_vm14 = vcmp.gt.f32.partialorder %v1237_v13, 0.0  ;;  %vm1458_vm15 = vcmp.gt.f32.partialorder %v992_v14, 0.0  ;;  %v1240_v30 = vadd.f32 %v3482_v3, %v1239_v61 }
  0xff   : > { %v1647_v20 = vmul.f32 0.2, %v1237_v13  ;;  %2354 = vst.msk [vmem:[%s3493_s4 + $0x38] sm:$0xf] %vm2339_vm3, %v2857_v17  ;;  %v1777_v23 = vsel %vm1521_vm12, %v1245_v9, %v1649_v18  ;;  %v1586_v24 = vmul.f32 0.2, %v992_v14  ;;  %v3575_v31 = vpop.f32.mrf.mxu0  ;;  %v3577_v32 = vpop.f32.mrf.mxu1  ;;  %v1005_v42 = vadd.f32 %v3062_v5, %v3482_v3 }
 0x100   : > { %v2921_v27 = vpack.c.bf16 %v1777_v23, %v1777_v23  ;;  %v1711_v28 = vsel %vm1455_vm13, %v981_v10, %v1583_v19  ;;  %vm1522_vm0 = vcmp.gt.f32.partialorder %v1248_v25, 0.0  ;;  %v1650_v37 = vmul.f32 0.2, %v1248_v25 }
 0x101   : > { %v1775_v29 = vsel %vm1519_vm14, %v1237_v13, %v1647_v20  ;;  %v2855_v33 = vpack.c.bf16 %v1711_v28, %v1711_v28  ;;  %v1714_v35 = vsel %vm1458_vm15, %v992_v14, %v1586_v24  ;;  %vm1456_vm1 = vcmp.gt.f32.partialorder %v984_v26, 0.0  ;;  %v3066_v39 = vpop.f32.mrf.mxu0  ;;  %v3130_v40 = vpop.f32.mrf.mxu1 }
 0x102   : > { %v2919_v34 = vpack.c.bf16 %v1775_v29, %v1775_v29  ;;  %2418 = vst.msk [vmem:[%s3493_s4 + $0x138] sm:$0xf] %vm2339_vm3, %v2921_v27  ;;  %v2858_v36 = vpack.c.bf16 %v1714_v35, %v1714_v35  ;;  %v1584_v38 = vmul.f32 0.2, %v984_v26  ;;  %vm1520_vm2 = vcmp.gt.f32.partialorder %v1240_v30, 0.0 }
 0x103   : > { %2352 = vst.msk [vmem:[%s3493_s4 + $0x30] sm:$0xf] %vm2339_vm3, %v2855_v33  ;;  %v1648_v41 = vmul.f32 0.2, %v1240_v30  ;;  %v1261_v43 = vadd.f32 %v3126_v6, %v3482_v3  ;;  %v1778_v44 = vsel %vm1522_vm0, %v1248_v25, %v1650_v37  ;;  %v997_v46 = vadd.f32 %v3482_v3, %v996_v15  ;;  %v1012_v48 = vpop.f32.mrf.mxu0  ;;  %v3592_v49 = vpop.f32.mrf.mxu1 }
 0x104   : > { %2416 = vst.msk [vmem:[%s3493_s4 + $0x130] sm:$0xf] %vm2339_vm3, %v2919_v34  ;;  %2355 = vst.msk [vmem:[%s3493_s4 + $0x3c] sm:$0xf] %vm2339_vm3, %v2858_v36  ;;  %v1712_v45 = vsel %vm1456_vm1, %v984_v26, %v1584_v38  ;;  %v1253_v47 = vadd.f32 %v3482_v3, %v1252_v16  ;;  %v2922_v50 = vpack.c.bf16 %v1778_v44, %v1778_v44  ;;  %vm1461_vm4 = vcmp.gt.f32.partialorder %v1005_v42, 0.0 }
 0x105   : > { %v2856_v51 = vpack.c.bf16 %v1712_v45, %v1712_v45  ;;  %v1776_v52 = vsel %vm1520_vm2, %v1240_v30, %v1648_v41  ;;  %v1589_v54 = vmul.f32 0.2, %v1005_v42  ;;  %vm1525_vm5 = vcmp.gt.f32.partialorder %v1261_v43, 0.0  ;;  %v3594_v56 = vpop.f32.mrf.mxu0  ;;  %v3596_v57 = vpop.f32.mrf.mxu1 }
 0x106   : > { %v2920_v53 = vpack.c.bf16 %v1776_v52, %v1776_v52  ;;  %v1653_v55 = vmul.f32 0.2, %v1261_v43  ;;  %2419 = vst.msk [vmem:[%s3493_s4 + $0x13c] sm:$0xf] %vm2339_vm3, %v2922_v50  ;;  %vm1459_vm6 = vcmp.gt.f32.partialorder %v997_v46, 0.0  ;;  %vm1523_vm7 = vcmp.gt.f32.partialorder %v1253_v47, 0.0 }
 0x107   : > { %2353 = vst.msk [vmem:[%s3493_s4 + $0x34] sm:$0xf] %vm2339_vm3, %v2856_v51  ;;  %v1587_v58 = vmul.f32 0.2, %v997_v46  ;;  %v1651_v59 = vmul.f32 0.2, %v1253_v47  ;;  %v1717_v60 = vsel %vm1461_vm4, %v1005_v42, %v1589_v54  ;;  %v1008_v62 = vadd.f32 %v3063_v21, %v3482_v3  ;;  %v3606_v0 = vpop.f32.mrf.mxu0  ;;  %v3608_v1 = vpop.f32.mrf.mxu1 }
 0x108   : > { %2417 = vst.msk [vmem:[%s3493_s4 + $0x134] sm:$0xf] %vm2339_vm3, %v2920_v53  ;;  %v1781_v61 = vsel %vm1525_vm5, %v1261_v43, %v1653_v55  ;;  %v1264_v63 = vadd.f32 %v3127_v22, %v3482_v3  ;;  %v2861_v2 = vpack.c.bf16 %v1717_v60, %v1717_v60  ;;  %v1000_v13 = vadd.f32 %v3482_v3, %v3575_v31 }
 0x109   : > { %v2925_v4 = vpack.c.bf16 %v1781_v61, %v1781_v61  ;;  %v1715_v5 = vsel %vm1459_vm6, %v997_v46, %v1587_v58  ;;  %v1779_v6 = vsel %vm1523_vm7, %v1253_v47, %v1651_v59  ;;  %vm1462_vm8 = vcmp.gt.f32.partialorder %v1008_v62, 0.0  ;;  %v3610_v10 = vpop.f32.mrf.mxu0  ;;  %v3612_v11 = vpop.f32.mrf.mxu1 }
 0x10a   : > { %v2859_v7 = vpack.c.bf16 %v1715_v5, %v1715_v5  ;;  %v2923_v8 = vpack.c.bf16 %v1779_v6, %v1779_v6  ;;  %v1590_v9 = vmul.f32 0.2, %v1008_v62  ;;  %2358 = vst.msk [vmem:[%s3493_s4 + $0x48] sm:$0xf] %vm2339_vm3, %v2861_v2  ;;  %vm1526_vm9 = vcmp.gt.f32.partialorder %v1264_v63, 0.0 }
 0x10b   : > { %2422 = vst.msk [vmem:[%s3493_s4 + $0x148] sm:$0xf] %vm2339_vm3, %v2925_v4  ;;  %v1654_v12 = vmul.f32 0.2, %v1264_v63  ;;  %v1256_v14 = vadd.f32 %v3482_v3, %v3577_v32  ;;  %v1021_v16 = vadd.f32 %v3066_v39, %v3482_v3  ;;  %v1277_v17 = vadd.f32 %v3130_v40, %v3482_v3  ;;  %v3629_v19 = vpop.f32.mrf.mxu0  ;;  %v3631_v20 = vpop.f32.mrf.mxu1 }
 0x10c   : > { %2356 = vst.msk [vmem:[%s3493_s4 + $0x40] sm:$0xf] %vm2339_vm3, %v2859_v7  ;;  %2420 = vst.msk [vmem:[%s3493_s4 + $0x140] sm:$0xf] %vm2339_vm3, %v2923_v8  ;;  %v1718_v15 = vsel %vm1462_vm8, %v1008_v62, %v1590_v9  ;;  %v1013_v18 = vadd.f32 %v3482_v3, %v1012_v48  ;;  %vm1460_vm10 = vcmp.gt.f32.partialorder %v1000_v13, 0.0  ;;  %v1269_v39 = vadd.f32 %v3482_v3, %v3592_v49 }
 0x10d   : > { %v2862_v21 = vpack.c.bf16 %v1718_v15, %v1718_v15  ;;  %v1782_v22 = vsel %vm1526_vm9, %v1264_v63, %v1654_v12  ;;  %v1588_v23 = vmul.f32 0.2, %v1000_v13  ;;  %vm1524_vm11 = vcmp.gt.f32.partialorder %v1256_v14, 0.0  ;;  %v3633_v26 = vpop.f32.mrf.mxu0  ;;  %v3635_v27 = vpop.f32.mrf.mxu1 }
 0x10e   : > { %v2926_v24 = vpack.c.bf16 %v1782_v22, %v1782_v22  ;;  %v1652_v25 = vmul.f32 0.2, %v1256_v14  ;;  %vm1465_vm12 = vcmp.gt.f32.partialorder %v1021_v16, 0.0  ;;  %v1593_v29 = vmul.f32 0.2, %v1021_v16 }
 0x10f   : > { %2359 = vst.msk [vmem:[%s3493_s4 + $0x4c] sm:$0xf] %vm2339_vm3, %v2862_v21  ;;  %v1716_v28 = vsel %vm1460_vm10, %v1000_v13, %v1588_v23  ;;  %vm1529_vm13 = vcmp.gt.f32.partialorder %v1277_v17, 0.0  ;;  %v1657_v30 = vmul.f32 0.2, %v1277_v17  ;;  %vm1463_vm14 = vcmp.gt.f32.partialorder %v1013_v18, 0.0  ;;  %v3641_v34 = vpop.f32.mrf.mxu0  ;;  %v3643_v35 = vpop.f32.mrf.mxu1 }
 0x110   : > { %2423 = vst.msk [vmem:[%s3493_s4 + $0x14c] sm:$0xf] %vm2339_vm3, %v2926_v24  ;;  %v2860_v31 = vpack.c.bf16 %v1716_v28, %v1716_v28  ;;  %v1780_v32 = vsel %vm1524_vm11, %v1256_v14, %v1652_v25  ;;  %v1591_v33 = vmul.f32 0.2, %v1013_v18  ;;  %v1721_v37 = vsel %vm1465_vm12, %v1021_v16, %v1593_v29 }
 0x111   : > { %v2924_v36 = vpack.c.bf16 %v1780_v32, %v1780_v32  ;;  %v1785_v38 = vsel %vm1529_vm13, %v1277_v17, %v1657_v30  ;;  %v2865_v40 = vpack.c.bf16 %v1721_v37, %v1721_v37  ;;  %v1024_v43 = vadd.f32 %v3594_v56, %v3482_v3  ;;  %v3652_v44 = vpop.f32.mrf.mxu0  ;;  %v3654_v45 = vpop.f32.mrf.mxu1 }
 0x112   : > { %2357 = vst.msk [vmem:[%s3493_s4 + $0x44] sm:$0xf] %vm2339_vm3, %v2860_v31  ;;  %v2929_v41 = vpack.c.bf16 %v1785_v38, %v1785_v38  ;;  %v1719_v42 = vsel %vm1463_vm14, %v1013_v18, %v1591_v33  ;;  %vm1527_vm15 = vcmp.gt.f32.partialorder %v1269_v39, 0.0  ;;  %v1655_v47 = vmul.f32 0.2, %v1269_v39 }
 0x113   : > { %2421 = vst.msk [vmem:[%s3493_s4 + $0x144] sm:$0xf] %vm2339_vm3, %v2924_v36  ;;  %v2863_v46 = vpack.c.bf16 %v1719_v42, %v1719_v42  ;;  %v1280_v48 = vadd.f32 %v3596_v57, %v3482_v3  ;;  %2362 = vst.msk [vmem:[%s3493_s4 + $0x58] sm:$0xf] %vm2339_vm3, %v2865_v40  ;;  %vm1466_vm0 = vcmp.gt.f32.partialorder %v1024_v43, 0.0  ;;  %v1016_v50 = vadd.f32 %v3482_v3, %v3606_v0  ;;  %v3668_v52 = vpop.f32.mrf.mxu0  ;;  %v3670_v53 = vpop.f32.mrf.mxu1 }
 0x114   : > { %2426 = vst.msk [vmem:[%s3493_s4 + $0x158] sm:$0xf] %vm2339_vm3, %v2929_v41  ;;  %v1594_v49 = vmul.f32 0.2, %v1024_v43  ;;  %v1272_v51 = vadd.f32 %v3482_v3, %v3608_v1  ;;  %v1783_v54 = vsel %vm1527_vm15, %v1269_v39, %v1655_v47  ;;  %v1037_v56 = vadd.f32 %v3610_v10, %v3482_v3 }
 0x115   : > { %2360 = vst.msk [vmem:[%s3493_s4 + $0x50] sm:$0xf] %vm2339_vm3, %v2863_v46  ;;  %vm1530_vm1 = vcmp.gt.f32.partialorder %v1280_v48, 0.0  ;;  %v1658_v55 = vmul.f32 0.2, %v1280_v48  ;;  %v2927_v57 = vpack.c.bf16 %v1783_v54, %v1783_v54  ;;  %vm1464_vm2 = vcmp.gt.f32.partialorder %v1016_v50, 0.0  ;;  %v3676_v60 = vpop.f32.mrf.mxu0  ;;  %v3678_v61 = vpop.f32.mrf.mxu1 }
 0x116   : > { %v1722_v58 = vsel %vm1466_vm0, %v1024_v43, %v1594_v49  ;;  %v1592_v59 = vmul.f32 0.2, %v1016_v50  ;;  %vm1528_vm4 = vcmp.gt.f32.partialorder %v1272_v51, 0.0  ;;  %v1656_v0 = vmul.f32 0.2, %v1272_v51 }
 0x117   : > { %v2866_v62 = vpack.c.bf16 %v1722_v58, %v1722_v58  ;;  %v1786_v63 = vsel %vm1530_vm1, %v1280_v48, %v1658_v55  ;;  %2424 = vst.msk [vmem:[%s3493_s4 + $0x150] sm:$0xf] %vm2339_vm3, %v2927_v57  ;;  %vm1469_vm5 = vcmp.gt.f32.partialorder %v1037_v56, 0.0  ;;  %v1597_v4 = vmul.f32 0.2, %v1037_v56  ;;  %v3682_v5 = vpop.f32.mrf.mxu0  ;;  %v3684_v6 = vpop.f32.mrf.mxu1 }
 0x118   : > { %v2930_v1 = vpack.c.bf16 %v1786_v63, %v1786_v63  ;;  %v1720_v2 = vsel %vm1464_vm2, %v1016_v50, %v1592_v59  ;;  %v1784_v8 = vsel %vm1528_vm4, %v1272_v51, %v1656_v0  ;;  %v1293_v9 = vadd.f32 %v3612_v11, %v3482_v3 }
 0x119   : > { %2363 = vst.msk [vmem:[%s3493_s4 + $0x5c] sm:$0xf] %vm2339_vm3, %v2866_v62  ;;  %v2864_v7 = vpack.c.bf16 %v1720_v2, %v1720_v2  ;;  %v1029_v10 = vadd.f32 %v3482_v3, %v3629_v19  ;;  %v2928_v12 = vpack.c.bf16 %v1784_v8, %v1784_v8  ;;  %v1725_v13 = vsel %vm1469_vm5, %v1037_v56, %v1597_v4  ;;  %v3698_v16 = vpop.f32.mrf.mxu0  ;;  %v3700_v17 = vpop.f32.mrf.mxu1 }
 0x11a   : > { %2427 = vst.msk [vmem:[%s3493_s4 + $0x15c] sm:$0xf] %vm2339_vm3, %v2930_v1  ;;  %v1285_v14 = vadd.f32 %v3482_v3, %v3631_v20  ;;  %v1040_v15 = vadd.f32 %v3633_v26, %v3482_v3  ;;  %v2869_v11 = vpack.c.bf16 %v1725_v13, %v1725_v13  ;;  %vm1533_vm6 = vcmp.gt.f32.partialorder %v1293_v9, 0.0 }
 0x11b   : > { %2361 = vst.msk [vmem:[%s3493_s4 + $0x54] sm:$0xf] %vm2339_vm3, %v2864_v7  ;;  %v1661_v18 = vmul.f32 0.2, %v1293_v9  ;;  %vm1467_vm7 = vcmp.gt.f32.partialorder %v1029_v10, 0.0  ;;  %v3706_v20 = vpop.f32.mrf.mxu0  ;;  %v3708_v22 = vpop.f32.mrf.mxu1  ;;  %v1296_v25 = vadd.f32 %v3635_v27, %v3482_v3  ;;  %v1032_v26 = vadd.f32 %v3482_v3, %v3641_v34 }
 0x11c   : > { %2425 = vst.msk [vmem:[%s3493_s4 + $0x154] sm:$0xf] %vm2339_vm3, %v2928_v12  ;;  %v1595_v19 = vmul.f32 0.2, %v1029_v10  ;;  %vm1531_vm8 = vcmp.gt.f32.partialorder %v1285_v14, 0.0  ;;  %vm1470_vm9 = vcmp.gt.f32.partialorder %v1040_v15, 0.0  ;;  %v1288_v31 = vadd.f32 %v3482_v3, %v3643_v35 }
 0x11d   : > { %v1659_v21 = vmul.f32 0.2, %v1285_v14  ;;  %2366 = vst.msk [vmem:[%s3493_s4 + $0x68] sm:$0xf] %vm2339_vm3, %v2869_v11  ;;  %v1789_v23 = vsel %vm1533_vm6, %v1293_v9, %v1661_v18  ;;  %v1598_v24 = vmul.f32 0.2, %v1040_v15  ;;  %v3718_v32 = vpop.f32.mrf.mxu0  ;;  %v3720_v33 = vpop.f32.mrf.mxu1  ;;  %v1053_v42 = vadd.f32 %v3652_v44, %v3482_v3 }
 0x11e   : > { %v2933_v28 = vpack.c.bf16 %v1789_v23, %v1789_v23  ;;  %v1723_v29 = vsel %vm1467_vm7, %v1029_v10, %v1595_v19  ;;  %vm1534_vm10 = vcmp.gt.f32.partialorder %v1296_v25, 0.0  ;;  %v1662_v38 = vmul.f32 0.2, %v1296_v25 }
 0x11f   : > { %v1787_v30 = vsel %vm1531_vm8, %v1285_v14, %v1659_v21  ;;  %v2867_v36 = vpack.c.bf16 %v1723_v29, %v1723_v29  ;;  %v1726_v27 = vsel %vm1470_vm9, %v1040_v15, %v1598_v24  ;;  %vm1468_vm11 = vcmp.gt.f32.partialorder %v1032_v26, 0.0  ;;  %v3725_v40 = vpop.f32.mrf.mxu0  ;;  %v3727_v41 = vpop.f32.mrf.mxu1 }
 0x120   : > { %v2931_v37 = vpack.c.bf16 %v1787_v30, %v1787_v30  ;;  %2430 = vst.msk [vmem:[%s3493_s4 + $0x168] sm:$0xf] %vm2339_vm3, %v2933_v28  ;;  %v2870_v34 = vpack.c.bf16 %v1726_v27, %v1726_v27  ;;  %v1596_v39 = vmul.f32 0.2, %v1032_v26  ;;  %vm1532_vm12 = vcmp.gt.f32.partialorder %v1288_v31, 0.0 }
 0x121   : > { %2364 = vst.msk [vmem:[%s3493_s4 + $0x60] sm:$0xf] %vm2339_vm3, %v2867_v36  ;;  %v1660_v35 = vmul.f32 0.2, %v1288_v31  ;;  %v1309_v43 = vadd.f32 %v3654_v45, %v3482_v3  ;;  %v1790_v46 = vsel %vm1534_vm10, %v1296_v25, %v1662_v38  ;;  %v1045_v48 = vadd.f32 %v3482_v3, %v3668_v52  ;;  %v3743_v50 = vpop.f32.mrf.mxu0  ;;  %v3745_v51 = vpop.f32.mrf.mxu1 }
 0x122   : > { %2428 = vst.msk [vmem:[%s3493_s4 + $0x160] sm:$0xf] %vm2339_vm3, %v2931_v37  ;;  %2367 = vst.msk [vmem:[%s3493_s4 + $0x6c] sm:$0xf] %vm2339_vm3, %v2870_v34  ;;  %v1724_v47 = vsel %vm1468_vm11, %v1032_v26, %v1596_v39  ;;  %v1301_v49 = vadd.f32 %v3482_v3, %v3670_v53  ;;  %v2934_v44 = vpack.c.bf16 %v1790_v46, %v1790_v46  ;;  %vm1473_vm13 = vcmp.gt.f32.partialorder %v1053_v42, 0.0 }
 0x123   : > { %v2868_v54 = vpack.c.bf16 %v1724_v47, %v1724_v47  ;;  %v1788_v45 = vsel %vm1532_vm12, %v1288_v31, %v1660_v35  ;;  %v1601_v56 = vmul.f32 0.2, %v1053_v42  ;;  %vm1537_vm14 = vcmp.gt.f32.partialorder %v1309_v43, 0.0  ;;  %v3747_v58 = vpop.f32.mrf.mxu0  ;;  %v3749_v59 = vpop.f32.mrf.mxu1 }
 0x124   : > { %v2932_v55 = vpack.c.bf16 %v1788_v45, %v1788_v45  ;;  %v1665_v57 = vmul.f32 0.2, %v1309_v43  ;;  %2431 = vst.msk [vmem:[%s3493_s4 + $0x16c] sm:$0xf] %vm2339_vm3, %v2934_v44  ;;  %vm1471_vm15 = vcmp.gt.f32.partialorder %v1045_v48, 0.0  ;;  %vm1535_vm0 = vcmp.gt.f32.partialorder %v1301_v49, 0.0 }
 0x125   : > { %2365 = vst.msk [vmem:[%s3493_s4 + $0x64] sm:$0xf] %vm2339_vm3, %v2868_v54  ;;  %v1599_v52 = vmul.f32 0.2, %v1045_v48  ;;  %v1663_v53 = vmul.f32 0.2, %v1301_v49  ;;  %v1729_v62 = vsel %vm1473_vm13, %v1053_v42, %v1601_v56  ;;  %v1056_v0 = vadd.f32 %v3676_v60, %v3482_v3  ;;  %v3761_v2 = vpop.f32.mrf.mxu0  ;;  %v3763_v4 = vpop.f32.mrf.mxu1 }
 0x126   : > { %2429 = vst.msk [vmem:[%s3493_s4 + $0x164] sm:$0xf] %vm2339_vm3, %v2932_v55  ;;  %v1793_v63 = vsel %vm1537_vm14, %v1309_v43, %v1665_v57  ;;  %v1312_v1 = vadd.f32 %v3678_v61, %v3482_v3  ;;  %v2873_v7 = vpack.c.bf16 %v1729_v62, %v1729_v62  ;;  %v1048_v11 = vadd.f32 %v3482_v3, %v3682_v5 }
 0x127   : > { %v2937_v8 = vpack.c.bf16 %v1793_v63, %v1793_v63  ;;  %v1727_v9 = vsel %vm1471_vm15, %v1045_v48, %v1599_v52  ;;  %v1791_v10 = vsel %vm1535_vm0, %v1301_v49, %v1663_v53  ;;  %vm1474_vm1 = vcmp.gt.f32.partialorder %v1056_v0, 0.0  ;;  %v3765_v15 = vpop.f32.mrf.mxu0  ;;  %v3767_v60 = vpop.f32.mrf.mxu1 }
 0x128   : > { %v2871_v12 = vpack.c.bf16 %v1727_v9, %v1727_v9  ;;  %v2935_v13 = vpack.c.bf16 %v1791_v10, %v1791_v10  ;;  %v1602_v14 = vmul.f32 0.2, %v1056_v0  ;;  %2370 = vst.msk [vmem:[%s3493_s4 + $0x78] sm:$0xf] %vm2339_vm3, %v2873_v7  ;;  %vm1538_vm2 = vcmp.gt.f32.partialorder %v1312_v1, 0.0 }
 0x129   : > { %2434 = vst.msk [vmem:[%s3493_s4 + $0x178] sm:$0xf] %vm2339_vm3, %v2937_v8  ;;  %v1666_v61 = vmul.f32 0.2, %v1312_v1  ;;  %v1304_v18 = vadd.f32 %v3482_v3, %v3684_v6  ;;  %v1069_v21 = vadd.f32 %v3698_v16, %v3482_v3  ;;  %v1325_v23 = vadd.f32 %v3700_v17, %v3482_v3  ;;  %v3787_v25 = vpop.f32.mrf.mxu0  ;;  %v3789_v5 = vpop.f32.mrf.mxu1 }
 0x12a   : > { %2368 = vst.msk [vmem:[%s3493_s4 + $0x70] sm:$0xf] %vm2339_vm3, %v2871_v12  ;;  %2432 = vst.msk [vmem:[%s3493_s4 + $0x170] sm:$0xf] %vm2339_vm3, %v2935_v13  ;;  %v1730_v19 = vsel %vm1474_vm1, %v1056_v0, %v1602_v14  ;;  %v1061_v24 = vadd.f32 %v3482_v3, %v3706_v20  ;;  %vm1472_vm4 = vcmp.gt.f32.partialorder %v1048_v11, 0.0  ;;  %v1317_v46 = vadd.f32 %v3482_v3, %v3708_v22 }
 0x12b   : > { %v2874_v6 = vpack.c.bf16 %v1730_v19, %v1730_v19  ;;  %v1794_v26 = vsel %vm1538_vm2, %v1312_v1, %v1666_v61  ;;  %v1600_v28 = vmul.f32 0.2, %v1048_v11  ;;  %vm1536_vm5 = vcmp.gt.f32.partialorder %v1304_v18, 0.0  ;;  %v3791_v16 = vpop.f32.mrf.mxu0  ;;  %v3793_v31 = vpop.f32.mrf.mxu1  ;;  %v3849_v19 = vld [vmem:[%s4122_s2] ss:$0 sm:$0xff] }
 0x12c   : > { %v2938_v29 = vpack.c.bf16 %v1794_v26, %v1794_v26  ;;  %v1664_v30 = vmul.f32 0.2, %v1304_v18  ;;  %vm1477_vm6 = vcmp.gt.f32.partialorder %v1069_v21, 0.0  ;;  %v1605_v20 = vmul.f32 0.2, %v1069_v21 }
 0x12d   : > { %2371 = vst.msk [vmem:[%s3493_s4 + $0x7c] sm:$0xf] %vm2339_vm3, %v2874_v6  ;;  %v1728_v17 = vsel %vm1472_vm4, %v1048_v11, %v1600_v28  ;;  %vm1541_vm7 = vcmp.gt.f32.partialorder %v1325_v23, 0.0  ;;  %v1669_v36 = vmul.f32 0.2, %v1325_v23  ;;  %vm1475_vm8 = vcmp.gt.f32.partialorder %v1061_v24, 0.0  ;;  %v3799_v38 = vpop.f32.mrf.mxu0  ;;  %v3801_v39 = vpop.f32.mrf.mxu1 }
 0x12e   : > { %2435 = vst.msk [vmem:[%s3493_s4 + $0x17c] sm:$0xf] %vm2339_vm3, %v2938_v29  ;;  %v2872_v37 = vpack.c.bf16 %v1728_v17, %v1728_v17  ;;  %v1792_v27 = vsel %vm1536_vm5, %v1304_v18, %v1664_v30  ;;  %v1603_v34 = vmul.f32 0.2, %v1061_v24  ;;  %v1733_v42 = vsel %vm1477_vm6, %v1069_v21, %v1605_v20 }
 0x12f   : > { %v2936_v35 = vpack.c.bf16 %v1792_v27, %v1792_v27  ;;  %v1797_v43 = vsel %vm1541_vm7, %v1325_v23, %v1669_v36  ;;  %v2877_v47 = vpack.c.bf16 %v1733_v42, %v1733_v42  ;;  %v1072_v44 = vadd.f32 %v3718_v32, %v3482_v3  ;;  %v3810_v54 = vpop.f32.mrf.mxu0  ;;  %v3812_v45 = vpop.f32.mrf.mxu1 }
 0x130   : > { %2369 = vst.msk [vmem:[%s3493_s4 + $0x74] sm:$0xf] %vm2339_vm3, %v2872_v37  ;;  %v2941_v48 = vpack.c.bf16 %v1797_v43, %v1797_v43  ;;  %v1731_v49 = vsel %vm1475_vm8, %v1061_v24, %v1603_v34  ;;  %vm1539_vm9 = vcmp.gt.f32.partialorder %v1317_v46, 0.0  ;;  %v1667_v56 = vmul.f32 0.2, %v1317_v46 }
 0x131   : > { %2433 = vst.msk [vmem:[%s3493_s4 + $0x174] sm:$0xf] %vm2339_vm3, %v2936_v35  ;;  %v2875_v55 = vpack.c.bf16 %v1731_v49, %v1731_v49  ;;  %v1328_v22 = vadd.f32 %v3720_v33, %v3482_v3  ;;  %2374 = vst.msk [vmem:[%s3493_s4 + $0x88] sm:$0xf] %vm2339_vm3, %v2877_v47  ;;  %vm1478_vm10 = vcmp.gt.f32.partialorder %v1072_v44, 0.0  ;;  %v1064_v32 = vadd.f32 %v3482_v3, %v3725_v40  ;;  %v3826_v53 = vpop.f32.mrf.mxu0  ;;  %v3828_v62 = vpop.f32.mrf.mxu1 }
 0x132   : > { %2438 = vst.msk [vmem:[%s3493_s4 + $0x188] sm:$0xf] %vm2339_vm3, %v2941_v48  ;;  %v1606_v57 = vmul.f32 0.2, %v1072_v44  ;;  %v1320_v52 = vadd.f32 %v3482_v3, %v3727_v41  ;;  %v1795_v33 = vsel %vm1539_vm9, %v1317_v46, %v1667_v56  ;;  %v1085_v0 = vadd.f32 %v3743_v50, %v3482_v3 }
 0x133   : > { %2372 = vst.msk [vmem:[%s3493_s4 + $0x80] sm:$0xf] %vm2339_vm3, %v2875_v55  ;;  %vm1542_vm11 = vcmp.gt.f32.partialorder %v1328_v22, 0.0  ;;  %v1670_v63 = vmul.f32 0.2, %v1328_v22  ;;  %v2939_v1 = vpack.c.bf16 %v1795_v33, %v1795_v33  ;;  %vm1476_vm12 = vcmp.gt.f32.partialorder %v1064_v32, 0.0  ;;  %v3834_v8 = vpop.f32.mrf.mxu0  ;;  %v3836_v41 = vpop.f32.mrf.mxu1 }
 0x134   : > { %v1734_v7 = vsel %vm1478_vm10, %v1072_v44, %v1606_v57  ;;  %v1604_v40 = vmul.f32 0.2, %v1064_v32  ;;  %vm1540_vm13 = vcmp.gt.f32.partialorder %v1320_v52, 0.0  ;;  %v1668_v12 = vmul.f32 0.2, %v1320_v52 }
 0x135   : > { %v2878_v9 = vpack.c.bf16 %v1734_v7, %v1734_v7  ;;  %v1798_v10 = vsel %vm1542_vm11, %v1328_v22, %v1670_v63  ;;  %2436 = vst.msk [vmem:[%s3493_s4 + $0x180] sm:$0xf] %vm2339_vm3, %v2939_v1  ;;  %vm1481_vm14 = vcmp.gt.f32.partialorder %v1085_v0, 0.0  ;;  %v1609_v3 = vmul.f32 0.2, %v1085_v0  ;;  %v3840_v50 = vpop.f32.mrf.mxu0  ;;  %v3842_v61 = vpop.f32.mrf.mxu1 }
 0x136   : > { %v2942_v13 = vpack.c.bf16 %v1798_v10, %v1798_v10  ;;  %v1732_v14 = vsel %vm1476_vm12, %v1064_v32, %v1604_v40  ;;  %v1796_v18 = vsel %vm1540_vm13, %v1320_v52, %v1668_v12  ;;  %v1341_v21 = vadd.f32 %v3849_v19, %v3745_v51 }
 0x137   : > { %2375 = vst.msk [vmem:[%s3493_s4 + $0x8c] sm:$0xf] %vm2339_vm3, %v2878_v9  ;;  %v2876_v11 = vpack.c.bf16 %v1732_v14, %v1732_v14  ;;  %v1077_v23 = vadd.f32 %v3849_v19, %v3747_v58  ;;  %v2940_v24 = vpack.c.bf16 %v1796_v18, %v1796_v18  ;;  %v1737_v6 = vsel %vm1481_vm14, %v1085_v0, %v1609_v3  ;;  %v3861_v29 = vpop.f32.mrf.mxu0  ;;  %v3863_v30 = vpop.f32.mrf.mxu1 }
 0x138   : > { %2439 = vst.msk [vmem:[%s3493_s4 + $0x18c] sm:$0xf] %vm2339_vm3, %v2942_v13  ;;  %v1333_v26 = vadd.f32 %v3849_v19, %v3749_v59  ;;  %v1088_v28 = vadd.f32 %v3849_v19, %v3761_v2  ;;  %v2881_v51 = vpack.c.bf16 %v1737_v6, %v1737_v6  ;;  %vm1545_vm15 = vcmp.gt.f32.partialorder %v1341_v21, 0.0 }
 0x139   : > { %2373 = vst.msk [vmem:[%s3493_s4 + $0x84] sm:$0xf] %vm2339_vm3, %v2876_v11  ;;  %v1673_v58 = vmul.f32 0.2, %v1341_v21  ;;  %vm1479_vm0 = vcmp.gt.f32.partialorder %v1077_v23, 0.0  ;;  %v3869_v59 = vpop.f32.mrf.mxu0  ;;  %v3871_v36 = vpop.f32.mrf.mxu1  ;;  %v1344_v27 = vadd.f32 %v3849_v19, %v3763_v4  ;;  %v1080_v34 = vadd.f32 %v3849_v19, %v3765_v15 }
 0x13a   : > { %2437 = vst.msk [vmem:[%s3493_s4 + $0x184] sm:$0xf] %vm2339_vm3, %v2940_v24  ;;  %v1607_v17 = vmul.f32 0.2, %v1077_v23  ;;  %vm1543_vm1 = vcmp.gt.f32.partialorder %v1333_v26, 0.0  ;;  %vm1482_vm2 = vcmp.gt.f32.partialorder %v1088_v28, 0.0  ;;  %v1336_v46 = vadd.f32 %v3849_v19, %v3767_v60 }
 0x13b   : > { %v1671_v20 = vmul.f32 0.2, %v1333_v26  ;;  %2378 = vst.msk [vmem:[%s3493_s4 + $0x98] sm:$0xf] %vm2339_vm3, %v2881_v51  ;;  %v1801_v2 = vsel %vm1545_vm15, %v1341_v21, %v1673_v58  ;;  %v1610_v37 = vmul.f32 0.2, %v1088_v28  ;;  %v3881_v47 = vpop.f32.mrf.mxu0  ;;  %v3883_v55 = vpop.f32.mrf.mxu1  ;;  %v1101_v22 = vadd.f32 %v3849_v19, %v3787_v25 }
 0x13c   : > { %v2945_v35 = vpack.c.bf16 %v1801_v2, %v1801_v2  ;;  %v1735_v42 = vsel %vm1479_vm0, %v1077_v23, %v1607_v17  ;;  %vm1546_vm4 = vcmp.gt.f32.partialorder %v1344_v27, 0.0  ;;  %v1674_v15 = vmul.f32 0.2, %v1344_v27 }
 0x13d   : > { %v1799_v43 = vsel %vm1543_vm1, %v1333_v26, %v1671_v20  ;;  %v2879_v48 = vpack.c.bf16 %v1735_v42, %v1735_v42  ;;  %v1738_v44 = vsel %vm1482_vm2, %v1088_v28, %v1610_v37  ;;  %vm1480_vm5 = vcmp.gt.f32.partialorder %v1080_v34, 0.0  ;;  %v3901_v0 = vpop.f32.mrf.mxu0 }
 0x13e   : > { %v2943_v49 = vpack.c.bf16 %v1799_v43, %v1799_v43  ;;  %2442 = vst.msk [vmem:[%s3493_s4 + $0x198] sm:$0xf] %vm2339_vm3, %v2945_v35  ;;  %v2882_v4 = vpack.c.bf16 %v1738_v44, %v1738_v44  ;;  %v1608_v56 = vmul.f32 0.2, %v1080_v34  ;;  %vm1544_vm6 = vcmp.gt.f32.partialorder %v1336_v46, 0.0 }
 0x13f   : > { %2376 = vst.msk [vmem:[%s3493_s4 + $0x90] sm:$0xf] %vm2339_vm3, %v2879_v48  ;;  %v1672_v60 = vmul.f32 0.2, %v1336_v46  ;;  %v1357_v57 = vadd.f32 %v3849_v19, %v3789_v5  ;;  %v1802_v32 = vsel %vm1546_vm4, %v1344_v27, %v1674_v15  ;;  %v1093_v33 = vadd.f32 %v3849_v19, %v3791_v16  ;;  %v3903_v5 = vpop.f32.mrf.mxu1  ;;  %v3915_v11 = vpop.f32.mrf.mxu0 }
 0x140   : > { %2440 = vst.msk [vmem:[%s3493_s4 + $0x190] sm:$0xf] %vm2339_vm3, %v2943_v49  ;;  %2379 = vst.msk [vmem:[%s3493_s4 + $0x9c] sm:$0xf] %vm2339_vm3, %v2882_v4  ;;  %v1736_v52 = vsel %vm1480_vm5, %v1080_v34, %v1608_v56  ;;  %v1349_v63 = vadd.f32 %v3849_v19, %v3793_v31  ;;  %v2946_v1 = vpack.c.bf16 %v1802_v32, %v1802_v32  ;;  %vm1485_vm7 = vcmp.gt.f32.partialorder %v1101_v22, 0.0 }
 0x141   : > { %v2880_v25 = vpack.c.bf16 %v1736_v52, %v1736_v52  ;;  %v1800_v7 = vsel %vm1544_vm6, %v1336_v46, %v1672_v60  ;;  %v1613_v9 = vmul.f32 0.2, %v1101_v22  ;;  %vm1549_vm8 = vcmp.gt.f32.partialorder %v1357_v57, 0.0  ;;  %v3917_v6 = vpop.f32.mrf.mxu1 }
 0x142   : > { %v2944_v40 = vpack.c.bf16 %v1800_v7, %v1800_v7  ;;  %v1677_v10 = vmul.f32 0.2, %v1357_v57  ;;  %2443 = vst.msk [vmem:[%s3493_s4 + $0x19c] sm:$0xf] %vm2339_vm3, %v2946_v1  ;;  %vm1483_vm9 = vcmp.gt.f32.partialorder %v1093_v33, 0.0  ;;  %vm1547_vm10 = vcmp.gt.f32.partialorder %v1349_v63, 0.0 }
 0x143   : > { %2377 = vst.msk [vmem:[%s3493_s4 + $0x94] sm:$0xf] %vm2339_vm3, %v2880_v25  ;;  %v1611_v16 = vmul.f32 0.2, %v1093_v33  ;;  %v1675_v31 = vmul.f32 0.2, %v1349_v63  ;;  %v1741_v12 = vsel %vm1485_vm7, %v1101_v22, %v1613_v9  ;;  %v1104_v14 = vadd.f32 %v3849_v19, %v3799_v38  ;;  %v3939_v35 = vpop.f32.mrf.mxu1 }
 0x144   : > { %2441 = vst.msk [vmem:[%s3493_s4 + $0x194] sm:$0xf] %vm2339_vm3, %v2944_v40  ;;  %v1805_v13 = vsel %vm1549_vm8, %v1357_v57, %v1677_v10  ;;  %v1360_v3 = vadd.f32 %v3849_v19, %v3801_v39  ;;  %v2885_v18 = vpack.c.bf16 %v1741_v12, %v1741_v12  ;;  %v1096_v39 = vadd.f32 %v3849_v19, %v3810_v54  ;;  %v3937_v54 = vpop.f32.mrf.mxu0 }
 0x145   : > { %v2949_v21 = vpack.c.bf16 %v1805_v13, %v1805_v13  ;;  %v1739_v23 = vsel %vm1483_vm9, %v1093_v33, %v1611_v16  ;;  %v1803_v24 = vsel %vm1547_vm10, %v1349_v63, %v1675_v31  ;;  %vm1486_vm11 = vcmp.gt.f32.partialorder %v1104_v14, 0.0  ;;  %v3949_v22 = vpop.f32.mrf.mxu1 }
 0x146   : > { %v2883_v26 = vpack.c.bf16 %v1739_v23, %v1739_v23  ;;  %v2947_v28 = vpack.c.bf16 %v1803_v24, %v1803_v24  ;;  %v1614_v51 = vmul.f32 0.2, %v1104_v14  ;;  %2382 = vst.msk [vmem:[%s3493_s4 + $0xa8] sm:$0xf] %vm2339_vm3, %v2885_v18  ;;  %vm1550_vm12 = vcmp.gt.f32.partialorder %v1360_v3, 0.0  ;;  %v3945_v44 = vpop.f32.mrf.mxu0 }
 0x147   : > { %2446 = vst.msk [vmem:[%s3493_s4 + $0x1a8] sm:$0xf] %vm2339_vm3, %v2949_v21  ;;  %v1678_v38 = vmul.f32 0.2, %v1360_v3  ;;  %v1352_v58 = vadd.f32 %v3849_v19, %v3812_v45  ;;  %v1117_v20 = vadd.f32 %v3849_v19, %v3826_v53  ;;  %v1373_v2 = vadd.f32 %v3849_v19, %v3828_v62  ;;  %v3973_v16 = vpop.f32.mrf.mxu1 }
 0x148   : > { %2380 = vst.msk [vmem:[%s3493_s4 + $0xa0] sm:$0xf] %vm2339_vm3, %v2883_v26  ;;  %2444 = vst.msk [vmem:[%s3493_s4 + $0x1a0] sm:$0xf] %vm2339_vm3, %v2947_v28  ;;  %v1742_v17 = vsel %vm1486_vm11, %v1104_v14, %v1614_v51  ;;  %v1109_v37 = vadd.f32 %v3849_v19, %v3834_v8  ;;  %vm1484_vm13 = vcmp.gt.f32.partialorder %v1096_v39, 0.0  ;;  %v1365_v60 = vadd.f32 %v3849_v19, %v3836_v41  ;;  %v3967_v40 = vpop.f32.mrf.mxu0 }
 0x149   : > { %v2886_v27 = vpack.c.bf16 %v1742_v17, %v1742_v17  ;;  %v1806_v45 = vsel %vm1550_vm12, %v1360_v3, %v1678_v38  ;;  %v1612_v34 = vmul.f32 0.2, %v1096_v39  ;;  %vm1548_vm14 = vcmp.gt.f32.partialorder %v1352_v58, 0.0  ;;  %v3985_v51 = vpop.f32.mrf.mxu1 }
 0x14a   : > { %v2950_v42 = vpack.c.bf16 %v1806_v45, %v1806_v45  ;;  %v1676_v43 = vmul.f32 0.2, %v1352_v58  ;;  %vm1489_vm15 = vcmp.gt.f32.partialorder %v1117_v20, 0.0  ;;  %v1617_v62 = vmul.f32 0.2, %v1117_v20 }
 0x14b   : > { %2383 = vst.msk [vmem:[%s3493_s4 + $0xac] sm:$0xf] %vm2339_vm3, %v2886_v27  ;;  %v1740_v53 = vsel %vm1484_vm13, %v1096_v39, %v1612_v34  ;;  %vm1553_vm0 = vcmp.gt.f32.partialorder %v1373_v2, 0.0  ;;  %v1681_v8 = vmul.f32 0.2, %v1373_v2  ;;  %vm1487_vm1 = vcmp.gt.f32.partialorder %v1109_v37, 0.0  ;;  %v4005_v34 = vpop.f32.mrf.mxu1 }
 0x14c   : > { %2447 = vst.msk [vmem:[%s3493_s4 + $0x1ac] sm:$0xf] %vm2339_vm3, %v2950_v42  ;;  %v2884_v46 = vpack.c.bf16 %v1740_v53, %v1740_v53  ;;  %v1804_v48 = vsel %vm1548_vm14, %v1352_v58, %v1676_v43  ;;  %v1615_v49 = vmul.f32 0.2, %v1109_v37  ;;  %v1745_v15 = vsel %vm1489_vm15, %v1117_v20, %v1617_v62 }
 0x14d   : > { %v2948_v4 = vpack.c.bf16 %v1804_v48, %v1804_v48  ;;  %v1809_v56 = vsel %vm1553_vm0, %v1373_v2, %v1681_v8  ;;  %v2889_v57 = vpack.c.bf16 %v1745_v15, %v1745_v15  ;;  %v1120_v33 = vadd.f32 %v3849_v19, %v3840_v50 }
 0x14e   : > { %2381 = vst.msk [vmem:[%s3493_s4 + $0xa4] sm:$0xf] %vm2339_vm3, %v2884_v46  ;;  %v2953_v32 = vpack.c.bf16 %v1809_v56, %v1809_v56  ;;  %v1743_v52 = vsel %vm1487_vm1, %v1109_v37, %v1615_v49  ;;  %vm1551_vm2 = vcmp.gt.f32.partialorder %v1365_v60, 0.0  ;;  %v1679_v1 = vmul.f32 0.2, %v1365_v60 }
 0x14f   : > { %2445 = vst.msk [vmem:[%s3493_s4 + $0x1a4] sm:$0xf] %vm2339_vm3, %v2948_v4  ;;  %v2887_v63 = vpack.c.bf16 %v1743_v52, %v1743_v52  ;;  %v1376_v25 = vadd.f32 %v3849_v19, %v3842_v61  ;;  %2386 = vst.msk [vmem:[%s3493_s4 + $0xb8] sm:$0xf] %vm2339_vm3, %v2889_v57  ;;  %vm1490_vm4 = vcmp.gt.f32.partialorder %v1120_v33, 0.0  ;;  %v1112_v7 = vadd.f32 %v3849_v19, %v3861_v29 }
 0x150   : > { %2450 = vst.msk [vmem:[%s3493_s4 + $0x1b8] sm:$0xf] %vm2339_vm3, %v2953_v32  ;;  %v1618_v41 = vmul.f32 0.2, %v1120_v33  ;;  %v1368_v50 = vadd.f32 %v3849_v19, %v3863_v30  ;;  %v1807_v9 = vsel %vm1551_vm2, %v1365_v60, %v1679_v1  ;;  %v1133_v10 = vadd.f32 %v3849_v19, %v3869_v59  ;;  %v3977_v59 = vpop.f32.mrf.mxu0  ;;  %v4019_v60 = vpop.f32.mrf.mxu1 }
 0x151   : > { %2384 = vst.msk [vmem:[%s3493_s4 + $0xb0] sm:$0xf] %vm2339_vm3, %v2887_v63  ;;  %vm1554_vm5 = vcmp.gt.f32.partialorder %v1376_v25, 0.0  ;;  %v1682_v61 = vmul.f32 0.2, %v1376_v25  ;;  %v2951_v31 = vpack.c.bf16 %v1807_v9, %v1807_v9  ;;  %vm1488_vm6 = vcmp.gt.f32.partialorder %v1112_v7, 0.0 }
 0x152   : > { %v1746_v12 = vsel %vm1490_vm4, %v1120_v33, %v1618_v41  ;;  %v1616_v29 = vmul.f32 0.2, %v1112_v7  ;;  %vm1552_vm7 = vcmp.gt.f32.partialorder %v1368_v50, 0.0  ;;  %v1680_v14 = vmul.f32 0.2, %v1368_v50  ;;  %v3997_v37 = vpop.f32.mrf.mxu0 }
 0x153   : > { %v2890_v13 = vpack.c.bf16 %v1746_v12, %v1746_v12  ;;  %v1810_v30 = vsel %vm1554_vm5, %v1376_v25, %v1682_v61  ;;  %2448 = vst.msk [vmem:[%s3493_s4 + $0x1b0] sm:$0xf] %vm2339_vm3, %v2951_v31  ;;  %vm1493_vm8 = vcmp.gt.f32.partialorder %v1133_v10, 0.0  ;;  %v1621_v21 = vmul.f32 0.2, %v1133_v10 }
 0x154   : > { %v2954_v3 = vpack.c.bf16 %v1810_v30, %v1810_v30  ;;  %v1744_v18 = vsel %vm1488_vm6, %v1112_v7, %v1616_v29  ;;  %v1808_v24 = vsel %vm1552_vm7, %v1368_v50, %v1680_v14  ;;  %v1389_v26 = vadd.f32 %v3849_v19, %v3871_v36  ;;  %v1156_v4 = vpop.f32.mrf.mxu0 }
 0x155   : > { %2387 = vst.msk [vmem:[%s3493_s4 + $0xbc] sm:$0xf] %vm2339_vm3, %v2890_v13  ;;  %v2888_v23 = vpack.c.bf16 %v1744_v18, %v1744_v18  ;;  %v1125_v28 = vadd.f32 %v3849_v19, %v3881_v47  ;;  %v2952_v38 = vpack.c.bf16 %v1808_v24, %v1808_v24  ;;  %v1749_v39 = vsel %vm1493_vm8, %v1133_v10, %v1621_v21 }
 0x156   : > { %2451 = vst.msk [vmem:[%s3493_s4 + $0x1bc] sm:$0xf] %vm2339_vm3, %v2954_v3  ;;  %v1381_v58 = vadd.f32 %v3849_v19, %v3883_v55  ;;  %v1136_v17 = vadd.f32 %v3849_v19, %v3901_v0  ;;  %v2893_v20 = vpack.c.bf16 %v1749_v39, %v1749_v39  ;;  %vm1557_vm9 = vcmp.gt.f32.partialorder %v1389_v26, 0.0  ;;  %v4027_v7 = vpop.f32.mrf.mxu0 }
 0x157   : > { %2385 = vst.msk [vmem:[%s3493_s4 + $0xb4] sm:$0xf] %vm2339_vm3, %v2888_v23  ;;  %v1685_v36 = vmul.f32 0.2, %v1389_v26  ;;  %vm1491_vm10 = vcmp.gt.f32.partialorder %v1125_v28, 0.0  ;;  %v1392_v0 = vadd.f32 %v3849_v19, %v3903_v5  ;;  %v1128_v45 = vadd.f32 %v3849_v19, %v3915_v11 }
 0x158   : > { %2449 = vst.msk [vmem:[%s3493_s4 + $0x1b4] sm:$0xf] %vm2339_vm3, %v2952_v38  ;;  %v1619_v47 = vmul.f32 0.2, %v1125_v28  ;;  %vm1555_vm11 = vcmp.gt.f32.partialorder %v1381_v58, 0.0  ;;  %vm1494_vm12 = vcmp.gt.f32.partialorder %v1136_v17, 0.0  ;;  %v1384_v62 = vadd.f32 %v3849_v19, %v3917_v6  ;;  %v1159_v21 = vpop.f32.mrf.mxu0 }
 0x159   : > { %v1683_v2 = vmul.f32 0.2, %v1381_v58  ;;  %2390 = vst.msk [vmem:[%s3493_s4 + $0xc8] sm:$0xf] %vm2339_vm3, %v2893_v20  ;;  %v1813_v55 = vsel %vm1557_vm9, %v1389_v26, %v1685_v36  ;;  %v1622_v27 = vmul.f32 0.2, %v1136_v17  ;;  %v1149_v6 = vadd.f32 %v3849_v19, %v3937_v54 }
 0x15a   : > { %v2957_v42 = vpack.c.bf16 %v1813_v55, %v1813_v55  ;;  %v1747_v43 = vsel %vm1491_vm10, %v1125_v28, %v1619_v47  ;;  %vm1558_vm13 = vcmp.gt.f32.partialorder %v1392_v0, 0.0  ;;  %v1686_v49 = vmul.f32 0.2, %v1392_v0  ;;  %v3106_v36 = vpop.f32.mrf.mxu0 }
 0x15b   : > { %v1811_v53 = vsel %vm1555_vm11, %v1381_v58, %v1683_v2  ;;  %v2891_v8 = vpack.c.bf16 %v1747_v43, %v1747_v43  ;;  %v1750_v48 = vsel %vm1494_vm12, %v1136_v17, %v1622_v27  ;;  %vm1492_vm14 = vcmp.gt.f32.partialorder %v1128_v45, 0.0 }
 0x15c   : > { %v2955_v46 = vpack.c.bf16 %v1811_v53, %v1811_v53  ;;  %2454 = vst.msk [vmem:[%s3493_s4 + $0x1c8] sm:$0xf] %vm2339_vm3, %v2957_v42  ;;  %v2894_v5 = vpack.c.bf16 %v1750_v48, %v1750_v48  ;;  %v1620_v11 = vmul.f32 0.2, %v1128_v45  ;;  %vm1556_vm15 = vcmp.gt.f32.partialorder %v1384_v62, 0.0 }
 0x15d   : > { %2388 = vst.msk [vmem:[%s3493_s4 + $0xc0] sm:$0xf] %vm2339_vm3, %v2891_v8  ;;  %v1684_v15 = vmul.f32 0.2, %v1384_v62  ;;  %v1405_v56 = vadd.f32 %v3849_v19, %v3939_v35  ;;  %v1814_v57 = vsel %vm1558_vm13, %v1392_v0, %v1686_v49  ;;  %v1141_v52 = vadd.f32 %v3849_v19, %v3945_v44 }
 0x15e   : > { %2452 = vst.msk [vmem:[%s3493_s4 + $0x1c0] sm:$0xf] %vm2339_vm3, %v2955_v46  ;;  %2391 = vst.msk [vmem:[%s3493_s4 + $0xcc] sm:$0xf] %vm2339_vm3, %v2894_v5  ;;  %v1748_v32 = vsel %vm1492_vm14, %v1128_v45, %v1620_v11  ;;  %v1397_v33 = vadd.f32 %v3849_v19, %v3949_v22  ;;  %v2958_v63 = vpack.c.bf16 %v1814_v57, %v1814_v57  ;;  %vm1497_vm0 = vcmp.gt.f32.partialorder %v1149_v6, 0.0  ;;  %v3167_v22 = vpop.f32.mrf.mxu1  ;;  %v1172_v5 = vpop.f32.mrf.mxu0 }
 0x15f   : > { %v2892_v54 = vpack.c.bf16 %v1748_v32, %v1748_v32  ;;  %v1812_v1 = vsel %vm1556_vm15, %v1384_v62, %v1684_v15  ;;  %v1625_v25 = vmul.f32 0.2, %v1149_v6  ;;  %vm1561_vm1 = vcmp.gt.f32.partialorder %v1405_v56, 0.0 }
 0x160   : > { %v2956_v35 = vpack.c.bf16 %v1812_v1, %v1812_v1  ;;  %v1689_v41 = vmul.f32 0.2, %v1405_v56  ;;  %2455 = vst.msk [vmem:[%s3493_s4 + $0x1cc] sm:$0xf] %vm2339_vm3, %v2958_v63  ;;  %vm1495_vm2 = vcmp.gt.f32.partialorder %v1141_v52, 0.0  ;;  %vm1559_vm4 = vcmp.gt.f32.partialorder %v1397_v33, 0.0  ;;  %v1415_v24 = vpop.f32.mrf.mxu1  ;;  %v3107_v1 = vpop.f32.mrf.mxu0 }
 0x161   : > { %2389 = vst.msk [vmem:[%s3493_s4 + $0xc4] sm:$0xf] %vm2339_vm3, %v2892_v54  ;;  %v1623_v44 = vmul.f32 0.2, %v1141_v52  ;;  %v1687_v50 = vmul.f32 0.2, %v1397_v33  ;;  %v1753_v9 = vsel %vm1497_vm0, %v1149_v6, %v1625_v25  ;;  %v1152_v10 = vadd.f32 %v3849_v19, %v3967_v40 }
 0x162   : > { %2453 = vst.msk [vmem:[%s3493_s4 + $0x1c4] sm:$0xf] %vm2339_vm3, %v2956_v35  ;;  %v1817_v61 = vsel %vm1561_vm1, %v1405_v56, %v1689_v41  ;;  %v1408_v31 = vadd.f32 %v3849_v19, %v3973_v16  ;;  %v2897_v12 = vpack.c.bf16 %v1753_v9, %v1753_v9  ;;  %v1144_v16 = vadd.f32 %v3849_v19, %v3977_v59  ;;  %v3170_v55 = vpop.f32.mrf.mxu1 }
 0x163   : > { %v2961_v29 = vpack.c.bf16 %v1817_v61, %v1817_v61  ;;  %v1751_v13 = vsel %vm1495_vm2, %v1141_v52, %v1623_v44  ;;  %v1815_v30 = vsel %vm1559_vm4, %v1397_v33, %v1687_v50  ;;  %vm1498_vm5 = vcmp.gt.f32.partialorder %v1152_v10, 0.0 }
 0x164   : > { %v2895_v14 = vpack.c.bf16 %v1751_v13, %v1751_v13  ;;  %v2959_v3 = vpack.c.bf16 %v1815_v30, %v1815_v30  ;;  %v1626_v18 = vmul.f32 0.2, %v1152_v10  ;;  %2394 = vst.msk [vmem:[%s3493_s4 + $0xd8] sm:$0xf] %vm2339_vm3, %v2897_v12  ;;  %vm1562_vm6 = vcmp.gt.f32.partialorder %v1408_v31, 0.0  ;;  %v1428_v15 = vpop.f32.mrf.mxu1 }
 0x165   : > { %2458 = vst.msk [vmem:[%s3493_s4 + $0x1d8] sm:$0xf] %vm2339_vm3, %v2961_v29  ;;  %v1690_v40 = vmul.f32 0.2, %v1408_v31  ;;  %v1400_v23 = vadd.f32 %v3849_v19, %v3985_v51  ;;  %v1165_v28 = vadd.f32 %v3849_v19, %v3997_v37  ;;  %v1421_v38 = vadd.f32 %v3849_v19, %v4005_v34 }
 0x166   : > { %2392 = vst.msk [vmem:[%s3493_s4 + $0xd0] sm:$0xf] %vm2339_vm3, %v2895_v14  ;;  %2456 = vst.msk [vmem:[%s3493_s4 + $0x1d0] sm:$0xf] %vm2339_vm3, %v2959_v3  ;;  %v1754_v26 = vsel %vm1498_vm5, %v1152_v10, %v1626_v18  ;;  %v1157_v39 = vadd.f32 %v3849_v19, %v1156_v4  ;;  %vm1496_vm7 = vcmp.gt.f32.partialorder %v1144_v16, 0.0  ;;  %v1413_v53 = vadd.f32 %v3849_v19, %v4019_v60  ;;  %v1175_v14 = vpop.f32.mrf.mxu0 }
 0x167   : > { %v2898_v59 = vpack.c.bf16 %v1754_v26, %v1754_v26  ;;  %v1818_v58 = vsel %vm1562_vm6, %v1408_v31, %v1690_v40  ;;  %v1624_v51 = vmul.f32 0.2, %v1144_v16  ;;  %vm1560_vm8 = vcmp.gt.f32.partialorder %v1400_v23, 0.0 }
 0x168   : > { %v2962_v17 = vpack.c.bf16 %v1818_v58, %v1818_v58  ;;  %v1688_v20 = vmul.f32 0.2, %v1400_v23  ;;  %vm1501_vm9 = vcmp.gt.f32.partialorder %v1165_v28, 0.0  ;;  %v1629_v2 = vmul.f32 0.2, %v1165_v28 }
 0x169   : > { %2395 = vst.msk [vmem:[%s3493_s4 + $0xdc] sm:$0xf] %vm2339_vm3, %v2898_v59  ;;  %v1752_v47 = vsel %vm1496_vm7, %v1144_v16, %v1624_v51  ;;  %vm1565_vm10 = vcmp.gt.f32.partialorder %v1421_v38, 0.0  ;;  %v1693_v37 = vmul.f32 0.2, %v1421_v38  ;;  %vm1499_vm11 = vcmp.gt.f32.partialorder %v1157_v39, 0.0 }
 0x16a   : > { %2459 = vst.msk [vmem:[%s3493_s4 + $0x1dc] sm:$0xf] %vm2339_vm3, %v2962_v17  ;;  %v2896_v27 = vpack.c.bf16 %v1752_v47, %v1752_v47  ;;  %v1816_v0 = vsel %vm1560_vm8, %v1400_v23, %v1688_v20  ;;  %v1627_v45 = vmul.f32 0.2, %v1157_v39  ;;  %v1757_v42 = vsel %vm1501_vm9, %v1165_v28, %v1629_v2 }
 0x16b   : > { %v2960_v34 = vpack.c.bf16 %v1816_v0, %v1816_v0  ;;  %v1821_v43 = vsel %vm1565_vm10, %v1421_v38, %v1693_v37  ;;  %v2901_v62 = vpack.c.bf16 %v1757_v42, %v1757_v42  ;;  %v1168_v48 = vadd.f32 %v3849_v19, %v4027_v7  ;;  %v3171_v7 = vpop.f32.mrf.mxu1 }
 0x16c   : > { %2393 = vst.msk [vmem:[%s3493_s4 + $0xd4] sm:$0xf] %vm2339_vm3, %v2896_v27  ;;  %v2965_v8 = vpack.c.bf16 %v1821_v43, %v1821_v43  ;;  %v1755_v46 = vsel %vm1499_vm11, %v1157_v39, %v1627_v45  ;;  %vm1563_vm12 = vcmp.gt.f32.partialorder %v1413_v53, 0.0  ;;  %v1691_v11 = vmul.f32 0.2, %v1413_v53 }
 0x16d   : > { %2457 = vst.msk [vmem:[%s3493_s4 + $0x1d4] sm:$0xf] %vm2339_vm3, %v2960_v34  ;;  %v2899_v49 = vpack.c.bf16 %v1755_v46, %v1755_v46  ;;  %v1424_v4 = vadd.f32 %v3849_v19, %v3167_v22  ;;  %2398 = vst.msk [vmem:[%s3493_s4 + $0xe8] sm:$0xf] %vm2339_vm3, %v2901_v62  ;;  %vm1502_vm13 = vcmp.gt.f32.partialorder %v1168_v48, 0.0  ;;  %v1160_v56 = vadd.f32 %v3849_v19, %v1159_v21  ;;  %v1431_v21 = vpop.f32.mrf.mxu1 }
 0x16e   : > { %2462 = vst.msk [vmem:[%s3493_s4 + $0x1e8] sm:$0xf] %vm2339_vm3, %v2965_v8  ;;  %v1630_v6 = vmul.f32 0.2, %v1168_v48  ;;  %v1416_v60 = vadd.f32 %v3849_v19, %v1415_v24  ;;  %v1819_v57 = vsel %vm1563_vm12, %v1413_v53, %v1691_v11  ;;  %v1181_v52 = vadd.f32 %v3849_v19, %v3106_v36 }
 0x16f   : > { %2396 = vst.msk [vmem:[%s3493_s4 + $0xe0] sm:$0xf] %vm2339_vm3, %v2899_v49  ;;  %vm1566_vm14 = vcmp.gt.f32.partialorder %v1424_v4, 0.0  ;;  %v1694_v32 = vmul.f32 0.2, %v1424_v4  ;;  %v2963_v33 = vpack.c.bf16 %v1819_v57, %v1819_v57  ;;  %vm1500_vm15 = vcmp.gt.f32.partialorder %v1160_v56, 0.0 }
 0x170   : > { %v1758_v63 = vsel %vm1502_vm13, %v1168_v48, %v1630_v6  ;;  %v1628_v54 = vmul.f32 0.2, %v1160_v56  ;;  %vm1564_vm0 = vcmp.gt.f32.partialorder %v1416_v60, 0.0  ;;  %v1692_v41 = vmul.f32 0.2, %v1416_v60 }
 0x171   : > { %v2902_v35 = vpack.c.bf16 %v1758_v63, %v1758_v63  ;;  %v1822_v25 = vsel %vm1566_vm14, %v1424_v4, %v1694_v32  ;;  %2460 = vst.msk [vmem:[%s3493_s4 + $0x1e0] sm:$0xf] %vm2339_vm3, %v2963_v33  ;;  %vm1505_vm1 = vcmp.gt.f32.partialorder %v1181_v52, 0.0  ;;  %v1633_v22 = vmul.f32 0.2, %v1181_v52 }
 0x172   : > { %v2966_v44 = vpack.c.bf16 %v1822_v25, %v1822_v25  ;;  %v1756_v50 = vsel %vm1500_vm15, %v1160_v56, %v1628_v54  ;;  %v1820_v61 = vsel %vm1564_vm0, %v1416_v60, %v1692_v41  ;;  %v1437_v10 = vadd.f32 %v3849_v19, %v3170_v55 }
 0x173   : > { %2399 = vst.msk [vmem:[%s3493_s4 + $0xec] sm:$0xf] %vm2339_vm3, %v2902_v35  ;;  %v2900_v9 = vpack.c.bf16 %v1756_v50, %v1756_v50  ;;  %v1173_v31 = vadd.f32 %v3849_v19, %v1172_v5  ;;  %v2964_v12 = vpack.c.bf16 %v1820_v61, %v1820_v61  ;;  %v1761_v29 = vsel %vm1505_vm1, %v1181_v52, %v1633_v22 }
 0x174   : > { %2463 = vst.msk [vmem:[%s3493_s4 + $0x1ec] sm:$0xf] %vm2339_vm3, %v2966_v44  ;;  %v1429_v13 = vadd.f32 %v3849_v19, %v1428_v15  ;;  %v1184_v30 = vadd.f32 %v3849_v19, %v3107_v1  ;;  %v2905_v3 = vpack.c.bf16 %v1761_v29, %v1761_v29  ;;  %vm1569_vm2 = vcmp.gt.f32.partialorder %v1437_v10, 0.0 }
 0x175   : > { %2397 = vst.msk [vmem:[%s3493_s4 + $0xe4] sm:$0xf] %vm2339_vm3, %v2900_v9  ;;  %v1697_v18 = vmul.f32 0.2, %v1437_v10  ;;  %vm1503_vm4 = vcmp.gt.f32.partialorder %v1173_v31, 0.0  ;;  %v1440_v26 = vadd.f32 %v3849_v19, %v3171_v7  ;;  %v1176_v28 = vadd.f32 %v3849_v19, %v1175_v14 }
 0x176   : > { %2461 = vst.msk [vmem:[%s3493_s4 + $0x1e4] sm:$0xf] %vm2339_vm3, %v2964_v12  ;;  %v1631_v40 = vmul.f32 0.2, %v1173_v31  ;;  %vm1567_vm5 = vcmp.gt.f32.partialorder %v1429_v13, 0.0  ;;  %vm1506_vm6 = vcmp.gt.f32.partialorder %v1184_v30, 0.0  ;;  %v1432_v58 = vadd.f32 %v3849_v19, %v1431_v21 }
 0x177   : > { %v1695_v16 = vmul.f32 0.2, %v1429_v13  ;;  %2402 = vst.msk [vmem:[%s3493_s4 + $0xf8] sm:$0xf] %vm2339_vm3, %v2905_v3  ;;  %v1825_v23 = vsel %vm1569_vm2, %v1437_v10, %v1697_v18  ;;  %v1634_v24 = vmul.f32 0.2, %v1184_v30 }
 0x178   : > { %v2969_v38 = vpack.c.bf16 %v1825_v23, %v1825_v23  ;;  %v1759_v39 = vsel %vm1503_vm4, %v1173_v31, %v1631_v40  ;;  %vm1570_vm7 = vcmp.gt.f32.partialorder %v1440_v26, 0.0  ;;  %v1698_v47 = vmul.f32 0.2, %v1440_v26 }
 0x179   : > { %v1823_v59 = vsel %vm1567_vm5, %v1429_v13, %v1695_v16  ;;  %v2903_v51 = vpack.c.bf16 %v1759_v39, %v1759_v39  ;;  %v1762_v20 = vsel %vm1506_vm6, %v1184_v30, %v1634_v24  ;;  %vm1504_vm8 = vcmp.gt.f32.partialorder %v1176_v28, 0.0 }
 0x17a   : > { %v2967_v17 = vpack.c.bf16 %v1823_v59, %v1823_v59  ;;  %2466 = vst.msk [vmem:[%s3493_s4 + $0x1f8] sm:$0xf] %vm2339_vm3, %v2969_v38  ;;  %v2906_v36 = vpack.c.bf16 %v1762_v20, %v1762_v20  ;;  %v1632_v2 = vmul.f32 0.2, %v1176_v28  ;;  %vm1568_vm9 = vcmp.gt.f32.partialorder %v1432_v58, 0.0 }
 0x17b   : > { %2400 = vst.msk [vmem:[%s3493_s4 + $0xf0] sm:$0xf] %vm2339_vm3, %v2903_v51  ;;  %v1696_v37 = vmul.f32 0.2, %v1432_v58  ;;  %v1826_v19 = vsel %vm1570_vm7, %v1440_v26, %v1698_v47 }
 0x17c   : > { %2464 = vst.msk [vmem:[%s3493_s4 + $0x1f0] sm:$0xf] %vm2339_vm3, %v2967_v17  ;;  %2403 = vst.msk [vmem:[%s3493_s4 + $0xfc] sm:$0xf] %vm2339_vm3, %v2906_v36  ;;  %v1760_v55 = vsel %vm1504_vm8, %v1176_v28, %v1632_v2  ;;  %v2970_v27 = vpack.c.bf16 %v1826_v19, %v1826_v19 }
 0x17d   : > { %v2904_v0 = vpack.c.bf16 %v1760_v55, %v1760_v55  ;;  %v1824_v45 = vsel %vm1568_vm9, %v1432_v58, %v1696_v37 }
 0x17e   : > { %v2968_v34 = vpack.c.bf16 %v1824_v45, %v1824_v45  ;;  %2467 = vst.msk [vmem:[%s3493_s4 + $0x1fc] sm:$0xf] %vm2339_vm3, %v2970_v27 }
 0x17f   : > { %2401 = vst.msk [vmem:[%s3493_s4 + $0xf4] sm:$0xf] %vm2339_vm3, %v2904_v0 }
 0x180   : > { %2465 = vst.msk [vmem:[%s3493_s4 + $0x1f4] sm:$0xf] %vm2339_vm3, %v2968_v34 }
 0x181 PF: > { %s13_s14 = sadd.s32 1, %s3292_s14   ;;  %s4124_s12 = smov %s3288_s13 }
 0x182   : > { %p10_p5 = scmp.ge.s32.totalorder %s13_s14, 4   ;;  %s4125_s13 = smov %s4127_s15 }
 0x184   :  { %12 = sbr.rel (!%p10_p5) target bundleno = 2 (0x2), region = 68 }

// kernel: discriminator_forward.6
= control target key start
LH: loop header
LB: loop body
LE: loop exit
PB: predicated region body
PF: predicated region fallthrough
CT: control target
= control target key end

     0   :  { %s3465_s12 = smov 0   ;;  %s3467_s13 = smov 0   ;;  %s3978_s0 = inlined_call_operand.vmem [shape: bf16[512,1024], index: 0, kind: input, shape index: {}]   ;;  %s3979_s1 = inlined_call_operand.vmem [shape: bf16[1024,128], index: 1, kind: input, shape index: {}]   ;;  %s3980_s2 = inlined_call_operand.vmem [shape: f32[1,128], index: 2, kind: input, shape index: {}]   ;;  %s3981_s3 = inlined_call_operand.vmem [shape: bf16[512,128], index: 3, kind: output, shape index: {}]  }
   0x1   :  { %s3469_s14 = smov 0  }
   0x2 LB: > { %s25_s15 = sadd.s32 1, %s3439_s13  ;;  %p2524_p0 = scmp.ge.s32.totalorder %s3443_s14, 1  ;;  %s3443_s14 = sphi %s3469_s14, %s13_s14   ;;  %s3439_s13 = sphi %s3467_s13, %s3983_s13   ;;  %s3435_s12 = sphi %s3465_s12, %s3982_s12  }
   0x3   : > { %p27_p1 = scmp.ge.s32.totalorder %s25_s15, 2  ;;  %p170_p2 = scmp.lt.s32.totalorder %s3443_s14, 3 }
   0x5   : > { %s3985_s15 = smov (%p27_p1, %s25_s15), 0  ;;  %p171_p3 = pnand %p2524_p0, %p170_p2 }
   0x6   : > { %s2525_s25 = sshll.u32 (!%p171_p3), %s3435_s12, 5 }
   0x7   : > { %174 = sbr.rel (%p171_p3) target bundleno = 505 (0x1f9), region = 32  ;;  %p206_p4 = scmp.lt.s32.totalorder (!%p171_p3), %s2525_s25, 63 }
   0xc   : > { %v3357_v0 = vld [vmem:[%s3979_s1 + $0x78] sm:$0xff]   ;;  %v3361_v4 = vld [vmem:[%s3979_s1 + $0x70] sm:$0xff]   ;;  %v3365_v8 = vld [vmem:[%s3979_s1 + $0x68] sm:$0xff]   ;;  %s3987_s25 = smov (!%p206_p4, %s2525_s25), 63 }
   0xd   : > { %v3358_v1 = vld [vmem:[%s3979_s1 + $0xf8] sm:$0xff]   ;;  %2885 = vmatprep.subr.bf16.mxu0 %v3357_v0  ;;  %v3362_v5 = vld [vmem:[%s3979_s1 + $0xf0] sm:$0xff]   ;;  %v3366_v9 = vld [vmem:[%s3979_s1 + $0xe8] sm:$0xff]   ;;  %s2757_s24 = sshll.u32 %s3987_s25, 5 }
   0xe   : > { %v3359_v2 = vld [vmem:[%s3979_s1 + $0x38] sm:$0xff]   ;;  %2997 = vmatprep.subr.bf16.mxu1 %v3358_v1  ;;  %v3363_v6 = vld [vmem:[%s3979_s1 + $0x30] sm:$0xff]   ;;  %v3367_v10 = vld [vmem:[%s3979_s1 + $0x28] sm:$0xff]   ;;  %s3582_s12 = scalar_lea.vmem %s3978_s0, %s2757_s24 }
   0xf   : > { %v3360_v3 = vld [vmem:[%s3979_s1 + $0xb8] sm:$0xff]   ;;  %2886 = vmatpush3.bf16.msra.mxu0 %v3359_v2  ;;  %v3364_v7 = vld [vmem:[%s3979_s1 + $0xb0] sm:$0xff]   ;;  %v3368_v11 = vld [vmem:[%s3979_s1 + $0xa8] sm:$0xff]  }
  0x10   : > { %2998 = vmatpush3.bf16.msra.mxu1 %v3360_v3  ;;  %2887 = vmatprep.subr.bf16.mxu0 %v3361_v4  ;;  %v3369_v12 = vld [vmem:[%s3979_s1 + $0x60] sm:$0xff]   ;;  %v3373_v16 = vld [vmem:[%s3979_s1 + $0x58] sm:$0xff]   ;;  %v3377_v20 = vld [vmem:[%s3979_s1 + $0x50] sm:$0xff]  }
  0x11   : > { %2999 = vmatprep.subr.bf16.mxu1 %v3362_v5  ;;  %v3370_v13 = vld [vmem:[%s3979_s1 + $0xe0] sm:$0xff]   ;;  %v3374_v17 = vld [vmem:[%s3979_s1 + $0xd8] sm:$0xff]   ;;  %v3378_v21 = vld [vmem:[%s3979_s1 + $0xd0] sm:$0xff]  }
  0x12   : > { %v3371_v14 = vld [vmem:[%s3979_s1 + $0x20] sm:$0xff]   ;;  %v3375_v18 = vld [vmem:[%s3979_s1 + $0x18] sm:$0xff]   ;;  %v3379_v22 = vld [vmem:[%s3979_s1 + $0x10] sm:$0xff]  }
  0x13   : > { %2888 = vmatpush3.bf16.msra.mxu0 %v3363_v6  ;;  %v3372_v15 = vld [vmem:[%s3979_s1 + $0xa0] sm:$0xff]   ;;  %v3376_v19 = vld [vmem:[%s3979_s1 + $0x98] sm:$0xff]   ;;  %v3380_v23 = vld [vmem:[%s3979_s1 + $0x90] sm:$0xff]  }
  0x14   : > { %3000 = vmatpush3.bf16.msra.mxu1 %v3364_v7  ;;  %2889 = vmatprep.subr.bf16.mxu0 %v3365_v8  ;;  %v3381_v24 = vld [vmem:[%s3979_s1 + $0x48] sm:$0xff]   ;;  %v3385_v28 = vld [vmem:[%s3979_s1 + $0x40] sm:$0xff]   ;;  %v3389_v40 = vld [vmem:[%s3979_s1 + $0x178] sm:$0xff]  }
  0x15   : > { %3001 = vmatprep.subr.bf16.mxu1 %v3366_v9  ;;  %v3382_v25 = vld [vmem:[%s3979_s1 + $0xc8] sm:$0xff]   ;;  %v3386_v29 = vld [vmem:[%s3979_s1 + $0xc0] sm:$0xff]   ;;  %v3390_v41 = vld [vmem:[%s3979_s1 + $0x138] sm:$0xff]  }
  0x16   : > { %v3383_v26 = vld [vmem:[%s3979_s1 + $0x8] sm:$0xff]   ;;  %v3387_v30 = vld [vmem:[%s3979_s1] sm:$0xff]   ;;  %v3391_v42 = vld [vmem:[%s3979_s1 + $0x1f8] sm:$0xff]  }
  0x17   : > { %2890 = vmatpush3.bf16.msra.mxu0 %v3367_v10  ;;  %v3384_v27 = vld [vmem:[%s3979_s1 + $0x88] sm:$0xff]   ;;  %v3388_v31 = vld [vmem:[%s3979_s1 + $0x80] sm:$0xff]   ;;  %v3392_v43 = vld [vmem:[%s3979_s1 + $0x1b8] sm:$0xff]  }
  0x18   : > { %3002 = vmatpush3.bf16.msra.mxu1 %v3368_v11  ;;  %2891 = vmatprep.subr.bf16.mxu0 %v3369_v12  ;;  %v229_v32 = vld [vmem:[%s3582_s12] sm:$0xff]  ;;  %v230_v34 = vld [vmem:[%s3582_s12 + $0x8] sm:$0xff]  ;;  %v3393_v55 = vld [vmem:[%s3979_s1 + $0x170] sm:$0xff]  }
  0x19   : > { %3003 = vmatprep.subr.bf16.mxu1 %v3370_v13  ;;  %v233_v33 = vld [vmem:[%s3582_s12 + $0x20] sm:$0xff]  ;;  %v234_v37 = vld [vmem:[%s3582_s12 + $0x28] sm:$0xff]  ;;  %v3394_v58 = vld [vmem:[%s3979_s1 + $0x130] sm:$0xff]  }
  0x1a   : > { %v2531_v35 = vcombine.low %v229_v32, %v233_v33  ;;  %v2532_v36 = vcombine.high %v229_v32, %v233_v33  ;;  %v2533_v38 = vcombine.low %v230_v34, %v234_v37  ;;  %v2534_v39 = vcombine.high %v230_v34, %v234_v37  ;;  %v237_v44 = vld [vmem:[%s3582_s12 + $0x40] sm:$0xff]  ;;  %v238_v47 = vld [vmem:[%s3582_s12 + $0x48] sm:$0xff]  ;;  %v3395_v60 = vld [vmem:[%s3979_s1 + $0x1f0] sm:$0xff]  }
  0x1b   : > { %2892 = vmatpush3.bf16.msra.mxu0 %v3371_v14  ;;  %v241_v45 = vld [vmem:[%s3582_s12 + $0x60] sm:$0xff]  ;;  %v242_v48 = vld [vmem:[%s3582_s12 + $0x68] sm:$0xff]  ;;  %v3396_v61 = vld [vmem:[%s3979_s1 + $0x1b0] sm:$0xff]  }
  0x1c   : > { %3004 = vmatpush3.bf16.msra.mxu1 %v3372_v15  ;;  %2893 = vmatprep.subr.bf16.mxu0 %v3373_v16  ;;  %v2540_v46 = vcombine.high %v237_v44, %v241_v45  ;;  %v245_v49 = vld [vmem:[%s3582_s12 + $0x80] sm:$0xff]  ;;  %v2542_v50 = vcombine.high %v238_v47, %v242_v48  ;;  %v246_v52 = vld [vmem:[%s3582_s12 + $0x88] sm:$0xff]  ;;  %v2539_v54 = vcombine.low %v237_v44, %v241_v45  ;;  %v3409_v34 = vld [vmem:[%s3979_s1 + $0x150] sm:$0xff]  }
  0x1d   : > { %3005 = vmatprep.subr.bf16.mxu1 %v3374_v17  ;;  %1548 = vmatprep.mubr.bf16.mxu0 %v2532_v36  ;;  %v249_v51 = vld [vmem:[%s3582_s12 + $0xa0] sm:$0xff]  ;;  %v250_v53 = vld [vmem:[%s3582_s12 + $0xa8] sm:$0xff]  ;;  %v2541_v56 = vcombine.low %v238_v47, %v242_v48  ;;  %v3410_v36 = vld [vmem:[%s3979_s1 + $0x110] sm:$0xff]  }
  0x1e   : > { %1709 = vmatprep.mubr.bf16.mxu1 %v2534_v39  ;;  %v2548_v57 = vcombine.high %v245_v49, %v249_v51  ;;  %v2550_v59 = vcombine.high %v246_v52, %v250_v53  ;;  %v253_v62 = vld [vmem:[%s3582_s12 + $0xc0] sm:$0xff]  ;;  %v254_v0 = vld [vmem:[%s3582_s12 + $0xc8] sm:$0xff]  ;;  %v2547_v3 = vcombine.low %v245_v49, %v249_v51  ;;  %v2549_v5 = vcombine.low %v246_v52, %v250_v53  ;;  %v3411_v37 = vld [vmem:[%s3979_s1 + $0x1d0] sm:$0xff]  }
  0x1f   : > { %2894 = vmatpush3.bf16.msra.mxu0 %v3375_v18  ;;  %v257_v63 = vld [vmem:[%s3582_s12 + $0xe0] sm:$0xff]  ;;  %v258_v1 = vld [vmem:[%s3582_s12 + $0xe8] sm:$0xff]  ;;  %v3412_v39 = vld [vmem:[%s3979_s1 + $0x190] sm:$0xff]  }
  0x20   : > { %3006 = vmatpush3.bf16.msra.mxu1 %v3376_v19  ;;  %2895 = vmatprep.subr.bf16.mxu0 %v3377_v20  ;;  %v3397_v2 = vld [vmem:[%s3979_s1 + $0x168] sm:$0xff]   ;;  %v2556_v6 = vcombine.high %v253_v62, %v257_v63  ;;  %v2558_v8 = vcombine.high %v254_v0, %v258_v1  ;;  %v261_v10 = vld [vmem:[%s3582_s12 + $0x100] sm:$0xff]  ;;  %v2555_v16 = vcombine.low %v253_v62, %v257_v63 }
  0x21   : > { %3007 = vmatprep.subr.bf16.mxu1 %v3378_v21  ;;  %v3398_v4 = vld [vmem:[%s3979_s1 + $0x128] sm:$0xff]   ;;  %v265_v11 = vld [vmem:[%s3582_s12 + $0x120] sm:$0xff]  ;;  %v2557_v18 = vcombine.low %v254_v0, %v258_v1 }
  0x22   : > { %v3399_v7 = vld [vmem:[%s3979_s1 + $0x1e8] sm:$0xff]   ;;  %v3401_v14 = vld [vmem:[%s3979_s1 + $0x160] sm:$0xff]   ;;  %v2564_v19 = vcombine.high %v261_v10, %v265_v11 }
  0x23   : > { %2896 = vmatpush3.bf16.msra.mxu0 %v3379_v22  ;;  %v3400_v9 = vld [vmem:[%s3979_s1 + $0x1a8] sm:$0xff]   ;;  %v3402_v15 = vld [vmem:[%s3979_s1 + $0x120] sm:$0xff]  }
  0x24   : > { %3008 = vmatpush3.bf16.msra.mxu1 %v3380_v23  ;;  %2897 = vmatprep.subr.bf16.mxu0 %v3381_v24  ;;  %v262_v12 = vld [vmem:[%s3582_s12 + $0x108] sm:$0xff]  ;;  %v3403_v17 = vld [vmem:[%s3979_s1 + $0x1e0] sm:$0xff]   ;;  %v3405_v24 = vld [vmem:[%s3979_s1 + $0x158] sm:$0xff]  }
  0x25   : > { %3009 = vmatprep.subr.bf16.mxu1 %v3382_v25  ;;  %v266_v13 = vld [vmem:[%s3582_s12 + $0x128] sm:$0xff]  ;;  %v3404_v20 = vld [vmem:[%s3979_s1 + $0x1a0] sm:$0xff]  }
  0x26   : > { %v2566_v21 = vcombine.high %v262_v12, %v266_v13  ;;  %v269_v22 = vld [vmem:[%s3582_s12 + $0x140] sm:$0xff]  ;;  %v270_v25 = vld [vmem:[%s3582_s12 + $0x148] sm:$0xff] }
  0x27   : > { %2898 = vmatpush3.bf16.msra.mxu0 %v3383_v26  ;;  %v273_v23 = vld [vmem:[%s3582_s12 + $0x160] sm:$0xff]  ;;  %v274_v26 = vld [vmem:[%s3582_s12 + $0x168] sm:$0xff] }
  0x28   : > { %3010 = vmatpush3.bf16.msra.mxu1 %v3384_v27  ;;  %2899 = vmatprep.subr.bf16.mxu0 %v3385_v28  ;;  %v3406_v27 = vld [vmem:[%s3979_s1 + $0x118] sm:$0xff]   ;;  %v2572_v32 = vcombine.high %v269_v22, %v273_v23  ;;  %v2574_v33 = vcombine.high %v270_v25, %v274_v26  ;;  %v3414_v47 = vld [vmem:[%s3979_s1 + $0x108] sm:$0xff]   ;;  %v289_v51 = vld [vmem:[%s3582_s12 + $0x1e0] sm:$0xff] }
  0x29   : > { %3011 = vmatprep.subr.bf16.mxu1 %v3386_v29  ;;  %v3407_v28 = vld [vmem:[%s3979_s1 + $0x1d8] sm:$0xff]   ;;  %v3415_v48 = vld [vmem:[%s3979_s1 + $0x1c8] sm:$0xff]   ;;  %v293_v62 = vld [vmem:[%s3582_s12 + $0x200] sm:$0xff] }
  0x2a   : > { %v3408_v29 = vld [vmem:[%s3979_s1 + $0x198] sm:$0xff]   ;;  %v3416_v49 = vld [vmem:[%s3979_s1 + $0x188] sm:$0xff]   ;;  %v297_v63 = vld [vmem:[%s3582_s12 + $0x220] sm:$0xff] }
  0x2b   : > { %2900 = vmatpush3.bf16.msra.mxu0 %v3387_v30  ;;  %v2563_v30 = vcombine.low %v261_v10, %v265_v11  ;;  %v286_v52 = vld [vmem:[%s3582_s12 + $0x1c8] sm:$0xff]  ;;  %v2595_v10 = vcombine.low %v293_v62, %v297_v63 }
  0x2c   : > { %3012 = vmatpush3.bf16.msra.mxu1 %v3388_v31  ;;  %3109 = vmatprep.subr.bf16.mxu0 %v3389_v40  ;;  %v2565_v31 = vcombine.low %v262_v12, %v266_v13  ;;  %v278_v40 = vld [vmem:[%s3582_s12 + $0x188] sm:$0xff] }
  0x2d   : > { %3221 = vmatprep.subr.bf16.mxu1 %v3391_v42  ;;  %v2571_v42 = vcombine.low %v269_v22, %v273_v23  ;;  %v290_v53 = vld [vmem:[%s3582_s12 + $0x1e8] sm:$0xff]  ;;  %v317_v22 = vld [vmem:[%s3582_s12 + $0x2c0] sm:$0xff] }
  0x2e   : > { %1549 = vmatmul.mubr.bf16.vlgmr.msra.gmra.mxu0 %v2531_v35  ;;  %v277_v35 = vld [vmem:[%s3582_s12 + $0x180] sm:$0xff]  ;;  %v294_v0 = vld [vmem:[%s3582_s12 + $0x208] sm:$0xff] }
  0x2f   : > { %1710 = vmatmul.mubr.bf16.vlgmr.msra.gmra.mxu1 %v2533_v38  ;;  %3110 = vmatpush3.bf16.msra.mxu0 %v3390_v41  ;;  %v281_v38 = vld [vmem:[%s3582_s12 + $0x1a0] sm:$0xff]  ;;  %v282_v41 = vld [vmem:[%s3582_s12 + $0x1a8] sm:$0xff] }
  0x30   : > { %3222 = vmatpush3.bf16.msra.mxu1 %v3392_v43  ;;  %1556 = vmatprep.mubr.bf16.mxu0 %v2540_v46  ;;  %v2573_v43 = vcombine.low %v270_v25, %v274_v26  ;;  %v2580_v44 = vcombine.high %v277_v35, %v281_v38  ;;  %v2582_v45 = vcombine.high %v278_v40, %v282_v41  ;;  %v3413_v46 = vld [vmem:[%s3979_s1 + $0x148] sm:$0xff]   ;;  %v321_v23 = vld [vmem:[%s3582_s12 + $0x2e0] sm:$0xff] }
  0x31   : > { %1717 = vmatprep.mubr.bf16.mxu1 %v2542_v50  ;;  %3111 = vmatprep.subr.bf16.mxu0 %v3393_v55  ;;  %v285_v50 = vld [vmem:[%s3582_s12 + $0x1c0] sm:$0xff]  ;;  %v298_v1 = vld [vmem:[%s3582_s12 + $0x228] sm:$0xff] }
  0x32   : > { %3223 = vmatprep.subr.bf16.mxu1 %v3395_v60  ;;  %v3417_v55 = vld [vmem:[%s3979_s1 + $0x140] sm:$0xff]   ;;  %v2597_v11 = vcombine.low %v294_v0, %v298_v1  ;;  %v322_v25 = vld [vmem:[%s3582_s12 + $0x2e8] sm:$0xff] }
  0x33   : > { %3112 = vmatpush3.bf16.msra.mxu0 %v3394_v58  ;;  %v3418_v58 = vld [vmem:[%s3979_s1 + $0x100] sm:$0xff]  }
  0x34   : > { %3224 = vmatpush3.bf16.msra.mxu1 %v3396_v61  ;;  %3113 = vmatprep.subr.bf16.mxu0 %v3397_v2  ;;  %v3419_v60 = vld [vmem:[%s3979_s1 + $0x1c0] sm:$0xff]   ;;  %v2587_v2 = vcombine.low %v285_v50, %v289_v51 }
  0x35   : > { %3225 = vmatprep.subr.bf16.mxu1 %v3399_v7  ;;  %v3420_v61 = vld [vmem:[%s3979_s1 + $0x180] sm:$0xff]  }
  0x36   : > { %1557 = vmatmul.mubr.bf16.gmra.mxu0 %v2539_v54  ;;  %v2579_v54 = vcombine.low %v277_v35, %v281_v38  ;;  %v305_v7 = vld [vmem:[%s3582_s12 + $0x260] sm:$0xff] }
  0x37   : > { %1718 = vmatmul.mubr.bf16.gmra.mxu1 %v2541_v56  ;;  %1564 = vmatprep.mubr.bf16.mxu0 %v2548_v57  ;;  %v2581_v56 = vcombine.low %v278_v40, %v282_v41  ;;  %v2588_v57 = vcombine.high %v285_v50, %v289_v51  ;;  %v333_v38 = vld [vmem:[%s3582_s12 + $0x340] sm:$0xff]  ;;  %v334_v40 = vld [vmem:[%s3582_s12 + $0x348] sm:$0xff] }
  0x38   : > { %1725 = vmatprep.mubr.bf16.mxu1 %v2550_v59  ;;  %3114 = vmatpush3.bf16.msra.mxu0 %v3398_v4  ;;  %v2590_v59 = vcombine.high %v286_v52, %v290_v53  ;;  %v2596_v4 = vcombine.high %v293_v62, %v297_v63  ;;  %v338_v41 = vld [vmem:[%s3582_s12 + $0x368] sm:$0xff]  ;;  %v231_v62 = vld [vmem:[%s3582_s12 + $0x10] sm:$0xff] }
  0x39   : > { %3226 = vmatpush3.bf16.msra.mxu1 %v3400_v9  ;;  %3115 = vmatprep.subr.bf16.mxu0 %v3401_v14  ;;  %v306_v9 = vld [vmem:[%s3582_s12 + $0x268] sm:$0xff]  ;;  %v309_v14 = vld [vmem:[%s3582_s12 + $0x280] sm:$0xff]  ;;  %v2637_v51 = vcombine.low %v334_v40, %v338_v41  ;;  %v235_v63 = vld [vmem:[%s3582_s12 + $0x30] sm:$0xff] }
  0x3a   : > { %3227 = vmatprep.subr.bf16.mxu1 %v3403_v17  ;;  %v314_v17 = vld [vmem:[%s3582_s12 + $0x2a8] sm:$0xff] }
  0x3c   : > { %3116 = vmatpush3.bf16.msra.mxu0 %v3402_v15  ;;  %v313_v15 = vld [vmem:[%s3582_s12 + $0x2a0] sm:$0xff] }
  0x3d   : > { %3228 = vmatpush3.bf16.msra.mxu1 %v3404_v20  ;;  %3117 = vmatprep.subr.bf16.mxu0 %v3405_v24  ;;  %v2612_v20 = vcombine.high %v309_v14, %v313_v15  ;;  %v318_v24 = vld [vmem:[%s3582_s12 + $0x2c8] sm:$0xff]  ;;  %v2611_v26 = vcombine.low %v309_v14, %v313_v15  ;;  %v247_v14 = vld [vmem:[%s3582_s12 + $0x90] sm:$0xff] }
  0x3e   : > { %1565 = vmatmul.mubr.bf16.gmra.mxu0 %v2547_v3  ;;  %3229 = vmatprep.subr.bf16.mxu1 %v3407_v28  ;;  %v2589_v3 = vcombine.low %v286_v52, %v290_v53  ;;  %v2620_v28 = vcombine.high %v317_v22, %v321_v23  ;;  %v2621_v35 = vcombine.low %v318_v24, %v322_v25  ;;  %v251_v15 = vld [vmem:[%s3582_s12 + $0xb0] sm:$0xff] }
  0x3f   : > { %1726 = vmatmul.mubr.bf16.gmra.mxu1 %v2549_v5  ;;  %1572 = vmatprep.mubr.bf16.mxu0 %v2556_v6  ;;  %v2598_v5 = vcombine.high %v294_v0, %v298_v1  ;;  %v301_v6 = vld [vmem:[%s3582_s12 + $0x240] sm:$0xff]  ;;  %v232_v0 = vld [vmem:[%s3582_s12 + $0x18] sm:$0xff] }
  0x40   : > { %1733 = vmatprep.mubr.bf16.mxu1 %v2558_v8  ;;  %3118 = vmatpush3.bf16.msra.mxu0 %v3406_v27  ;;  %v302_v8 = vld [vmem:[%s3582_s12 + $0x248] sm:$0xff]  ;;  %v2604_v12 = vcombine.high %v301_v6, %v305_v7  ;;  %v236_v1 = vld [vmem:[%s3582_s12 + $0x38] sm:$0xff] }
  0x41   : > { %3230 = vmatpush3.bf16.msra.mxu1 %v3408_v29  ;;  %3119 = vmatprep.subr.bf16.mxu0 %v3409_v34  ;;  %v2606_v13 = vcombine.high %v302_v8, %v306_v9  ;;  %v2622_v29 = vcombine.high %v318_v24, %v322_v25  ;;  %v2619_v34 = vcombine.low %v317_v22, %v321_v23  ;;  %v255_v22 = vld [vmem:[%s3582_s12 + $0xd0] sm:$0xff]  ;;  %v256_v24 = vld [vmem:[%s3582_s12 + $0xd8] sm:$0xff] }
  0x42   : > { %3231 = vmatprep.subr.bf16.mxu1 %v3411_v37  ;;  %v259_v23 = vld [vmem:[%s3582_s12 + $0xf0] sm:$0xff]  ;;  %v260_v25 = vld [vmem:[%s3582_s12 + $0xf8] sm:$0xff] }
  0x44   : > { %3120 = vmatpush3.bf16.msra.mxu0 %v3410_v36 }
  0x45   : > { %3232 = vmatpush3.bf16.msra.mxu1 %v3412_v39  ;;  %3121 = vmatprep.subr.bf16.mxu0 %v3413_v46  ;;  %v337_v39 = vld [vmem:[%s3582_s12 + $0x360] sm:$0xff] }
  0x46   : > { %1573 = vmatmul.mubr.bf16.gmra.mxu0 %v2555_v16  ;;  %3233 = vmatprep.subr.bf16.mxu1 %v3415_v48  ;;  %v310_v16 = vld [vmem:[%s3582_s12 + $0x288] sm:$0xff]  ;;  %v341_v46 = vld [vmem:[%s3582_s12 + $0x380] sm:$0xff]  ;;  %v2635_v50 = vcombine.low %v333_v38, %v337_v39 }
  0x47   : > { %1734 = vmatmul.mubr.bf16.gmra.mxu1 %v2557_v18  ;;  %1580 = vmatprep.mubr.bf16.mxu0 %v2564_v19  ;;  %v2603_v18 = vcombine.low %v301_v6, %v305_v7  ;;  %v2605_v19 = vcombine.low %v302_v8, %v306_v9  ;;  %v2613_v27 = vcombine.low %v310_v16, %v314_v17  ;;  %v342_v48 = vld [vmem:[%s3582_s12 + $0x388] sm:$0xff]  ;;  %v239_v6 = vld [vmem:[%s3582_s12 + $0x50] sm:$0xff]  ;;  %v240_v8 = vld [vmem:[%s3582_s12 + $0x58] sm:$0xff] }
  0x48   : > { %1741 = vmatprep.mubr.bf16.mxu1 %v2566_v21  ;;  %3122 = vmatpush3.bf16.msra.mxu0 %v3414_v47  ;;  %v2614_v21 = vcombine.high %v310_v16, %v314_v17  ;;  %v345_v47 = vld [vmem:[%s3582_s12 + $0x3a0] sm:$0xff]  ;;  %v243_v7 = vld [vmem:[%s3582_s12 + $0x70] sm:$0xff]  ;;  %v244_v9 = vld [vmem:[%s3582_s12 + $0x78] sm:$0xff] }
  0x49   : > { %3234 = vmatpush3.bf16.msra.mxu1 %v3416_v49  ;;  %3123 = vmatprep.subr.bf16.mxu0 %v3417_v55  ;;  %v346_v49 = vld [vmem:[%s3582_s12 + $0x3a8] sm:$0xff]  ;;  %v2644_v52 = vcombine.high %v341_v46, %v345_v47  ;;  %v353_v55 = vld [vmem:[%s3582_s12 + $0x3e0] sm:$0xff]  ;;  %v248_v16 = vld [vmem:[%s3582_s12 + $0x98] sm:$0xff] }
  0x4a   : > { %3235 = vmatprep.subr.bf16.mxu1 %v3419_v60  ;;  %v2646_v53 = vcombine.high %v342_v48, %v346_v49  ;;  %v252_v17 = vld [vmem:[%s3582_s12 + $0xb8] sm:$0xff] }
  0x4c   : > { %3124 = vmatpush3.bf16.msra.mxu0 %v3418_v58  ;;  %v2643_v58 = vcombine.low %v341_v46, %v345_v47  ;;  %v279_v46 = vld [vmem:[%s3582_s12 + $0x190] sm:$0xff] }
  0x4d   : > { %3236 = vmatpush3.bf16.msra.mxu1 %v3420_v61  ;;  %v283_v47 = vld [vmem:[%s3582_s12 + $0x1b0] sm:$0xff] }
  0x4e   : > { %1581 = vmatmul.mubr.bf16.gmra.mxu0 %v2563_v30  ;;  %v325_v30 = vld [vmem:[%s3582_s12 + $0x300] sm:$0xff] }
  0x4f   : > { %1742 = vmatmul.mubr.bf16.gmra.mxu1 %v2565_v31  ;;  %1588 = vmatprep.mubr.bf16.mxu0 %v2572_v32  ;;  %v329_v31 = vld [vmem:[%s3582_s12 + $0x320] sm:$0xff]  ;;  %v326_v32 = vld [vmem:[%s3582_s12 + $0x308] sm:$0xff] }
  0x50   : > { %1749 = vmatprep.mubr.bf16.mxu1 %v2574_v33  ;;  %v330_v33 = vld [vmem:[%s3582_s12 + $0x328] sm:$0xff]  ;;  %v2628_v36 = vcombine.high %v325_v30, %v329_v31 }
  0x51   : > { %v2630_v37 = vcombine.high %v326_v32, %v330_v33 }
  0x56   : > { %1589 = vmatmul.mubr.bf16.gmra.mxu0 %v2571_v42  ;;  %v2627_v42 = vcombine.low %v325_v30, %v329_v31  ;;  %v263_v30 = vld [vmem:[%s3582_s12 + $0x110] sm:$0xff] }
  0x57   : > { %1750 = vmatmul.mubr.bf16.gmra.mxu1 %v2573_v43  ;;  %1596 = vmatprep.mubr.bf16.mxu0 %v2580_v44  ;;  %v2629_v43 = vcombine.low %v326_v32, %v330_v33  ;;  %v2636_v44 = vcombine.high %v333_v38, %v337_v39  ;;  %v267_v31 = vld [vmem:[%s3582_s12 + $0x130] sm:$0xff]  ;;  %v264_v32 = vld [vmem:[%s3582_s12 + $0x118] sm:$0xff] }
  0x58   : > { %1757 = vmatprep.mubr.bf16.mxu1 %v2582_v45  ;;  %v2638_v45 = vcombine.high %v334_v40, %v338_v41  ;;  %v268_v33 = vld [vmem:[%s3582_s12 + $0x138] sm:$0xff]  ;;  %v271_v38 = vld [vmem:[%s3582_s12 + $0x150] sm:$0xff] }
  0x59   : > { %v275_v39 = vld [vmem:[%s3582_s12 + $0x170] sm:$0xff]  ;;  %v272_v40 = vld [vmem:[%s3582_s12 + $0x158] sm:$0xff] }
  0x5a   : > { %v276_v41 = vld [vmem:[%s3582_s12 + $0x178] sm:$0xff] }
  0x5e   : > { %1597 = vmatmul.mubr.bf16.gmra.mxu0 %v2579_v54  ;;  %v349_v54 = vld [vmem:[%s3582_s12 + $0x3c0] sm:$0xff] }
  0x5f   : > { %1758 = vmatmul.mubr.bf16.gmra.mxu1 %v2581_v56  ;;  %1604 = vmatprep.mubr.bf16.mxu0 %v2588_v57  ;;  %v350_v56 = vld [vmem:[%s3582_s12 + $0x3c8] sm:$0xff]  ;;  %v2652_v60 = vcombine.high %v349_v54, %v353_v55 }
  0x60   : > { %1765 = vmatprep.mubr.bf16.mxu1 %v2590_v59  ;;  %v354_v57 = vld [vmem:[%s3582_s12 + $0x3e8] sm:$0xff]  ;;  %v2645_v59 = vcombine.low %v342_v48, %v346_v49  ;;  %v280_v48 = vld [vmem:[%s3582_s12 + $0x198] sm:$0xff] }
  0x61   : > { %v2654_v61 = vcombine.high %v350_v56, %v354_v57  ;;  %v284_v49 = vld [vmem:[%s3582_s12 + $0x1b8] sm:$0xff] }
  0x66   : > { %1605 = vmatmul.mubr.bf16.gmra.mxu0 %v2587_v2  ;;  %v2651_v2 = vcombine.low %v349_v54, %v353_v55  ;;  %v287_v54 = vld [vmem:[%s3582_s12 + $0x1d0] sm:$0xff] }
  0x67   : > { %1766 = vmatmul.mubr.bf16.gmra.mxu1 %v2589_v3  ;;  %1612 = vmatprep.mubr.bf16.mxu0 %v2596_v4  ;;  %v2653_v3 = vcombine.low %v350_v56, %v354_v57  ;;  %v2536_v4 = vcombine.high %v231_v62, %v235_v63  ;;  %v291_v55 = vld [vmem:[%s3582_s12 + $0x1f0] sm:$0xff]  ;;  %v288_v56 = vld [vmem:[%s3582_s12 + $0x1d8] sm:$0xff] }
  0x68   : > { %1773 = vmatprep.mubr.bf16.mxu1 %v2598_v5  ;;  %v2538_v5 = vcombine.high %v232_v0, %v236_v1  ;;  %v292_v57 = vld [vmem:[%s3582_s12 + $0x1f8] sm:$0xff] }
  0x6e   : > { %1613 = vmatmul.mubr.bf16.gmra.mxu0 %v2595_v10  ;;  %v2535_v10 = vcombine.low %v231_v62, %v235_v63  ;;  %v295_v62 = vld [vmem:[%s3582_s12 + $0x210] sm:$0xff] }
  0x6f   : > { %1774 = vmatmul.mubr.bf16.gmra.mxu1 %v2597_v11  ;;  %1620 = vmatprep.mubr.bf16.mxu0 %v2604_v12  ;;  %v2537_v11 = vcombine.low %v232_v0, %v236_v1  ;;  %v2544_v12 = vcombine.high %v239_v6, %v243_v7  ;;  %v299_v63 = vld [vmem:[%s3582_s12 + $0x230] sm:$0xff]  ;;  %v296_v0 = vld [vmem:[%s3582_s12 + $0x218] sm:$0xff] }
  0x70   : > { %1781 = vmatprep.mubr.bf16.mxu1 %v2606_v13  ;;  %v2546_v13 = vcombine.high %v240_v8, %v244_v9  ;;  %v300_v1 = vld [vmem:[%s3582_s12 + $0x238] sm:$0xff] }
  0x76   : > { %1621 = vmatmul.mubr.bf16.gmra.mxu0 %v2603_v18  ;;  %v2543_v18 = vcombine.low %v239_v6, %v243_v7  ;;  %v303_v6 = vld [vmem:[%s3582_s12 + $0x250] sm:$0xff] }
  0x77   : > { %1782 = vmatmul.mubr.bf16.gmra.mxu1 %v2605_v19  ;;  %1628 = vmatprep.mubr.bf16.mxu0 %v2612_v20  ;;  %v2545_v19 = vcombine.low %v240_v8, %v244_v9  ;;  %v2552_v20 = vcombine.high %v247_v14, %v251_v15  ;;  %v307_v7 = vld [vmem:[%s3582_s12 + $0x270] sm:$0xff]  ;;  %v304_v8 = vld [vmem:[%s3582_s12 + $0x258] sm:$0xff] }
  0x78   : > { %1789 = vmatprep.mubr.bf16.mxu1 %v2614_v21  ;;  %v2554_v21 = vcombine.high %v248_v16, %v252_v17  ;;  %v308_v9 = vld [vmem:[%s3582_s12 + $0x278] sm:$0xff] }
  0x7e   : > { %1629 = vmatmul.mubr.bf16.gmra.mxu0 %v2611_v26  ;;  %v2551_v26 = vcombine.low %v247_v14, %v251_v15 }
  0x7f   : > { %1790 = vmatmul.mubr.bf16.gmra.mxu1 %v2613_v27  ;;  %1636 = vmatprep.mubr.bf16.mxu0 %v2620_v28  ;;  %v2553_v27 = vcombine.low %v248_v16, %v252_v17  ;;  %v2560_v28 = vcombine.high %v255_v22, %v259_v23  ;;  %v3793_v16 = vld [vmem:[%s3980_s2] ss:$0 sm:$0xff] }
  0x80   : > { %1797 = vmatprep.mubr.bf16.mxu1 %v2622_v29  ;;  %v2562_v29 = vcombine.high %v256_v24, %v260_v25 }
  0x86   : > { %1637 = vmatmul.mubr.bf16.gmra.mxu0 %v2619_v34  ;;  %v2559_v34 = vcombine.low %v255_v22, %v259_v23  ;;  %v312_v22 = vld [vmem:[%s3582_s12 + $0x298] sm:$0xff] }
  0x87   : > { %1798 = vmatmul.mubr.bf16.gmra.mxu1 %v2621_v35  ;;  %1644 = vmatprep.mubr.bf16.mxu0 %v2628_v36  ;;  %v2561_v35 = vcombine.low %v256_v24, %v260_v25  ;;  %v2568_v36 = vcombine.high %v263_v30, %v267_v31  ;;  %v316_v23 = vld [vmem:[%s3582_s12 + $0x2b8] sm:$0xff] }
  0x88   : > { %1805 = vmatprep.mubr.bf16.mxu1 %v2630_v37  ;;  %v2570_v37 = vcombine.high %v264_v32, %v268_v33 }
  0x8e   : > { %1645 = vmatmul.mubr.bf16.gmra.mxu0 %v2627_v42  ;;  %v2567_v42 = vcombine.low %v263_v30, %v267_v31 }
  0x8f   : > { %1806 = vmatmul.mubr.bf16.gmra.mxu1 %v2629_v43  ;;  %1652 = vmatprep.mubr.bf16.mxu0 %v2636_v44  ;;  %v2569_v43 = vcombine.low %v264_v32, %v268_v33  ;;  %v2576_v44 = vcombine.high %v271_v38, %v275_v39  ;;  %v2618_v32 = vcombine.high %v312_v22, %v316_v23 }
  0x90   : > { %1813 = vmatprep.mubr.bf16.mxu1 %v2638_v45  ;;  %v2578_v45 = vcombine.high %v272_v40, %v276_v41 }
  0x96   : > { %1653 = vmatmul.mubr.bf16.gmra.mxu0 %v2635_v50  ;;  %v2575_v50 = vcombine.low %v271_v38, %v275_v39 }
  0x97   : > { %1814 = vmatmul.mubr.bf16.gmra.mxu1 %v2637_v51  ;;  %1660 = vmatprep.mubr.bf16.mxu0 %v2644_v52  ;;  %v2577_v51 = vcombine.low %v272_v40, %v276_v41  ;;  %v2584_v52 = vcombine.high %v279_v46, %v283_v47  ;;  %v319_v41 = vld [vmem:[%s3582_s12 + $0x2d0] sm:$0xff] }
  0x98   : > { %1821 = vmatprep.mubr.bf16.mxu1 %v2646_v53  ;;  %v2586_v53 = vcombine.high %v280_v48, %v284_v49 }
  0x9e   : > { %1661 = vmatmul.mubr.bf16.gmra.mxu0 %v2643_v58  ;;  %v2583_v58 = vcombine.low %v279_v46, %v283_v47  ;;  %v320_v46 = vld [vmem:[%s3582_s12 + $0x2d8] sm:$0xff] }
  0x9f   : > { %1822 = vmatmul.mubr.bf16.gmra.mxu1 %v2645_v59  ;;  %1668 = vmatprep.mubr.bf16.mxu0 %v2652_v60  ;;  %v2585_v59 = vcombine.low %v280_v48, %v284_v49  ;;  %v2592_v60 = vcombine.high %v287_v54, %v291_v55  ;;  %v324_v47 = vld [vmem:[%s3582_s12 + $0x2f8] sm:$0xff] }
  0xa0   : > { %1829 = vmatprep.mubr.bf16.mxu1 %v2654_v61  ;;  %v2594_v61 = vcombine.high %v288_v56, %v292_v57 }
  0xa6   : > { %1669 = vmatmul.mubr.bf16.gmra.mxu0 %v2651_v2  ;;  %v2591_v2 = vcombine.low %v287_v54, %v291_v55 }
  0xa7   : > { %1830 = vmatmul.mubr.bf16.gmra.mxu1 %v2653_v3  ;;  %1870 = vmatprep.mubr.bf16.mxu0 %v2536_v4  ;;  %v2593_v3 = vcombine.low %v288_v56, %v292_v57  ;;  %v2600_v4 = vcombine.high %v295_v62, %v299_v63  ;;  %v2626_v56 = vcombine.high %v320_v46, %v324_v47 }
  0xa8   : > { %2031 = vmatprep.mubr.bf16.mxu1 %v2538_v5  ;;  %v2602_v5 = vcombine.high %v296_v0, %v300_v1 }
  0xae   : > { %1871 = vmatmul.mubr.bf16.vlgmr.msra.gmra.mxu0 %v2535_v10  ;;  %v2599_v10 = vcombine.low %v295_v62, %v299_v63 }
  0xaf   : > { %2032 = vmatmul.mubr.bf16.vlgmr.msra.gmra.mxu1 %v2537_v11  ;;  %1878 = vmatprep.mubr.bf16.mxu0 %v2544_v12  ;;  %v2601_v11 = vcombine.low %v296_v0, %v300_v1  ;;  %v2608_v12 = vcombine.high %v303_v6, %v307_v7  ;;  %v327_v1 = vld [vmem:[%s3582_s12 + $0x310] sm:$0xff] }
  0xb0   : > { %2039 = vmatprep.mubr.bf16.mxu1 %v2546_v13  ;;  %v2610_v13 = vcombine.high %v304_v8, %v308_v9 }
  0xb6   : > { %1879 = vmatmul.mubr.bf16.gmra.mxu0 %v2543_v18  ;;  %v311_v18 = vld [vmem:[%s3582_s12 + $0x290] sm:$0xff] }
  0xb7   : > { %2040 = vmatmul.mubr.bf16.gmra.mxu1 %v2545_v19  ;;  %1886 = vmatprep.mubr.bf16.mxu0 %v2552_v20  ;;  %v315_v19 = vld [vmem:[%s3582_s12 + $0x2b0] sm:$0xff] }
  0xb8   : > { %2047 = vmatprep.mubr.bf16.mxu1 %v2554_v21  ;;  %v2616_v30 = vcombine.high %v311_v18, %v315_v19 }
  0xbe   : > { %1887 = vmatmul.mubr.bf16.gmra.mxu0 %v2551_v26  ;;  %v2607_v26 = vcombine.low %v303_v6, %v307_v7  ;;  %v328_v6 = vld [vmem:[%s3582_s12 + $0x318] sm:$0xff] }
  0xbf   : > { %2048 = vmatmul.mubr.bf16.gmra.mxu1 %v2553_v27  ;;  %1894 = vmatprep.mubr.bf16.mxu0 %v2560_v28  ;;  %v332_v7 = vld [vmem:[%s3582_s12 + $0x338] sm:$0xff] }
  0xc0   : > { %2055 = vmatprep.mubr.bf16.mxu1 %v2562_v29  ;;  %v2609_v29 = vcombine.low %v304_v8, %v308_v9 }
  0xc6   : > { %1895 = vmatmul.mubr.bf16.gmra.mxu0 %v2559_v34 }
  0xc7   : > { %2056 = vmatmul.mubr.bf16.gmra.mxu1 %v2561_v35  ;;  %1902 = vmatprep.mubr.bf16.mxu0 %v2568_v36 }
  0xc8   : > { %2063 = vmatprep.mubr.bf16.mxu1 %v2570_v37 }
  0xce   : > { %1903 = vmatmul.mubr.bf16.gmra.mxu0 %v2567_v42  ;;  %v323_v42 = vld [vmem:[%s3582_s12 + $0x2f0] sm:$0xff] }
  0xcf   : > { %2064 = vmatmul.mubr.bf16.gmra.mxu1 %v2569_v43  ;;  %1910 = vmatprep.mubr.bf16.mxu0 %v2576_v44  ;;  %v2624_v54 = vcombine.high %v319_v41, %v323_v42 }
  0xd0   : > { %2071 = vmatprep.mubr.bf16.mxu1 %v2578_v45 }
  0xd6   : > { %1911 = vmatmul.mubr.bf16.gmra.mxu0 %v2575_v50  ;;  %v2615_v50 = vcombine.low %v311_v18, %v315_v19 }
  0xd7   : > { %2072 = vmatmul.mubr.bf16.gmra.mxu1 %v2577_v51  ;;  %1918 = vmatprep.mubr.bf16.mxu0 %v2584_v52 }
  0xd8   : > { %2079 = vmatprep.mubr.bf16.mxu1 %v2586_v53  ;;  %v2617_v53 = vcombine.low %v312_v22, %v316_v23 }
  0xde   : > { %1919 = vmatmul.mubr.bf16.gmra.mxu0 %v2583_v58 }
  0xdf   : > { %2080 = vmatmul.mubr.bf16.gmra.mxu1 %v2585_v59  ;;  %1926 = vmatprep.mubr.bf16.mxu0 %v2592_v60 }
  0xe0   : > { %2087 = vmatprep.mubr.bf16.mxu1 %v2594_v61 }
  0xe6   : > { %1927 = vmatmul.mubr.bf16.gmra.mxu0 %v2591_v2  ;;  %v331_v2 = vld [vmem:[%s3582_s12 + $0x330] sm:$0xff] }
  0xe7   : > { %2088 = vmatmul.mubr.bf16.gmra.mxu1 %v2593_v3  ;;  %1934 = vmatprep.mubr.bf16.mxu0 %v2600_v4 }
  0xe8   : > { %2095 = vmatprep.mubr.bf16.mxu1 %v2602_v5 }
  0xee   : > { %v2901_v14 = vpop.f32.mrf.mxu0  ;;  %1935 = vmatmul.mubr.bf16.gmra.mxu0 %v2599_v10  ;;  %v2623_v10 = vcombine.low %v319_v41, %v323_v42 }
  0xef   : > { %v3013_v15 = vpop.f32.mrf.mxu1  ;;  %2096 = vmatmul.mubr.bf16.gmra.mxu1 %v2601_v11  ;;  %1942 = vmatprep.mubr.bf16.mxu0 %v2608_v12 }
  0xf0   : > { %v2902_v17 = vpop.f32.mrf.mxu0  ;;  %2103 = vmatprep.mubr.bf16.mxu1 %v2610_v13  ;;  %v2625_v13 = vcombine.low %v320_v46, %v324_v47 }
  0xf1   : > { %v2903_v20 = vadd.f32 %v2902_v17, %v2901_v14  ;;  %v3014_v21 = vpop.f32.mrf.mxu1  ;;  %v2632_v14 = vcombine.high %v327_v1, %v331_v2  ;;  %v2634_v17 = vcombine.high %v328_v6, %v332_v7 }
  0xf2   : > { %v3015_v24 = vadd.f32 %v3014_v21, %v3013_v15  ;;  %v2904_v25 = vpop.f32.mrf.mxu0 }
  0xf3   : > { %v1551_v27 = vadd.f32 %v2903_v20, %v3793_v16  ;;  %v3016_v28 = vpop.f32.mrf.mxu1 }
  0xf4   : > { %v2905_v31 = vpop.f32.mrf.mxu0 }
  0xf5   : > { %v3800_v33 = vadd.f32 %v3015_v24, %v1551_v27  ;;  %v2906_v34 = vadd.f32 %v2905_v31, %v2904_v25  ;;  %v3017_v35 = vpop.f32.mrf.mxu1  ;;  %v339_v27 = vld [vmem:[%s3582_s12 + $0x370] sm:$0xff]  ;;  %v336_v31 = vld [vmem:[%s3582_s12 + $0x358] sm:$0xff] }
  0xf6   : > { %v3018_v36 = vadd.f32 %v3017_v35, %v3016_v28  ;;  %v2907_v37 = vpop.f32.mrf.mxu0  ;;  %1943 = vmatmul.mubr.bf16.gmra.mxu0 %v2607_v26  ;;  %v335_v26 = vld [vmem:[%s3582_s12 + $0x350] sm:$0xff] }
  0xf7   : > { %v1554_v38 = vadd.f32 %v2906_v34, %v3793_v16  ;;  %v3019_v39 = vpop.f32.mrf.mxu1  ;;  %2104 = vmatmul.mubr.bf16.gmra.mxu1 %v2609_v29  ;;  %1950 = vmatprep.mubr.bf16.mxu0 %v2616_v30 }
  0xf8   : > { %v2908_v40 = vpop.f32.mrf.mxu0  ;;  %2111 = vmatprep.mubr.bf16.mxu1 %v2618_v32  ;;  %v340_v32 = vld [vmem:[%s3582_s12 + $0x378] sm:$0xff] }
  0xf9   : > { %v3805_v43 = vadd.f32 %v3018_v36, %v1554_v38  ;;  %v2909_v44 = vadd.f32 %v2908_v40, %v2907_v37  ;;  %v3020_v45 = vpop.f32.mrf.mxu1  ;;  %v2631_v36 = vcombine.low %v327_v1, %v331_v2  ;;  %v2640_v40 = vcombine.high %v335_v26, %v339_v27 }
  0xfa   : > { %v3021_v48 = vadd.f32 %v3020_v45, %v3019_v39  ;;  %v2910_v49 = vpop.f32.mrf.mxu0  ;;  %v2633_v39 = vcombine.low %v328_v6, %v332_v7  ;;  %v2642_v42 = vcombine.high %v336_v31, %v340_v32  ;;  %v2641_v1 = vcombine.low %v336_v31, %v340_v32 }
  0xfb   : > { %v1559_v51 = vadd.f32 %v2909_v44, %v3793_v16  ;;  %v3022_v52 = vpop.f32.mrf.mxu1 }
  0xfc   : > { %v2911_v55 = vpop.f32.mrf.mxu0 }
  0xfd   : > { %v3810_v57 = vadd.f32 %v3021_v48, %v1559_v51  ;;  %v2912_v58 = vadd.f32 %v2911_v55, %v2910_v49  ;;  %v3023_v59 = vpop.f32.mrf.mxu1 }
  0xfe   : > { %v3024_v60 = vadd.f32 %v3023_v59, %v3022_v52  ;;  %v2913_v61 = vpop.f32.mrf.mxu0  ;;  %1951 = vmatmul.mubr.bf16.gmra.mxu0 %v2615_v50  ;;  %v343_v52 = vld [vmem:[%s3582_s12 + $0x390] sm:$0xff]  ;;  %v348_v59 = vld [vmem:[%s3582_s12 + $0x3b8] sm:$0xff] }
  0xff   : > { %v1562_v62 = vadd.f32 %v2912_v58, %v3793_v16  ;;  %v3025_v63 = vpop.f32.mrf.mxu1  ;;  %2112 = vmatmul.mubr.bf16.gmra.mxu1 %v2617_v53  ;;  %1958 = vmatprep.mubr.bf16.mxu0 %v2624_v54  ;;  %v347_v53 = vld [vmem:[%s3582_s12 + $0x3b0] sm:$0xff]  ;;  %v344_v58 = vld [vmem:[%s3582_s12 + $0x398] sm:$0xff] }
 0x100   : > { %v2914_v0 = vpop.f32.mrf.mxu0  ;;  %2119 = vmatprep.mubr.bf16.mxu1 %v2626_v56  ;;  %v2648_v2 = vcombine.high %v343_v52, %v347_v53 }
 0x101   : > { %v3815_v3 = vadd.f32 %v3024_v60, %v1562_v62  ;;  %v2915_v4 = vadd.f32 %v2914_v0, %v2913_v61  ;;  %v3026_v5 = vpop.f32.mrf.mxu1  ;;  %v2639_v62 = vcombine.low %v335_v26, %v339_v27 }
 0x102   : > { %v3027_v8 = vadd.f32 %v3026_v5, %v3025_v63  ;;  %v2916_v9 = vpop.f32.mrf.mxu0  ;;  %v2650_v5 = vcombine.high %v344_v58, %v348_v59 }
 0x103   : > { %v1567_v11 = vadd.f32 %v2915_v4, %v3793_v16  ;;  %v3028_v12 = vpop.f32.mrf.mxu1 }
 0x104   : > { %v2917_v15 = vpop.f32.mrf.mxu0 }
 0x105   : > { %v3820_v18 = vadd.f32 %v3027_v8, %v1567_v11  ;;  %v2918_v19 = vadd.f32 %v2917_v15, %v2916_v9  ;;  %v3029_v20 = vpop.f32.mrf.mxu1  ;;  %v355_v15 = vld [vmem:[%s3582_s12 + $0x3f0] sm:$0xff] }
 0x106   : > { %v3030_v21 = vadd.f32 %v3029_v20, %v3028_v12  ;;  %v2919_v22 = vpop.f32.mrf.mxu0  ;;  %1959 = vmatmul.mubr.bf16.gmra.mxu0 %v2623_v10 }
 0x107   : > { %v1570_v23 = vadd.f32 %v2918_v19, %v3793_v16  ;;  %v3031_v24 = vpop.f32.mrf.mxu1  ;;  %2120 = vmatmul.mubr.bf16.gmra.mxu1 %v2625_v13  ;;  %1966 = vmatprep.mubr.bf16.mxu0 %v2632_v14  ;;  %v351_v14 = vld [vmem:[%s3582_s12 + $0x3d0] sm:$0xff] }
 0x108   : > { %v2920_v25 = vpop.f32.mrf.mxu0  ;;  %2127 = vmatprep.mubr.bf16.mxu1 %v2634_v17 }
 0x109   : > { %v3825_v28 = vadd.f32 %v3030_v21, %v1570_v23  ;;  %v2921_v29 = vadd.f32 %v2920_v25, %v2919_v22  ;;  %v3032_v30 = vpop.f32.mrf.mxu1  ;;  %v352_v21 = vld [vmem:[%s3582_s12 + $0x3d8] sm:$0xff]  ;;  %v2647_v25 = vcombine.low %v343_v52, %v347_v53 }
 0x10a   : > { %v3033_v34 = vadd.f32 %v3032_v30, %v3031_v24  ;;  %v2922_v35 = vpop.f32.mrf.mxu0  ;;  %v356_v22 = vld [vmem:[%s3582_s12 + $0x3f8] sm:$0xff]  ;;  %v2656_v30 = vcombine.high %v351_v14, %v355_v15  ;;  %s2529_s12 = sshll.u32 %s3987_s25, 2 }
 0x10b   : > { %v1575_v37 = vadd.f32 %v2921_v29, %v3793_v16  ;;  %v3034_v38 = vpop.f32.mrf.mxu1  ;;  %v2649_v29 = vcombine.low %v344_v58, %v348_v59  ;;  %v2658_v32 = vcombine.high %v352_v21, %v356_v22  ;;  %v2657_v52 = vcombine.low %v352_v21, %v356_v22  ;;  %s3922_s17 = scalar_lea.vmem %s3981_s3, %s2529_s12 }
 0x10c   : > { %v2923_v41 = vpop.f32.mrf.mxu0 }
 0x10d   : > { %v3830_v44 = vadd.f32 %v3033_v34, %v1575_v37  ;;  %v2924_v45 = vadd.f32 %v2923_v41, %v2922_v35  ;;  %v3035_v46 = vpop.f32.mrf.mxu1 }
 0x10e   : > { %v3036_v47 = vadd.f32 %v3035_v46, %v3034_v38  ;;  %v2925_v48 = vpop.f32.mrf.mxu0  ;;  %1967 = vmatmul.mubr.bf16.gmra.mxu0 %v2631_v36 }
 0x10f   : > { %v1578_v49 = vadd.f32 %v2924_v45, %v3793_v16  ;;  %v3037_v50 = vpop.f32.mrf.mxu1  ;;  %2128 = vmatmul.mubr.bf16.gmra.mxu1 %v2633_v39  ;;  %1974 = vmatprep.mubr.bf16.mxu0 %v2640_v40 }
 0x110   : > { %v2926_v51 = vpop.f32.mrf.mxu0  ;;  %2135 = vmatprep.mubr.bf16.mxu1 %v2642_v42 }
 0x111   : > { %v3835_v54 = vadd.f32 %v3036_v47, %v1578_v49  ;;  %v2927_v55 = vadd.f32 %v2926_v51, %v2925_v48  ;;  %v3038_v56 = vpop.f32.mrf.mxu1  ;;  %v2655_v49 = vcombine.low %v351_v14, %v355_v15 }
 0x112   : > { %v3039_v60 = vadd.f32 %v3038_v56, %v3037_v50  ;;  %v2928_v61 = vpop.f32.mrf.mxu0 }
 0x113   : > { %v1583_v63 = vadd.f32 %v2927_v55, %v3793_v16  ;;  %v3040_v0 = vpop.f32.mrf.mxu1 }
 0x114   : > { %v2929_v4 = vpop.f32.mrf.mxu0 }
 0x115   : > { %v3840_v6 = vadd.f32 %v3039_v60, %v1583_v63  ;;  %v2930_v7 = vadd.f32 %v2929_v4, %v2928_v61  ;;  %v3041_v8 = vpop.f32.mrf.mxu1 }
 0x116   : > { %v3042_v9 = vadd.f32 %v3041_v8, %v3040_v0  ;;  %v2931_v10 = vpop.f32.mrf.mxu0  ;;  %1975 = vmatmul.mubr.bf16.gmra.mxu0 %v2639_v62 }
 0x117   : > { %v1586_v11 = vadd.f32 %v2930_v7, %v3793_v16  ;;  %v3043_v12 = vpop.f32.mrf.mxu1  ;;  %2136 = vmatmul.mubr.bf16.gmra.mxu1 %v2641_v1  ;;  %1982 = vmatprep.mubr.bf16.mxu0 %v2648_v2 }
 0x118   : > { %v2932_v13 = vpop.f32.mrf.mxu0  ;;  %2143 = vmatprep.mubr.bf16.mxu1 %v2650_v5 }
 0x119   : > { %v3845_v17 = vadd.f32 %v3042_v9, %v1586_v11  ;;  %v2933_v19 = vadd.f32 %v2932_v13, %v2931_v10  ;;  %v3044_v20 = vpop.f32.mrf.mxu1 }
 0x11a   : > { %v3045_v23 = vadd.f32 %v3044_v20, %v3043_v12  ;;  %v2934_v24 = vpop.f32.mrf.mxu0 }
 0x11b   : > { %v1591_v26 = vadd.f32 %v2933_v19, %v3793_v16  ;;  %v3046_v27 = vpop.f32.mrf.mxu1 }
 0x11c   : > { %v2935_v31 = vpop.f32.mrf.mxu0 }
 0x11d   : > { %v3850_v34 = vadd.f32 %v3045_v23, %v1591_v26  ;;  %v2936_v35 = vadd.f32 %v2935_v31, %v2934_v24  ;;  %v3047_v36 = vpop.f32.mrf.mxu1 }
 0x11e   : > { %v3048_v37 = vadd.f32 %v3047_v36, %v3046_v27  ;;  %v2937_v38 = vpop.f32.mrf.mxu0  ;;  %1983 = vmatmul.mubr.bf16.gmra.mxu0 %v2647_v25 }
 0x11f   : > { %v1594_v39 = vadd.f32 %v2936_v35, %v3793_v16  ;;  %v3049_v40 = vpop.f32.mrf.mxu1  ;;  %2144 = vmatmul.mubr.bf16.gmra.mxu1 %v2649_v29  ;;  %1990 = vmatprep.mubr.bf16.mxu0 %v2656_v30 }
 0x120   : > { %v2938_v41 = vpop.f32.mrf.mxu0  ;;  %2151 = vmatprep.mubr.bf16.mxu1 %v2658_v32 }
 0x121   : > { %v3853_v42 = vadd.f32 %v3048_v37, %v1594_v39  ;;  %v2939_v45 = vadd.f32 %v2938_v41, %v2937_v38  ;;  %v3050_v46 = vpop.f32.mrf.mxu1 }
 0x122   : > { %v3051_v47 = vadd.f32 %v3050_v46, %v3049_v40  ;;  %v2940_v48 = vpop.f32.mrf.mxu0 }
 0x123   : > { %v1599_v50 = vadd.f32 %v2939_v45, %v3793_v16  ;;  %v3052_v51 = vpop.f32.mrf.mxu1 }
 0x124   : > { %v2941_v53 = vpop.f32.mrf.mxu0 }
 0x125   : > { %v3856_v55 = vadd.f32 %v3051_v47, %v1599_v50  ;;  %v2942_v56 = vadd.f32 %v2941_v53, %v2940_v48  ;;  %v3053_v58 = vpop.f32.mrf.mxu1 }
 0x126   : > { %v3054_v59 = vadd.f32 %v3053_v58, %v3052_v51  ;;  %v2943_v60 = vpop.f32.mrf.mxu0  ;;  %1991 = vmatmul.mubr.bf16.gmra.mxu0 %v2655_v49 }
 0x127   : > { %v1602_v61 = vadd.f32 %v2942_v56, %v3793_v16  ;;  %v3055_v62 = vpop.f32.mrf.mxu1  ;;  %2152 = vmatmul.mubr.bf16.gmra.mxu1 %v2657_v52 }
 0x128   : > { %v2944_v63 = vpop.f32.mrf.mxu0 }
 0x129   : > { %v3859_v0 = vadd.f32 %v3054_v59, %v1602_v61  ;;  %v2945_v1 = vadd.f32 %v2944_v63, %v2943_v60  ;;  %v3056_v2 = vpop.f32.mrf.mxu1 }
 0x12a   : > { %v3057_v4 = vadd.f32 %v3056_v2, %v3055_v62  ;;  %v2946_v5 = vpop.f32.mrf.mxu0 }
 0x12b   : > { %v1607_v7 = vadd.f32 %v2945_v1, %v3793_v16  ;;  %v3058_v8 = vpop.f32.mrf.mxu1 }
 0x12c   : > { %v2947_v9 = vpop.f32.mrf.mxu0 }
 0x12d   : > { %v3862_v10 = vadd.f32 %v3057_v4, %v1607_v7  ;;  %v2948_v11 = vadd.f32 %v2947_v9, %v2946_v5  ;;  %v3059_v12 = vpop.f32.mrf.mxu1 }
 0x12e   : > { %v3060_v13 = vadd.f32 %v3059_v12, %v3058_v8  ;;  %v2949_v14 = vpop.f32.mrf.mxu0 }
 0x12f   : > { %v1610_v15 = vadd.f32 %v2948_v11, %v3793_v16  ;;  %v3061_v19 = vpop.f32.mrf.mxu1 }
 0x130   : > { %v2950_v20 = vpop.f32.mrf.mxu0 }
 0x131   : > { %v3865_v21 = vadd.f32 %v3060_v13, %v1610_v15  ;;  %v2951_v22 = vadd.f32 %v2950_v20, %v2949_v14  ;;  %v3062_v23 = vpop.f32.mrf.mxu1 }
 0x132   : > { %v3063_v24 = vadd.f32 %v3062_v23, %v3061_v19  ;;  %v2952_v25 = vpop.f32.mrf.mxu0 }
 0x133   : > { %v1615_v26 = vadd.f32 %v2951_v22, %v3793_v16  ;;  %v3064_v27 = vpop.f32.mrf.mxu1 }
 0x134   : > { %v2953_v29 = vpop.f32.mrf.mxu0 }
 0x135   : > { %v3868_v30 = vadd.f32 %v3063_v24, %v1615_v26  ;;  %v2954_v31 = vadd.f32 %v2953_v29, %v2952_v25  ;;  %v3065_v32 = vpop.f32.mrf.mxu1 }
 0x136   : > { %v3066_v35 = vadd.f32 %v3065_v32, %v3064_v27  ;;  %v2955_v36 = vpop.f32.mrf.mxu0 }
 0x137   : > { %v1618_v37 = vadd.f32 %v2954_v31, %v3793_v16  ;;  %v3067_v38 = vpop.f32.mrf.mxu1 }
 0x138   : > { %v2956_v39 = vpop.f32.mrf.mxu0 }
 0x139   : > { %v3871_v40 = vadd.f32 %v3066_v35, %v1618_v37  ;;  %v2957_v41 = vadd.f32 %v2956_v39, %v2955_v36  ;;  %v3068_v45 = vpop.f32.mrf.mxu1 }
 0x13a   : > { %v3069_v46 = vadd.f32 %v3068_v45, %v3067_v38  ;;  %v2958_v47 = vpop.f32.mrf.mxu0 }
 0x13b   : > { %v1623_v48 = vadd.f32 %v2957_v41, %v3793_v16  ;;  %v3070_v49 = vpop.f32.mrf.mxu1 }
 0x13c   : > { %v2959_v50 = vpop.f32.mrf.mxu0 }
 0x13d   : > { %v3874_v51 = vadd.f32 %v3069_v46, %v1623_v48  ;;  %v2960_v52 = vadd.f32 %v2959_v50, %v2958_v47  ;;  %v3071_v53 = vpop.f32.mrf.mxu1 }
 0x13e   : > { %v3072_v56 = vadd.f32 %v3071_v53, %v3070_v49  ;;  %v2961_v58 = vpop.f32.mrf.mxu0 }
 0x13f   : > { %v1626_v59 = vadd.f32 %v2960_v52, %v3793_v16  ;;  %v3073_v60 = vpop.f32.mrf.mxu1 }
 0x140   : > { %v2962_v61 = vpop.f32.mrf.mxu0 }
 0x141   : > { %v3877_v62 = vadd.f32 %v3072_v56, %v1626_v59  ;;  %v2963_v63 = vadd.f32 %v2962_v61, %v2961_v58  ;;  %v3074_v1 = vpop.f32.mrf.mxu1 }
 0x142   : > { %v3075_v2 = vadd.f32 %v3074_v1, %v3073_v60  ;;  %v2964_v4 = vpop.f32.mrf.mxu0 }
 0x143   : > { %v1631_v5 = vadd.f32 %v2963_v63, %v3793_v16  ;;  %v3076_v7 = vpop.f32.mrf.mxu1 }
 0x144   : > { %v2965_v8 = vpop.f32.mrf.mxu0 }
 0x145   : > { %v3880_v9 = vadd.f32 %v3075_v2, %v1631_v5  ;;  %v2966_v11 = vadd.f32 %v2965_v8, %v2964_v4  ;;  %v3077_v12 = vpop.f32.mrf.mxu1 }
 0x146   : > { %v3078_v13 = vadd.f32 %v3077_v12, %v3076_v7  ;;  %v2967_v14 = vpop.f32.mrf.mxu0 }
 0x147   : > { %v1634_v15 = vadd.f32 %v2966_v11, %v3793_v16  ;;  %v3079_v19 = vpop.f32.mrf.mxu1 }
 0x148   : > { %v2968_v20 = vpop.f32.mrf.mxu0 }
 0x149   : > { %v3883_v22 = vadd.f32 %v3078_v13, %v1634_v15  ;;  %v2969_v23 = vadd.f32 %v2968_v20, %v2967_v14  ;;  %v3080_v24 = vpop.f32.mrf.mxu1 }
 0x14a   : > { %v3081_v25 = vadd.f32 %v3080_v24, %v3079_v19  ;;  %v2970_v26 = vpop.f32.mrf.mxu0 }
 0x14b   : > { %v1639_v27 = vadd.f32 %v2969_v23, %v3793_v16  ;;  %v3082_v29 = vpop.f32.mrf.mxu1 }
 0x14c   : > { %v2971_v31 = vpop.f32.mrf.mxu0 }
 0x14d   : > { %v3886_v32 = vadd.f32 %v3081_v25, %v1639_v27  ;;  %v2972_v35 = vadd.f32 %v2971_v31, %v2970_v26  ;;  %v3083_v36 = vpop.f32.mrf.mxu1 }
 0x14e   : > { %v3084_v37 = vadd.f32 %v3083_v36, %v3082_v29  ;;  %v2973_v38 = vpop.f32.mrf.mxu0 }
 0x14f   : > { %v1642_v39 = vadd.f32 %v2972_v35, %v3793_v16  ;;  %v3085_v41 = vpop.f32.mrf.mxu1 }
 0x150   : > { %v2974_v45 = vpop.f32.mrf.mxu0 }
 0x151   : > { %v3889_v46 = vadd.f32 %v3084_v37, %v1642_v39  ;;  %v2975_v47 = vadd.f32 %v2974_v45, %v2973_v38  ;;  %v3086_v48 = vpop.f32.mrf.mxu1 }
 0x152   : > { %v3087_v49 = vadd.f32 %v3086_v48, %v3085_v41  ;;  %v2976_v50 = vpop.f32.mrf.mxu0 }
 0x153   : > { %v1647_v52 = vadd.f32 %v2975_v47, %v3793_v16  ;;  %v3088_v53 = vpop.f32.mrf.mxu1 }
 0x154   : > { %v2977_v56 = vpop.f32.mrf.mxu0 }
 0x155   : > { %v3892_v58 = vadd.f32 %v3087_v49, %v1647_v52  ;;  %v2978_v59 = vadd.f32 %v2977_v56, %v2976_v50  ;;  %v3089_v60 = vpop.f32.mrf.mxu1 }
 0x156   : > { %v3090_v61 = vadd.f32 %v3089_v60, %v3088_v53  ;;  %v2979_v63 = vpop.f32.mrf.mxu0 }
 0x157   : > { %v1650_v1 = vadd.f32 %v2978_v59, %v3793_v16  ;;  %v3091_v2 = vpop.f32.mrf.mxu1 }
 0x158   : > { %v2980_v4 = vpop.f32.mrf.mxu0 }
 0x159   : > { %v3895_v5 = vadd.f32 %v3090_v61, %v1650_v1  ;;  %v2981_v7 = vadd.f32 %v2980_v4, %v2979_v63  ;;  %v3092_v8 = vpop.f32.mrf.mxu1 }
 0x15a   : > { %v3093_v11 = vadd.f32 %v3092_v8, %v3091_v2  ;;  %v2982_v12 = vpop.f32.mrf.mxu0 }
 0x15b   : > { %v1655_v13 = vadd.f32 %v2981_v7, %v3793_v16  ;;  %v3094_v14 = vpop.f32.mrf.mxu1 }
 0x15c   : > { %v2983_v15 = vpop.f32.mrf.mxu0 }
 0x15d   : > { %v3898_v19 = vadd.f32 %v3093_v11, %v1655_v13  ;;  %v2984_v20 = vadd.f32 %v2983_v15, %v2982_v12  ;;  %v3095_v23 = vpop.f32.mrf.mxu1 }
 0x15e   : > { %v3096_v24 = vadd.f32 %v3095_v23, %v3094_v14  ;;  %v2985_v25 = vpop.f32.mrf.mxu0 }
 0x15f   : > { %v1658_v26 = vadd.f32 %v2984_v20, %v3793_v16  ;;  %v3097_v27 = vpop.f32.mrf.mxu1 }
 0x160   : > { %v2986_v29 = vpop.f32.mrf.mxu0 }
 0x161   : > { %v3901_v31 = vadd.f32 %v3096_v24, %v1658_v26  ;;  %v2987_v35 = vadd.f32 %v2986_v29, %v2985_v25  ;;  %v3098_v36 = vpop.f32.mrf.mxu1 }
 0x162   : > { %v3099_v37 = vadd.f32 %v3098_v36, %v3097_v27  ;;  %v2988_v38 = vpop.f32.mrf.mxu0 }
 0x163   : > { %v1663_v39 = vadd.f32 %v2987_v35, %v3793_v16  ;;  %v3100_v41 = vpop.f32.mrf.mxu1 }
 0x164   : > { %v2989_v45 = vpop.f32.mrf.mxu0 }
 0x165   : > { %v3904_v47 = vadd.f32 %v3099_v37, %v1663_v39  ;;  %v2990_v48 = vadd.f32 %v2989_v45, %v2988_v38  ;;  %v3101_v49 = vpop.f32.mrf.mxu1 }
 0x166   : > { %v3102_v50 = vadd.f32 %v3101_v49, %v3100_v41  ;;  %v2991_v52 = vpop.f32.mrf.mxu0 }
 0x167   : > { %v1666_v53 = vadd.f32 %v2990_v48, %v3793_v16  ;;  %v3103_v56 = vpop.f32.mrf.mxu1 }
 0x168   : > { %v2992_v59 = vpop.f32.mrf.mxu0 }
 0x169   : > { %v3907_v60 = vadd.f32 %v3102_v50, %v1666_v53  ;;  %v2993_v61 = vadd.f32 %v2992_v59, %v2991_v52  ;;  %v3104_v63 = vpop.f32.mrf.mxu1 }
 0x16a   : > { %v3105_v1 = vadd.f32 %v3104_v63, %v3103_v56  ;;  %v2994_v2 = vpop.f32.mrf.mxu0 }
 0x16b   : > { %v1671_v4 = vadd.f32 %v2993_v61, %v3793_v16  ;;  %v3106_v7 = vpop.f32.mrf.mxu1 }
 0x16c   : > { %v2995_v8 = vpop.f32.mrf.mxu0 }
 0x16d   : > { %v3910_v11 = vadd.f32 %v3105_v1, %v1671_v4  ;;  %v2996_v12 = vadd.f32 %v2995_v8, %v2994_v2  ;;  %v3107_v13 = vpop.f32.mrf.mxu1 }
 0x16e   : > { %v3108_v14 = vadd.f32 %v3107_v13, %v3106_v7  ;;  %v3125_v15 = vpop.f32.mrf.mxu0 }
 0x16f   : > { %v1674_v20 = vadd.f32 %v2996_v12, %v3793_v16  ;;  %v3237_v23 = vpop.f32.mrf.mxu1 }
 0x170   : > { %v3126_v24 = vpop.f32.mrf.mxu0 }
 0x171   : > { %v3913_v25 = vadd.f32 %v3108_v14, %v1674_v20  ;;  %v3127_v26 = vadd.f32 %v3126_v24, %v3125_v15  ;;  %v3238_v27 = vpop.f32.mrf.mxu1 }
 0x172   : > { %v3128_v29 = vpop.f32.mrf.mxu0  ;;  %v3239_v36 = vadd.f32 %v3238_v27, %v3237_v23 }
 0x173   : > { %v1873_v35 = vadd.f32 %v3127_v26, %v3800_v33  ;;  %v3240_v37 = vpop.f32.mrf.mxu1 }
 0x174   : > { %v3129_v38 = vpop.f32.mrf.mxu0 }
 0x175   : > { %v2034_v39 = vadd.f32 %v3239_v36, %v1873_v35  ;;  %v3130_v41 = vadd.f32 %v3129_v38, %v3128_v29  ;;  %v3241_v45 = vpop.f32.mrf.mxu1 }
 0x176   : > { %v3131_v48 = vpop.f32.mrf.mxu0  ;;  %v3242_v16 = vadd.f32 %v3241_v45, %v3240_v37 }
 0x177   : > { %v1876_v49 = vadd.f32 %v3130_v41, %v3805_v43  ;;  %v3243_v50 = vpop.f32.mrf.mxu1  ;;  %v2192_v53 = vmul.f32 0.2, %v2034_v39  ;;  %vm2160_vm0 = vcmp.gt.f32.partialorder %v2034_v39, 0.0 }
 0x178   : > { %v3132_v52 = vpop.f32.mrf.mxu0 }
 0x179   : > { %v2037_v56 = vadd.f32 %v3242_v16, %v1876_v49  ;;  %v3133_v59 = vadd.f32 %v3132_v52, %v3131_v48  ;;  %v3244_v61 = vpop.f32.mrf.mxu1  ;;  %v2224_v8 = vsel %vm2160_vm0, %v2034_v39, %v2192_v53 }
 0x17a   : > { %v3134_v33 = vpop.f32.mrf.mxu0  ;;  %v3245_v2 = vadd.f32 %v3244_v61, %v3243_v50 }
 0x17b   : > { %vm2161_vm1 = vcmp.gt.f32.partialorder %v2037_v56, 0.0  ;;  %v2193_v63 = vmul.f32 0.2, %v2037_v56  ;;  %v1881_v1 = vadd.f32 %v3133_v59, %v3810_v57  ;;  %v3246_v4 = vpop.f32.mrf.mxu1 }
 0x17c   : > { %v3135_v7 = vpop.f32.mrf.mxu0 }
 0x17d   : > { %v2225_v43 = vsel %vm2161_vm1, %v2037_v56, %v2193_v63  ;;  %v2042_v12 = vadd.f32 %v3245_v2, %v1881_v1  ;;  %v3136_v13 = vadd.f32 %v3135_v7, %v3134_v33  ;;  %v3247_v14 = vpop.f32.mrf.mxu1 }
 0x17e   : > { %v2793_v15 = vpack.c.bf16 %v2225_v43, %v2224_v8  ;;  %v3137_v20 = vpop.f32.mrf.mxu0  ;;  %v3248_v24 = vadd.f32 %v3247_v14, %v3246_v4 }
 0x17f   : > { %v1884_v23 = vadd.f32 %v3136_v13, %v3815_v3  ;;  %v3249_v57 = vpop.f32.mrf.mxu1  ;;  %v2194_v27 = vmul.f32 0.2, %v2042_v12  ;;  %vm2162_vm2 = vcmp.gt.f32.partialorder %v2042_v12, 0.0 }
 0x180   : > { %2794 = vst [vmem:[%s3922_s17] sm:$0xff] %v2793_v15   ;;  %v3138_v26 = vpop.f32.mrf.mxu0 }
 0x181   : > { %v2045_v29 = vadd.f32 %v3248_v24, %v1884_v23  ;;  %v3139_v35 = vadd.f32 %v3138_v26, %v3137_v20  ;;  %v3250_v36 = vpop.f32.mrf.mxu1  ;;  %v2226_v49 = vsel %vm2162_vm2, %v2042_v12, %v2194_v27 }
 0x182   : > { %v3140_v37 = vpop.f32.mrf.mxu0  ;;  %v3251_v41 = vadd.f32 %v3250_v36, %v3249_v57 }
 0x183   : > { %vm2163_vm3 = vcmp.gt.f32.partialorder %v2045_v29, 0.0  ;;  %v2195_v38 = vmul.f32 0.2, %v2045_v29  ;;  %v1889_v39 = vadd.f32 %v3139_v35, %v3820_v18  ;;  %v3252_v45 = vpop.f32.mrf.mxu1 }
 0x184   : > { %v3141_v48 = vpop.f32.mrf.mxu0 }
 0x185   : > { %v2227_v3 = vsel %vm2163_vm3, %v2045_v29, %v2195_v38  ;;  %v2050_v16 = vadd.f32 %v3251_v41, %v1889_v39  ;;  %v3142_v50 = vadd.f32 %v3141_v48, %v3140_v37  ;;  %v3253_v52 = vpop.f32.mrf.mxu1 }
 0x186   : > { %v2798_v53 = vpack.c.bf16 %v2227_v3, %v2226_v49  ;;  %v3143_v56 = vpop.f32.mrf.mxu0  ;;  %v3254_v61 = vadd.f32 %v3253_v52, %v3252_v45 }
 0x187   : > { %v1892_v59 = vadd.f32 %v3142_v50, %v3825_v28  ;;  %v3255_v33 = vpop.f32.mrf.mxu1  ;;  %v2196_v1 = vmul.f32 0.2, %v2050_v16  ;;  %vm2164_vm4 = vcmp.gt.f32.partialorder %v2050_v16, 0.0 }
 0x188   : > { %2870 = vst [vmem:[%s3922_s17 + $0x8] sm:$0xff] %v2798_v53   ;;  %v3144_v63 = vpop.f32.mrf.mxu0 }
 0x189   : > { %v2053_v2 = vadd.f32 %v3254_v61, %v1892_v59  ;;  %v3145_v4 = vadd.f32 %v3144_v63, %v3143_v56  ;;  %v3256_v18 = vpop.f32.mrf.mxu1  ;;  %v2228_v15 = vsel %vm2164_vm4, %v2050_v16, %v2196_v1 }
 0x18a   : > { %v3146_v7 = vpop.f32.mrf.mxu0  ;;  %v3257_v12 = vadd.f32 %v3256_v18, %v3255_v33 }
 0x18b   : > { %vm2165_vm5 = vcmp.gt.f32.partialorder %v2053_v2, 0.0  ;;  %v2197_v8 = vmul.f32 0.2, %v2053_v2  ;;  %v1897_v43 = vadd.f32 %v3145_v4, %v3830_v44  ;;  %v3258_v13 = vpop.f32.mrf.mxu1 }
 0x18c   : > { %v3147_v14 = vpop.f32.mrf.mxu0 }
 0x18d   : > { %v2229_v28 = vsel %vm2165_vm5, %v2053_v2, %v2197_v8  ;;  %v2058_v20 = vadd.f32 %v3257_v12, %v1897_v43  ;;  %v3148_v23 = vadd.f32 %v3147_v14, %v3146_v7  ;;  %v3259_v24 = vpop.f32.mrf.mxu1 }
 0x18e   : > { %v2803_v57 = vpack.c.bf16 %v2229_v28, %v2228_v15  ;;  %v3149_v26 = vpop.f32.mrf.mxu0  ;;  %v3260_v29 = vadd.f32 %v3259_v24, %v3258_v13 }
 0x18f   : > { %v1900_v27 = vadd.f32 %v3148_v23, %v3835_v54  ;;  %v3261_v35 = vpop.f32.mrf.mxu1  ;;  %v2198_v37 = vmul.f32 0.2, %v2058_v20  ;;  %vm2166_vm6 = vcmp.gt.f32.partialorder %v2058_v20, 0.0 }
 0x190   : > { %2871 = vst [vmem:[%s3922_s17 + $0x10] sm:$0xff] %v2803_v57   ;;  %v3150_v36 = vpop.f32.mrf.mxu0 }
 0x191   : > { %v2061_v38 = vadd.f32 %v3260_v29, %v1900_v27  ;;  %v3151_v39 = vadd.f32 %v3150_v36, %v3149_v26  ;;  %v3262_v44 = vpop.f32.mrf.mxu1  ;;  %v2230_v50 = vsel %vm2166_vm6, %v2058_v20, %v2198_v37 }
 0x192   : > { %v3152_v41 = vpop.f32.mrf.mxu0  ;;  %v3263_v49 = vadd.f32 %v3262_v44, %v3261_v35 }
 0x193   : > { %vm2167_vm7 = vcmp.gt.f32.partialorder %v2061_v38, 0.0  ;;  %v2199_v45 = vmul.f32 0.2, %v2061_v38  ;;  %v1905_v48 = vadd.f32 %v3151_v39, %v3840_v6  ;;  %v3264_v3 = vpop.f32.mrf.mxu1 }
 0x194   : > { %v3153_v16 = vpop.f32.mrf.mxu0 }
 0x195   : > { %v2231_v54 = vsel %vm2167_vm7, %v2061_v38, %v2199_v45  ;;  %v2066_v52 = vadd.f32 %v3263_v49, %v1905_v48  ;;  %v3154_v53 = vadd.f32 %v3153_v16, %v3152_v41  ;;  %v3265_v56 = vpop.f32.mrf.mxu1 }
 0x196   : > { %v2808_v59 = vpack.c.bf16 %v2231_v54, %v2230_v50  ;;  %v3155_v61 = vpop.f32.mrf.mxu0  ;;  %v3266_v63 = vadd.f32 %v3265_v56, %v3264_v3 }
 0x197   : > { %v1908_v33 = vadd.f32 %v3154_v53, %v3845_v17  ;;  %v3267_v1 = vpop.f32.mrf.mxu1  ;;  %v2200_v4 = vmul.f32 0.2, %v2066_v52  ;;  %vm2168_vm8 = vcmp.gt.f32.partialorder %v2066_v52, 0.0 }
 0x198   : > { %2872 = vst [vmem:[%s3922_s17 + $0x18] sm:$0xff] %v2808_v59   ;;  %v3156_v2 = vpop.f32.mrf.mxu0 }
 0x199   : > { %v2069_v18 = vadd.f32 %v3266_v63, %v1908_v33  ;;  %v3157_v7 = vadd.f32 %v3156_v2, %v3155_v61  ;;  %v3268_v6 = vpop.f32.mrf.mxu1  ;;  %v2232_v28 = vsel %vm2168_vm8, %v2066_v52, %v2200_v4 }
 0x19a   : > { %v3158_v8 = vpop.f32.mrf.mxu0  ;;  %v3269_v13 = vadd.f32 %v3268_v6, %v3267_v1 }
 0x19b   : > { %vm2169_vm9 = vcmp.gt.f32.partialorder %v2069_v18, 0.0  ;;  %v2201_v43 = vmul.f32 0.2, %v2069_v18  ;;  %v1913_v12 = vadd.f32 %v3157_v7, %v3850_v34  ;;  %v3270_v14 = vpop.f32.mrf.mxu1 }
 0x19c   : > { %v3159_v15 = vpop.f32.mrf.mxu0 }
 0x19d   : > { %v2233_v17 = vsel %vm2169_vm9, %v2069_v18, %v2201_v43  ;;  %v2074_v20 = vadd.f32 %v3269_v13, %v1913_v12  ;;  %v3160_v23 = vadd.f32 %v3159_v15, %v3158_v8  ;;  %v3271_v24 = vpop.f32.mrf.mxu1 }
 0x19e   : > { %v2813_v57 = vpack.c.bf16 %v2233_v17, %v2232_v28  ;;  %v3161_v26 = vpop.f32.mrf.mxu0  ;;  %v3272_v29 = vadd.f32 %v3271_v24, %v3270_v14 }
 0x19f   : > { %v1916_v27 = vadd.f32 %v3160_v23, %v3853_v42  ;;  %v3273_v35 = vpop.f32.mrf.mxu1  ;;  %v2202_v37 = vmul.f32 0.2, %v2074_v20  ;;  %vm2170_vm10 = vcmp.gt.f32.partialorder %v2074_v20, 0.0 }
 0x1a0   : > { %2873 = vst [vmem:[%s3922_s17 + $0x20] sm:$0xff] %v2813_v57   ;;  %v3162_v36 = vpop.f32.mrf.mxu0 }
 0x1a1   : > { %v2077_v38 = vadd.f32 %v3272_v29, %v1916_v27  ;;  %v3163_v39 = vadd.f32 %v3162_v36, %v3161_v26  ;;  %v3274_v34 = vpop.f32.mrf.mxu1  ;;  %v2234_v16 = vsel %vm2170_vm10, %v2074_v20, %v2202_v37 }
 0x1a2   : > { %v3164_v44 = vpop.f32.mrf.mxu0  ;;  %v3275_v48 = vadd.f32 %v3274_v34, %v3273_v35 }
 0x1a3   : > { %vm2171_vm11 = vcmp.gt.f32.partialorder %v2077_v38, 0.0  ;;  %v2203_v41 = vmul.f32 0.2, %v2077_v38  ;;  %v1921_v45 = vadd.f32 %v3163_v39, %v3856_v55  ;;  %v3276_v49 = vpop.f32.mrf.mxu1 }
 0x1a4   : > { %v3165_v3 = vpop.f32.mrf.mxu0 }
 0x1a5   : > { %v2235_v42 = vsel %vm2171_vm11, %v2077_v38, %v2203_v41  ;;  %v2082_v50 = vadd.f32 %v3275_v48, %v1921_v45  ;;  %v3166_v54 = vadd.f32 %v3165_v3, %v3164_v44  ;;  %v3277_v52 = vpop.f32.mrf.mxu1 }
 0x1a6   : > { %v2818_v53 = vpack.c.bf16 %v2235_v42, %v2234_v16  ;;  %v3167_v56 = vpop.f32.mrf.mxu0  ;;  %v3278_v61 = vadd.f32 %v3277_v52, %v3276_v49 }
 0x1a7   : > { %v1924_v59 = vadd.f32 %v3166_v54, %v3859_v0  ;;  %v3279_v33 = vpop.f32.mrf.mxu1  ;;  %v2204_v1 = vmul.f32 0.2, %v2082_v50  ;;  %vm2172_vm12 = vcmp.gt.f32.partialorder %v2082_v50, 0.0 }
 0x1a8   : > { %2874 = vst [vmem:[%s3922_s17 + $0x28] sm:$0xff] %v2818_v53   ;;  %v3168_v63 = vpop.f32.mrf.mxu0 }
 0x1a9   : > { %v2085_v2 = vadd.f32 %v3278_v61, %v1924_v59  ;;  %v3169_v4 = vadd.f32 %v3168_v63, %v3167_v56  ;;  %v3280_v55 = vpop.f32.mrf.mxu1  ;;  %v2236_v13 = vsel %vm2172_vm12, %v2082_v50, %v2204_v1 }
 0x1aa   : > { %v3170_v18 = vpop.f32.mrf.mxu0  ;;  %v3281_v8 = vadd.f32 %v3280_v55, %v3279_v33 }
 0x1ab   : > { %vm2173_vm13 = vcmp.gt.f32.partialorder %v2085_v2, 0.0  ;;  %v2205_v7 = vmul.f32 0.2, %v2085_v2  ;;  %v1929_v6 = vadd.f32 %v3169_v4, %v3862_v10  ;;  %v3282_v43 = vpop.f32.mrf.mxu1 }
 0x1ac   : > { %v3171_v12 = vpop.f32.mrf.mxu0 }
 0x1ad   : > { %v2237_v0 = vsel %vm2173_vm13, %v2085_v2, %v2205_v7  ;;  %v2090_v14 = vadd.f32 %v3281_v8, %v1929_v6  ;;  %v3172_v15 = vadd.f32 %v3171_v12, %v3170_v18  ;;  %v3283_v28 = vpop.f32.mrf.mxu1 }
 0x1ae   : > { %v2823_v17 = vpack.c.bf16 %v2237_v0, %v2236_v13  ;;  %v3173_v20 = vpop.f32.mrf.mxu0  ;;  %v3284_v24 = vadd.f32 %v3283_v28, %v3282_v43 }
 0x1af   : > { %v1932_v23 = vadd.f32 %v3172_v15, %v3865_v21  ;;  %v3285_v57 = vpop.f32.mrf.mxu1  ;;  %v2206_v27 = vmul.f32 0.2, %v2090_v14  ;;  %vm2174_vm14 = vcmp.gt.f32.partialorder %v2090_v14, 0.0 }
 0x1b0   : > { %2875 = vst [vmem:[%s3922_s17 + $0x30] sm:$0xff] %v2823_v17   ;;  %v3174_v26 = vpop.f32.mrf.mxu0 }
 0x1b1   : > { %v2093_v29 = vadd.f32 %v3284_v24, %v1932_v23  ;;  %v3175_v35 = vadd.f32 %v3174_v26, %v3173_v20  ;;  %v3286_v10 = vpop.f32.mrf.mxu1  ;;  %v2238_v41 = vsel %vm2174_vm14, %v2090_v14, %v2206_v27 }
 0x1b2   : > { %v3176_v36 = vpop.f32.mrf.mxu0  ;;  %v3287_v39 = vadd.f32 %v3286_v10, %v3285_v57 }
 0x1b3   : > { %vm2175_vm15 = vcmp.gt.f32.partialorder %v2093_v29, 0.0  ;;  %v2207_v37 = vmul.f32 0.2, %v2093_v29  ;;  %v1937_v38 = vadd.f32 %v3175_v35, %v3868_v30  ;;  %v3288_v34 = vpop.f32.mrf.mxu1 }
 0x1b4   : > { %v3177_v44 = vpop.f32.mrf.mxu0 }
 0x1b5   : > { %v2239_v21 = vsel %vm2175_vm15, %v2093_v29, %v2207_v37  ;;  %v2098_v45 = vadd.f32 %v3287_v39, %v1937_v38  ;;  %v3178_v48 = vadd.f32 %v3177_v44, %v3176_v36  ;;  %v3289_v49 = vpop.f32.mrf.mxu1 }
 0x1b6   : > { %v2828_v3 = vpack.c.bf16 %v2239_v21, %v2238_v41  ;;  %v3179_v16 = vpop.f32.mrf.mxu0  ;;  %v3290_v50 = vadd.f32 %v3289_v49, %v3288_v34 }
 0x1b7   : > { %v1940_v42 = vadd.f32 %v3178_v48, %v3871_v40  ;;  %v3291_v54 = vpop.f32.mrf.mxu1  ;;  %v2208_v53 = vmul.f32 0.2, %v2098_v45  ;;  %vm2176_vm0 = vcmp.gt.f32.partialorder %v2098_v45, 0.0 }
 0x1b8   : > { %2876 = vst [vmem:[%s3922_s17 + $0x38] sm:$0xff] %v2828_v3   ;;  %v3180_v52 = vpop.f32.mrf.mxu0 }
 0x1b9   : > { %v2101_v56 = vadd.f32 %v3290_v50, %v1940_v42  ;;  %v3181_v59 = vadd.f32 %v3180_v52, %v3179_v16  ;;  %v3292_v30 = vpop.f32.mrf.mxu1  ;;  %v2240_v55 = vsel %vm2176_vm0, %v2098_v45, %v2208_v53 }
 0x1ba   : > { %v3182_v61 = vpop.f32.mrf.mxu0  ;;  %v3293_v1 = vadd.f32 %v3292_v30, %v3291_v54 }
 0x1bb   : > { %vm2177_vm1 = vcmp.gt.f32.partialorder %v2101_v56, 0.0  ;;  %v2209_v33 = vmul.f32 0.2, %v2101_v56  ;;  %v1945_v63 = vadd.f32 %v3181_v59, %v3874_v51  ;;  %v3294_v2 = vpop.f32.mrf.mxu1 }
 0x1bc   : > { %v3183_v4 = vpop.f32.mrf.mxu0 }
 0x1bd   : > { %v2241_v40 = vsel %vm2177_vm1, %v2101_v56, %v2209_v33  ;;  %v2106_v18 = vadd.f32 %v3293_v1, %v1945_v63  ;;  %v3184_v7 = vadd.f32 %v3183_v4, %v3182_v61  ;;  %v3295_v6 = vpop.f32.mrf.mxu1 }
 0x1be   : > { %v2833_v8 = vpack.c.bf16 %v2241_v40, %v2240_v55  ;;  %v3185_v43 = vpop.f32.mrf.mxu0  ;;  %v3296_v13 = vadd.f32 %v3295_v6, %v3294_v2 }
 0x1bf   : > { %v1948_v12 = vadd.f32 %v3184_v7, %v3877_v62  ;;  %v3297_v0 = vpop.f32.mrf.mxu1  ;;  %v2210_v15 = vmul.f32 0.2, %v2106_v18  ;;  %vm2178_vm2 = vcmp.gt.f32.partialorder %v2106_v18, 0.0 }
 0x1c0   : > { %2877 = vst [vmem:[%s3922_s17 + $0x40] sm:$0xff] %v2833_v8   ;;  %v3186_v14 = vpop.f32.mrf.mxu0 }
 0x1c1   : > { %v2109_v28 = vadd.f32 %v3296_v13, %v1948_v12  ;;  %v3187_v17 = vadd.f32 %v3186_v14, %v3185_v43  ;;  %v3298_v51 = vpop.f32.mrf.mxu1  ;;  %v2242_v29 = vsel %vm2178_vm2, %v2106_v18, %v2210_v15 }
 0x1c2   : > { %v3188_v20 = vpop.f32.mrf.mxu0  ;;  %v3299_v57 = vadd.f32 %v3298_v51, %v3297_v0 }
 0x1c3   : > { %vm2179_vm3 = vcmp.gt.f32.partialorder %v2109_v28, 0.0  ;;  %v2211_v23 = vmul.f32 0.2, %v2109_v28  ;;  %v1953_v24 = vadd.f32 %v3187_v17, %v3880_v9  ;;  %v3300_v26 = vpop.f32.mrf.mxu1 }
 0x1c4   : > { %v3189_v27 = vpop.f32.mrf.mxu0 }
 0x1c5   : > { %v2243_v62 = vsel %vm2179_vm3, %v2109_v28, %v2211_v23  ;;  %v2114_v35 = vadd.f32 %v3299_v57, %v1953_v24  ;;  %v3190_v10 = vadd.f32 %v3189_v27, %v3188_v20  ;;  %v3301_v36 = vpop.f32.mrf.mxu1 }
 0x1c6   : > { %v2838_v37 = vpack.c.bf16 %v2243_v62, %v2242_v29  ;;  %v3191_v38 = vpop.f32.mrf.mxu0  ;;  %v3302_v34 = vadd.f32 %v3301_v36, %v3300_v26 }
 0x1c7   : > { %v1956_v39 = vadd.f32 %v3190_v10, %v3883_v22  ;;  %v3303_v44 = vpop.f32.mrf.mxu1  ;;  %v2212_v21 = vmul.f32 0.2, %v2114_v35  ;;  %vm2180_vm4 = vcmp.gt.f32.partialorder %v2114_v35, 0.0 }
 0x1c8   : > { %2878 = vst [vmem:[%s3922_s17 + $0x48] sm:$0xff] %v2838_v37   ;;  %v3192_v41 = vpop.f32.mrf.mxu0 }
 0x1c9   : > { %v2117_v45 = vadd.f32 %v3302_v34, %v1956_v39  ;;  %v3193_v48 = vadd.f32 %v3192_v41, %v3191_v38  ;;  %v3304_v9 = vpop.f32.mrf.mxu1  ;;  %v2244_v52 = vsel %vm2180_vm4, %v2114_v35, %v2212_v21 }
 0x1ca   : > { %v3194_v49 = vpop.f32.mrf.mxu0  ;;  %v3305_v42 = vadd.f32 %v3304_v9, %v3303_v44 }
 0x1cb   : > { %vm2181_vm5 = vcmp.gt.f32.partialorder %v2117_v45, 0.0  ;;  %v2213_v3 = vmul.f32 0.2, %v2117_v45  ;;  %v1961_v16 = vadd.f32 %v3193_v48, %v3886_v32  ;;  %v3306_v50 = vpop.f32.mrf.mxu1 }
 0x1cc   : > { %v3195_v54 = vpop.f32.mrf.mxu0 }
 0x1cd   : > { %v2245_v22 = vsel %vm2181_vm5, %v2117_v45, %v2213_v3  ;;  %v2122_v53 = vadd.f32 %v3305_v42, %v1961_v16  ;;  %v3196_v56 = vadd.f32 %v3195_v54, %v3194_v49  ;;  %v3307_v59 = vpop.f32.mrf.mxu1 }
 0x1ce   : > { %v2843_v30 = vpack.c.bf16 %v2245_v22, %v2244_v52  ;;  %v3197_v61 = vpop.f32.mrf.mxu0  ;;  %v3308_v63 = vadd.f32 %v3307_v59, %v3306_v50 }
 0x1cf   : > { %v1964_v33 = vadd.f32 %v3196_v56, %v3889_v46  ;;  %v3309_v1 = vpop.f32.mrf.mxu1  ;;  %v2214_v4 = vmul.f32 0.2, %v2122_v53  ;;  %vm2182_vm6 = vcmp.gt.f32.partialorder %v2122_v53, 0.0 }
 0x1d0   : > { %2879 = vst [vmem:[%s3922_s17 + $0x50] sm:$0xff] %v2843_v30   ;;  %v3198_v2 = vpop.f32.mrf.mxu0 }
 0x1d1   : > { %v2125_v55 = vadd.f32 %v3308_v63, %v1964_v33  ;;  %v3199_v40 = vadd.f32 %v3198_v2, %v3197_v61  ;;  %v3310_v32 = vpop.f32.mrf.mxu1  ;;  %v2246_v13 = vsel %vm2182_vm6, %v2122_v53, %v2214_v4 }
 0x1d2   : > { %v3200_v18 = vpop.f32.mrf.mxu0  ;;  %v3311_v8 = vadd.f32 %v3310_v32, %v3309_v1 }
 0x1d3   : > { %vm2183_vm7 = vcmp.gt.f32.partialorder %v2125_v55, 0.0  ;;  %v2215_v7 = vmul.f32 0.2, %v2125_v55  ;;  %v1969_v6 = vadd.f32 %v3199_v40, %v3892_v58  ;;  %v3312_v43 = vpop.f32.mrf.mxu1 }
 0x1d4   : > { %v3201_v12 = vpop.f32.mrf.mxu0 }
 0x1d5   : > { %v2247_v46 = vsel %vm2183_vm7, %v2125_v55, %v2215_v7  ;;  %v2130_v0 = vadd.f32 %v3311_v8, %v1969_v6  ;;  %v3202_v14 = vadd.f32 %v3201_v12, %v3200_v18  ;;  %v3313_v15 = vpop.f32.mrf.mxu1 }
 0x1d6   : > { %v2848_v28 = vpack.c.bf16 %v2247_v46, %v2246_v13  ;;  %v3203_v17 = vpop.f32.mrf.mxu0  ;;  %v3314_v20 = vadd.f32 %v3313_v15, %v3312_v43 }
 0x1d7   : > { %v1972_v51 = vadd.f32 %v3202_v14, %v3895_v5  ;;  %v3315_v23 = vpop.f32.mrf.mxu1  ;;  %v2216_v57 = vmul.f32 0.2, %v2130_v0  ;;  %vm2184_vm8 = vcmp.gt.f32.partialorder %v2130_v0, 0.0 }
 0x1d8   : > { %2880 = vst [vmem:[%s3922_s17 + $0x58] sm:$0xff] %v2848_v28   ;;  %v3204_v24 = vpop.f32.mrf.mxu0 }
 0x1d9   : > { %v2133_v26 = vadd.f32 %v3314_v20, %v1972_v51  ;;  %v3205_v27 = vadd.f32 %v3204_v24, %v3203_v17  ;;  %v3316_v58 = vpop.f32.mrf.mxu1  ;;  %v2248_v38 = vsel %vm2184_vm8, %v2130_v0, %v2216_v57 }
 0x1da   : > { %v3206_v29 = vpop.f32.mrf.mxu0  ;;  %v3317_v10 = vadd.f32 %v3316_v58, %v3315_v23 }
 0x1db   : > { %vm2185_vm9 = vcmp.gt.f32.partialorder %v2133_v26, 0.0  ;;  %v2217_v62 = vmul.f32 0.2, %v2133_v26  ;;  %v1977_v35 = vadd.f32 %v3205_v27, %v3898_v19  ;;  %v3318_v36 = vpop.f32.mrf.mxu1 }
 0x1dc   : > { %v3207_v37 = vpop.f32.mrf.mxu0 }
 0x1dd   : > { %v2249_v5 = vsel %vm2185_vm9, %v2133_v26, %v2217_v62  ;;  %v2138_v39 = vadd.f32 %v3317_v10, %v1977_v35  ;;  %v3208_v34 = vadd.f32 %v3207_v37, %v3206_v29  ;;  %v3319_v44 = vpop.f32.mrf.mxu1 }
 0x1de   : > { %v2853_v41 = vpack.c.bf16 %v2249_v5, %v2248_v38  ;;  %v3209_v21 = vpop.f32.mrf.mxu0  ;;  %v3320_v48 = vadd.f32 %v3319_v44, %v3318_v36 }
 0x1df   : > { %v1980_v45 = vadd.f32 %v3208_v34, %v3901_v31  ;;  %v3321_v9 = vpop.f32.mrf.mxu1  ;;  %v2218_v3 = vmul.f32 0.2, %v2138_v39  ;;  %vm2186_vm10 = vcmp.gt.f32.partialorder %v2138_v39, 0.0 }
 0x1e0   : > { %2881 = vst [vmem:[%s3922_s17 + $0x60] sm:$0xff] %v2853_v41   ;;  %v3210_v49 = vpop.f32.mrf.mxu0 }
 0x1e1   : > { %v2141_v16 = vadd.f32 %v3320_v48, %v1980_v45  ;;  %v3211_v42 = vadd.f32 %v3210_v49, %v3209_v21  ;;  %v3322_v19 = vpop.f32.mrf.mxu1  ;;  %v2250_v59 = vsel %vm2186_vm10, %v2138_v39, %v2218_v3 }
 0x1e2   : > { %v3212_v50 = vpop.f32.mrf.mxu0  ;;  %v3323_v22 = vadd.f32 %v3322_v19, %v3321_v9 }
 0x1e3   : > { %vm2187_vm11 = vcmp.gt.f32.partialorder %v2141_v16, 0.0  ;;  %v2219_v54 = vmul.f32 0.2, %v2141_v16  ;;  %v1985_v52 = vadd.f32 %v3211_v42, %v3904_v47  ;;  %v3324_v53 = vpop.f32.mrf.mxu1 }
 0x1e4   : > { %v3213_v56 = vpop.f32.mrf.mxu0 }
 0x1e5   : > { %v2251_v31 = vsel %vm2187_vm11, %v2141_v16, %v2219_v54  ;;  %v2146_v30 = vadd.f32 %v3323_v22, %v1985_v52  ;;  %v3214_v61 = vadd.f32 %v3213_v56, %v3212_v50  ;;  %v3325_v33 = vpop.f32.mrf.mxu1 }
 0x1e6   : > { %v2858_v63 = vpack.c.bf16 %v2251_v31, %v2250_v59  ;;  %v3215_v1 = vpop.f32.mrf.mxu0  ;;  %v3326_v4 = vadd.f32 %v3325_v33, %v3324_v53 }
 0x1e7   : > { %v1988_v2 = vadd.f32 %v3214_v61, %v3907_v60  ;;  %v3327_v55 = vpop.f32.mrf.mxu1  ;;  %v2220_v32 = vmul.f32 0.2, %v2146_v30  ;;  %vm2188_vm12 = vcmp.gt.f32.partialorder %v2146_v30, 0.0 }
 0x1e8   : > { %2882 = vst [vmem:[%s3922_s17 + $0x68] sm:$0xff] %v2858_v63   ;;  %v3216_v40 = vpop.f32.mrf.mxu0 }
 0x1e9   : > { %v2149_v18 = vadd.f32 %v3326_v4, %v1988_v2  ;;  %v3217_v7 = vadd.f32 %v3216_v40, %v3215_v1  ;;  %v3328_v47 = vpop.f32.mrf.mxu1  ;;  %v2252_v0 = vsel %vm2188_vm12, %v2146_v30, %v2220_v32 }
 0x1ea   : > { %v3218_v6 = vpop.f32.mrf.mxu0  ;;  %v3329_v12 = vadd.f32 %v3328_v47, %v3327_v55 }
 0x1eb   : > { %vm2189_vm13 = vcmp.gt.f32.partialorder %v2149_v18, 0.0  ;;  %v2221_v8 = vmul.f32 0.2, %v2149_v18  ;;  %v1993_v43 = vadd.f32 %v3217_v7, %v3910_v11  ;;  %v3330_v13 = vpop.f32.mrf.mxu1 }
 0x1ec   : > { %v3219_v46 = vpop.f32.mrf.mxu0 }
 0x1ed   : > { %v2253_v60 = vsel %vm2189_vm13, %v2149_v18, %v2221_v8  ;;  %v2154_v14 = vadd.f32 %v3329_v12, %v1993_v43  ;;  %v3220_v15 = vadd.f32 %v3219_v46, %v3218_v6  ;;  %v3331_v28 = vpop.f32.mrf.mxu1 }
 0x1ee   : > { %v2863_v17 = vpack.c.bf16 %v2253_v60, %v2252_v0  ;;  %v3332_v20 = vadd.f32 %v3331_v28, %v3330_v13 }
 0x1ef   : > { %v1996_v51 = vadd.f32 %v3220_v15, %v3913_v25  ;;  %v2222_v23 = vmul.f32 0.2, %v2154_v14  ;;  %vm2190_vm14 = vcmp.gt.f32.partialorder %v2154_v14, 0.0 }
 0x1f0   : > { %2883 = vst [vmem:[%s3922_s17 + $0x70] sm:$0xff] %v2863_v17  }
 0x1f1   : > { %v2157_v24 = vadd.f32 %v3332_v20, %v1996_v51  ;;  %v2254_v11 = vsel %vm2190_vm14, %v2154_v14, %v2222_v23 }
 0x1f3   : > { %vm2191_vm15 = vcmp.gt.f32.partialorder %v2157_v24, 0.0  ;;  %v2223_v57 = vmul.f32 0.2, %v2157_v24 }
 0x1f5   : > { %v2255_v26 = vsel %vm2191_vm15, %v2157_v24, %v2223_v57 }
 0x1f6   : > { %v2868_v27 = vpack.c.bf16 %v2255_v26, %v2254_v11 }
 0x1f8   : > { %2884 = vst [vmem:[%s3922_s17 + $0x78] sm:$0xff] %v2868_v27  }
 0x1f9 PF: > { %s13_s14 = sadd.s32 1, %s3443_s14   ;;  %s3982_s12 = smov %s3439_s13 }
 0x1fa   : > { %p10_p5 = scmp.ge.s32.totalorder %s13_s14, 4   ;;  %s3983_s13 = smov %s3985_s15 }
 0x1fc   :  { %12 = sbr.rel (!%p10_p5) target bundleno = 2 (0x2), region = 68 }

// kernel: discriminator_forward.7
= control target key start
LH: loop header
LB: loop body
LE: loop exit
PB: predicated region body
PF: predicated region fallthrough
CT: control target
= control target key end

     0   :  { %s5280_s12 = smov 0   ;;  %s5282_s13 = smov 0   ;;  %s6667_s0 = inlined_call_operand.vmem [shape: bf16[128,2048], index: 0, kind: input, shape index: {}]   ;;  %s6668_s1 = inlined_call_operand.vmem [shape: bf16[2048,256], index: 1, kind: input, shape index: {}]   ;;  %s6669_s2 = inlined_call_operand.vmem [shape: f32[1,256], index: 2, kind: input, shape index: {}]   ;;  %s6670_s3 = inlined_call_operand.vmem [shape: bf16[128,256], index: 3, kind: output, shape index: {}]  }
   0x1   :  { %s5284_s14 = smov 0   ;;  %s5286_s15 = smov 0  }
   0x2   :  { %s5288_s16 = smov 0  }
   0x3 LB: > { %s22_s17 = sadd.s32 1, %s5254_s15  ;;  %s4190_s18 = sadd.s32 4294967295, %s5258_s16   ;;  %s5258_s16 = sphi %s5288_s16, %s13_s16   ;;  %s5254_s15 = sphi %s5286_s15, %s6677_s15   ;;  %s5250_s14 = sphi %s5284_s14, %s6676_s14   ;;  %s5246_s13 = sphi %s5282_s13, %s6675_s13   ;;  %s5242_s12 = sphi %s5280_s12, %s6674_s12  }
   0x4   : > { %p23_p0 = scmp.ge.s32.totalorder %s22_s17, 2  ;;  %p65_p1 = scmp.ne.s32.totalorder %s5246_s13, %s5242_s12 }
   0x5   : > { %p66_p2 = scmp.eq.s32.totalorder %s5258_s16, 0  ;;  %p123_p4 = scmp.eq.s32.totalorder %s4190_s18, 1 }
   0x6   : > { %s6679_s17 = smov (%p23_p0, %s22_s17), 0  ;;  %s58_s20 = sadd.s32 1, %s5246_s13 }
   0x7   : > { %p67_p3 = por %p66_p2, %p65_p1  ;;  %s55_s19 = ssub.s32 %s5254_s15, %s6679_s17 }
   0x8   : > { %p56_p5 = scmp.eq.s32.totalorder %s55_s19, 0  ;;  %p5315_p6 = por %p123_p4, %p65_p1 }
   0x9   : > { %p4194_p7 = scmp.ge.s32.totalorder %s5258_s16, 2 }
   0xa   : > { %s5320_s22 = scalar_select %p56_p5, %s5246_s13, %s58_s20  }
   0xb   : > { %155 = sbr.rel (%p4194_p7) target bundleno = 190 (0xbe), region = 20 }
  0x10   : > { %158 = sbr.rel (!%p67_p3) target bundleno = 190 (0xbe), region = 24  ;;  %s160_s23 = sand.u32 (%p67_p3), 1, %s5246_s13  }
  0x11   : > { %s4196_s24 = sshll.u32 (%p67_p3), %s5254_s15, 2  ;;  %s4195_s25 = sshll.u32 (%p67_p3), %s160_s23, 10 }
  0x12   : > { %s5328_s28 = scalar_lea.vmem (%p67_p3), %s6668_s1, %s4196_s24  ;;  %s5332_s29 = scalar_lea.vmem (%p67_p3), [#allocation2], %s4195_s25 }
  0x13   : > { %v181_v0 = vld [vmem:[%s5328_s28] sm:$0xf] (%p67_p3)  ;;  %v183_v1 = vld [vmem:[%s5328_s28 + $0x8] sm:$0xf] (%p67_p3)  ;;  %v185_v2 = vld [vmem:[%s5328_s28 + $0x10] sm:$0xf] (%p67_p3) }
  0x14   : > { %182 = vst [vmem:[%s5332_s29] sm:$0xf] (%p67_p3), %v181_v0  ;;  %184 = vst [vmem:[%s5332_s29 + $0x4] sm:$0xf] (%p67_p3), %v183_v1  ;;  %v187_v3 = vld [vmem:[%s5328_s28 + $0x18] sm:$0xf] (%p67_p3) }
  0x15   : > { %v189_v4 = vld [vmem:[%s5328_s28 + $0x20] sm:$0xf]  ;;  %186 = vst [vmem:[%s5332_s29 + $0x8] sm:$0xf] %v185_v2  ;;  %188 = vst [vmem:[%s5332_s29 + $0xc] sm:$0xf] %v187_v3 }
  0x16   : > { %190 = vst [vmem:[%s5332_s29 + $0x10] sm:$0xf] %v189_v4  ;;  %v191_v5 = vld [vmem:[%s5328_s28 + $0x28] sm:$0xf]  ;;  %v193_v6 = vld [vmem:[%s5328_s28 + $0x30] sm:$0xf] }
  0x17   : > { %v195_v7 = vld [vmem:[%s5328_s28 + $0x38] sm:$0xf]  ;;  %192 = vst [vmem:[%s5332_s29 + $0x14] sm:$0xf] %v191_v5  ;;  %194 = vst [vmem:[%s5332_s29 + $0x18] sm:$0xf] %v193_v6 }
  0x18   : > { %196 = vst [vmem:[%s5332_s29 + $0x1c] sm:$0xf] %v195_v7  ;;  %v197_v8 = vld [vmem:[%s5328_s28 + $0x40] sm:$0xf]  ;;  %v199_v9 = vld [vmem:[%s5328_s28 + $0x48] sm:$0xf] }
  0x19   : > { %v201_v10 = vld [vmem:[%s5328_s28 + $0x50] sm:$0xf]  ;;  %198 = vst [vmem:[%s5332_s29 + $0x20] sm:$0xf] %v197_v8  ;;  %200 = vst [vmem:[%s5332_s29 + $0x24] sm:$0xf] %v199_v9 }
  0x1a   : > { %202 = vst [vmem:[%s5332_s29 + $0x28] sm:$0xf] %v201_v10  ;;  %v203_v11 = vld [vmem:[%s5328_s28 + $0x58] sm:$0xf]  ;;  %v205_v12 = vld [vmem:[%s5328_s28 + $0x60] sm:$0xf] }
  0x1b   : > { %v207_v13 = vld [vmem:[%s5328_s28 + $0x68] sm:$0xf]  ;;  %204 = vst [vmem:[%s5332_s29 + $0x2c] sm:$0xf] %v203_v11  ;;  %206 = vst [vmem:[%s5332_s29 + $0x30] sm:$0xf] %v205_v12 }
  0x1c   : > { %208 = vst [vmem:[%s5332_s29 + $0x34] sm:$0xf] %v207_v13  ;;  %v209_v14 = vld [vmem:[%s5328_s28 + $0x70] sm:$0xf]  ;;  %v211_v15 = vld [vmem:[%s5328_s28 + $0x78] sm:$0xf] }
  0x1d   : > { %v213_v16 = vld [vmem:[%s5328_s28 + $0x80] sm:$0xf]  ;;  %210 = vst [vmem:[%s5332_s29 + $0x38] sm:$0xf] %v209_v14  ;;  %212 = vst [vmem:[%s5332_s29 + $0x3c] sm:$0xf] %v211_v15 }
  0x1e   : > { %214 = vst [vmem:[%s5332_s29 + $0x40] sm:$0xf] %v213_v16  ;;  %v215_v17 = vld [vmem:[%s5328_s28 + $0x88] sm:$0xf]  ;;  %v217_v18 = vld [vmem:[%s5328_s28 + $0x90] sm:$0xf] }
  0x1f   : > { %v219_v19 = vld [vmem:[%s5328_s28 + $0x98] sm:$0xf]  ;;  %216 = vst [vmem:[%s5332_s29 + $0x44] sm:$0xf] %v215_v17  ;;  %218 = vst [vmem:[%s5332_s29 + $0x48] sm:$0xf] %v217_v18 }
  0x20   : > { %220 = vst [vmem:[%s5332_s29 + $0x4c] sm:$0xf] %v219_v19  ;;  %v221_v20 = vld [vmem:[%s5328_s28 + $0xa0] sm:$0xf]  ;;  %v223_v21 = vld [vmem:[%s5328_s28 + $0xa8] sm:$0xf] }
  0x21   : > { %v225_v22 = vld [vmem:[%s5328_s28 + $0xb0] sm:$0xf]  ;;  %222 = vst [vmem:[%s5332_s29 + $0x50] sm:$0xf] %v221_v20  ;;  %224 = vst [vmem:[%s5332_s29 + $0x54] sm:$0xf] %v223_v21 }
  0x22   : > { %226 = vst [vmem:[%s5332_s29 + $0x58] sm:$0xf] %v225_v22  ;;  %v227_v23 = vld [vmem:[%s5328_s28 + $0xb8] sm:$0xf]  ;;  %v229_v24 = vld [vmem:[%s5328_s28 + $0xc0] sm:$0xf] }
  0x23   : > { %v231_v25 = vld [vmem:[%s5328_s28 + $0xc8] sm:$0xf]  ;;  %228 = vst [vmem:[%s5332_s29 + $0x5c] sm:$0xf] %v227_v23  ;;  %230 = vst [vmem:[%s5332_s29 + $0x60] sm:$0xf] %v229_v24 }
  0x24   : > { %232 = vst [vmem:[%s5332_s29 + $0x64] sm:$0xf] %v231_v25  ;;  %v233_v26 = vld [vmem:[%s5328_s28 + $0xd0] sm:$0xf]  ;;  %v235_v27 = vld [vmem:[%s5328_s28 + $0xd8] sm:$0xf] }
  0x25   : > { %v237_v28 = vld [vmem:[%s5328_s28 + $0xe0] sm:$0xf]  ;;  %234 = vst [vmem:[%s5332_s29 + $0x68] sm:$0xf] %v233_v26  ;;  %236 = vst [vmem:[%s5332_s29 + $0x6c] sm:$0xf] %v235_v27 }
  0x26   : > { %238 = vst [vmem:[%s5332_s29 + $0x70] sm:$0xf] %v237_v28  ;;  %v239_v29 = vld [vmem:[%s5328_s28 + $0xe8] sm:$0xf]  ;;  %v241_v30 = vld [vmem:[%s5328_s28 + $0xf0] sm:$0xf] }
  0x27   : > { %v243_v31 = vld [vmem:[%s5328_s28 + $0xf8] sm:$0xf]  ;;  %240 = vst [vmem:[%s5332_s29 + $0x74] sm:$0xf] %v239_v29  ;;  %242 = vst [vmem:[%s5332_s29 + $0x78] sm:$0xf] %v241_v30 }
  0x28   : > { %244 = vst [vmem:[%s5332_s29 + $0x7c] sm:$0xf] %v243_v31  ;;  %v245_v32 = vld [vmem:[%s5328_s28 + $0x100] sm:$0xf]  ;;  %v247_v33 = vld [vmem:[%s5328_s28 + $0x108] sm:$0xf] }
  0x29   : > { %v249_v34 = vld [vmem:[%s5328_s28 + $0x110] sm:$0xf]  ;;  %246 = vst [vmem:[%s5332_s29 + $0x80] sm:$0xf] %v245_v32  ;;  %248 = vst [vmem:[%s5332_s29 + $0x84] sm:$0xf] %v247_v33 }
  0x2a   : > { %250 = vst [vmem:[%s5332_s29 + $0x88] sm:$0xf] %v249_v34  ;;  %v251_v35 = vld [vmem:[%s5328_s28 + $0x118] sm:$0xf]  ;;  %v253_v36 = vld [vmem:[%s5328_s28 + $0x120] sm:$0xf] }
  0x2b   : > { %v255_v37 = vld [vmem:[%s5328_s28 + $0x128] sm:$0xf]  ;;  %252 = vst [vmem:[%s5332_s29 + $0x8c] sm:$0xf] %v251_v35  ;;  %254 = vst [vmem:[%s5332_s29 + $0x90] sm:$0xf] %v253_v36 }
  0x2c   : > { %256 = vst [vmem:[%s5332_s29 + $0x94] sm:$0xf] %v255_v37  ;;  %v257_v38 = vld [vmem:[%s5328_s28 + $0x130] sm:$0xf]  ;;  %v259_v39 = vld [vmem:[%s5328_s28 + $0x138] sm:$0xf] }
  0x2d   : > { %v261_v40 = vld [vmem:[%s5328_s28 + $0x140] sm:$0xf]  ;;  %258 = vst [vmem:[%s5332_s29 + $0x98] sm:$0xf] %v257_v38  ;;  %260 = vst [vmem:[%s5332_s29 + $0x9c] sm:$0xf] %v259_v39 }
  0x2e   : > { %262 = vst [vmem:[%s5332_s29 + $0xa0] sm:$0xf] %v261_v40  ;;  %v263_v41 = vld [vmem:[%s5328_s28 + $0x148] sm:$0xf]  ;;  %v265_v42 = vld [vmem:[%s5328_s28 + $0x150] sm:$0xf] }
  0x2f   : > { %v267_v43 = vld [vmem:[%s5328_s28 + $0x158] sm:$0xf]  ;;  %264 = vst [vmem:[%s5332_s29 + $0xa4] sm:$0xf] %v263_v41  ;;  %266 = vst [vmem:[%s5332_s29 + $0xa8] sm:$0xf] %v265_v42 }
  0x30   : > { %268 = vst [vmem:[%s5332_s29 + $0xac] sm:$0xf] %v267_v43  ;;  %v269_v44 = vld [vmem:[%s5328_s28 + $0x160] sm:$0xf]  ;;  %v271_v45 = vld [vmem:[%s5328_s28 + $0x168] sm:$0xf] }
  0x31   : > { %v273_v46 = vld [vmem:[%s5328_s28 + $0x170] sm:$0xf]  ;;  %270 = vst [vmem:[%s5332_s29 + $0xb0] sm:$0xf] %v269_v44  ;;  %272 = vst [vmem:[%s5332_s29 + $0xb4] sm:$0xf] %v271_v45 }
  0x32   : > { %274 = vst [vmem:[%s5332_s29 + $0xb8] sm:$0xf] %v273_v46  ;;  %v275_v47 = vld [vmem:[%s5328_s28 + $0x178] sm:$0xf]  ;;  %v277_v48 = vld [vmem:[%s5328_s28 + $0x180] sm:$0xf] }
  0x33   : > { %v279_v49 = vld [vmem:[%s5328_s28 + $0x188] sm:$0xf]  ;;  %276 = vst [vmem:[%s5332_s29 + $0xbc] sm:$0xf] %v275_v47  ;;  %278 = vst [vmem:[%s5332_s29 + $0xc0] sm:$0xf] %v277_v48 }
  0x34   : > { %280 = vst [vmem:[%s5332_s29 + $0xc4] sm:$0xf] %v279_v49  ;;  %v281_v50 = vld [vmem:[%s5328_s28 + $0x190] sm:$0xf]  ;;  %v283_v51 = vld [vmem:[%s5328_s28 + $0x198] sm:$0xf] }
  0x35   : > { %v285_v52 = vld [vmem:[%s5328_s28 + $0x1a0] sm:$0xf]  ;;  %282 = vst [vmem:[%s5332_s29 + $0xc8] sm:$0xf] %v281_v50  ;;  %284 = vst [vmem:[%s5332_s29 + $0xcc] sm:$0xf] %v283_v51 }
  0x36   : > { %286 = vst [vmem:[%s5332_s29 + $0xd0] sm:$0xf] %v285_v52  ;;  %v287_v53 = vld [vmem:[%s5328_s28 + $0x1a8] sm:$0xf]  ;;  %v289_v54 = vld [vmem:[%s5328_s28 + $0x1b0] sm:$0xf] }
  0x37   : > { %v291_v55 = vld [vmem:[%s5328_s28 + $0x1b8] sm:$0xf]  ;;  %288 = vst [vmem:[%s5332_s29 + $0xd4] sm:$0xf] %v287_v53  ;;  %290 = vst [vmem:[%s5332_s29 + $0xd8] sm:$0xf] %v289_v54 }
  0x38   : > { %292 = vst [vmem:[%s5332_s29 + $0xdc] sm:$0xf] %v291_v55  ;;  %v293_v56 = vld [vmem:[%s5328_s28 + $0x1c0] sm:$0xf]  ;;  %v295_v57 = vld [vmem:[%s5328_s28 + $0x1c8] sm:$0xf] }
  0x39   : > { %v297_v58 = vld [vmem:[%s5328_s28 + $0x1d0] sm:$0xf]  ;;  %294 = vst [vmem:[%s5332_s29 + $0xe0] sm:$0xf] %v293_v56  ;;  %296 = vst [vmem:[%s5332_s29 + $0xe4] sm:$0xf] %v295_v57 }
  0x3a   : > { %298 = vst [vmem:[%s5332_s29 + $0xe8] sm:$0xf] %v297_v58  ;;  %v299_v59 = vld [vmem:[%s5328_s28 + $0x1d8] sm:$0xf]  ;;  %v301_v60 = vld [vmem:[%s5328_s28 + $0x1e0] sm:$0xf] }
  0x3b   : > { %v303_v61 = vld [vmem:[%s5328_s28 + $0x1e8] sm:$0xf]  ;;  %300 = vst [vmem:[%s5332_s29 + $0xec] sm:$0xf] %v299_v59  ;;  %302 = vst [vmem:[%s5332_s29 + $0xf0] sm:$0xf] %v301_v60 }
  0x3c   : > { %304 = vst [vmem:[%s5332_s29 + $0xf4] sm:$0xf] %v303_v61  ;;  %v305_v62 = vld [vmem:[%s5328_s28 + $0x1f0] sm:$0xf]  ;;  %v307_v63 = vld [vmem:[%s5328_s28 + $0x1f8] sm:$0xf] }
  0x3d   : > { %v309_v0 = vld [vmem:[%s5328_s28 + $0x200] sm:$0xf]  ;;  %306 = vst [vmem:[%s5332_s29 + $0xf8] sm:$0xf] %v305_v62  ;;  %308 = vst [vmem:[%s5332_s29 + $0xfc] sm:$0xf] %v307_v63 }
  0x3e   : > { %310 = vst [vmem:[%s5332_s29 + $0x100] sm:$0xf] %v309_v0  ;;  %v311_v1 = vld [vmem:[%s5328_s28 + $0x208] sm:$0xf]  ;;  %v313_v2 = vld [vmem:[%s5328_s28 + $0x210] sm:$0xf] }
  0x3f   : > { %v315_v3 = vld [vmem:[%s5328_s28 + $0x218] sm:$0xf]  ;;  %312 = vst [vmem:[%s5332_s29 + $0x104] sm:$0xf] %v311_v1  ;;  %314 = vst [vmem:[%s5332_s29 + $0x108] sm:$0xf] %v313_v2 }
  0x40   : > { %316 = vst [vmem:[%s5332_s29 + $0x10c] sm:$0xf] %v315_v3  ;;  %v317_v4 = vld [vmem:[%s5328_s28 + $0x220] sm:$0xf]  ;;  %v319_v5 = vld [vmem:[%s5328_s28 + $0x228] sm:$0xf] }
  0x41   : > { %v321_v6 = vld [vmem:[%s5328_s28 + $0x230] sm:$0xf]  ;;  %318 = vst [vmem:[%s5332_s29 + $0x110] sm:$0xf] %v317_v4  ;;  %320 = vst [vmem:[%s5332_s29 + $0x114] sm:$0xf] %v319_v5 }
  0x42   : > { %322 = vst [vmem:[%s5332_s29 + $0x118] sm:$0xf] %v321_v6  ;;  %v323_v7 = vld [vmem:[%s5328_s28 + $0x238] sm:$0xf]  ;;  %v325_v8 = vld [vmem:[%s5328_s28 + $0x240] sm:$0xf] }
  0x43   : > { %v327_v9 = vld [vmem:[%s5328_s28 + $0x248] sm:$0xf]  ;;  %324 = vst [vmem:[%s5332_s29 + $0x11c] sm:$0xf] %v323_v7  ;;  %326 = vst [vmem:[%s5332_s29 + $0x120] sm:$0xf] %v325_v8 }
  0x44   : > { %328 = vst [vmem:[%s5332_s29 + $0x124] sm:$0xf] %v327_v9  ;;  %v329_v10 = vld [vmem:[%s5328_s28 + $0x250] sm:$0xf]  ;;  %v331_v11 = vld [vmem:[%s5328_s28 + $0x258] sm:$0xf] }
  0x45   : > { %v333_v12 = vld [vmem:[%s5328_s28 + $0x260] sm:$0xf]  ;;  %330 = vst [vmem:[%s5332_s29 + $0x128] sm:$0xf] %v329_v10  ;;  %332 = vst [vmem:[%s5332_s29 + $0x12c] sm:$0xf] %v331_v11 }
  0x46   : > { %334 = vst [vmem:[%s5332_s29 + $0x130] sm:$0xf] %v333_v12  ;;  %v335_v13 = vld [vmem:[%s5328_s28 + $0x268] sm:$0xf]  ;;  %v337_v14 = vld [vmem:[%s5328_s28 + $0x270] sm:$0xf] }
  0x47   : > { %v339_v15 = vld [vmem:[%s5328_s28 + $0x278] sm:$0xf]  ;;  %336 = vst [vmem:[%s5332_s29 + $0x134] sm:$0xf] %v335_v13  ;;  %338 = vst [vmem:[%s5332_s29 + $0x138] sm:$0xf] %v337_v14 }
  0x48   : > { %340 = vst [vmem:[%s5332_s29 + $0x13c] sm:$0xf] %v339_v15  ;;  %v341_v16 = vld [vmem:[%s5328_s28 + $0x280] sm:$0xf]  ;;  %v343_v17 = vld [vmem:[%s5328_s28 + $0x288] sm:$0xf] }
  0x49   : > { %v345_v18 = vld [vmem:[%s5328_s28 + $0x290] sm:$0xf]  ;;  %342 = vst [vmem:[%s5332_s29 + $0x140] sm:$0xf] %v341_v16  ;;  %344 = vst [vmem:[%s5332_s29 + $0x144] sm:$0xf] %v343_v17 }
  0x4a   : > { %346 = vst [vmem:[%s5332_s29 + $0x148] sm:$0xf] %v345_v18  ;;  %v347_v19 = vld [vmem:[%s5328_s28 + $0x298] sm:$0xf]  ;;  %v349_v20 = vld [vmem:[%s5328_s28 + $0x2a0] sm:$0xf] }
  0x4b   : > { %v351_v21 = vld [vmem:[%s5328_s28 + $0x2a8] sm:$0xf]  ;;  %348 = vst [vmem:[%s5332_s29 + $0x14c] sm:$0xf] %v347_v19  ;;  %350 = vst [vmem:[%s5332_s29 + $0x150] sm:$0xf] %v349_v20 }
  0x4c   : > { %352 = vst [vmem:[%s5332_s29 + $0x154] sm:$0xf] %v351_v21  ;;  %v353_v22 = vld [vmem:[%s5328_s28 + $0x2b0] sm:$0xf]  ;;  %v355_v23 = vld [vmem:[%s5328_s28 + $0x2b8] sm:$0xf] }
  0x4d   : > { %v357_v24 = vld [vmem:[%s5328_s28 + $0x2c0] sm:$0xf]  ;;  %354 = vst [vmem:[%s5332_s29 + $0x158] sm:$0xf] %v353_v22  ;;  %356 = vst [vmem:[%s5332_s29 + $0x15c] sm:$0xf] %v355_v23 }
  0x4e   : > { %358 = vst [vmem:[%s5332_s29 + $0x160] sm:$0xf] %v357_v24  ;;  %v359_v25 = vld [vmem:[%s5328_s28 + $0x2c8] sm:$0xf]  ;;  %v361_v26 = vld [vmem:[%s5328_s28 + $0x2d0] sm:$0xf] }
  0x4f   : > { %v363_v27 = vld [vmem:[%s5328_s28 + $0x2d8] sm:$0xf]  ;;  %360 = vst [vmem:[%s5332_s29 + $0x164] sm:$0xf] %v359_v25  ;;  %362 = vst [vmem:[%s5332_s29 + $0x168] sm:$0xf] %v361_v26 }
  0x50   : > { %364 = vst [vmem:[%s5332_s29 + $0x16c] sm:$0xf] %v363_v27  ;;  %v365_v28 = vld [vmem:[%s5328_s28 + $0x2e0] sm:$0xf]  ;;  %v367_v29 = vld [vmem:[%s5328_s28 + $0x2e8] sm:$0xf] }
  0x51   : > { %v369_v30 = vld [vmem:[%s5328_s28 + $0x2f0] sm:$0xf]  ;;  %366 = vst [vmem:[%s5332_s29 + $0x170] sm:$0xf] %v365_v28  ;;  %368 = vst [vmem:[%s5332_s29 + $0x174] sm:$0xf] %v367_v29 }
  0x52   : > { %370 = vst [vmem:[%s5332_s29 + $0x178] sm:$0xf] %v369_v30  ;;  %v371_v31 = vld [vmem:[%s5328_s28 + $0x2f8] sm:$0xf]  ;;  %v373_v32 = vld [vmem:[%s5328_s28 + $0x300] sm:$0xf] }
  0x53   : > { %v375_v33 = vld [vmem:[%s5328_s28 + $0x308] sm:$0xf]  ;;  %372 = vst [vmem:[%s5332_s29 + $0x17c] sm:$0xf] %v371_v31  ;;  %374 = vst [vmem:[%s5332_s29 + $0x180] sm:$0xf] %v373_v32 }
  0x54   : > { %376 = vst [vmem:[%s5332_s29 + $0x184] sm:$0xf] %v375_v33  ;;  %v377_v34 = vld [vmem:[%s5328_s28 + $0x310] sm:$0xf]  ;;  %v379_v35 = vld [vmem:[%s5328_s28 + $0x318] sm:$0xf] }
  0x55   : > { %v381_v36 = vld [vmem:[%s5328_s28 + $0x320] sm:$0xf]  ;;  %378 = vst [vmem:[%s5332_s29 + $0x188] sm:$0xf] %v377_v34  ;;  %380 = vst [vmem:[%s5332_s29 + $0x18c] sm:$0xf] %v379_v35 }
  0x56   : > { %382 = vst [vmem:[%s5332_s29 + $0x190] sm:$0xf] %v381_v36  ;;  %v383_v37 = vld [vmem:[%s5328_s28 + $0x328] sm:$0xf]  ;;  %v385_v38 = vld [vmem:[%s5328_s28 + $0x330] sm:$0xf] }
  0x57   : > { %v387_v39 = vld [vmem:[%s5328_s28 + $0x338] sm:$0xf]  ;;  %384 = vst [vmem:[%s5332_s29 + $0x194] sm:$0xf] %v383_v37  ;;  %386 = vst [vmem:[%s5332_s29 + $0x198] sm:$0xf] %v385_v38 }
  0x58   : > { %388 = vst [vmem:[%s5332_s29 + $0x19c] sm:$0xf] %v387_v39  ;;  %v389_v40 = vld [vmem:[%s5328_s28 + $0x340] sm:$0xf]  ;;  %v391_v41 = vld [vmem:[%s5328_s28 + $0x348] sm:$0xf] }
  0x59   : > { %v393_v42 = vld [vmem:[%s5328_s28 + $0x350] sm:$0xf]  ;;  %390 = vst [vmem:[%s5332_s29 + $0x1a0] sm:$0xf] %v389_v40  ;;  %392 = vst [vmem:[%s5332_s29 + $0x1a4] sm:$0xf] %v391_v41 }
  0x5a   : > { %394 = vst [vmem:[%s5332_s29 + $0x1a8] sm:$0xf] %v393_v42  ;;  %v395_v43 = vld [vmem:[%s5328_s28 + $0x358] sm:$0xf]  ;;  %v397_v44 = vld [vmem:[%s5328_s28 + $0x360] sm:$0xf] }
  0x5b   : > { %v399_v45 = vld [vmem:[%s5328_s28 + $0x368] sm:$0xf]  ;;  %396 = vst [vmem:[%s5332_s29 + $0x1ac] sm:$0xf] %v395_v43  ;;  %398 = vst [vmem:[%s5332_s29 + $0x1b0] sm:$0xf] %v397_v44 }
  0x5c   : > { %400 = vst [vmem:[%s5332_s29 + $0x1b4] sm:$0xf] %v399_v45  ;;  %v401_v46 = vld [vmem:[%s5328_s28 + $0x370] sm:$0xf]  ;;  %v403_v47 = vld [vmem:[%s5328_s28 + $0x378] sm:$0xf] }
  0x5d   : > { %v405_v48 = vld [vmem:[%s5328_s28 + $0x380] sm:$0xf]  ;;  %402 = vst [vmem:[%s5332_s29 + $0x1b8] sm:$0xf] %v401_v46  ;;  %404 = vst [vmem:[%s5332_s29 + $0x1bc] sm:$0xf] %v403_v47 }
  0x5e   : > { %406 = vst [vmem:[%s5332_s29 + $0x1c0] sm:$0xf] %v405_v48  ;;  %v407_v49 = vld [vmem:[%s5328_s28 + $0x388] sm:$0xf]  ;;  %v409_v50 = vld [vmem:[%s5328_s28 + $0x390] sm:$0xf] }
  0x5f   : > { %v411_v51 = vld [vmem:[%s5328_s28 + $0x398] sm:$0xf]  ;;  %408 = vst [vmem:[%s5332_s29 + $0x1c4] sm:$0xf] %v407_v49  ;;  %410 = vst [vmem:[%s5332_s29 + $0x1c8] sm:$0xf] %v409_v50 }
  0x60   : > { %412 = vst [vmem:[%s5332_s29 + $0x1cc] sm:$0xf] %v411_v51  ;;  %v413_v52 = vld [vmem:[%s5328_s28 + $0x3a0] sm:$0xf]  ;;  %v415_v53 = vld [vmem:[%s5328_s28 + $0x3a8] sm:$0xf] }
  0x61   : > { %v417_v54 = vld [vmem:[%s5328_s28 + $0x3b0] sm:$0xf]  ;;  %414 = vst [vmem:[%s5332_s29 + $0x1d0] sm:$0xf] %v413_v52  ;;  %416 = vst [vmem:[%s5332_s29 + $0x1d4] sm:$0xf] %v415_v53 }
  0x62   : > { %418 = vst [vmem:[%s5332_s29 + $0x1d8] sm:$0xf] %v417_v54  ;;  %v419_v55 = vld [vmem:[%s5328_s28 + $0x3b8] sm:$0xf]  ;;  %v421_v56 = vld [vmem:[%s5328_s28 + $0x3c0] sm:$0xf] }
  0x63   : > { %v423_v57 = vld [vmem:[%s5328_s28 + $0x3c8] sm:$0xf]  ;;  %420 = vst [vmem:[%s5332_s29 + $0x1dc] sm:$0xf] %v419_v55  ;;  %422 = vst [vmem:[%s5332_s29 + $0x1e0] sm:$0xf] %v421_v56 }
  0x64   : > { %424 = vst [vmem:[%s5332_s29 + $0x1e4] sm:$0xf] %v423_v57  ;;  %v425_v58 = vld [vmem:[%s5328_s28 + $0x3d0] sm:$0xf]  ;;  %v427_v59 = vld [vmem:[%s5328_s28 + $0x3d8] sm:$0xf] }
  0x65   : > { %v429_v60 = vld [vmem:[%s5328_s28 + $0x3e0] sm:$0xf]  ;;  %426 = vst [vmem:[%s5332_s29 + $0x1e8] sm:$0xf] %v425_v58  ;;  %428 = vst [vmem:[%s5332_s29 + $0x1ec] sm:$0xf] %v427_v59 }
  0x66   : > { %430 = vst [vmem:[%s5332_s29 + $0x1f0] sm:$0xf] %v429_v60  ;;  %v431_v61 = vld [vmem:[%s5328_s28 + $0x3e8] sm:$0xf]  ;;  %v433_v62 = vld [vmem:[%s5328_s28 + $0x3f0] sm:$0xf] }
  0x67   : > { %v435_v63 = vld [vmem:[%s5328_s28 + $0x3f8] sm:$0xf]  ;;  %432 = vst [vmem:[%s5332_s29 + $0x1f4] sm:$0xf] %v431_v61  ;;  %434 = vst [vmem:[%s5332_s29 + $0x1f8] sm:$0xf] %v433_v62 }
  0x68   : > { %436 = vst [vmem:[%s5332_s29 + $0x1fc] sm:$0xf] %v435_v63  ;;  %v437_v0 = vld [vmem:[%s5328_s28 + $0x400] sm:$0xf]  ;;  %v439_v1 = vld [vmem:[%s5328_s28 + $0x408] sm:$0xf] }
  0x69   : > { %v441_v2 = vld [vmem:[%s5328_s28 + $0x410] sm:$0xf]  ;;  %438 = vst [vmem:[%s5332_s29 + $0x200] sm:$0xf] %v437_v0  ;;  %440 = vst [vmem:[%s5332_s29 + $0x204] sm:$0xf] %v439_v1 }
  0x6a   : > { %442 = vst [vmem:[%s5332_s29 + $0x208] sm:$0xf] %v441_v2  ;;  %v443_v3 = vld [vmem:[%s5328_s28 + $0x418] sm:$0xf]  ;;  %v445_v4 = vld [vmem:[%s5328_s28 + $0x420] sm:$0xf] }
  0x6b   : > { %v447_v5 = vld [vmem:[%s5328_s28 + $0x428] sm:$0xf]  ;;  %444 = vst [vmem:[%s5332_s29 + $0x20c] sm:$0xf] %v443_v3  ;;  %446 = vst [vmem:[%s5332_s29 + $0x210] sm:$0xf] %v445_v4 }
  0x6c   : > { %448 = vst [vmem:[%s5332_s29 + $0x214] sm:$0xf] %v447_v5  ;;  %v449_v6 = vld [vmem:[%s5328_s28 + $0x430] sm:$0xf]  ;;  %v451_v7 = vld [vmem:[%s5328_s28 + $0x438] sm:$0xf] }
  0x6d   : > { %v453_v8 = vld [vmem:[%s5328_s28 + $0x440] sm:$0xf]  ;;  %450 = vst [vmem:[%s5332_s29 + $0x218] sm:$0xf] %v449_v6  ;;  %452 = vst [vmem:[%s5332_s29 + $0x21c] sm:$0xf] %v451_v7 }
  0x6e   : > { %454 = vst [vmem:[%s5332_s29 + $0x220] sm:$0xf] %v453_v8  ;;  %v455_v9 = vld [vmem:[%s5328_s28 + $0x448] sm:$0xf]  ;;  %v457_v10 = vld [vmem:[%s5328_s28 + $0x450] sm:$0xf] }
  0x6f   : > { %v459_v11 = vld [vmem:[%s5328_s28 + $0x458] sm:$0xf]  ;;  %456 = vst [vmem:[%s5332_s29 + $0x224] sm:$0xf] %v455_v9  ;;  %458 = vst [vmem:[%s5332_s29 + $0x228] sm:$0xf] %v457_v10 }
  0x70   : > { %460 = vst [vmem:[%s5332_s29 + $0x22c] sm:$0xf] %v459_v11  ;;  %v461_v12 = vld [vmem:[%s5328_s28 + $0x460] sm:$0xf]  ;;  %v463_v13 = vld [vmem:[%s5328_s28 + $0x468] sm:$0xf] }
  0x71   : > { %v465_v14 = vld [vmem:[%s5328_s28 + $0x470] sm:$0xf]  ;;  %462 = vst [vmem:[%s5332_s29 + $0x230] sm:$0xf] %v461_v12  ;;  %464 = vst [vmem:[%s5332_s29 + $0x234] sm:$0xf] %v463_v13 }
  0x72   : > { %466 = vst [vmem:[%s5332_s29 + $0x238] sm:$0xf] %v465_v14  ;;  %v467_v15 = vld [vmem:[%s5328_s28 + $0x478] sm:$0xf]  ;;  %v469_v16 = vld [vmem:[%s5328_s28 + $0x480] sm:$0xf] }
  0x73   : > { %v471_v17 = vld [vmem:[%s5328_s28 + $0x488] sm:$0xf]  ;;  %468 = vst [vmem:[%s5332_s29 + $0x23c] sm:$0xf] %v467_v15  ;;  %470 = vst [vmem:[%s5332_s29 + $0x240] sm:$0xf] %v469_v16 }
  0x74   : > { %472 = vst [vmem:[%s5332_s29 + $0x244] sm:$0xf] %v471_v17  ;;  %v473_v18 = vld [vmem:[%s5328_s28 + $0x490] sm:$0xf]  ;;  %v475_v19 = vld [vmem:[%s5328_s28 + $0x498] sm:$0xf] }
  0x75   : > { %v477_v20 = vld [vmem:[%s5328_s28 + $0x4a0] sm:$0xf]  ;;  %474 = vst [vmem:[%s5332_s29 + $0x248] sm:$0xf] %v473_v18  ;;  %476 = vst [vmem:[%s5332_s29 + $0x24c] sm:$0xf] %v475_v19 }
  0x76   : > { %478 = vst [vmem:[%s5332_s29 + $0x250] sm:$0xf] %v477_v20  ;;  %v479_v21 = vld [vmem:[%s5328_s28 + $0x4a8] sm:$0xf]  ;;  %v481_v22 = vld [vmem:[%s5328_s28 + $0x4b0] sm:$0xf] }
  0x77   : > { %v483_v23 = vld [vmem:[%s5328_s28 + $0x4b8] sm:$0xf]  ;;  %480 = vst [vmem:[%s5332_s29 + $0x254] sm:$0xf] %v479_v21  ;;  %482 = vst [vmem:[%s5332_s29 + $0x258] sm:$0xf] %v481_v22 }
  0x78   : > { %484 = vst [vmem:[%s5332_s29 + $0x25c] sm:$0xf] %v483_v23  ;;  %v485_v24 = vld [vmem:[%s5328_s28 + $0x4c0] sm:$0xf]  ;;  %v487_v25 = vld [vmem:[%s5328_s28 + $0x4c8] sm:$0xf] }
  0x79   : > { %v489_v26 = vld [vmem:[%s5328_s28 + $0x4d0] sm:$0xf]  ;;  %486 = vst [vmem:[%s5332_s29 + $0x260] sm:$0xf] %v485_v24  ;;  %488 = vst [vmem:[%s5332_s29 + $0x264] sm:$0xf] %v487_v25 }
  0x7a   : > { %490 = vst [vmem:[%s5332_s29 + $0x268] sm:$0xf] %v489_v26  ;;  %v491_v27 = vld [vmem:[%s5328_s28 + $0x4d8] sm:$0xf]  ;;  %v493_v28 = vld [vmem:[%s5328_s28 + $0x4e0] sm:$0xf] }
  0x7b   : > { %v495_v29 = vld [vmem:[%s5328_s28 + $0x4e8] sm:$0xf]  ;;  %492 = vst [vmem:[%s5332_s29 + $0x26c] sm:$0xf] %v491_v27  ;;  %494 = vst [vmem:[%s5332_s29 + $0x270] sm:$0xf] %v493_v28 }
  0x7c   : > { %496 = vst [vmem:[%s5332_s29 + $0x274] sm:$0xf] %v495_v29  ;;  %v497_v30 = vld [vmem:[%s5328_s28 + $0x4f0] sm:$0xf]  ;;  %v499_v31 = vld [vmem:[%s5328_s28 + $0x4f8] sm:$0xf] }
  0x7d   : > { %v501_v32 = vld [vmem:[%s5328_s28 + $0x500] sm:$0xf]  ;;  %498 = vst [vmem:[%s5332_s29 + $0x278] sm:$0xf] %v497_v30  ;;  %500 = vst [vmem:[%s5332_s29 + $0x27c] sm:$0xf] %v499_v31 }
  0x7e   : > { %502 = vst [vmem:[%s5332_s29 + $0x280] sm:$0xf] %v501_v32  ;;  %v503_v33 = vld [vmem:[%s5328_s28 + $0x508] sm:$0xf]  ;;  %v505_v34 = vld [vmem:[%s5328_s28 + $0x510] sm:$0xf] }
  0x7f   : > { %v507_v35 = vld [vmem:[%s5328_s28 + $0x518] sm:$0xf]  ;;  %504 = vst [vmem:[%s5332_s29 + $0x284] sm:$0xf] %v503_v33  ;;  %506 = vst [vmem:[%s5332_s29 + $0x288] sm:$0xf] %v505_v34 }
  0x80   : > { %508 = vst [vmem:[%s5332_s29 + $0x28c] sm:$0xf] %v507_v35  ;;  %v509_v36 = vld [vmem:[%s5328_s28 + $0x520] sm:$0xf]  ;;  %v511_v37 = vld [vmem:[%s5328_s28 + $0x528] sm:$0xf] }
  0x81   : > { %v513_v38 = vld [vmem:[%s5328_s28 + $0x530] sm:$0xf]  ;;  %510 = vst [vmem:[%s5332_s29 + $0x290] sm:$0xf] %v509_v36  ;;  %512 = vst [vmem:[%s5332_s29 + $0x294] sm:$0xf] %v511_v37 }
  0x82   : > { %514 = vst [vmem:[%s5332_s29 + $0x298] sm:$0xf] %v513_v38  ;;  %v515_v39 = vld [vmem:[%s5328_s28 + $0x538] sm:$0xf]  ;;  %v517_v40 = vld [vmem:[%s5328_s28 + $0x540] sm:$0xf] }
  0x83   : > { %v519_v41 = vld [vmem:[%s5328_s28 + $0x548] sm:$0xf]  ;;  %516 = vst [vmem:[%s5332_s29 + $0x29c] sm:$0xf] %v515_v39  ;;  %518 = vst [vmem:[%s5332_s29 + $0x2a0] sm:$0xf] %v517_v40 }
  0x84   : > { %520 = vst [vmem:[%s5332_s29 + $0x2a4] sm:$0xf] %v519_v41  ;;  %v521_v42 = vld [vmem:[%s5328_s28 + $0x550] sm:$0xf]  ;;  %v523_v43 = vld [vmem:[%s5328_s28 + $0x558] sm:$0xf] }
  0x85   : > { %v525_v44 = vld [vmem:[%s5328_s28 + $0x560] sm:$0xf]  ;;  %522 = vst [vmem:[%s5332_s29 + $0x2a8] sm:$0xf] %v521_v42  ;;  %524 = vst [vmem:[%s5332_s29 + $0x2ac] sm:$0xf] %v523_v43 }
  0x86   : > { %526 = vst [vmem:[%s5332_s29 + $0x2b0] sm:$0xf] %v525_v44  ;;  %v527_v45 = vld [vmem:[%s5328_s28 + $0x568] sm:$0xf]  ;;  %v529_v46 = vld [vmem:[%s5328_s28 + $0x570] sm:$0xf] }
  0x87   : > { %v531_v47 = vld [vmem:[%s5328_s28 + $0x578] sm:$0xf]  ;;  %528 = vst [vmem:[%s5332_s29 + $0x2b4] sm:$0xf] %v527_v45  ;;  %530 = vst [vmem:[%s5332_s29 + $0x2b8] sm:$0xf] %v529_v46 }
  0x88   : > { %532 = vst [vmem:[%s5332_s29 + $0x2bc] sm:$0xf] %v531_v47  ;;  %v533_v48 = vld [vmem:[%s5328_s28 + $0x580] sm:$0xf]  ;;  %v535_v49 = vld [vmem:[%s5328_s28 + $0x588] sm:$0xf] }
  0x89   : > { %v537_v50 = vld [vmem:[%s5328_s28 + $0x590] sm:$0xf]  ;;  %534 = vst [vmem:[%s5332_s29 + $0x2c0] sm:$0xf] %v533_v48  ;;  %536 = vst [vmem:[%s5332_s29 + $0x2c4] sm:$0xf] %v535_v49 }
  0x8a   : > { %538 = vst [vmem:[%s5332_s29 + $0x2c8] sm:$0xf] %v537_v50  ;;  %v539_v51 = vld [vmem:[%s5328_s28 + $0x598] sm:$0xf]  ;;  %v541_v52 = vld [vmem:[%s5328_s28 + $0x5a0] sm:$0xf] }
  0x8b   : > { %v543_v53 = vld [vmem:[%s5328_s28 + $0x5a8] sm:$0xf]  ;;  %540 = vst [vmem:[%s5332_s29 + $0x2cc] sm:$0xf] %v539_v51  ;;  %542 = vst [vmem:[%s5332_s29 + $0x2d0] sm:$0xf] %v541_v52 }
  0x8c   : > { %544 = vst [vmem:[%s5332_s29 + $0x2d4] sm:$0xf] %v543_v53  ;;  %v545_v54 = vld [vmem:[%s5328_s28 + $0x5b0] sm:$0xf]  ;;  %v547_v55 = vld [vmem:[%s5328_s28 + $0x5b8] sm:$0xf] }
  0x8d   : > { %v549_v56 = vld [vmem:[%s5328_s28 + $0x5c0] sm:$0xf]  ;;  %546 = vst [vmem:[%s5332_s29 + $0x2d8] sm:$0xf] %v545_v54  ;;  %548 = vst [vmem:[%s5332_s29 + $0x2dc] sm:$0xf] %v547_v55 }
  0x8e   : > { %550 = vst [vmem:[%s5332_s29 + $0x2e0] sm:$0xf] %v549_v56  ;;  %v551_v57 = vld [vmem:[%s5328_s28 + $0x5c8] sm:$0xf]  ;;  %v553_v58 = vld [vmem:[%s5328_s28 + $0x5d0] sm:$0xf] }
  0x8f   : > { %v555_v59 = vld [vmem:[%s5328_s28 + $0x5d8] sm:$0xf]  ;;  %552 = vst [vmem:[%s5332_s29 + $0x2e4] sm:$0xf] %v551_v57  ;;  %554 = vst [vmem:[%s5332_s29 + $0x2e8] sm:$0xf] %v553_v58 }
  0x90   : > { %556 = vst [vmem:[%s5332_s29 + $0x2ec] sm:$0xf] %v555_v59  ;;  %v557_v60 = vld [vmem:[%s5328_s28 + $0x5e0] sm:$0xf]  ;;  %v559_v61 = vld [vmem:[%s5328_s28 + $0x5e8] sm:$0xf] }
  0x91   : > { %v561_v62 = vld [vmem:[%s5328_s28 + $0x5f0] sm:$0xf]  ;;  %558 = vst [vmem:[%s5332_s29 + $0x2f0] sm:$0xf] %v557_v60  ;;  %560 = vst [vmem:[%s5332_s29 + $0x2f4] sm:$0xf] %v559_v61 }
  0x92   : > { %562 = vst [vmem:[%s5332_s29 + $0x2f8] sm:$0xf] %v561_v62  ;;  %v563_v63 = vld [vmem:[%s5328_s28 + $0x5f8] sm:$0xf]  ;;  %v565_v0 = vld [vmem:[%s5328_s28 + $0x600] sm:$0xf] }
  0x93   : > { %v567_v1 = vld [vmem:[%s5328_s28 + $0x608] sm:$0xf]  ;;  %564 = vst [vmem:[%s5332_s29 + $0x2fc] sm:$0xf] %v563_v63  ;;  %566 = vst [vmem:[%s5332_s29 + $0x300] sm:$0xf] %v565_v0 }
  0x94   : > { %568 = vst [vmem:[%s5332_s29 + $0x304] sm:$0xf] %v567_v1  ;;  %v569_v2 = vld [vmem:[%s5328_s28 + $0x610] sm:$0xf]  ;;  %v571_v3 = vld [vmem:[%s5328_s28 + $0x618] sm:$0xf] }
  0x95   : > { %v573_v4 = vld [vmem:[%s5328_s28 + $0x620] sm:$0xf]  ;;  %570 = vst [vmem:[%s5332_s29 + $0x308] sm:$0xf] %v569_v2  ;;  %572 = vst [vmem:[%s5332_s29 + $0x30c] sm:$0xf] %v571_v3 }
  0x96   : > { %574 = vst [vmem:[%s5332_s29 + $0x310] sm:$0xf] %v573_v4  ;;  %v575_v5 = vld [vmem:[%s5328_s28 + $0x628] sm:$0xf]  ;;  %v577_v6 = vld [vmem:[%s5328_s28 + $0x630] sm:$0xf] }
  0x97   : > { %v579_v7 = vld [vmem:[%s5328_s28 + $0x638] sm:$0xf]  ;;  %576 = vst [vmem:[%s5332_s29 + $0x314] sm:$0xf] %v575_v5  ;;  %578 = vst [vmem:[%s5332_s29 + $0x318] sm:$0xf] %v577_v6 }
  0x98   : > { %580 = vst [vmem:[%s5332_s29 + $0x31c] sm:$0xf] %v579_v7  ;;  %v581_v8 = vld [vmem:[%s5328_s28 + $0x640] sm:$0xf]  ;;  %v583_v9 = vld [vmem:[%s5328_s28 + $0x648] sm:$0xf] }
  0x99   : > { %v585_v10 = vld [vmem:[%s5328_s28 + $0x650] sm:$0xf]  ;;  %582 = vst [vmem:[%s5332_s29 + $0x320] sm:$0xf] %v581_v8  ;;  %584 = vst [vmem:[%s5332_s29 + $0x324] sm:$0xf] %v583_v9 }
  0x9a   : > { %586 = vst [vmem:[%s5332_s29 + $0x328] sm:$0xf] %v585_v10  ;;  %v587_v11 = vld [vmem:[%s5328_s28 + $0x658] sm:$0xf]  ;;  %v589_v12 = vld [vmem:[%s5328_s28 + $0x660] sm:$0xf] }
  0x9b   : > { %v591_v13 = vld [vmem:[%s5328_s28 + $0x668] sm:$0xf]  ;;  %588 = vst [vmem:[%s5332_s29 + $0x32c] sm:$0xf] %v587_v11  ;;  %590 = vst [vmem:[%s5332_s29 + $0x330] sm:$0xf] %v589_v12 }
  0x9c   : > { %592 = vst [vmem:[%s5332_s29 + $0x334] sm:$0xf] %v591_v13  ;;  %v593_v14 = vld [vmem:[%s5328_s28 + $0x670] sm:$0xf]  ;;  %v595_v15 = vld [vmem:[%s5328_s28 + $0x678] sm:$0xf] }
  0x9d   : > { %v597_v16 = vld [vmem:[%s5328_s28 + $0x680] sm:$0xf]  ;;  %594 = vst [vmem:[%s5332_s29 + $0x338] sm:$0xf] %v593_v14  ;;  %596 = vst [vmem:[%s5332_s29 + $0x33c] sm:$0xf] %v595_v15 }
  0x9e   : > { %598 = vst [vmem:[%s5332_s29 + $0x340] sm:$0xf] %v597_v16  ;;  %v599_v17 = vld [vmem:[%s5328_s28 + $0x688] sm:$0xf]  ;;  %v601_v18 = vld [vmem:[%s5328_s28 + $0x690] sm:$0xf] }
  0x9f   : > { %v603_v19 = vld [vmem:[%s5328_s28 + $0x698] sm:$0xf]  ;;  %600 = vst [vmem:[%s5332_s29 + $0x344] sm:$0xf] %v599_v17  ;;  %602 = vst [vmem:[%s5332_s29 + $0x348] sm:$0xf] %v601_v18 }
  0xa0   : > { %604 = vst [vmem:[%s5332_s29 + $0x34c] sm:$0xf] %v603_v19  ;;  %v605_v20 = vld [vmem:[%s5328_s28 + $0x6a0] sm:$0xf]  ;;  %v607_v21 = vld [vmem:[%s5328_s28 + $0x6a8] sm:$0xf] }
  0xa1   : > { %v609_v22 = vld [vmem:[%s5328_s28 + $0x6b0] sm:$0xf]  ;;  %606 = vst [vmem:[%s5332_s29 + $0x350] sm:$0xf] %v605_v20  ;;  %608 = vst [vmem:[%s5332_s29 + $0x354] sm:$0xf] %v607_v21 }
  0xa2   : > { %610 = vst [vmem:[%s5332_s29 + $0x358] sm:$0xf] %v609_v22  ;;  %v611_v23 = vld [vmem:[%s5328_s28 + $0x6b8] sm:$0xf]  ;;  %v613_v24 = vld [vmem:[%s5328_s28 + $0x6c0] sm:$0xf] }
  0xa3   : > { %v615_v25 = vld [vmem:[%s5328_s28 + $0x6c8] sm:$0xf]  ;;  %612 = vst [vmem:[%s5332_s29 + $0x35c] sm:$0xf] %v611_v23  ;;  %614 = vst [vmem:[%s5332_s29 + $0x360] sm:$0xf] %v613_v24 }
  0xa4   : > { %616 = vst [vmem:[%s5332_s29 + $0x364] sm:$0xf] %v615_v25  ;;  %v617_v26 = vld [vmem:[%s5328_s28 + $0x6d0] sm:$0xf]  ;;  %v619_v27 = vld [vmem:[%s5328_s28 + $0x6d8] sm:$0xf] }
  0xa5   : > { %v621_v28 = vld [vmem:[%s5328_s28 + $0x6e0] sm:$0xf]  ;;  %618 = vst [vmem:[%s5332_s29 + $0x368] sm:$0xf] %v617_v26  ;;  %620 = vst [vmem:[%s5332_s29 + $0x36c] sm:$0xf] %v619_v27 }
  0xa6   : > { %622 = vst [vmem:[%s5332_s29 + $0x370] sm:$0xf] %v621_v28  ;;  %v623_v29 = vld [vmem:[%s5328_s28 + $0x6e8] sm:$0xf]  ;;  %v625_v30 = vld [vmem:[%s5328_s28 + $0x6f0] sm:$0xf] }
  0xa7   : > { %v627_v31 = vld [vmem:[%s5328_s28 + $0x6f8] sm:$0xf]  ;;  %624 = vst [vmem:[%s5332_s29 + $0x374] sm:$0xf] %v623_v29  ;;  %626 = vst [vmem:[%s5332_s29 + $0x378] sm:$0xf] %v625_v30 }
  0xa8   : > { %628 = vst [vmem:[%s5332_s29 + $0x37c] sm:$0xf] %v627_v31  ;;  %v629_v32 = vld [vmem:[%s5328_s28 + $0x700] sm:$0xf]  ;;  %v631_v33 = vld [vmem:[%s5328_s28 + $0x708] sm:$0xf] }
  0xa9   : > { %v633_v34 = vld [vmem:[%s5328_s28 + $0x710] sm:$0xf]  ;;  %630 = vst [vmem:[%s5332_s29 + $0x380] sm:$0xf] %v629_v32  ;;  %632 = vst [vmem:[%s5332_s29 + $0x384] sm:$0xf] %v631_v33 }
  0xaa   : > { %634 = vst [vmem:[%s5332_s29 + $0x388] sm:$0xf] %v633_v34  ;;  %v635_v35 = vld [vmem:[%s5328_s28 + $0x718] sm:$0xf]  ;;  %v637_v36 = vld [vmem:[%s5328_s28 + $0x720] sm:$0xf] }
  0xab   : > { %v639_v37 = vld [vmem:[%s5328_s28 + $0x728] sm:$0xf]  ;;  %636 = vst [vmem:[%s5332_s29 + $0x38c] sm:$0xf] %v635_v35  ;;  %638 = vst [vmem:[%s5332_s29 + $0x390] sm:$0xf] %v637_v36 }
  0xac   : > { %640 = vst [vmem:[%s5332_s29 + $0x394] sm:$0xf] %v639_v37  ;;  %v641_v38 = vld [vmem:[%s5328_s28 + $0x730] sm:$0xf]  ;;  %v643_v39 = vld [vmem:[%s5328_s28 + $0x738] sm:$0xf] }
  0xad   : > { %v645_v40 = vld [vmem:[%s5328_s28 + $0x740] sm:$0xf]  ;;  %642 = vst [vmem:[%s5332_s29 + $0x398] sm:$0xf] %v641_v38  ;;  %644 = vst [vmem:[%s5332_s29 + $0x39c] sm:$0xf] %v643_v39 }
  0xae   : > { %646 = vst [vmem:[%s5332_s29 + $0x3a0] sm:$0xf] %v645_v40  ;;  %v647_v41 = vld [vmem:[%s5328_s28 + $0x748] sm:$0xf]  ;;  %v649_v42 = vld [vmem:[%s5328_s28 + $0x750] sm:$0xf] }
  0xaf   : > { %v651_v43 = vld [vmem:[%s5328_s28 + $0x758] sm:$0xf]  ;;  %648 = vst [vmem:[%s5332_s29 + $0x3a4] sm:$0xf] %v647_v41  ;;  %650 = vst [vmem:[%s5332_s29 + $0x3a8] sm:$0xf] %v649_v42 }
  0xb0   : > { %652 = vst [vmem:[%s5332_s29 + $0x3ac] sm:$0xf] %v651_v43  ;;  %v653_v44 = vld [vmem:[%s5328_s28 + $0x760] sm:$0xf]  ;;  %v655_v45 = vld [vmem:[%s5328_s28 + $0x768] sm:$0xf] }
  0xb1   : > { %v657_v46 = vld [vmem:[%s5328_s28 + $0x770] sm:$0xf]  ;;  %654 = vst [vmem:[%s5332_s29 + $0x3b0] sm:$0xf] %v653_v44  ;;  %656 = vst [vmem:[%s5332_s29 + $0x3b4] sm:$0xf] %v655_v45 }
  0xb2   : > { %658 = vst [vmem:[%s5332_s29 + $0x3b8] sm:$0xf] %v657_v46  ;;  %v659_v47 = vld [vmem:[%s5328_s28 + $0x778] sm:$0xf]  ;;  %v661_v48 = vld [vmem:[%s5328_s28 + $0x780] sm:$0xf] }
  0xb3   : > { %v663_v49 = vld [vmem:[%s5328_s28 + $0x788] sm:$0xf]  ;;  %660 = vst [vmem:[%s5332_s29 + $0x3bc] sm:$0xf] %v659_v47  ;;  %662 = vst [vmem:[%s5332_s29 + $0x3c0] sm:$0xf] %v661_v48 }
  0xb4   : > { %664 = vst [vmem:[%s5332_s29 + $0x3c4] sm:$0xf] %v663_v49  ;;  %v665_v50 = vld [vmem:[%s5328_s28 + $0x790] sm:$0xf]  ;;  %v667_v51 = vld [vmem:[%s5328_s28 + $0x798] sm:$0xf] }
  0xb5   : > { %v669_v52 = vld [vmem:[%s5328_s28 + $0x7a0] sm:$0xf]  ;;  %666 = vst [vmem:[%s5332_s29 + $0x3c8] sm:$0xf] %v665_v50  ;;  %668 = vst [vmem:[%s5332_s29 + $0x3cc] sm:$0xf] %v667_v51 }
  0xb6   : > { %670 = vst [vmem:[%s5332_s29 + $0x3d0] sm:$0xf] %v669_v52  ;;  %v671_v53 = vld [vmem:[%s5328_s28 + $0x7a8] sm:$0xf]  ;;  %v673_v54 = vld [vmem:[%s5328_s28 + $0x7b0] sm:$0xf] }
  0xb7   : > { %v675_v55 = vld [vmem:[%s5328_s28 + $0x7b8] sm:$0xf]  ;;  %672 = vst [vmem:[%s5332_s29 + $0x3d4] sm:$0xf] %v671_v53  ;;  %674 = vst [vmem:[%s5332_s29 + $0x3d8] sm:$0xf] %v673_v54 }
  0xb8   : > { %676 = vst [vmem:[%s5332_s29 + $0x3dc] sm:$0xf] %v675_v55  ;;  %v677_v56 = vld [vmem:[%s5328_s28 + $0x7c0] sm:$0xf]  ;;  %v679_v57 = vld [vmem:[%s5328_s28 + $0x7c8] sm:$0xf] }
  0xb9   : > { %v681_v58 = vld [vmem:[%s5328_s28 + $0x7d0] sm:$0xf]  ;;  %678 = vst [vmem:[%s5332_s29 + $0x3e0] sm:$0xf] %v677_v56  ;;  %680 = vst [vmem:[%s5332_s29 + $0x3e4] sm:$0xf] %v679_v57 }
  0xba   : > { %682 = vst [vmem:[%s5332_s29 + $0x3e8] sm:$0xf] %v681_v58  ;;  %v683_v59 = vld [vmem:[%s5328_s28 + $0x7d8] sm:$0xf]  ;;  %v685_v60 = vld [vmem:[%s5328_s28 + $0x7e0] sm:$0xf] }
  0xbb   : > { %v687_v61 = vld [vmem:[%s5328_s28 + $0x7e8] sm:$0xf]  ;;  %684 = vst [vmem:[%s5332_s29 + $0x3ec] sm:$0xf] %v683_v59  ;;  %686 = vst [vmem:[%s5332_s29 + $0x3f0] sm:$0xf] %v685_v60 }
  0xbc   : > { %688 = vst [vmem:[%s5332_s29 + $0x3f4] sm:$0xf] %v687_v61  ;;  %v689_v62 = vld [vmem:[%s5328_s28 + $0x7f0] sm:$0xf]  ;;  %v691_v63 = vld [vmem:[%s5328_s28 + $0x7f8] sm:$0xf] }
  0xbd   : > { %690 = vst [vmem:[%s5332_s29 + $0x3f8] sm:$0xf] %v689_v62  ;;  %692 = vst [vmem:[%s5332_s29 + $0x3fc] sm:$0xf] %v691_v63 }
  0xbe PF: > { %p4197_p8 = scmp.ge.s32.totalorder %s5258_s16, 1  ;;  %p1233_p9 = scmp.lt.s32.totalorder %s5258_s16, 3 }
  0xc0   : > { %p1234_p10 = pnand %p4197_p8, %p1233_p9 }
  0xc2   : > { %1237 = sbr.rel (%p1234_p10) target bundleno = 703 (0x2bf), region = 69 }
  0xc7   : > { %s1240_s30 = sand.u32 1, %s5242_s12   ;;  %v5850_v0 = vld [vmem:[%s6667_s0] sm:$0xff]  ;;  %v5860_v2 = vld [vmem:[%s6667_s0 + $0x8] sm:$0xff]  ;;  %p1278_p11 = scmp.lt.s32.totalorder %s5250_s14, 1 }
  0xc8   : > { %v5855_v1 = vld [vmem:[%s6667_s0 + $0x40] sm:$0xff]  ;;  %s4198_s10 = sshll.u32 %s1240_s30, 10  ;;  %v5869_v4 = vld [vmem:[%s6667_s0 + $0x48] sm:$0xff]  ;;  %s4199_s5 = sshll.u32 %s1240_s30, 6 }
  0xc9   : > { %v4202_v3 = vcombine.high %v5850_v0, %v5855_v1  ;;  %v4204_v5 = vcombine.high %v5860_v2, %v5869_v4  ;;  %s5873_s19 = scalar_lea.vmem [#allocation2], %s4198_s10  ;;  %v1299_v35 = vld [vmem:[%s6667_s0 + $0x80] sm:$0xff]  ;;  %v1300_v38 = vld [vmem:[%s6667_s0 + $0x88] sm:$0xff]  ;;  %v4201_v42 = vcombine.low %v5850_v0, %v5855_v1  ;;  %v4203_v43 = vcombine.low %v5860_v2, %v5869_v4  ;;  %s6587_s12 = scalar_lea.vmem [#allocation3], %s4199_s5 }
  0xca   : > { %v5092_v6 = vld [vmem:[%s5873_s19 + $0x78] sm:$0xff]   ;;  %v5096_v10 = vld [vmem:[%s5873_s19 + $0x70] sm:$0xff]   ;;  %v5100_v14 = vld [vmem:[%s5873_s19 + $0x68] sm:$0xff]   ;;  %s1279_s29 = scalar_select %p1278_p11, %s5250_s14, 1 }
  0xcb   : > { %3114 = vmatprep.mubr.bf16.mxu0 %v4202_v3  ;;  %v5093_v7 = vld [vmem:[%s5873_s19 + $0xf8] sm:$0xff]   ;;  %3211 = vmatprep.mubr.bf16.mxu1 %v4204_v5  ;;  %v5097_v11 = vld [vmem:[%s5873_s19 + $0xf0] sm:$0xff]   ;;  %v5101_v15 = vld [vmem:[%s5873_s19 + $0xe8] sm:$0xff]   ;;  %s4474_s30 = sshll.u32 (%p5315_p6), %s5250_s14, 2 }
  0xcc   : > { %4540 = vmatprep.subr.bf16.mxu0 %v5092_v6  ;;  %v5094_v8 = vld [vmem:[%s5873_s19 + $0x38] sm:$0xff]   ;;  %4604 = vmatprep.subr.bf16.mxu1 %v5093_v7  ;;  %v5098_v12 = vld [vmem:[%s5873_s19 + $0x30] sm:$0xff]   ;;  %v5102_v16 = vld [vmem:[%s5873_s19 + $0x28] sm:$0xff]   ;;  %s1280_s10 = scalar_lea.vmem %s6669_s2, %s1279_s29  ;;  %s3997_s8 = scalar_lea.vmem (%p5315_p6), %s6670_s3, %s4474_s30 }
  0xcd   : > { %v5095_v9 = vld [vmem:[%s5873_s19 + $0xb8] sm:$0xff]   ;;  %4541 = vmatpush3.bf16.msra.mxu0 %v5094_v8  ;;  %v5099_v13 = vld [vmem:[%s5873_s19 + $0xb0] sm:$0xff]   ;;  %v5103_v17 = vld [vmem:[%s5873_s19 + $0xa8] sm:$0xff]  }
  0xce   : > { %4605 = vmatpush3.bf16.msra.mxu1 %v5095_v9  ;;  %4542 = vmatprep.subr.bf16.mxu0 %v5096_v10  ;;  %v5104_v18 = vld [vmem:[%s5873_s19 + $0x60] sm:$0xff]   ;;  %v5108_v22 = vld [vmem:[%s5873_s19 + $0x58] sm:$0xff]   ;;  %v5112_v26 = vld [vmem:[%s5873_s19 + $0x50] sm:$0xff]  }
  0xcf   : > { %4606 = vmatprep.subr.bf16.mxu1 %v5097_v11  ;;  %v5105_v19 = vld [vmem:[%s5873_s19 + $0xe0] sm:$0xff]   ;;  %v5109_v23 = vld [vmem:[%s5873_s19 + $0xd8] sm:$0xff]   ;;  %v5113_v27 = vld [vmem:[%s5873_s19 + $0xd0] sm:$0xff]  }
  0xd0   : > { %v5106_v20 = vld [vmem:[%s5873_s19 + $0x20] sm:$0xff]   ;;  %v5110_v24 = vld [vmem:[%s5873_s19 + $0x18] sm:$0xff]   ;;  %v5114_v28 = vld [vmem:[%s5873_s19 + $0x10] sm:$0xff]  }
  0xd1   : > { %4543 = vmatpush3.bf16.msra.mxu0 %v5098_v12  ;;  %v5107_v21 = vld [vmem:[%s5873_s19 + $0xa0] sm:$0xff]   ;;  %v5111_v25 = vld [vmem:[%s5873_s19 + $0x98] sm:$0xff]   ;;  %v5115_v29 = vld [vmem:[%s5873_s19 + $0x90] sm:$0xff]  }
  0xd2   : > { %4607 = vmatpush3.bf16.msra.mxu1 %v5099_v13  ;;  %4544 = vmatprep.subr.bf16.mxu0 %v5100_v14  ;;  %v5116_v30 = vld [vmem:[%s5873_s19 + $0x48] sm:$0xff]   ;;  %v5120_v34 = vld [vmem:[%s5873_s19 + $0x40] sm:$0xff]   ;;  %v5124_v44 = vld [vmem:[%s5873_s19 + $0x178] sm:$0xff]  }
  0xd3   : > { %4608 = vmatprep.subr.bf16.mxu1 %v5101_v15  ;;  %v5117_v31 = vld [vmem:[%s5873_s19 + $0xc8] sm:$0xff]   ;;  %v1307_v36 = vld [vmem:[%s6667_s0 + $0xc0] sm:$0xff]  ;;  %v5125_v45 = vld [vmem:[%s5873_s19 + $0x138] sm:$0xff]  }
  0xd4   : > { %v5118_v32 = vld [vmem:[%s5873_s19 + $0x8] sm:$0xff]   ;;  %v5121_v37 = vld [vmem:[%s5873_s19 + $0xc0] sm:$0xff]   ;;  %v4218_v46 = vcombine.high %v1299_v35, %v1307_v36  ;;  %v5126_v47 = vld [vmem:[%s5873_s19 + $0x1f8] sm:$0xff]   ;;  %v4217_v54 = vcombine.low %v1299_v35, %v1307_v36 }
  0xd5   : > { %4545 = vmatpush3.bf16.msra.mxu0 %v5102_v16  ;;  %v5119_v33 = vld [vmem:[%s5873_s19 + $0x88] sm:$0xff]   ;;  %v5122_v40 = vld [vmem:[%s5873_s19] sm:$0xff]   ;;  %v5127_v49 = vld [vmem:[%s5873_s19 + $0x1b8] sm:$0xff]  }
  0xd6   : > { %4609 = vmatpush3.bf16.msra.mxu1 %v5103_v17  ;;  %4546 = vmatprep.subr.bf16.mxu0 %v5104_v18  ;;  %v1308_v39 = vld [vmem:[%s6667_s0 + $0xc8] sm:$0xff]  ;;  %v5123_v41 = vld [vmem:[%s5873_s19 + $0x80] sm:$0xff]   ;;  %v5128_v50 = vld [vmem:[%s5873_s19 + $0x170] sm:$0xff]  }
  0xd7   : > { %4610 = vmatprep.subr.bf16.mxu1 %v5105_v19  ;;  %v4220_v48 = vcombine.high %v1300_v38, %v1308_v39  ;;  %v1315_v51 = vld [vmem:[%s6667_s0 + $0x100] sm:$0xff]  ;;  %v5129_v52 = vld [vmem:[%s5873_s19 + $0x130] sm:$0xff]   ;;  %v4219_v56 = vcombine.low %v1300_v38, %v1308_v39  ;;  %v1316_v58 = vld [vmem:[%s6667_s0 + $0x108] sm:$0xff] }
  0xd8   : > { %v5130_v53 = vld [vmem:[%s5873_s19 + $0x1f0] sm:$0xff]   ;;  %v1323_v57 = vld [vmem:[%s6667_s0 + $0x140] sm:$0xff]  ;;  %v1324_v59 = vld [vmem:[%s6667_s0 + $0x148] sm:$0xff] }
  0xd9   : > { %4547 = vmatpush3.bf16.msra.mxu0 %v5106_v20  ;;  %v5131_v55 = vld [vmem:[%s5873_s19 + $0x1b0] sm:$0xff]   ;;  %v4234_v60 = vcombine.high %v1315_v51, %v1323_v57  ;;  %v4236_v61 = vcombine.high %v1316_v58, %v1324_v59  ;;  %v5132_v62 = vld [vmem:[%s5873_s19 + $0x168] sm:$0xff]   ;;  %v1331_v2 = vld [vmem:[%s6667_s0 + $0x180] sm:$0xff]  ;;  %v4233_v6 = vcombine.low %v1315_v51, %v1323_v57  ;;  %v4235_v8 = vcombine.low %v1316_v58, %v1324_v59 }
  0xda   : > { %4611 = vmatpush3.bf16.msra.mxu1 %v5107_v21  ;;  %4548 = vmatprep.subr.bf16.mxu0 %v5108_v22  ;;  %v5133_v63 = vld [vmem:[%s5873_s19 + $0x128] sm:$0xff]   ;;  %v1339_v3 = vld [vmem:[%s6667_s0 + $0x1c0] sm:$0xff]  ;;  %v5140_v18 = vld [vmem:[%s5873_s19 + $0x158] sm:$0xff]  }
  0xdb   : > { %4612 = vmatprep.subr.bf16.mxu1 %v5109_v23  ;;  %v5134_v0 = vld [vmem:[%s5873_s19 + $0x1e8] sm:$0xff]   ;;  %v5136_v7 = vld [vmem:[%s5873_s19 + $0x160] sm:$0xff]   ;;  %v4250_v9 = vcombine.high %v1331_v2, %v1339_v3  ;;  %v5141_v19 = vld [vmem:[%s5873_s19 + $0x118] sm:$0xff]   ;;  %v4249_v21 = vcombine.low %v1331_v2, %v1339_v3 }
  0xdc   : > { %v5135_v1 = vld [vmem:[%s5873_s19 + $0x1a8] sm:$0xff]   ;;  %v5137_v10 = vld [vmem:[%s5873_s19 + $0x120] sm:$0xff]   ;;  %v5142_v20 = vld [vmem:[%s5873_s19 + $0x1d8] sm:$0xff]  }
  0xdd   : > { %4549 = vmatpush3.bf16.msra.mxu0 %v5110_v24  ;;  %v1332_v4 = vld [vmem:[%s6667_s0 + $0x188] sm:$0xff]  ;;  %v5138_v12 = vld [vmem:[%s5873_s19 + $0x1e0] sm:$0xff]   ;;  %v5143_v22 = vld [vmem:[%s5873_s19 + $0x198] sm:$0xff]  }
  0xde   : > { %4613 = vmatpush3.bf16.msra.mxu1 %v5111_v25  ;;  %4550 = vmatprep.subr.bf16.mxu0 %v5112_v26  ;;  %v1340_v5 = vld [vmem:[%s6667_s0 + $0x1c8] sm:$0xff]  ;;  %v5139_v13 = vld [vmem:[%s5873_s19 + $0x1a0] sm:$0xff]   ;;  %v5144_v26 = vld [vmem:[%s5873_s19 + $0x150] sm:$0xff]  }
  0xdf   : > { %4614 = vmatprep.subr.bf16.mxu1 %v5113_v27  ;;  %v4252_v11 = vcombine.high %v1332_v4, %v1340_v5  ;;  %v1347_v14 = vld [vmem:[%s6667_s0 + $0x200] sm:$0xff]  ;;  %v1348_v16 = vld [vmem:[%s6667_s0 + $0x208] sm:$0xff]  ;;  %v4251_v23 = vcombine.low %v1332_v4, %v1340_v5  ;;  %v5145_v27 = vld [vmem:[%s5873_s19 + $0x110] sm:$0xff]  }
  0xe0   : > { %v1355_v15 = vld [vmem:[%s6667_s0 + $0x240] sm:$0xff]  ;;  %v1356_v17 = vld [vmem:[%s6667_s0 + $0x248] sm:$0xff]  ;;  %v1286_v2 = vld [vmem:[%s6667_s0 + $0x18] sm:$0xff] }
  0xe1   : > { %4551 = vmatpush3.bf16.msra.mxu0 %v5114_v28  ;;  %v4266_v24 = vcombine.high %v1347_v14, %v1355_v15  ;;  %v4268_v25 = vcombine.high %v1348_v16, %v1356_v17  ;;  %v5146_v28 = vld [vmem:[%s5873_s19 + $0x1d0] sm:$0xff]   ;;  %v5148_v35 = vld [vmem:[%s5873_s19 + $0x148] sm:$0xff]   ;;  %v4267_v36 = vcombine.low %v1348_v16, %v1356_v17  ;;  %v1403_v57 = vld [vmem:[%s6667_s0 + $0x3c0] sm:$0xff] }
  0xe2   : > { %4615 = vmatpush3.bf16.msra.mxu1 %v5115_v29  ;;  %4552 = vmatprep.subr.bf16.mxu0 %v5116_v30  ;;  %v5147_v29 = vld [vmem:[%s5873_s19 + $0x190] sm:$0xff]   ;;  %v1363_v30 = vld [vmem:[%s6667_s0 + $0x280] sm:$0xff]  ;;  %v5149_v38 = vld [vmem:[%s5873_s19 + $0x108] sm:$0xff]  }
  0xe3   : > { %4616 = vmatprep.subr.bf16.mxu1 %v5117_v31  ;;  %v1371_v31 = vld [vmem:[%s6667_s0 + $0x2c0] sm:$0xff]  ;;  %v1396_v58 = vld [vmem:[%s6667_s0 + $0x388] sm:$0xff]  ;;  %v1294_v3 = vld [vmem:[%s6667_s0 + $0x58] sm:$0xff] }
  0xe4   : > { %v1404_v59 = vld [vmem:[%s6667_s0 + $0x3c8] sm:$0xff] }
  0xe5   : > { %4553 = vmatpush3.bf16.msra.mxu0 %v5118_v32  ;;  %v1364_v32 = vld [vmem:[%s6667_s0 + $0x288] sm:$0xff]  ;;  %v4315_v5 = vcombine.low %v1396_v58, %v1404_v59 }
  0xe6   : > { %4617 = vmatpush3.bf16.msra.mxu1 %v5119_v33  ;;  %4554 = vmatprep.subr.bf16.mxu0 %v5120_v34  ;;  %v1372_v33 = vld [vmem:[%s6667_s0 + $0x2c8] sm:$0xff]  ;;  %v4265_v34 = vcombine.low %v1347_v14, %v1355_v15  ;;  %v5157_v14 = vld [vmem:[%s5873_s19 + $0x238] sm:$0xff]  }
  0xe7   : > { %4618 = vmatprep.subr.bf16.mxu1 %v5121_v37  ;;  %v4282_v37 = vcombine.high %v1363_v30, %v1371_v31  ;;  %v4284_v39 = vcombine.high %v1364_v32, %v1372_v33  ;;  %v4283_v51 = vcombine.low %v1364_v32, %v1372_v33  ;;  %v5159_v15 = vld [vmem:[%s5873_s19 + $0x2b8] sm:$0xff]   ;;  %v5167_v33 = vld [vmem:[%s5873_s19 + $0x2a8] sm:$0xff]  }
  0xe9   : > { %4555 = vmatpush3.bf16.msra.mxu0 %v5122_v40  ;;  %v5150_v40 = vld [vmem:[%s5873_s19 + $0x1c8] sm:$0xff]  }
  0xea   : > { %4619 = vmatpush3.bf16.msra.mxu1 %v5123_v41  ;;  %4668 = vmatprep.subr.bf16.mxu0 %v5124_v44  ;;  %v5151_v41 = vld [vmem:[%s5873_s19 + $0x188] sm:$0xff]  }
  0xeb   : > { %4732 = vmatprep.subr.bf16.mxu1 %v5126_v47  ;;  %v1380_v44 = vld [vmem:[%s6667_s0 + $0x308] sm:$0xff]  ;;  %v5153_v47 = vld [vmem:[%s5873_s19 + $0x100] sm:$0xff]  }
  0xec   : > { %3115 = vmatmul.mubr.bf16.vlgmr.msra.gmra.mxu0 %v4201_v42  ;;  %v1379_v42 = vld [vmem:[%s6667_s0 + $0x300] sm:$0xff] }
  0xed   : > { %3212 = vmatmul.mubr.bf16.vlgmr.msra.gmra.mxu1 %v4203_v43  ;;  %4669 = vmatpush3.bf16.msra.mxu0 %v5125_v45  ;;  %v1387_v43 = vld [vmem:[%s6667_s0 + $0x340] sm:$0xff]  ;;  %v1388_v45 = vld [vmem:[%s6667_s0 + $0x348] sm:$0xff] }
  0xee   : > { %3122 = vmatprep.mubr.bf16.mxu0 %v4218_v46  ;;  %4733 = vmatpush3.bf16.msra.mxu1 %v5127_v49  ;;  %v5152_v46 = vld [vmem:[%s5873_s19 + $0x140] sm:$0xff]   ;;  %v4281_v49 = vcombine.low %v1363_v30, %v1371_v31  ;;  %v5165_v31 = vld [vmem:[%s5873_s19 + $0x228] sm:$0xff]  }
  0xef   : > { %3219 = vmatprep.mubr.bf16.mxu1 %v4220_v48  ;;  %4670 = vmatprep.subr.bf16.mxu0 %v5128_v50  ;;  %v5154_v48 = vld [vmem:[%s5873_s19 + $0x1c0] sm:$0xff]  }
  0xf0   : > { %4734 = vmatprep.subr.bf16.mxu1 %v5130_v53  ;;  %v5155_v50 = vld [vmem:[%s5873_s19 + $0x180] sm:$0xff]   ;;  %v4300_v53 = vcombine.high %v1380_v44, %v1388_v45 }
  0xf1   : > { %4671 = vmatpush3.bf16.msra.mxu0 %v5129_v52  ;;  %v4298_v52 = vcombine.high %v1379_v42, %v1387_v43 }
  0xf2   : > { %4735 = vmatpush3.bf16.msra.mxu1 %v5131_v55  ;;  %4672 = vmatprep.subr.bf16.mxu0 %v5132_v62  ;;  %v5158_v55 = vld [vmem:[%s5873_s19 + $0x2f8] sm:$0xff]  }
  0xf3   : > { %4736 = vmatprep.subr.bf16.mxu1 %v5134_v0  ;;  %v1285_v0 = vld [vmem:[%s6667_s0 + $0x10] sm:$0xff] }
  0xf4   : > { %3123 = vmatmul.mubr.bf16.gmra.mxu0 %v4217_v54  ;;  %v5156_v54 = vld [vmem:[%s5873_s19 + $0x278] sm:$0xff]  }
  0xf5   : > { %3220 = vmatmul.mubr.bf16.gmra.mxu1 %v4219_v56  ;;  %3130 = vmatprep.mubr.bf16.mxu0 %v4234_v60  ;;  %v1395_v56 = vld [vmem:[%s6667_s0 + $0x380] sm:$0xff]  ;;  %v4297_v60 = vcombine.low %v1379_v42, %v1387_v43  ;;  %v5172_v42 = vld [vmem:[%s5873_s19 + $0x258] sm:$0xff]  }
  0xf6   : > { %3227 = vmatprep.mubr.bf16.mxu1 %v4236_v61  ;;  %4673 = vmatpush3.bf16.msra.mxu0 %v5133_v63  ;;  %v4299_v61 = vcombine.low %v1380_v44, %v1388_v45  ;;  %v4314_v62 = vcombine.high %v1395_v56, %v1403_v57  ;;  %v4316_v63 = vcombine.high %v1396_v58, %v1404_v59  ;;  %v5174_v44 = vld [vmem:[%s5873_s19 + $0x2d8] sm:$0xff]   ;;  %v5180_v58 = vld [vmem:[%s5873_s19 + $0x248] sm:$0xff]  }
  0xf7   : > { %4737 = vmatpush3.bf16.msra.mxu1 %v5135_v1  ;;  %4674 = vmatprep.subr.bf16.mxu0 %v5136_v7  ;;  %v1293_v1 = vld [vmem:[%s6667_s0 + $0x50] sm:$0xff]  ;;  %v4313_v4 = vcombine.low %v1395_v56, %v1403_v57  ;;  %v4208_v7 = vcombine.high %v1286_v2, %v1294_v3 }
  0xf8   : > { %4738 = vmatprep.subr.bf16.mxu1 %v5138_v12  ;;  %v1310_v12 = vld [vmem:[%s6667_s0 + $0xd8] sm:$0xff]  ;;  %v5177_v56 = vld [vmem:[%s5873_s19 + $0x210] sm:$0xff]  }
  0xf9   : > { %v5179_v57 = vld [vmem:[%s5873_s19 + $0x290] sm:$0xff]  }
  0xfa   : > { %4675 = vmatpush3.bf16.msra.mxu0 %v5137_v10  ;;  %v1302_v10 = vld [vmem:[%s6667_s0 + $0x98] sm:$0xff] }
  0xfb   : > { %4739 = vmatpush3.bf16.msra.mxu1 %v5139_v13  ;;  %4676 = vmatprep.subr.bf16.mxu0 %v5140_v18  ;;  %v4207_v13 = vcombine.low %v1286_v2, %v1294_v3  ;;  %v4224_v17 = vcombine.high %v1302_v10, %v1310_v12  ;;  %v5160_v18 = vld [vmem:[%s5873_s19 + $0x270] sm:$0xff]   ;;  %v5184_v2 = vld [vmem:[%s5873_s19 + $0x240] sm:$0xff]  }
  0xfc   : > { %3131 = vmatmul.mubr.bf16.gmra.mxu0 %v4233_v6  ;;  %4740 = vmatprep.subr.bf16.mxu1 %v5142_v20  ;;  %v4206_v6 = vcombine.high %v1285_v0, %v1293_v1  ;;  %v5162_v20 = vld [vmem:[%s5873_s19 + $0x2f0] sm:$0xff]  }
  0xfd   : > { %3228 = vmatmul.mubr.bf16.gmra.mxu1 %v4235_v8  ;;  %3138 = vmatprep.mubr.bf16.mxu0 %v4250_v9  ;;  %v1301_v8 = vld [vmem:[%s6667_s0 + $0x90] sm:$0xff] }
  0xfe   : > { %3235 = vmatprep.mubr.bf16.mxu1 %v4252_v11  ;;  %4677 = vmatpush3.bf16.msra.mxu0 %v5141_v19  ;;  %v1309_v9 = vld [vmem:[%s6667_s0 + $0xd0] sm:$0xff]  ;;  %v4205_v11 = vcombine.low %v1285_v0, %v1293_v1  ;;  %v5183_v1 = vld [vmem:[%s5873_s19 + $0x288] sm:$0xff]  }
  0xff   : > { %4741 = vmatpush3.bf16.msra.mxu1 %v5143_v22  ;;  %4678 = vmatprep.subr.bf16.mxu0 %v5144_v26  ;;  %v4222_v16 = vcombine.high %v1301_v8, %v1309_v9  ;;  %v5161_v19 = vld [vmem:[%s5873_s19 + $0x230] sm:$0xff]   ;;  %v5164_v26 = vld [vmem:[%s5873_s19 + $0x268] sm:$0xff]  }
 0x100   : > { %4742 = vmatprep.subr.bf16.mxu1 %v5146_v28  ;;  %v1317_v22 = vld [vmem:[%s6667_s0 + $0x110] sm:$0xff]  ;;  %v4221_v28 = vcombine.low %v1301_v8, %v1309_v9  ;;  %v5185_v8 = vld [vmem:[%s5873_s19 + $0x200] sm:$0xff]  }
 0x101   : > { %v1365_v3 = vld [vmem:[%s6667_s0 + $0x290] sm:$0xff]  ;;  %v5187_v9 = vld [vmem:[%s5873_s19 + $0x280] sm:$0xff]  }
 0x102   : > { %4679 = vmatpush3.bf16.msra.mxu0 %v5145_v27  ;;  %v5166_v27 = vld [vmem:[%s5873_s19 + $0x2e8] sm:$0xff]  }
 0x103   : > { %4743 = vmatpush3.bf16.msra.mxu1 %v5147_v29  ;;  %4680 = vmatprep.subr.bf16.mxu0 %v5148_v35  ;;  %v4223_v29 = vcombine.low %v1302_v10, %v1310_v12  ;;  %v1333_v35 = vld [vmem:[%s6667_s0 + $0x190] sm:$0xff]  ;;  %v5188_v10 = vld [vmem:[%s5873_s19 + $0x378] sm:$0xff]  }
 0x104   : > { %3139 = vmatmul.mubr.bf16.gmra.mxu0 %v4249_v21  ;;  %4744 = vmatprep.subr.bf16.mxu1 %v5150_v40  ;;  %v5163_v21 = vld [vmem:[%s5873_s19 + $0x2b0] sm:$0xff]   ;;  %v5169_v40 = vld [vmem:[%s5873_s19 + $0x220] sm:$0xff]   ;;  %v5190_v12 = vld [vmem:[%s5873_s19 + $0x3f8] sm:$0xff]  }
 0x105   : > { %3236 = vmatmul.mubr.bf16.gmra.mxu1 %v4251_v23  ;;  %3146 = vmatprep.mubr.bf16.mxu0 %v4266_v24  ;;  %v1325_v23 = vld [vmem:[%s6667_s0 + $0x150] sm:$0xff]  ;;  %v1318_v24 = vld [vmem:[%s6667_s0 + $0x118] sm:$0xff] }
 0x106   : > { %3243 = vmatprep.mubr.bf16.mxu1 %v4268_v25  ;;  %4681 = vmatpush3.bf16.msra.mxu0 %v5149_v38  ;;  %v1326_v25 = vld [vmem:[%s6667_s0 + $0x158] sm:$0xff]  ;;  %v4238_v30 = vcombine.high %v1317_v22, %v1325_v23  ;;  %v4237_v43 = vcombine.low %v1317_v22, %v1325_v23 }
 0x107   : > { %4745 = vmatpush3.bf16.msra.mxu1 %v5151_v41  ;;  %4682 = vmatprep.subr.bf16.mxu0 %v5152_v46  ;;  %v4240_v32 = vcombine.high %v1318_v24, %v1326_v25  ;;  %v1334_v38 = vld [vmem:[%s6667_s0 + $0x198] sm:$0xff]  ;;  %v5171_v41 = vld [vmem:[%s5873_s19 + $0x2a0] sm:$0xff]   ;;  %v4239_v45 = vcombine.low %v1318_v24, %v1326_v25  ;;  %v1397_v24 = vld [vmem:[%s6667_s0 + $0x390] sm:$0xff] }
 0x108   : > { %4746 = vmatprep.subr.bf16.mxu1 %v5154_v48  ;;  %v5173_v48 = vld [vmem:[%s5873_s19 + $0x218] sm:$0xff]   ;;  %v1405_v25 = vld [vmem:[%s6667_s0 + $0x3d0] sm:$0xff] }
 0x10a   : > { %4683 = vmatpush3.bf16.msra.mxu0 %v5153_v47 }
 0x10b   : > { %4747 = vmatpush3.bf16.msra.mxu1 %v5155_v50  ;;  %4796 = vmatprep.subr.bf16.mxu0 %v5156_v54  ;;  %v5176_v50 = vld [vmem:[%s5873_s19 + $0x250] sm:$0xff]   ;;  %v1350_v54 = vld [vmem:[%s6667_s0 + $0x218] sm:$0xff] }
 0x10c   : > { %3147 = vmatmul.mubr.bf16.gmra.mxu0 %v4265_v34  ;;  %4860 = vmatprep.subr.bf16.mxu1 %v5158_v55  ;;  %v5168_v34 = vld [vmem:[%s5873_s19 + $0x260] sm:$0xff]   ;;  %v1358_v55 = vld [vmem:[%s6667_s0 + $0x258] sm:$0xff] }
 0x10d   : > { %3244 = vmatmul.mubr.bf16.gmra.mxu1 %v4267_v36  ;;  %3154 = vmatprep.mubr.bf16.mxu0 %v4282_v37  ;;  %v1341_v36 = vld [vmem:[%s6667_s0 + $0x1d0] sm:$0xff]  ;;  %v5170_v37 = vld [vmem:[%s5873_s19 + $0x2e0] sm:$0xff]   ;;  %v4272_v0 = vcombine.high %v1350_v54, %v1358_v55 }
 0x10e   : > { %3251 = vmatprep.mubr.bf16.mxu1 %v4284_v39  ;;  %v1342_v39 = vld [vmem:[%s6667_s0 + $0x1d8] sm:$0xff]  ;;  %v4254_v46 = vcombine.high %v1333_v35, %v1341_v36  ;;  %v4253_v59 = vcombine.low %v1333_v35, %v1341_v36  ;;  %v1296_v35 = vld [vmem:[%s6667_s0 + $0x68] sm:$0xff]  ;;  %v4317_v36 = vcombine.low %v1397_v24, %v1405_v25 }
 0x10f   : > { %v4256_v47 = vcombine.high %v1334_v38, %v1342_v39 }
 0x114   : > { %3155 = vmatmul.mubr.bf16.gmra.mxu0 %v4281_v49  ;;  %v5175_v49 = vld [vmem:[%s5873_s19 + $0x298] sm:$0xff]  }
 0x115   : > { %3252 = vmatmul.mubr.bf16.gmra.mxu1 %v4283_v51  ;;  %3162 = vmatprep.mubr.bf16.mxu0 %v4298_v52  ;;  %v1349_v51 = vld [vmem:[%s6667_s0 + $0x210] sm:$0xff] }
 0x116   : > { %3259 = vmatprep.mubr.bf16.mxu1 %v4300_v53  ;;  %v1357_v52 = vld [vmem:[%s6667_s0 + $0x250] sm:$0xff] }
 0x117   : > { %v5178_v53 = vld [vmem:[%s5873_s19 + $0x2d0] sm:$0xff]  }
 0x11c   : > { %3163 = vmatmul.mubr.bf16.gmra.mxu0 %v4297_v60  ;;  %v5182_v60 = vld [vmem:[%s5873_s19 + $0x2c8] sm:$0xff]  }
 0x11d   : > { %3260 = vmatmul.mubr.bf16.gmra.mxu1 %v4299_v61  ;;  %3170 = vmatprep.mubr.bf16.mxu0 %v4314_v62  ;;  %v4255_v61 = vcombine.low %v1334_v38, %v1342_v39  ;;  %v4270_v62 = vcombine.high %v1349_v51, %v1357_v52 }
 0x11e   : > { %3267 = vmatprep.mubr.bf16.mxu1 %v4316_v63  ;;  %v5181_v63 = vld [vmem:[%s5873_s19 + $0x208] sm:$0xff]  }
 0x124   : > { %3171 = vmatmul.mubr.bf16.gmra.mxu0 %v4313_v4  ;;  %v1373_v4 = vld [vmem:[%s6667_s0 + $0x2d0] sm:$0xff] }
 0x125   : > { %3268 = vmatmul.mubr.bf16.gmra.mxu1 %v4315_v5  ;;  %3308 = vmatprep.mubr.bf16.mxu0 %v4206_v6  ;;  %v5186_v5 = vld [vmem:[%s5873_s19 + $0x2c0] sm:$0xff]   ;;  %v1366_v6 = vld [vmem:[%s6667_s0 + $0x298] sm:$0xff] }
 0x126   : > { %3405 = vmatprep.mubr.bf16.mxu1 %v4208_v7  ;;  %v1374_v7 = vld [vmem:[%s6667_s0 + $0x2d8] sm:$0xff] }
 0x12c   : > { %3309 = vmatmul.mubr.bf16.vlgmr.msra.gmra.mxu0 %v4205_v11  ;;  %v4269_v11 = vcombine.low %v1349_v51, %v1357_v52  ;;  %v5194_v51 = vld [vmem:[%s5873_s19 + $0x3f0] sm:$0xff]  }
 0x12d   : > { %3406 = vmatmul.mubr.bf16.vlgmr.msra.gmra.mxu1 %v4207_v13  ;;  %4797 = vmatpush3.bf16.msra.mxu0 %v5157_v14  ;;  %v4271_v13 = vcombine.low %v1350_v54, %v1358_v55  ;;  %v4286_v14 = vcombine.high %v1365_v3, %v1373_v4  ;;  %v5193_v52 = vld [vmem:[%s5873_s19 + $0x330] sm:$0xff]   ;;  %v1319_v54 = vld [vmem:[%s6667_s0 + $0x120] sm:$0xff] }
 0x12e   : > { %4861 = vmatpush3.bf16.msra.mxu1 %v5159_v15  ;;  %3316 = vmatprep.mubr.bf16.mxu0 %v4222_v16  ;;  %v4288_v15 = vcombine.high %v1366_v6, %v1374_v7  ;;  %v1381_v16 = vld [vmem:[%s6667_s0 + $0x310] sm:$0xff]  ;;  %v1327_v55 = vld [vmem:[%s6667_s0 + $0x160] sm:$0xff] }
 0x12f   : > { %3413 = vmatprep.mubr.bf16.mxu1 %v4224_v17  ;;  %4798 = vmatprep.subr.bf16.mxu0 %v5160_v18  ;;  %v1389_v17 = vld [vmem:[%s6667_s0 + $0x350] sm:$0xff]  ;;  %v1382_v18 = vld [vmem:[%s6667_s0 + $0x318] sm:$0xff] }
 0x130   : > { %4862 = vmatprep.subr.bf16.mxu1 %v5162_v20  ;;  %v4285_v20 = vcombine.low %v1365_v3, %v1373_v4  ;;  %v4302_v22 = vcombine.high %v1381_v16, %v1389_v17  ;;  %v5202_v3 = vld [vmem:[%s5873_s19 + $0x3e0] sm:$0xff]  }
 0x131   : > { %4799 = vmatpush3.bf16.msra.mxu0 %v5161_v19  ;;  %v1390_v19 = vld [vmem:[%s6667_s0 + $0x358] sm:$0xff]  ;;  %v1335_v4 = vld [vmem:[%s6667_s0 + $0x1a0] sm:$0xff] }
 0x132   : > { %4863 = vmatpush3.bf16.msra.mxu1 %v5163_v21  ;;  %4800 = vmatprep.subr.bf16.mxu0 %v5164_v26  ;;  %v4287_v21 = vcombine.low %v1366_v6, %v1374_v7  ;;  %v4304_v23 = vcombine.high %v1382_v18, %v1390_v19  ;;  %v1398_v26 = vld [vmem:[%s6667_s0 + $0x398] sm:$0xff]  ;;  %v1336_v6 = vld [vmem:[%s6667_s0 + $0x1a8] sm:$0xff]  ;;  %v5201_v7 = vld [vmem:[%s5873_s19 + $0x320] sm:$0xff]  }
 0x133   : > { %4864 = vmatprep.subr.bf16.mxu1 %v5166_v27  ;;  %v1406_v27 = vld [vmem:[%s6667_s0 + $0x3d8] sm:$0xff] }
 0x134   : > { %3317 = vmatmul.mubr.bf16.gmra.mxu0 %v4221_v28  ;;  %v4301_v28 = vcombine.low %v1381_v16, %v1389_v17  ;;  %v5205_v16 = vld [vmem:[%s5873_s19 + $0x318] sm:$0xff]  }
 0x135   : > { %3414 = vmatmul.mubr.bf16.gmra.mxu1 %v4223_v29  ;;  %3324 = vmatprep.mubr.bf16.mxu0 %v4238_v30  ;;  %v4303_v29 = vcombine.low %v1382_v18, %v1390_v19  ;;  %v4318_v30 = vcombine.high %v1397_v24, %v1405_v25  ;;  %v5207_v17 = vld [vmem:[%s5873_s19 + $0x398] sm:$0xff]   ;;  %v5208_v18 = vld [vmem:[%s5873_s19 + $0x350] sm:$0xff]   ;;  %v1360_v24 = vld [vmem:[%s6667_s0 + $0x268] sm:$0xff] }
 0x136   : > { %3421 = vmatprep.mubr.bf16.mxu1 %v4240_v32  ;;  %4801 = vmatpush3.bf16.msra.mxu0 %v5165_v31  ;;  %v4320_v31 = vcombine.high %v1398_v26, %v1406_v27  ;;  %v1287_v32 = vld [vmem:[%s6667_s0 + $0x20] sm:$0xff]  ;;  %v5210_v19 = vld [vmem:[%s5873_s19 + $0x3d0] sm:$0xff]  }
 0x137   : > { %4865 = vmatpush3.bf16.msra.mxu1 %v5167_v33  ;;  %4802 = vmatprep.subr.bf16.mxu0 %v5168_v34  ;;  %v1295_v33 = vld [vmem:[%s6667_s0 + $0x60] sm:$0xff]  ;;  %v1288_v34 = vld [vmem:[%s6667_s0 + $0x28] sm:$0xff]  ;;  %v5211_v25 = vld [vmem:[%s5873_s19 + $0x390] sm:$0xff]  }
 0x138   : > { %4866 = vmatprep.subr.bf16.mxu1 %v5170_v37  ;;  %v4319_v37 = vcombine.low %v1398_v26, %v1406_v27  ;;  %v4210_v38 = vcombine.high %v1287_v32, %v1295_v33  ;;  %v4212_v39 = vcombine.high %v1288_v34, %v1296_v35  ;;  %v5212_v26 = vld [vmem:[%s5873_s19 + $0x348] sm:$0xff]  }
 0x13a   : > { %4803 = vmatpush3.bf16.msra.mxu0 %v5169_v40  ;;  %v1303_v40 = vld [vmem:[%s6667_s0 + $0xa0] sm:$0xff] }
 0x13b   : > { %4867 = vmatpush3.bf16.msra.mxu1 %v5171_v41  ;;  %4804 = vmatprep.subr.bf16.mxu0 %v5172_v42  ;;  %v1311_v41 = vld [vmem:[%s6667_s0 + $0xe0] sm:$0xff]  ;;  %v4209_v42 = vcombine.low %v1287_v32, %v1295_v33  ;;  %v5213_v32 = vld [vmem:[%s5873_s19 + $0x308] sm:$0xff]  }
 0x13c   : > { %3325 = vmatmul.mubr.bf16.gmra.mxu0 %v4237_v43  ;;  %4868 = vmatprep.subr.bf16.mxu1 %v5174_v44  ;;  %v1304_v43 = vld [vmem:[%s6667_s0 + $0xa8] sm:$0xff] }
 0x13d   : > { %3422 = vmatmul.mubr.bf16.gmra.mxu1 %v4239_v45  ;;  %3332 = vmatprep.mubr.bf16.mxu0 %v4254_v46  ;;  %v1312_v44 = vld [vmem:[%s6667_s0 + $0xe8] sm:$0xff]  ;;  %v4211_v45 = vcombine.low %v1288_v34, %v1296_v35  ;;  %v5189_v46 = vld [vmem:[%s5873_s19 + $0x338] sm:$0xff]   ;;  %v5216_v34 = vld [vmem:[%s5873_s19 + $0x340] sm:$0xff]  }
 0x13e   : > { %3429 = vmatprep.mubr.bf16.mxu1 %v4256_v47  ;;  %4805 = vmatpush3.bf16.msra.mxu0 %v5173_v48  ;;  %v5191_v47 = vld [vmem:[%s5873_s19 + $0x3b8] sm:$0xff]   ;;  %v4226_v48 = vcombine.high %v1303_v40, %v1311_v41  ;;  %v5215_v33 = vld [vmem:[%s5873_s19 + $0x388] sm:$0xff]   ;;  %v5218_v35 = vld [vmem:[%s5873_s19 + $0x3c0] sm:$0xff]  }
 0x13f   : > { %4869 = vmatpush3.bf16.msra.mxu1 %v5175_v49  ;;  %4806 = vmatprep.subr.bf16.mxu0 %v5176_v50  ;;  %v4228_v49 = vcombine.high %v1304_v43, %v1312_v44  ;;  %v5192_v50 = vld [vmem:[%s5873_s19 + $0x370] sm:$0xff]  }
 0x140   : > { %4870 = vmatprep.subr.bf16.mxu1 %v5178_v53  ;;  %v5195_v53 = vld [vmem:[%s5873_s19 + $0x3b0] sm:$0xff]  }
 0x142   : > { %4807 = vmatpush3.bf16.msra.mxu0 %v5177_v56  ;;  %v5196_v56 = vld [vmem:[%s5873_s19 + $0x368] sm:$0xff]  }
 0x143   : > { %4871 = vmatpush3.bf16.msra.mxu1 %v5179_v57  ;;  %4808 = vmatprep.subr.bf16.mxu0 %v5180_v58  ;;  %v1320_v57 = vld [vmem:[%s6667_s0 + $0x128] sm:$0xff] }
 0x144   : > { %3333 = vmatmul.mubr.bf16.gmra.mxu0 %v4253_v59  ;;  %4872 = vmatprep.subr.bf16.mxu1 %v5182_v60  ;;  %v1328_v58 = vld [vmem:[%s6667_s0 + $0x168] sm:$0xff]  ;;  %v4225_v60 = vcombine.low %v1303_v40, %v1311_v41  ;;  %v5219_v41 = vld [vmem:[%s5873_s19 + $0x380] sm:$0xff]  }
 0x145   : > { %3430 = vmatmul.mubr.bf16.gmra.mxu1 %v4255_v61  ;;  %3340 = vmatprep.mubr.bf16.mxu0 %v4270_v62  ;;  %v5198_v59 = vld [vmem:[%s5873_s19 + $0x3e8] sm:$0xff]   ;;  %v4227_v61 = vcombine.low %v1304_v43, %v1312_v44  ;;  %v4242_v62 = vcombine.high %v1319_v54, %v1327_v55 }
 0x146   : > { %3437 = vmatprep.mubr.bf16.mxu1 %v4272_v0  ;;  %4809 = vmatpush3.bf16.msra.mxu0 %v5181_v63  ;;  %v4244_v63 = vcombine.high %v1320_v57, %v1328_v58  ;;  %v5197_v0 = vld [vmem:[%s5873_s19 + $0x328] sm:$0xff]  }
 0x147   : > { %4873 = vmatpush3.bf16.msra.mxu1 %v5183_v1  ;;  %4810 = vmatprep.subr.bf16.mxu0 %v5184_v2  ;;  %v5199_v1 = vld [vmem:[%s5873_s19 + $0x3a8] sm:$0xff]   ;;  %v5200_v2 = vld [vmem:[%s5873_s19 + $0x360] sm:$0xff]  }
 0x148   : > { %4874 = vmatprep.subr.bf16.mxu1 %v5186_v5  ;;  %v1343_v5 = vld [vmem:[%s6667_s0 + $0x1e0] sm:$0xff]  ;;  %v1376_v40 = vld [vmem:[%s6667_s0 + $0x2e8] sm:$0xff] }
 0x149   : > { %v4257_v27 = vcombine.low %v1335_v4, %v1343_v5 }
 0x14a   : > { %4811 = vmatpush3.bf16.msra.mxu0 %v5185_v8  ;;  %v1344_v8 = vld [vmem:[%s6667_s0 + $0x1e8] sm:$0xff] }
 0x14b   : > { %4875 = vmatpush3.bf16.msra.mxu1 %v5187_v9  ;;  %4924 = vmatprep.subr.bf16.mxu0 %v5188_v10  ;;  %v5203_v9 = vld [vmem:[%s5873_s19 + $0x3a0] sm:$0xff]   ;;  %v5204_v10 = vld [vmem:[%s5873_s19 + $0x358] sm:$0xff]  }
 0x14c   : > { %3341 = vmatmul.mubr.bf16.gmra.mxu0 %v4269_v11  ;;  %4988 = vmatprep.subr.bf16.mxu1 %v5190_v12  ;;  %v4241_v11 = vcombine.low %v1319_v54, %v1327_v55  ;;  %v5206_v12 = vld [vmem:[%s5873_s19 + $0x3d8] sm:$0xff]   ;;  %v1399_v54 = vld [vmem:[%s6667_s0 + $0x3a0] sm:$0xff] }
 0x14d   : > { %3438 = vmatmul.mubr.bf16.gmra.mxu1 %v4271_v13  ;;  %3348 = vmatprep.mubr.bf16.mxu0 %v4286_v14  ;;  %v4243_v13 = vcombine.low %v1320_v57, %v1328_v58  ;;  %v4258_v14 = vcombine.high %v1335_v4, %v1343_v5  ;;  %v1407_v55 = vld [vmem:[%s6667_s0 + $0x3e0] sm:$0xff]  ;;  %v1408_v57 = vld [vmem:[%s6667_s0 + $0x3e8] sm:$0xff] }
 0x14e   : > { %3445 = vmatprep.mubr.bf16.mxu1 %v4288_v15  ;;  %v4260_v15 = vcombine.high %v1336_v6, %v1344_v8 }
 0x154   : > { %3349 = vmatmul.mubr.bf16.gmra.mxu0 %v4285_v20  ;;  %v1351_v20 = vld [vmem:[%s6667_s0 + $0x220] sm:$0xff] }
 0x155   : > { %3446 = vmatmul.mubr.bf16.gmra.mxu1 %v4287_v21  ;;  %3356 = vmatprep.mubr.bf16.mxu0 %v4302_v22  ;;  %v1359_v21 = vld [vmem:[%s6667_s0 + $0x260] sm:$0xff]  ;;  %v1352_v22 = vld [vmem:[%s6667_s0 + $0x228] sm:$0xff] }
 0x156   : > { %3453 = vmatprep.mubr.bf16.mxu1 %v4304_v23  ;;  %v5209_v23 = vld [vmem:[%s5873_s19 + $0x310] sm:$0xff]   ;;  %v4275_v43 = vcombine.low %v1352_v22, %v1360_v24 }
 0x15c   : > { %3357 = vmatmul.mubr.bf16.gmra.mxu0 %v4301_v28  ;;  %v5214_v28 = vld [vmem:[%s5873_s19 + $0x3c8] sm:$0xff]  }
 0x15d   : > { %3454 = vmatmul.mubr.bf16.gmra.mxu1 %v4303_v29  ;;  %3364 = vmatprep.mubr.bf16.mxu0 %v4318_v30  ;;  %v4259_v29 = vcombine.low %v1336_v6, %v1344_v8  ;;  %v4274_v30 = vcombine.high %v1351_v20, %v1359_v21  ;;  %v1305_v6 = vld [vmem:[%s6667_s0 + $0xb0] sm:$0xff]  ;;  %v1306_v8 = vld [vmem:[%s6667_s0 + $0xb8] sm:$0xff] }
 0x15e   : > { %3461 = vmatprep.mubr.bf16.mxu1 %v4320_v31  ;;  %v4276_v31 = vcombine.high %v1352_v22, %v1360_v24  ;;  %v1322_v22 = vld [vmem:[%s6667_s0 + $0x138] sm:$0xff] }
 0x164   : > { %3365 = vmatmul.mubr.bf16.gmra.mxu0 %v4317_v36  ;;  %v1367_v36 = vld [vmem:[%s6667_s0 + $0x2a0] sm:$0xff] }
 0x165   : > { %3462 = vmatmul.mubr.bf16.gmra.mxu1 %v4319_v37  ;;  %3502 = vmatprep.mubr.bf16.mxu0 %v4210_v38  ;;  %v1375_v37 = vld [vmem:[%s6667_s0 + $0x2e0] sm:$0xff] }
 0x166   : > { %3599 = vmatprep.mubr.bf16.mxu1 %v4212_v39  ;;  %v5217_v38 = vld [vmem:[%s5873_s19 + $0x300] sm:$0xff]   ;;  %v1368_v39 = vld [vmem:[%s6667_s0 + $0x2a8] sm:$0xff]  ;;  %v4290_v44 = vcombine.high %v1367_v36, %v1375_v37 }
 0x16c   : > { %3503 = vmatmul.mubr.bf16.vlgmr.msra.gmra.mxu0 %v4209_v42  ;;  %v4273_v42 = vcombine.low %v1351_v20, %v1359_v21 }
 0x16d   : > { %3600 = vmatmul.mubr.bf16.vlgmr.msra.gmra.mxu1 %v4211_v45  ;;  %4925 = vmatpush3.bf16.msra.mxu0 %v5189_v46  ;;  %v4292_v45 = vcombine.high %v1368_v39, %v1376_v40  ;;  %v1383_v46 = vld [vmem:[%s6667_s0 + $0x320] sm:$0xff] }
 0x16e   : > { %4989 = vmatpush3.bf16.msra.mxu1 %v5191_v47  ;;  %3510 = vmatprep.mubr.bf16.mxu0 %v4226_v48  ;;  %v1391_v47 = vld [vmem:[%s6667_s0 + $0x360] sm:$0xff]  ;;  %v1384_v48 = vld [vmem:[%s6667_s0 + $0x328] sm:$0xff] }
 0x16f   : > { %3607 = vmatprep.mubr.bf16.mxu1 %v4228_v49  ;;  %4926 = vmatprep.subr.bf16.mxu0 %v5192_v50  ;;  %v1392_v49 = vld [vmem:[%s6667_s0 + $0x368] sm:$0xff]  ;;  %v4289_v50 = vcombine.low %v1367_v36, %v1375_v37  ;;  %v4305_v58 = vcombine.low %v1383_v46, %v1391_v47 }
 0x170   : > { %4990 = vmatprep.subr.bf16.mxu1 %v5194_v51  ;;  %v4291_v51 = vcombine.low %v1368_v39, %v1376_v40 }
 0x171   : > { %4927 = vmatpush3.bf16.msra.mxu0 %v5193_v52  ;;  %v4306_v52 = vcombine.high %v1383_v46, %v1391_v47  ;;  %v1338_v46 = vld [vmem:[%s6667_s0 + $0x1b8] sm:$0xff] }
 0x172   : > { %4991 = vmatpush3.bf16.msra.mxu1 %v5195_v53  ;;  %4928 = vmatprep.subr.bf16.mxu0 %v5196_v56  ;;  %v4308_v53 = vcombine.high %v1384_v48, %v1392_v49  ;;  %v1400_v56 = vld [vmem:[%s6667_s0 + $0x3a8] sm:$0xff]  ;;  %v1346_v47 = vld [vmem:[%s6667_s0 + $0x1f8] sm:$0xff] }
 0x173   : > { %4992 = vmatprep.subr.bf16.mxu1 %v5198_v59  ;;  %v4307_v59 = vcombine.low %v1384_v48, %v1392_v49 }
 0x174   : > { %3511 = vmatmul.mubr.bf16.gmra.mxu0 %v4225_v60  ;;  %v4322_v60 = vcombine.high %v1399_v54, %v1407_v55 }
 0x175   : > { %3608 = vmatmul.mubr.bf16.gmra.mxu1 %v4227_v61  ;;  %3518 = vmatprep.mubr.bf16.mxu0 %v4242_v62  ;;  %v4324_v61 = vcombine.high %v1400_v56, %v1408_v57  ;;  %v1289_v62 = vld [vmem:[%s6667_s0 + $0x30] sm:$0xff] }
 0x176   : > { %3615 = vmatprep.mubr.bf16.mxu1 %v4244_v63  ;;  %4929 = vmatpush3.bf16.msra.mxu0 %v5197_v0  ;;  %v1297_v63 = vld [vmem:[%s6667_s0 + $0x70] sm:$0xff]  ;;  %v1290_v0 = vld [vmem:[%s6667_s0 + $0x38] sm:$0xff] }
 0x177   : > { %4993 = vmatpush3.bf16.msra.mxu1 %v5199_v1  ;;  %4930 = vmatprep.subr.bf16.mxu0 %v5200_v2  ;;  %v1298_v1 = vld [vmem:[%s6667_s0 + $0x78] sm:$0xff]  ;;  %v4321_v2 = vcombine.low %v1399_v54, %v1407_v55  ;;  %v4214_v4 = vcombine.high %v1289_v62, %v1297_v63 }
 0x178   : > { %4994 = vmatprep.subr.bf16.mxu1 %v5202_v3  ;;  %v4323_v3 = vcombine.low %v1400_v56, %v1408_v57  ;;  %v4216_v5 = vcombine.high %v1290_v0, %v1298_v1  ;;  %v4264_v56 = vcombine.high %v1338_v46, %v1346_v47 }
 0x17a   : > { %4931 = vmatpush3.bf16.msra.mxu0 %v5201_v7  ;;  %v1313_v7 = vld [vmem:[%s6667_s0 + $0xf0] sm:$0xff] }
 0x17b   : > { %4995 = vmatpush3.bf16.msra.mxu1 %v5203_v9  ;;  %4932 = vmatprep.subr.bf16.mxu0 %v5204_v10  ;;  %v1314_v9 = vld [vmem:[%s6667_s0 + $0xf8] sm:$0xff]  ;;  %v4213_v10 = vcombine.low %v1289_v62, %v1297_v63 }
 0x17c   : > { %3519 = vmatmul.mubr.bf16.gmra.mxu0 %v4241_v11  ;;  %4996 = vmatprep.subr.bf16.mxu1 %v5206_v12  ;;  %v4215_v11 = vcombine.low %v1290_v0, %v1298_v1  ;;  %v4230_v12 = vcombine.high %v1305_v6, %v1313_v7  ;;  %v1353_v1 = vld [vmem:[%s6667_s0 + $0x230] sm:$0xff] }
 0x17d   : > { %3616 = vmatmul.mubr.bf16.gmra.mxu1 %v4243_v13  ;;  %3526 = vmatprep.mubr.bf16.mxu0 %v4258_v14  ;;  %v4232_v13 = vcombine.high %v1306_v8, %v1314_v9 }
 0x17e   : > { %3623 = vmatprep.mubr.bf16.mxu1 %v4260_v15  ;;  %4933 = vmatpush3.bf16.msra.mxu0 %v5205_v16  ;;  %v6312_v16 = vld [vmem:[%s1280_s10] ss:$0 sm:$0xff] }
 0x17f   : > { %4997 = vmatpush3.bf16.msra.mxu1 %v5207_v17  ;;  %4934 = vmatprep.subr.bf16.mxu0 %v5208_v18  ;;  %v1321_v18 = vld [vmem:[%s6667_s0 + $0x130] sm:$0xff] }
 0x180   : > { %4998 = vmatprep.subr.bf16.mxu1 %v5210_v19  ;;  %v1329_v19 = vld [vmem:[%s6667_s0 + $0x170] sm:$0xff] }
 0x182   : > { %4935 = vmatpush3.bf16.msra.mxu0 %v5209_v23  ;;  %v1330_v23 = vld [vmem:[%s6667_s0 + $0x178] sm:$0xff] }
 0x183   : > { %4999 = vmatpush3.bf16.msra.mxu1 %v5211_v25  ;;  %4936 = vmatprep.subr.bf16.mxu0 %v5212_v26  ;;  %v4229_v26 = vcombine.low %v1305_v6, %v1313_v7  ;;  %v1354_v6 = vld [vmem:[%s6667_s0 + $0x238] sm:$0xff] }
 0x184   : > { %3527 = vmatmul.mubr.bf16.gmra.mxu0 %v4257_v27  ;;  %5000 = vmatprep.subr.bf16.mxu1 %v5214_v28  ;;  %v1362_v7 = vld [vmem:[%s6667_s0 + $0x278] sm:$0xff] }
 0x185   : > { %3624 = vmatmul.mubr.bf16.gmra.mxu1 %v4259_v29  ;;  %3534 = vmatprep.mubr.bf16.mxu0 %v4274_v30  ;;  %v4231_v29 = vcombine.low %v1306_v8, %v1314_v9  ;;  %v4246_v30 = vcombine.high %v1321_v18, %v1329_v19 }
 0x186   : > { %3631 = vmatprep.mubr.bf16.mxu1 %v4276_v31  ;;  %4937 = vmatpush3.bf16.msra.mxu0 %v5213_v32  ;;  %v4248_v32 = vcombine.high %v1322_v22, %v1330_v23 }
 0x187   : > { %5001 = vmatpush3.bf16.msra.mxu1 %v5215_v33  ;;  %4938 = vmatprep.subr.bf16.mxu0 %v5216_v34 }
 0x188   : > { %5002 = vmatprep.subr.bf16.mxu1 %v5218_v35 }
 0x18a   : > { %4939 = vmatpush3.bf16.msra.mxu0 %v5217_v38 }
 0x18b   : > { %5003 = vmatpush3.bf16.msra.mxu1 %v5219_v41  ;;  %v1337_v41 = vld [vmem:[%s6667_s0 + $0x1b0] sm:$0xff] }
 0x18c   : > { %3535 = vmatmul.mubr.bf16.gmra.mxu0 %v4273_v42  ;;  %v1345_v42 = vld [vmem:[%s6667_s0 + $0x1f0] sm:$0xff] }
 0x18d   : > { %3632 = vmatmul.mubr.bf16.gmra.mxu1 %v4275_v43  ;;  %3542 = vmatprep.mubr.bf16.mxu0 %v4290_v44  ;;  %v4262_v54 = vcombine.high %v1337_v41, %v1345_v42 }
 0x18e   : > { %3639 = vmatprep.mubr.bf16.mxu1 %v4292_v45 }
 0x194   : > { %3543 = vmatmul.mubr.bf16.gmra.mxu0 %v4289_v50  ;;  %v4245_v50 = vcombine.low %v1321_v18, %v1329_v19 }
 0x195   : > { %3640 = vmatmul.mubr.bf16.gmra.mxu1 %v4291_v51  ;;  %3550 = vmatprep.mubr.bf16.mxu0 %v4306_v52 }
 0x196   : > { %3647 = vmatprep.mubr.bf16.mxu1 %v4308_v53  ;;  %v4247_v53 = vcombine.low %v1322_v22, %v1330_v23 }
 0x19c   : > { %3551 = vmatmul.mubr.bf16.gmra.mxu0 %v4305_v58 }
 0x19d   : > { %3648 = vmatmul.mubr.bf16.gmra.mxu1 %v4307_v59  ;;  %3558 = vmatprep.mubr.bf16.mxu0 %v4322_v60 }
 0x19e   : > { %3655 = vmatprep.mubr.bf16.mxu1 %v4324_v61 }
 0x1a4   : > { %3559 = vmatmul.mubr.bf16.gmra.mxu0 %v4321_v2  ;;  %v1361_v2 = vld [vmem:[%s6667_s0 + $0x270] sm:$0xff] }
 0x1a5   : > { %3656 = vmatmul.mubr.bf16.gmra.mxu1 %v4323_v3  ;;  %3696 = vmatprep.mubr.bf16.mxu0 %v4214_v4 }
 0x1a6   : > { %3793 = vmatprep.mubr.bf16.mxu1 %v4216_v5 }
 0x1ac   : > { %v4556_v14 = vpop.f32.mrf.mxu0  ;;  %3697 = vmatmul.mubr.bf16.vlgmr.msra.gmra.mxu0 %v4213_v10  ;;  %v4261_v10 = vcombine.low %v1337_v41, %v1345_v42 }
 0x1ad   : > { %v4620_v15 = vpop.f32.mrf.mxu1  ;;  %3794 = vmatmul.mubr.bf16.vlgmr.msra.gmra.mxu1 %v4215_v11  ;;  %3704 = vmatprep.mubr.bf16.mxu0 %v4230_v12 }
 0x1ae   : > { %v4557_v17 = vpop.f32.mrf.mxu0  ;;  %3801 = vmatprep.mubr.bf16.mxu1 %v4232_v13  ;;  %v4263_v13 = vcombine.low %v1338_v46, %v1346_v47 }
 0x1af   : > { %v4558_v20 = vadd.f32 %v4557_v17, %v4556_v14  ;;  %v4621_v21 = vpop.f32.mrf.mxu1  ;;  %v4278_v14 = vcombine.high %v1353_v1, %v1361_v2  ;;  %v4280_v17 = vcombine.high %v1354_v6, %v1362_v7 }
 0x1b0   : > { %v4622_v24 = vadd.f32 %v4621_v21, %v4620_v15  ;;  %v4559_v25 = vpop.f32.mrf.mxu0 }
 0x1b1   : > { %v3117_v27 = vadd.f32 %v4558_v20, %v6312_v16  ;;  %v4623_v28 = vpop.f32.mrf.mxu1 }
 0x1b2   : > { %v4560_v31 = vpop.f32.mrf.mxu0 }
 0x1b3   : > { %v6327_v33 = vadd.f32 %v4622_v24, %v3117_v27  ;;  %v4561_v34 = vadd.f32 %v4560_v31, %v4559_v25  ;;  %v4624_v35 = vpop.f32.mrf.mxu1  ;;  %v1377_v27 = vld [vmem:[%s6667_s0 + $0x2f0] sm:$0xff]  ;;  %v1370_v31 = vld [vmem:[%s6667_s0 + $0x2b8] sm:$0xff] }
 0x1b4   : > { %v4625_v36 = vadd.f32 %v4624_v35, %v4623_v28  ;;  %v4562_v37 = vpop.f32.mrf.mxu0  ;;  %3705 = vmatmul.mubr.bf16.gmra.mxu0 %v4229_v26  ;;  %v1369_v26 = vld [vmem:[%s6667_s0 + $0x2b0] sm:$0xff] }
 0x1b5   : > { %v3120_v38 = vadd.f32 %v4561_v34, %v6312_v16  ;;  %v4626_v39 = vpop.f32.mrf.mxu1  ;;  %3802 = vmatmul.mubr.bf16.gmra.mxu1 %v4231_v29  ;;  %3712 = vmatprep.mubr.bf16.mxu0 %v4246_v30 }
 0x1b6   : > { %v4563_v40 = vpop.f32.mrf.mxu0  ;;  %3809 = vmatprep.mubr.bf16.mxu1 %v4248_v32  ;;  %v1378_v32 = vld [vmem:[%s6667_s0 + $0x2f8] sm:$0xff] }
 0x1b7   : > { %v6336_v43 = vadd.f32 %v4625_v36, %v3120_v38  ;;  %v4564_v44 = vadd.f32 %v4563_v40, %v4562_v37  ;;  %v4627_v45 = vpop.f32.mrf.mxu1  ;;  %v4277_v36 = vcombine.low %v1353_v1, %v1361_v2  ;;  %v4294_v40 = vcombine.high %v1369_v26, %v1377_v27 }
 0x1b8   : > { %v4628_v48 = vadd.f32 %v4627_v45, %v4626_v39  ;;  %v4565_v49 = vpop.f32.mrf.mxu0  ;;  %v4279_v39 = vcombine.low %v1354_v6, %v1362_v7  ;;  %v4296_v42 = vcombine.high %v1370_v31, %v1378_v32  ;;  %v4295_v1 = vcombine.low %v1370_v31, %v1378_v32 }
 0x1b9   : > { %v3125_v51 = vadd.f32 %v4564_v44, %v6312_v16  ;;  %v4629_v52 = vpop.f32.mrf.mxu1 }
 0x1ba   : > { %v4566_v55 = vpop.f32.mrf.mxu0 }
 0x1bb   : > { %v6345_v57 = vadd.f32 %v4628_v48, %v3125_v51  ;;  %v4567_v58 = vadd.f32 %v4566_v55, %v4565_v49  ;;  %v4630_v59 = vpop.f32.mrf.mxu1 }
 0x1bc   : > { %v4631_v60 = vadd.f32 %v4630_v59, %v4629_v52  ;;  %v4568_v61 = vpop.f32.mrf.mxu0  ;;  %3713 = vmatmul.mubr.bf16.gmra.mxu0 %v4245_v50  ;;  %v1385_v52 = vld [vmem:[%s6667_s0 + $0x330] sm:$0xff]  ;;  %v1394_v59 = vld [vmem:[%s6667_s0 + $0x378] sm:$0xff] }
 0x1bd   : > { %v3128_v62 = vadd.f32 %v4567_v58, %v6312_v16  ;;  %v4632_v63 = vpop.f32.mrf.mxu1  ;;  %3810 = vmatmul.mubr.bf16.gmra.mxu1 %v4247_v53  ;;  %3720 = vmatprep.mubr.bf16.mxu0 %v4262_v54  ;;  %v1393_v53 = vld [vmem:[%s6667_s0 + $0x370] sm:$0xff]  ;;  %v1386_v58 = vld [vmem:[%s6667_s0 + $0x338] sm:$0xff] }
 0x1be   : > { %v4569_v0 = vpop.f32.mrf.mxu0  ;;  %3817 = vmatprep.mubr.bf16.mxu1 %v4264_v56  ;;  %v4310_v2 = vcombine.high %v1385_v52, %v1393_v53 }
 0x1bf   : > { %v6354_v3 = vadd.f32 %v4631_v60, %v3128_v62  ;;  %v4570_v4 = vadd.f32 %v4569_v0, %v4568_v61  ;;  %v4633_v5 = vpop.f32.mrf.mxu1  ;;  %v4293_v62 = vcombine.low %v1369_v26, %v1377_v27 }
 0x1c0   : > { %v4634_v8 = vadd.f32 %v4633_v5, %v4632_v63  ;;  %v4571_v9 = vpop.f32.mrf.mxu0  ;;  %v4312_v5 = vcombine.high %v1386_v58, %v1394_v59 }
 0x1c1   : > { %v3133_v11 = vadd.f32 %v4570_v4, %v6312_v16  ;;  %v4635_v12 = vpop.f32.mrf.mxu1 }
 0x1c2   : > { %v4572_v15 = vpop.f32.mrf.mxu0 }
 0x1c3   : > { %v6363_v18 = vadd.f32 %v4634_v8, %v3133_v11  ;;  %v4573_v19 = vadd.f32 %v4572_v15, %v4571_v9  ;;  %v4636_v20 = vpop.f32.mrf.mxu1  ;;  %v1409_v15 = vld [vmem:[%s6667_s0 + $0x3f0] sm:$0xff] }
 0x1c4   : > { %v4637_v21 = vadd.f32 %v4636_v20, %v4635_v12  ;;  %v4574_v22 = vpop.f32.mrf.mxu0  ;;  %3721 = vmatmul.mubr.bf16.gmra.mxu0 %v4261_v10 }
 0x1c5   : > { %v3136_v23 = vadd.f32 %v4573_v19, %v6312_v16  ;;  %v4638_v24 = vpop.f32.mrf.mxu1  ;;  %3818 = vmatmul.mubr.bf16.gmra.mxu1 %v4263_v13  ;;  %3728 = vmatprep.mubr.bf16.mxu0 %v4278_v14  ;;  %v1401_v14 = vld [vmem:[%s6667_s0 + $0x3b0] sm:$0xff] }
 0x1c6   : > { %v4575_v25 = vpop.f32.mrf.mxu0  ;;  %3825 = vmatprep.mubr.bf16.mxu1 %v4280_v17 }
 0x1c7   : > { %v6372_v28 = vadd.f32 %v4637_v21, %v3136_v23  ;;  %v4576_v29 = vadd.f32 %v4575_v25, %v4574_v22  ;;  %v4639_v30 = vpop.f32.mrf.mxu1  ;;  %v1402_v21 = vld [vmem:[%s6667_s0 + $0x3b8] sm:$0xff]  ;;  %v4309_v25 = vcombine.low %v1385_v52, %v1393_v53 }
 0x1c8   : > { %v4640_v34 = vadd.f32 %v4639_v30, %v4638_v24  ;;  %v4577_v35 = vpop.f32.mrf.mxu0  ;;  %v1410_v22 = vld [vmem:[%s6667_s0 + $0x3f8] sm:$0xff]  ;;  %v4326_v30 = vcombine.high %v1401_v14, %v1409_v15 }
 0x1c9   : > { %v3141_v37 = vadd.f32 %v4576_v29, %v6312_v16  ;;  %v4641_v38 = vpop.f32.mrf.mxu1  ;;  %v4311_v29 = vcombine.low %v1386_v58, %v1394_v59  ;;  %v4328_v32 = vcombine.high %v1402_v21, %v1410_v22  ;;  %v4327_v52 = vcombine.low %v1402_v21, %v1410_v22 }
 0x1ca   : > { %v4578_v41 = vpop.f32.mrf.mxu0 }
 0x1cb   : > { %v6381_v44 = vadd.f32 %v4640_v34, %v3141_v37  ;;  %v4579_v45 = vadd.f32 %v4578_v41, %v4577_v35  ;;  %v4642_v46 = vpop.f32.mrf.mxu1 }
 0x1cc   : > { %v4643_v47 = vadd.f32 %v4642_v46, %v4641_v38  ;;  %v4580_v48 = vpop.f32.mrf.mxu0  ;;  %3729 = vmatmul.mubr.bf16.gmra.mxu0 %v4277_v36 }
 0x1cd   : > { %v3144_v49 = vadd.f32 %v4579_v45, %v6312_v16  ;;  %v4644_v50 = vpop.f32.mrf.mxu1  ;;  %3826 = vmatmul.mubr.bf16.gmra.mxu1 %v4279_v39  ;;  %3736 = vmatprep.mubr.bf16.mxu0 %v4294_v40 }
 0x1ce   : > { %v4581_v51 = vpop.f32.mrf.mxu0  ;;  %3833 = vmatprep.mubr.bf16.mxu1 %v4296_v42 }
 0x1cf   : > { %v6390_v54 = vadd.f32 %v4643_v47, %v3144_v49  ;;  %v4582_v55 = vadd.f32 %v4581_v51, %v4580_v48  ;;  %v4645_v56 = vpop.f32.mrf.mxu1  ;;  %v4325_v49 = vcombine.low %v1401_v14, %v1409_v15 }
 0x1d0   : > { %v4646_v60 = vadd.f32 %v4645_v56, %v4644_v50  ;;  %v4583_v61 = vpop.f32.mrf.mxu0 }
 0x1d1   : > { %v3149_v63 = vadd.f32 %v4582_v55, %v6312_v16  ;;  %v4647_v0 = vpop.f32.mrf.mxu1 }
 0x1d2   : > { %v4584_v4 = vpop.f32.mrf.mxu0 }
 0x1d3   : > { %v6399_v6 = vadd.f32 %v4646_v60, %v3149_v63  ;;  %v4585_v7 = vadd.f32 %v4584_v4, %v4583_v61  ;;  %v4648_v8 = vpop.f32.mrf.mxu1 }
 0x1d4   : > { %v4649_v9 = vadd.f32 %v4648_v8, %v4647_v0  ;;  %v4586_v10 = vpop.f32.mrf.mxu0  ;;  %3737 = vmatmul.mubr.bf16.gmra.mxu0 %v4293_v62 }
 0x1d5   : > { %v3152_v11 = vadd.f32 %v4585_v7, %v6312_v16  ;;  %v4650_v12 = vpop.f32.mrf.mxu1  ;;  %3834 = vmatmul.mubr.bf16.gmra.mxu1 %v4295_v1  ;;  %3744 = vmatprep.mubr.bf16.mxu0 %v4310_v2 }
 0x1d6   : > { %v4587_v13 = vpop.f32.mrf.mxu0  ;;  %3841 = vmatprep.mubr.bf16.mxu1 %v4312_v5 }
 0x1d7   : > { %v6408_v17 = vadd.f32 %v4649_v9, %v3152_v11  ;;  %v4588_v19 = vadd.f32 %v4587_v13, %v4586_v10  ;;  %v4651_v20 = vpop.f32.mrf.mxu1 }
 0x1d8   : > { %v4652_v23 = vadd.f32 %v4651_v20, %v4650_v12  ;;  %v4589_v24 = vpop.f32.mrf.mxu0 }
 0x1d9   : > { %v3157_v26 = vadd.f32 %v4588_v19, %v6312_v16  ;;  %v4653_v27 = vpop.f32.mrf.mxu1 }
 0x1da   : > { %v4590_v31 = vpop.f32.mrf.mxu0 }
 0x1db   : > { %v6417_v34 = vadd.f32 %v4652_v23, %v3157_v26  ;;  %v4591_v35 = vadd.f32 %v4590_v31, %v4589_v24  ;;  %v4654_v36 = vpop.f32.mrf.mxu1 }
 0x1dc   : > { %v4655_v37 = vadd.f32 %v4654_v36, %v4653_v27  ;;  %v4592_v38 = vpop.f32.mrf.mxu0  ;;  %3745 = vmatmul.mubr.bf16.gmra.mxu0 %v4309_v25 }
 0x1dd   : > { %v3160_v39 = vadd.f32 %v4591_v35, %v6312_v16  ;;  %v4656_v40 = vpop.f32.mrf.mxu1  ;;  %3842 = vmatmul.mubr.bf16.gmra.mxu1 %v4311_v29  ;;  %3752 = vmatprep.mubr.bf16.mxu0 %v4326_v30 }
 0x1de   : > { %v4593_v41 = vpop.f32.mrf.mxu0  ;;  %3849 = vmatprep.mubr.bf16.mxu1 %v4328_v32 }
 0x1df   : > { %v6420_v42 = vadd.f32 %v4655_v37, %v3160_v39  ;;  %v4594_v45 = vadd.f32 %v4593_v41, %v4592_v38  ;;  %v4657_v46 = vpop.f32.mrf.mxu1 }
 0x1e0   : > { %v4658_v47 = vadd.f32 %v4657_v46, %v4656_v40  ;;  %v4595_v48 = vpop.f32.mrf.mxu0 }
 0x1e1   : > { %v3165_v50 = vadd.f32 %v4594_v45, %v6312_v16  ;;  %v4659_v51 = vpop.f32.mrf.mxu1 }
 0x1e2   : > { %v4596_v53 = vpop.f32.mrf.mxu0 }
 0x1e3   : > { %v6423_v55 = vadd.f32 %v4658_v47, %v3165_v50  ;;  %v4597_v56 = vadd.f32 %v4596_v53, %v4595_v48  ;;  %v4660_v58 = vpop.f32.mrf.mxu1 }
 0x1e4   : > { %v4661_v59 = vadd.f32 %v4660_v58, %v4659_v51  ;;  %v4598_v60 = vpop.f32.mrf.mxu0  ;;  %3753 = vmatmul.mubr.bf16.gmra.mxu0 %v4325_v49 }
 0x1e5   : > { %v3168_v61 = vadd.f32 %v4597_v56, %v6312_v16  ;;  %v4662_v62 = vpop.f32.mrf.mxu1  ;;  %3850 = vmatmul.mubr.bf16.gmra.mxu1 %v4327_v52 }
 0x1e6   : > { %v4599_v63 = vpop.f32.mrf.mxu0 }
 0x1e7   : > { %v6426_v0 = vadd.f32 %v4661_v59, %v3168_v61  ;;  %v4600_v1 = vadd.f32 %v4599_v63, %v4598_v60  ;;  %v4663_v2 = vpop.f32.mrf.mxu1 }
 0x1e8   : > { %v4664_v4 = vadd.f32 %v4663_v2, %v4662_v62  ;;  %v4601_v5 = vpop.f32.mrf.mxu0 }
 0x1e9   : > { %v3173_v7 = vadd.f32 %v4600_v1, %v6312_v16  ;;  %v4665_v8 = vpop.f32.mrf.mxu1 }
 0x1ea   : > { %v4602_v9 = vpop.f32.mrf.mxu0 }
 0x1eb   : > { %v6429_v10 = vadd.f32 %v4664_v4, %v3173_v7  ;;  %v4603_v11 = vadd.f32 %v4602_v9, %v4601_v5  ;;  %v4666_v12 = vpop.f32.mrf.mxu1 }
 0x1ec   : > { %v4667_v13 = vadd.f32 %v4666_v12, %v4665_v8  ;;  %v4684_v14 = vpop.f32.mrf.mxu0 }
 0x1ed   : > { %v3176_v15 = vadd.f32 %v4603_v11, %v6312_v16  ;;  %v4748_v19 = vpop.f32.mrf.mxu1 }
 0x1ee   : > { %v4685_v20 = vpop.f32.mrf.mxu0 }
 0x1ef   : > { %v6432_v21 = vadd.f32 %v4667_v13, %v3176_v15  ;;  %v4686_v22 = vadd.f32 %v4685_v20, %v4684_v14  ;;  %v4749_v23 = vpop.f32.mrf.mxu1 }
 0x1f0   : > { %v4750_v24 = vadd.f32 %v4749_v23, %v4748_v19  ;;  %v4687_v25 = vpop.f32.mrf.mxu0 }
 0x1f1   : > { %v3311_v26 = vadd.f32 %v4686_v22, %v6327_v33  ;;  %v4751_v27 = vpop.f32.mrf.mxu1 }
 0x1f2   : > { %v4688_v29 = vpop.f32.mrf.mxu0 }
 0x1f3   : > { %v6435_v30 = vadd.f32 %v4750_v24, %v3311_v26  ;;  %v4689_v31 = vadd.f32 %v4688_v29, %v4687_v25  ;;  %v4752_v32 = vpop.f32.mrf.mxu1 }
 0x1f4   : > { %v4753_v35 = vadd.f32 %v4752_v32, %v4751_v27  ;;  %v4690_v36 = vpop.f32.mrf.mxu0 }
 0x1f5   : > { %v3314_v16 = vadd.f32 %v4689_v31, %v6336_v43  ;;  %v4754_v37 = vpop.f32.mrf.mxu1 }
 0x1f6   : > { %v4691_v38 = vpop.f32.mrf.mxu0 }
 0x1f7   : > { %v6438_v39 = vadd.f32 %v4753_v35, %v3314_v16  ;;  %v4692_v40 = vadd.f32 %v4691_v38, %v4690_v36  ;;  %v4755_v41 = vpop.f32.mrf.mxu1 }
 0x1f8   : > { %v4756_v45 = vadd.f32 %v4755_v41, %v4754_v37  ;;  %v4693_v46 = vpop.f32.mrf.mxu0 }
 0x1f9   : > { %v3319_v33 = vadd.f32 %v4692_v40, %v6345_v57  ;;  %v4757_v47 = vpop.f32.mrf.mxu1 }
 0x1fa   : > { %v4694_v48 = vpop.f32.mrf.mxu0 }
 0x1fb   : > { %v6441_v49 = vadd.f32 %v4756_v45, %v3319_v33  ;;  %v4695_v50 = vadd.f32 %v4694_v48, %v4693_v46  ;;  %v4758_v51 = vpop.f32.mrf.mxu1 }
 0x1fc   : > { %v4759_v52 = vadd.f32 %v4758_v51, %v4757_v47  ;;  %v4696_v53 = vpop.f32.mrf.mxu0 }
 0x1fd   : > { %v3322_v43 = vadd.f32 %v4695_v50, %v6354_v3  ;;  %v4760_v56 = vpop.f32.mrf.mxu1 }
 0x1fe   : > { %v4697_v58 = vpop.f32.mrf.mxu0 }
 0x1ff   : > { %v6444_v59 = vadd.f32 %v4759_v52, %v3322_v43  ;;  %v4698_v60 = vadd.f32 %v4697_v58, %v4696_v53  ;;  %v4761_v61 = vpop.f32.mrf.mxu1 }
 0x200   : > { %v4762_v62 = vadd.f32 %v4761_v61, %v4760_v56  ;;  %v4699_v63 = vpop.f32.mrf.mxu0 }
 0x201   : > { %v3327_v57 = vadd.f32 %v4698_v60, %v6363_v18  ;;  %v4763_v1 = vpop.f32.mrf.mxu1 }
 0x202   : > { %v4700_v2 = vpop.f32.mrf.mxu0 }
 0x203   : > { %v6447_v4 = vadd.f32 %v4762_v62, %v3327_v57  ;;  %v4701_v5 = vadd.f32 %v4700_v2, %v4699_v63  ;;  %v4764_v7 = vpop.f32.mrf.mxu1 }
 0x204   : > { %v4765_v8 = vadd.f32 %v4764_v7, %v4763_v1  ;;  %v4702_v9 = vpop.f32.mrf.mxu0 }
 0x205   : > { %v3330_v3 = vadd.f32 %v4701_v5, %v6372_v28  ;;  %v4766_v11 = vpop.f32.mrf.mxu1 }
 0x206   : > { %v4703_v12 = vpop.f32.mrf.mxu0 }
 0x207   : > { %v6450_v13 = vadd.f32 %v4765_v8, %v3330_v3  ;;  %v4704_v14 = vadd.f32 %v4703_v12, %v4702_v9  ;;  %v4767_v15 = vpop.f32.mrf.mxu1 }
 0x208   : > { %v4768_v19 = vadd.f32 %v4767_v15, %v4766_v11  ;;  %v4705_v20 = vpop.f32.mrf.mxu0 }
 0x209   : > { %v3335_v18 = vadd.f32 %v4704_v14, %v6381_v44  ;;  %v4769_v22 = vpop.f32.mrf.mxu1 }
 0x20a   : > { %v4706_v23 = vpop.f32.mrf.mxu0 }
 0x20b   : > { %v6453_v24 = vadd.f32 %v4768_v19, %v3335_v18  ;;  %v4707_v25 = vadd.f32 %v4706_v23, %v4705_v20  ;;  %v4770_v26 = vpop.f32.mrf.mxu1 }
 0x20c   : > { %v4771_v27 = vadd.f32 %v4770_v26, %v4769_v22  ;;  %v4708_v29 = vpop.f32.mrf.mxu0 }
 0x20d   : > { %v3338_v28 = vadd.f32 %v4707_v25, %v6390_v54  ;;  %v4772_v31 = vpop.f32.mrf.mxu1 }
 0x20e   : > { %v4709_v32 = vpop.f32.mrf.mxu0 }
 0x20f   : > { %v6456_v35 = vadd.f32 %v4771_v27, %v3338_v28  ;;  %v4710_v36 = vadd.f32 %v4709_v32, %v4708_v29  ;;  %v4773_v16 = vpop.f32.mrf.mxu1 }
 0x210   : > { %v4774_v37 = vadd.f32 %v4773_v16, %v4772_v31  ;;  %v4711_v38 = vpop.f32.mrf.mxu0 }
 0x211   : > { %v3343_v44 = vadd.f32 %v4710_v36, %v6399_v6  ;;  %v4775_v40 = vpop.f32.mrf.mxu1 }
 0x212   : > { %v4712_v41 = vpop.f32.mrf.mxu0 }
 0x213   : > { %v6459_v45 = vadd.f32 %v4774_v37, %v3343_v44  ;;  %v4713_v46 = vadd.f32 %v4712_v41, %v4711_v38  ;;  %v4776_v33 = vpop.f32.mrf.mxu1 }
 0x214   : > { %v4777_v47 = vadd.f32 %v4776_v33, %v4775_v40  ;;  %v4714_v48 = vpop.f32.mrf.mxu0 }
 0x215   : > { %v3346_v54 = vadd.f32 %v4713_v46, %v6408_v17  ;;  %v4778_v50 = vpop.f32.mrf.mxu1 }
 0x216   : > { %v4715_v51 = vpop.f32.mrf.mxu0 }
 0x217   : > { %v6462_v52 = vadd.f32 %v4777_v47, %v3346_v54  ;;  %v4716_v53 = vadd.f32 %v4715_v51, %v4714_v48  ;;  %v4779_v43 = vpop.f32.mrf.mxu1 }
 0x218   : > { %v4780_v56 = vadd.f32 %v4779_v43, %v4778_v50  ;;  %v4717_v58 = vpop.f32.mrf.mxu0 }
 0x219   : > { %v3351_v6 = vadd.f32 %v4716_v53, %v6417_v34  ;;  %v4781_v60 = vpop.f32.mrf.mxu1 }
 0x21a   : > { %v4718_v61 = vpop.f32.mrf.mxu0 }
 0x21b   : > { %v6465_v62 = vadd.f32 %v4780_v56, %v3351_v6  ;;  %v4719_v63 = vadd.f32 %v4718_v61, %v4717_v58  ;;  %v4782_v57 = vpop.f32.mrf.mxu1 }
 0x21c   : > { %v4783_v1 = vadd.f32 %v4782_v57, %v4781_v60  ;;  %v4720_v2 = vpop.f32.mrf.mxu0 }
 0x21d   : > { %v3354_v17 = vadd.f32 %v4719_v63, %v6420_v42  ;;  %v4784_v5 = vpop.f32.mrf.mxu1 }
 0x21e   : > { %v4721_v7 = vpop.f32.mrf.mxu0 }
 0x21f   : > { %v6468_v8 = vadd.f32 %v4783_v1, %v3354_v17  ;;  %v4722_v9 = vadd.f32 %v4721_v7, %v4720_v2  ;;  %v4785_v3 = vpop.f32.mrf.mxu1 }
 0x220   : > { %v4786_v11 = vadd.f32 %v4785_v3, %v4784_v5  ;;  %v4723_v12 = vpop.f32.mrf.mxu0 }
 0x221   : > { %v3359_v34 = vadd.f32 %v4722_v9, %v6423_v55  ;;  %v4787_v14 = vpop.f32.mrf.mxu1 }
 0x222   : > { %v4724_v15 = vpop.f32.mrf.mxu0 }
 0x223   : > { %v6471_v19 = vadd.f32 %v4786_v11, %v3359_v34  ;;  %v4725_v20 = vadd.f32 %v4724_v15, %v4723_v12  ;;  %v4788_v18 = vpop.f32.mrf.mxu1 }
 0x224   : > { %v4789_v22 = vadd.f32 %v4788_v18, %v4787_v14  ;;  %v4726_v23 = vpop.f32.mrf.mxu0 }
 0x225   : > { %v3362_v42 = vadd.f32 %v4725_v20, %v6426_v0  ;;  %v4790_v25 = vpop.f32.mrf.mxu1 }
 0x226   : > { %v4727_v26 = vpop.f32.mrf.mxu0 }
 0x227   : > { %v6474_v27 = vadd.f32 %v4789_v22, %v3362_v42  ;;  %v4728_v29 = vadd.f32 %v4727_v26, %v4726_v23  ;;  %v4791_v28 = vpop.f32.mrf.mxu1 }
 0x228   : > { %v4792_v31 = vadd.f32 %v4791_v28, %v4790_v25  ;;  %v4729_v32 = vpop.f32.mrf.mxu0 }
 0x229   : > { %v3367_v55 = vadd.f32 %v4728_v29, %v6429_v10  ;;  %v4793_v36 = vpop.f32.mrf.mxu1 }
 0x22a   : > { %v4730_v16 = vpop.f32.mrf.mxu0 }
 0x22b   : > { %v6477_v37 = vadd.f32 %v4792_v31, %v3367_v55  ;;  %v4731_v38 = vadd.f32 %v4730_v16, %v4729_v32  ;;  %v4794_v44 = vpop.f32.mrf.mxu1 }
 0x22c   : > { %v4795_v40 = vadd.f32 %v4794_v44, %v4793_v36  ;;  %v4812_v41 = vpop.f32.mrf.mxu0 }
 0x22d   : > { %v3370_v0 = vadd.f32 %v4731_v38, %v6432_v21  ;;  %v4876_v46 = vpop.f32.mrf.mxu1 }
 0x22e   : > { %v4813_v33 = vpop.f32.mrf.mxu0 }
 0x22f   : > { %v6480_v47 = vadd.f32 %v4795_v40, %v3370_v0  ;;  %v4814_v48 = vadd.f32 %v4813_v33, %v4812_v41  ;;  %v4877_v54 = vpop.f32.mrf.mxu1 }
 0x230   : > { %v4878_v50 = vadd.f32 %v4877_v54, %v4876_v46  ;;  %v6482_v51 = vpop.f32.mrf.mxu0 }
 0x231   : > { %v3505_v10 = vadd.f32 %v4814_v48, %v6435_v30  ;;  %v6485_v53 = vpop.f32.mrf.mxu1 }
 0x232   : > { %v6487_v43 = vpop.f32.mrf.mxu0 }
 0x233   : > { %v6489_v56 = vadd.f32 %v4878_v50, %v3505_v10  ;;  %v6491_v58 = vpop.f32.mrf.mxu1 }
 0x234   : > { %v4818_v21 = vpop.f32.mrf.mxu0 }
 0x235   : > { %v4882_v6 = vpop.f32.mrf.mxu1 }
 0x236   : > { %v4819_v60 = vpop.f32.mrf.mxu0 }
 0x237   : > { %v4820_v61 = vadd.f32 %v4819_v60, %v4818_v21  ;;  %v4883_v63 = vpop.f32.mrf.mxu1 }
 0x238   : > { %v4884_v57 = vadd.f32 %v4883_v63, %v4882_v6  ;;  %v6493_v1 = vpop.f32.mrf.mxu0 }
 0x239   : > { %v3513_v2 = vadd.f32 %v4820_v61, %v6441_v49  ;;  %v6496_v17 = vpop.f32.mrf.mxu1 }
 0x23a   : > { %v6498_v30 = vpop.f32.mrf.mxu0 }
 0x23b   : > { %v6500_v5 = vadd.f32 %v4884_v57, %v3513_v2  ;;  %v6502_v7 = vpop.f32.mrf.mxu1 }
 0x23c   : > { %v4824_v9 = vpop.f32.mrf.mxu0 }
 0x23d   : > { %v4888_v3 = vpop.f32.mrf.mxu1 }
 0x23e   : > { %v4825_v11 = vpop.f32.mrf.mxu0 }
 0x23f   : > { %v4826_v12 = vadd.f32 %v4825_v11, %v4824_v9  ;;  %v4889_v34 = vpop.f32.mrf.mxu1 }
 0x240   : > { %v4890_v14 = vadd.f32 %v4889_v34, %v4888_v3  ;;  %v6504_v15 = vpop.f32.mrf.mxu0 }
 0x241   : > { %v3521_v20 = vadd.f32 %v4826_v12, %v6447_v4  ;;  %v6507_v18 = vpop.f32.mrf.mxu1 }
 0x242   : > { %v6509_v49 = vpop.f32.mrf.mxu0 }
 0x243   : > { %v6511_v22 = vadd.f32 %v4890_v14, %v3521_v20  ;;  %v6513_v23 = vpop.f32.mrf.mxu1 }
 0x244   : > { %v4830_v42 = vpop.f32.mrf.mxu0 }
 0x245   : > { %v4894_v25 = vpop.f32.mrf.mxu1 }
 0x246   : > { %v4831_v26 = vpop.f32.mrf.mxu0 }
 0x247   : > { %v4832_v29 = vadd.f32 %v4831_v26, %v4830_v42  ;;  %v4895_v28 = vpop.f32.mrf.mxu1 }
 0x248   : > { %v4896_v31 = vadd.f32 %v4895_v28, %v4894_v25  ;;  %v6515_v32 = vpop.f32.mrf.mxu0 }
 0x249   : > { %v3529_v55 = vadd.f32 %v4832_v29, %v6453_v24  ;;  %v6518_v36 = vpop.f32.mrf.mxu1 }
 0x24a   : > { %v6520_v4 = vpop.f32.mrf.mxu0 }
 0x24b   : > { %v6522_v16 = vadd.f32 %v4896_v31, %v3529_v55  ;;  %v6524_v38 = vpop.f32.mrf.mxu1 }
 0x24c   : > { %v4836_v44 = vpop.f32.mrf.mxu0 }
 0x24d   : > { %v4900_v40 = vpop.f32.mrf.mxu1 }
 0x24e   : > { %v4837_v41 = vpop.f32.mrf.mxu0 }
 0x24f   : > { %v4838_v0 = vadd.f32 %v4837_v41, %v4836_v44  ;;  %v4901_v46 = vpop.f32.mrf.mxu1 }
 0x250   : > { %v4902_v33 = vadd.f32 %v4901_v46, %v4900_v40  ;;  %v6526_v48 = vpop.f32.mrf.mxu0 }
 0x251   : > { %v3537_v54 = vadd.f32 %v4838_v0, %v6459_v45  ;;  %v6529_v50 = vpop.f32.mrf.mxu1 }
 0x252   : > { %v6531_v24 = vpop.f32.mrf.mxu0 }
 0x253   : > { %v6533_v10 = vadd.f32 %v4902_v33, %v3537_v54  ;;  %v6535_v21 = vpop.f32.mrf.mxu1 }
 0x254   : > { %v4842_v6 = vpop.f32.mrf.mxu0 }
 0x255   : > { %v4906_v60 = vpop.f32.mrf.mxu1 }
 0x256   : > { %v4843_v61 = vpop.f32.mrf.mxu0 }
 0x257   : > { %v4844_v63 = vadd.f32 %v4843_v61, %v4842_v6  ;;  %v4907_v57 = vpop.f32.mrf.mxu1 }
 0x258   : > { %v4908_v2 = vadd.f32 %v4907_v57, %v4906_v60  ;;  %v6537_v9 = vpop.f32.mrf.mxu0  ;;  %v4817_v57 = vadd.f32 %v6487_v43, %v6482_v51  ;;  %v4823_v51 = vadd.f32 %v6498_v30, %v6493_v1  ;;  %v4887_v1 = vadd.f32 %v6502_v7, %v6496_v17 }
 0x259   : > { %v3545_v3 = vadd.f32 %v4844_v63, %v6465_v62  ;;  %v6540_v11 = vpop.f32.mrf.mxu1 }
 0x25a   : > { %v6542_v45 = vpop.f32.mrf.mxu0 }
 0x25b   : > { %v6544_v12 = vadd.f32 %v4908_v2, %v3545_v3  ;;  %v6546_v34 = vpop.f32.mrf.mxu1 }
 0x25c   : > { %v4848_v14 = vpop.f32.mrf.mxu0 }
 0x25d   : > { %v4912_v20 = vpop.f32.mrf.mxu1 }
 0x25e   : > { %v4849_v42 = vpop.f32.mrf.mxu0 }
 0x25f   : > { %v4850_v25 = vadd.f32 %v4849_v42, %v4848_v14  ;;  %v4913_v26 = vpop.f32.mrf.mxu1 }
 0x260   : > { %v4914_v29 = vadd.f32 %v4913_v26, %v4912_v20  ;;  %v6548_v28 = vpop.f32.mrf.mxu0 }
 0x261   : > { %v3553_v31 = vadd.f32 %v4850_v25, %v6471_v19  ;;  %v6551_v55 = vpop.f32.mrf.mxu1  ;;  %v3508_v25 = vadd.f32 %v4817_v57, %v6438_v39 }
 0x262   : > { %v6553_v62 = vpop.f32.mrf.mxu0 }
 0x263   : > { %v6555_v44 = vadd.f32 %v4914_v29, %v3553_v31  ;;  %v6557_v40 = vpop.f32.mrf.mxu1 }
 0x264   : > { %v4854_v41 = vpop.f32.mrf.mxu0 }
 0x265   : > { %v4918_v0 = vpop.f32.mrf.mxu1 }
 0x266   : > { %v4855_v46 = vpop.f32.mrf.mxu0 }
 0x267   : > { %v4856_v33 = vadd.f32 %v4855_v46, %v4854_v41  ;;  %v4919_v54 = vpop.f32.mrf.mxu1 }
 0x268   : > { %v4920_v6 = vadd.f32 %v4919_v54, %v4918_v0  ;;  %v6559_v60 = vpop.f32.mrf.mxu0 }
 0x269   : > { %v3561_v61 = vadd.f32 %v4856_v33, %v6477_v37  ;;  %v6562_v63 = vpop.f32.mrf.mxu1  ;;  %v4881_v37 = vadd.f32 %v6491_v58, %v6485_v53 }
 0x26a   : > { %v6564_v19 = vpop.f32.mrf.mxu0 }
 0x26b   : > { %v6568_v2 = vadd.f32 %v4920_v6, %v3561_v61  ;;  %v6570_v3 = vpop.f32.mrf.mxu1  ;;  %v3605_v33 = vadd.f32 %v4881_v37, %v3508_v25 }
 0x26c   : > { %v4940_v14 = vpop.f32.mrf.mxu0 }
 0x26d   : > { %6672 = vst [vmem:[#allocation4_spill] sm:$0xff] %v6568_v2  ;;  %v5004_v20 = vpop.f32.mrf.mxu1  ;;  %v3516_v2 = vadd.f32 %v4823_v51, %v6444_v59  ;;  %v4829_v59 = vadd.f32 %v6509_v49, %v6504_v15 }
 0x26e   : > { %v4941_v42 = vpop.f32.mrf.mxu0 }
 0x26f   : > { %v4942_v26 = vadd.f32 %v4941_v42, %v4940_v14  ;;  %v5005_v29 = vpop.f32.mrf.mxu1 }
 0x270   : > { %v4943_v31 = vpop.f32.mrf.mxu0  ;;  %v5006_v0 = vadd.f32 %v5005_v29, %v5004_v20 }
 0x271   : > { %v3699_v41 = vadd.f32 %v4942_v26, %v6489_v56  ;;  %v5007_v46 = vpop.f32.mrf.mxu1 }
 0x272   : > { %v4944_v43 = vpop.f32.mrf.mxu0 }
 0x273   : > { %v3796_v54 = vadd.f32 %v5006_v0, %v3699_v41  ;;  %v4945_v6 = vadd.f32 %v4944_v43, %v4943_v31  ;;  %v5008_v61 = vpop.f32.mrf.mxu1  ;;  %v3613_v41 = vadd.f32 %v4887_v1, %v3516_v2  ;;  %v4835_v1 = vadd.f32 %v6520_v4, %v6515_v32 }
 0x274   : > { %v4946_v39 = vpop.f32.mrf.mxu0  ;;  %v5009_v14 = vadd.f32 %v5008_v61, %v5007_v46  ;;  %v4899_v32 = vadd.f32 %v6524_v38, %v6518_v36 }
 0x275   : > { %v3702_v57 = vadd.f32 %v4945_v6, %v3605_v33  ;;  %v5010_v42 = vpop.f32.mrf.mxu1  ;;  %v3874_v58 = vmul.f32 0.2, %v3796_v54  ;;  %vm3858_vm0 = vcmp.gt.f32.partialorder %v3796_v54, 0.0 }
 0x276   : > { %v4947_v53 = vpop.f32.mrf.mxu0 }
 0x277   : > { %v3799_v56 = vadd.f32 %v5009_v14, %v3702_v57  ;;  %v4948_v20 = vadd.f32 %v4947_v53, %v4946_v39  ;;  %v5011_v26 = vpop.f32.mrf.mxu1  ;;  %v3890_v46 = vsel %vm3858_vm0, %v3796_v54, %v3874_v58  ;;  %v3524_v14 = vadd.f32 %v4829_v59, %v6450_v13 }
 0x278   : > { %v4949_v30 = vpop.f32.mrf.mxu0  ;;  %v5012_v31 = vadd.f32 %v5011_v26, %v5010_v42  ;;  %v4893_v42 = vadd.f32 %v6513_v23, %v6507_v18 }
 0x279   : > { %vm3859_vm1 = vcmp.gt.f32.partialorder %v3799_v56, 0.0  ;;  %v3875_v25 = vmul.f32 0.2, %v3799_v56  ;;  %v3707_v29 = vadd.f32 %v4948_v20, %v6500_v5  ;;  %v5013_v37 = vpop.f32.mrf.mxu1 }
 0x27a   : > { %v4950_v0 = vpop.f32.mrf.mxu0  ;;  %v3621_v26 = vadd.f32 %v4893_v42, %v3524_v14 }
 0x27b   : > { %v3891_v51 = vsel %vm3859_vm1, %v3799_v56, %v3875_v25  ;;  %v3804_v43 = vadd.f32 %v5012_v31, %v3707_v29  ;;  %v4951_v33 = vadd.f32 %v4950_v0, %v4949_v30  ;;  %v5014_v17 = vpop.f32.mrf.mxu1 }
 0x27c   : > { %v4496_v7 = vpack.c.bf16 %v3891_v51, %v3890_v46  ;;  %v4952_v6 = vpop.f32.mrf.mxu0  ;;  %v5015_v39 = vadd.f32 %v5014_v17, %v5013_v37 }
 0x27d   : > { %v3710_v61 = vadd.f32 %v4951_v33, %v3613_v41  ;;  %v5016_v57 = vpop.f32.mrf.mxu1  ;;  %v3876_v2 = vmul.f32 0.2, %v3804_v43  ;;  %vm3860_vm2 = vcmp.gt.f32.partialorder %v3804_v43, 0.0 }
 0x27e   : > { %4497 = vst [vmem:[%s6587_s12] sm:$0xff] %v4496_v7   ;;  %v4953_v5 = vpop.f32.mrf.mxu0 }
 0x27f   : > { %v3807_v15 = vadd.f32 %v5015_v39, %v3710_v61  ;;  %v4954_v49 = vadd.f32 %v4953_v5, %v4952_v6  ;;  %v5017_v54 = vpop.f32.mrf.mxu1  ;;  %v3892_v25 = vsel %vm3860_vm2, %v3804_v43, %v3876_v2 }
 0x280   : > { %v4955_v53 = vpop.f32.mrf.mxu0  ;;  %v5018_v20 = vadd.f32 %v5017_v54, %v5016_v57 }
 0x281   : > { %vm3861_vm3 = vcmp.gt.f32.partialorder %v3807_v15, 0.0  ;;  %v3877_v58 = vmul.f32 0.2, %v3807_v15  ;;  %v3715_v56 = vadd.f32 %v4954_v49, %v6511_v22  ;;  %v5019_v13 = vpop.f32.mrf.mxu1  ;;  %v3532_v22 = vadd.f32 %v4835_v1, %v6456_v35 }
 0x282   : > { %v4956_v30 = vpop.f32.mrf.mxu0  ;;  %v4841_v35 = vadd.f32 %v6531_v24, %v6526_v48  ;;  %v4905_v48 = vadd.f32 %v6535_v21, %v6529_v50 }
 0x283   : > { %v3893_v29 = vsel %vm3861_vm3, %v3807_v15, %v3877_v58  ;;  %v3812_v31 = vadd.f32 %v5018_v20, %v3715_v56  ;;  %v4957_v37 = vadd.f32 %v4956_v30, %v4955_v53  ;;  %v5020_v41 = vpop.f32.mrf.mxu1  ;;  %v3629_v14 = vadd.f32 %v4899_v32, %v3532_v22 }
 0x284   : > { %v4501_v18 = vpack.c.bf16 %v3893_v29, %v3892_v25  ;;  %v4958_v23 = vpop.f32.mrf.mxu0  ;;  %v5021_v0 = vadd.f32 %v5020_v41, %v5019_v13 }
 0x285   : > { %v3718_v59 = vadd.f32 %v4957_v37, %v3621_v26  ;;  %v5022_v46 = vpop.f32.mrf.mxu1  ;;  %v3878_v33 = vmul.f32 0.2, %v3812_v31  ;;  %vm3862_vm4 = vcmp.gt.f32.partialorder %v3812_v31, 0.0 }
 0x286   : > { %4533 = vst [vmem:[%s6587_s12 + $0x8] sm:$0xff] %v4501_v18   ;;  %v4959_v51 = vpop.f32.mrf.mxu0 }
 0x287   : > { %v3815_v17 = vadd.f32 %v5021_v0, %v3718_v59  ;;  %v4960_v7 = vadd.f32 %v4959_v51, %v4958_v23  ;;  %v5023_v6 = vpop.f32.mrf.mxu1  ;;  %v3894_v2 = vsel %vm3862_vm4, %v3812_v31, %v3878_v33 }
 0x288   : > { %v4961_v4 = vpop.f32.mrf.mxu0  ;;  %v5024_v39 = vadd.f32 %v5023_v6, %v5022_v46 }
 0x289   : > { %vm3863_vm5 = vcmp.gt.f32.partialorder %v3815_v17, 0.0  ;;  %v3879_v43 = vmul.f32 0.2, %v3815_v17  ;;  %v3723_v61 = vadd.f32 %v4960_v7, %v6522_v16  ;;  %v5025_v57 = vpop.f32.mrf.mxu1  ;;  %v3540_v16 = vadd.f32 %v4841_v35, %v6462_v52 }
 0x28a   : > { %v4962_v5 = vpop.f32.mrf.mxu0  ;;  %v4847_v52 = vadd.f32 %v6542_v45, %v6537_v9  ;;  %v4911_v9 = vadd.f32 %v6546_v34, %v6540_v11 }
 0x28b   : > { %v3895_v15 = vsel %vm3863_vm5, %v3815_v17, %v3879_v43  ;;  %v3820_v49 = vadd.f32 %v5024_v39, %v3723_v61  ;;  %v4963_v54 = vadd.f32 %v4962_v5, %v4961_v4  ;;  %v5026_v42 = vpop.f32.mrf.mxu1  ;;  %v3637_v41 = vadd.f32 %v4905_v48, %v3540_v16 }
 0x28c   : > { %v4506_v36 = vpack.c.bf16 %v3895_v15, %v3894_v2  ;;  %v4964_v38 = vpop.f32.mrf.mxu0  ;;  %v5027_v58 = vadd.f32 %v5026_v42, %v5025_v57 }
 0x28d   : > { %v3726_v53 = vadd.f32 %v4963_v54, %v3629_v14  ;;  %v5028_v56 = vpop.f32.mrf.mxu1  ;;  %v3880_v13 = vmul.f32 0.2, %v3820_v49  ;;  %vm3864_vm6 = vcmp.gt.f32.partialorder %v3820_v49, 0.0 }
 0x28e   : > { %4534 = vst [vmem:[%s6587_s12 + $0x10] sm:$0xff] %v4506_v36   ;;  %v4965_v20 = vpop.f32.mrf.mxu0 }
 0x28f   : > { %v3823_v26 = vadd.f32 %v5027_v58, %v3726_v53  ;;  %v4966_v1 = vadd.f32 %v4965_v20, %v4964_v38  ;;  %v5029_v30 = vpop.f32.mrf.mxu1  ;;  %v3896_v23 = vsel %vm3864_vm6, %v3820_v49, %v3880_v13 }
 0x290   : > { %v4967_v24 = vpop.f32.mrf.mxu0  ;;  %v5030_v31 = vadd.f32 %v5029_v30, %v5028_v56 }
 0x291   : > { %vm3865_vm7 = vcmp.gt.f32.partialorder %v3823_v26, 0.0  ;;  %v3881_v25 = vmul.f32 0.2, %v3823_v26  ;;  %v3731_v29 = vadd.f32 %v4966_v1, %v6533_v10  ;;  %v5031_v37 = vpop.f32.mrf.mxu1  ;;  %v3548_v10 = vadd.f32 %v4847_v52, %v6468_v8 }
 0x292   : > { %v4968_v18 = vpop.f32.mrf.mxu0  ;;  %v4853_v8 = vadd.f32 %v6553_v62, %v6548_v28  ;;  %v4917_v28 = vadd.f32 %v6557_v40, %v6551_v55 }
 0x293   : > { %v3897_v59 = vsel %vm3865_vm7, %v3823_v26, %v3881_v25  ;;  %v3828_v0 = vadd.f32 %v5030_v31, %v3731_v29  ;;  %v4969_v46 = vadd.f32 %v4968_v18, %v4967_v24  ;;  %v5032_v22 = vpop.f32.mrf.mxu1  ;;  %v3645_v35 = vadd.f32 %v4911_v9, %v3548_v10 }
 0x294   : > { %v4511_v50 = vpack.c.bf16 %v3897_v59, %v3896_v23  ;;  %v4970_v21 = vpop.f32.mrf.mxu0  ;;  %v5033_v33 = vadd.f32 %v5032_v22, %v5031_v37 }
 0x295   : > { %v3734_v51 = vadd.f32 %v4969_v46, %v3637_v41  ;;  %v5034_v17 = vpop.f32.mrf.mxu1  ;;  %v3882_v6 = vmul.f32 0.2, %v3828_v0  ;;  %vm3866_vm8 = vcmp.gt.f32.partialorder %v3828_v0, 0.0 }
 0x296   : > { %4535 = vst [vmem:[%s6587_s12 + $0x18] sm:$0xff] %v4511_v50   ;;  %v4971_v7 = vpop.f32.mrf.mxu0 }
 0x297   : > { %v3831_v32 = vadd.f32 %v5033_v33, %v3734_v51  ;;  %v4972_v4 = vadd.f32 %v4971_v7, %v4970_v21  ;;  %v5035_v43 = vpop.f32.mrf.mxu1  ;;  %v3898_v2 = vsel %vm3866_vm8, %v3828_v0, %v3882_v6  ;;  %v6673_v33 = vld [vmem:[#allocation4_spill] sm:$0xff] }
 0x298   : > { %v4973_v45 = vpop.f32.mrf.mxu0  ;;  %v5036_v57 = vadd.f32 %v5035_v43, %v5034_v17 }
 0x299   : > { %vm3867_vm9 = vcmp.gt.f32.partialorder %v3831_v32, 0.0  ;;  %v3883_v61 = vmul.f32 0.2, %v3831_v32  ;;  %v3739_v39 = vadd.f32 %v4972_v4, %v6544_v12  ;;  %v5037_v14 = vpop.f32.mrf.mxu1  ;;  %v3556_v12 = vadd.f32 %v4853_v8, %v6474_v27 }
 0x29a   : > { %v4974_v5 = vpop.f32.mrf.mxu0  ;;  %v4859_v27 = vadd.f32 %v6564_v19, %v6559_v60  ;;  %v4923_v60 = vadd.f32 %v6570_v3, %v6562_v63 }
 0x29b   : > { %v3899_v15 = vsel %vm3867_vm9, %v3831_v32, %v3883_v61  ;;  %v3836_v49 = vadd.f32 %v5036_v57, %v3739_v39  ;;  %v4975_v54 = vadd.f32 %v4974_v5, %v4973_v45  ;;  %v5038_v42 = vpop.f32.mrf.mxu1  ;;  %v3653_v24 = vadd.f32 %v4917_v28, %v3556_v12 }
 0x29c   : > { %v4516_v11 = vpack.c.bf16 %v3899_v15, %v3898_v2  ;;  %v4976_v34 = vpop.f32.mrf.mxu0  ;;  %v5039_v38 = vadd.f32 %v5038_v42, %v5037_v14  ;;  %v4014_v2 = vld [vmem:[%s6587_s12] sm:$0xf] (%p5315_p6)  ;;  %v4016_v15 = vld [vmem:[%s6587_s12 + $0x4] sm:$0xf] (%p5315_p6)  ;;  %v4022_v42 = vld [vmem:[%s6587_s12 + $0x10] sm:$0xf] (%p5315_p6) }
 0x29d   : > { %v3742_v36 = vadd.f32 %v4975_v54, %v3645_v35  ;;  %v5040_v53 = vpop.f32.mrf.mxu1  ;;  %v3884_v56 = vmul.f32 0.2, %v3836_v49  ;;  %vm3868_vm10 = vcmp.gt.f32.partialorder %v3836_v49, 0.0  ;;  %v4020_v54 = vld [vmem:[%s6587_s12 + $0xc] sm:$0xf] (%p5315_p6)  ;;  %4015 = vst [vmem:[%s3997_s8] sm:$0xf] (%p5315_p6), %v4014_v2 }
 0x29e   : > { %4536 = vst [vmem:[%s6587_s12 + $0x20] sm:$0xff] %v4516_v11   ;;  %v4977_v58 = vpop.f32.mrf.mxu0  ;;  %4017 = vst [vmem:[%s3997_s8 + $0x8] sm:$0xf] (%p5315_p6), %v4016_v15  ;;  %v4024_v11 = vld [vmem:[%s6587_s12 + $0x14] sm:$0xf] (%p5315_p6) }
 0x29f   : > { %v3839_v16 = vadd.f32 %v5039_v38, %v3742_v36  ;;  %v4978_v20 = vadd.f32 %v4977_v58, %v4976_v34  ;;  %v5041_v13 = vpop.f32.mrf.mxu1  ;;  %v3900_v29 = vsel %vm3868_vm10, %v3836_v49, %v3884_v56  ;;  %v4018_v49 = vld [vmem:[%s6587_s12 + $0x8] sm:$0xf] (%p5315_p6)  ;;  %4021 = vst [vmem:[%s3997_s8 + $0x18] sm:$0xf] (%p5315_p6), %v4020_v54  ;;  %4023 = vst [vmem:[%s3997_s8 + $0x20] sm:$0xf] (%p5315_p6), %v4022_v42 }
 0x2a0   : > { %v4979_v62 = vpop.f32.mrf.mxu0  ;;  %v5042_v30 = vadd.f32 %v5041_v13, %v5040_v53  ;;  %4019 = vst [vmem:[%s3997_s8 + $0x10] sm:$0xf] (%p5315_p6), %v4018_v49  ;;  %v4026_v34 = vld [vmem:[%s6587_s12 + $0x18] sm:$0xf] (%p5315_p6)  ;;  %v4028_v36 = vld [vmem:[%s6587_s12 + $0x1c] sm:$0xf] (%p5315_p6) }
 0x2a1   : > { %vm3869_vm11 = vcmp.gt.f32.partialorder %v3839_v16, 0.0  ;;  %v3885_v26 = vmul.f32 0.2, %v3839_v16  ;;  %v3747_v1 = vadd.f32 %v4978_v20, %v6555_v44  ;;  %v5043_v48 = vpop.f32.mrf.mxu1  ;;  %v3564_v44 = vadd.f32 %v4859_v27, %v6480_v47  ;;  %4025 = vst [vmem:[%s3997_s8 + $0x28] sm:$0xf] (%p5315_p6), %v4024_v11 }
 0x2a2   : > { %v4980_v25 = vpop.f32.mrf.mxu0  ;;  %4027 = vst [vmem:[%s3997_s8 + $0x30] sm:$0xf] (%p5315_p6), %v4026_v34  ;;  %4029 = vst [vmem:[%s3997_s8 + $0x38] sm:$0xf] (%p5315_p6), %v4028_v36 }
 0x2a3   : > { %v3901_v31 = vsel %vm3869_vm11, %v3839_v16, %v3885_v26  ;;  %v3844_v37 = vadd.f32 %v5042_v30, %v3747_v1  ;;  %v4981_v41 = vadd.f32 %v4980_v25, %v4979_v62  ;;  %v5044_v52 = vpop.f32.mrf.mxu1  ;;  %v3661_v6 = vadd.f32 %v4923_v60, %v3564_v44 }
 0x2a4   : > { %v4521_v55 = vpack.c.bf16 %v3901_v31, %v3900_v29  ;;  %v4982_v40 = vpop.f32.mrf.mxu0  ;;  %v5045_v23 = vadd.f32 %v5044_v52, %v5043_v48 }
 0x2a5   : > { %v3750_v18 = vadd.f32 %v4981_v41, %v3653_v24  ;;  %v5046_v59 = vpop.f32.mrf.mxu1  ;;  %v3886_v46 = vmul.f32 0.2, %v3844_v37  ;;  %vm3870_vm12 = vcmp.gt.f32.partialorder %v3844_v37, 0.0  ;;  %v4030_v38 = vld [vmem:[%s6587_s12 + $0x20] sm:$0xf] (%p5315_p6) }
 0x2a6   : > { %4537 = vst [vmem:[%s6587_s12 + $0x28] sm:$0xff] %v4521_v55   ;;  %v4983_v0 = vpop.f32.mrf.mxu0  ;;  %v4032_v53 = vld [vmem:[%s6587_s12 + $0x24] sm:$0xf] (%p5315_p6)  ;;  %4031 = vst [vmem:[%s3997_s8 + $0x40] sm:$0xf] (%p5315_p6), %v4030_v38 }
 0x2a7   : > { %v3847_v22 = vadd.f32 %v5045_v23, %v3750_v18  ;;  %v4984_v50 = vadd.f32 %v4983_v0, %v4982_v40  ;;  %v5047_v21 = vpop.f32.mrf.mxu1  ;;  %v3902_v32 = vsel %vm3870_vm12, %v3844_v37, %v3886_v46  ;;  %4033 = vst [vmem:[%s3997_s8 + $0x48] sm:$0xf] (%p5315_p6), %v4032_v53 }
 0x2a8   : > { %v4985_v19 = vpop.f32.mrf.mxu0  ;;  %v5048_v10 = vadd.f32 %v5047_v21, %v5046_v59 }
 0x2a9   : > { %vm3871_vm13 = vcmp.gt.f32.partialorder %v3847_v22, 0.0  ;;  %v3887_v51 = vmul.f32 0.2, %v3847_v22  ;;  %v3755_v17 = vadd.f32 %v4984_v50, %v6673_v33  ;;  %v5049_v7 = vpop.f32.mrf.mxu1 }
 0x2aa   : > { %v4986_v47 = vpop.f32.mrf.mxu0 }
 0x2ab   : > { %v3903_v4 = vsel %vm3871_vm13, %v3847_v22, %v3887_v51  ;;  %v3852_v43 = vadd.f32 %v5048_v10, %v3755_v17  ;;  %v4987_v9 = vadd.f32 %v4986_v47, %v4985_v19  ;;  %v5050_v45 = vpop.f32.mrf.mxu1 }
 0x2ac   : > { %v4526_v61 = vpack.c.bf16 %v3903_v4, %v3902_v32  ;;  %v5051_v63 = vadd.f32 %v5050_v45, %v5049_v7 }
 0x2ad   : > { %v3758_v39 = vadd.f32 %v4987_v9, %v3661_v6  ;;  %v3888_v3 = vmul.f32 0.2, %v3852_v43  ;;  %vm3872_vm14 = vcmp.gt.f32.partialorder %v3852_v43, 0.0  ;;  %v4034_v12 = vld [vmem:[%s6587_s12 + $0x28] sm:$0xf] (%p5315_p6) }
 0x2ae   : > { %4538 = vst [vmem:[%s6587_s12 + $0x30] sm:$0xff] %v4526_v61   ;;  %4035 = vst [vmem:[%s3997_s8 + $0x50] sm:$0xf] (%p5315_p6), %v4034_v12  ;;  %v4036_v58 = vld [vmem:[%s6587_s12 + $0x2c] sm:$0xf] (%p5315_p6) }
 0x2af   : > { %v3855_v57 = vadd.f32 %v5051_v63, %v3758_v39  ;;  %v3904_v35 = vsel %vm3872_vm14, %v3852_v43, %v3888_v3  ;;  %4037 = vst [vmem:[%s3997_s8 + $0x58] sm:$0xf] (%p5315_p6), %v4036_v58 }
 0x2b1   : > { %vm3873_vm15 = vcmp.gt.f32.partialorder %v3855_v57, 0.0  ;;  %v3889_v14 = vmul.f32 0.2, %v3855_v57 }
 0x2b2   : > { %3992 = sbr.rel (!%p5315_p6) target bundleno = 703 (0x2bf), region = 77 }
 0x2b3   : > { %v3905_v8 = vsel %vm3873_vm15, %v3855_v57, %v3889_v14 }
 0x2b4   : > { %v4531_v5 = vpack.c.bf16 %v3905_v8, %v3904_v35 }
 0x2b5   : > { %v4038_v56 = vld [vmem:[%s6587_s12 + $0x30] sm:$0xf] (%p5315_p6)  ;;  %v4040_v16 = vld [vmem:[%s6587_s12 + $0x34] sm:$0xf] (%p5315_p6) }
 0x2b6   : > { %4539 = vst [vmem:[%s6587_s12 + $0x38] sm:$0xff] %v4531_v5   ;;  %4039 = vst [vmem:[%s3997_s8 + $0x60] sm:$0xf] (%p5315_p6), %v4038_v56 }
 0x2b7   : > { %4041 = vst [vmem:[%s3997_s8 + $0x68] sm:$0xf] %v4040_v16 }
 0x2bd   : > { %v4042_v20 = vld [vmem:[%s6587_s12 + $0x38] sm:$0xf]  ;;  %v4044_v13 = vld [vmem:[%s6587_s12 + $0x3c] sm:$0xf] }
 0x2be   : > { %4043 = vst [vmem:[%s3997_s8 + $0x70] sm:$0xf] %v4042_v20  ;;  %4045 = vst [vmem:[%s3997_s8 + $0x78] sm:$0xf] %v4044_v13 }
 0x2bf PF: > { %s13_s16 = sadd.s32 1, %s5258_s16   ;;  %s6674_s12 = smov %s5246_s13 }
 0x2c0   : > { %p10_p12 = scmp.ge.s32.totalorder %s13_s16, 4   ;;  %s6675_s13 = smov %s5320_s22 }
 0x2c1   : > { %s6676_s14 = smov %s5254_s15  ;;  %s6677_s15 = smov %s6679_s17 }
 0x2c2   :  { %12 = sbr.rel (!%p10_p12) target bundleno = 3 (0x3), region = 155 }

// kernel: discriminator_forward.9
= control target key start
LH: loop header
LB: loop body
LE: loop exit
PB: predicated region body
PF: predicated region fallthrough
CT: control target
= control target key end

     0   :  { %v75_v0 = vlaneseq  ;;  %v1518_v10 = vmov 1983009808   ;;  %vm1371_vm0 = vcmask 1041408   ;;  %vm1507_vm1 = vcmask 1024   ;;  %s2499_s1 = inlined_call_operand.vmem [shape: bf16[1,8192], index: 1, kind: input, shape index: {}]   ;;  %s2500_s0 = inlined_call_operand.vmem [shape: bf16[2,8192], index: 0, kind: input, shape index: {}]   ;;  %s2501_s2 = inlined_call_operand.vmem [shape: f32[2,1], index: 2, kind: output, shape index: {}]  }
   0x1   :  { %v39_v1 = vld [vmem:[%s2499_s1 + $0x20] sm:$0xff]  ;;  %v40_v2 = vld [vmem:[%s2499_s1 + $0x28] sm:$0xff]  ;;  %v41_v4 = vld [vmem:[%s2499_s1 + $0x30] sm:$0xff]  ;;  %v1556_v11 = vunpack.c.l.s4 %v1518_v10 }
   0x2   :  { %v1540_v3 = vshrl.u32 %v75_v0, 7  ;;  %v42_v5 = vld [vmem:[%s2499_s1 + $0x38] sm:$0xff]  ;;  %v1548_v6 = vunpack.c.l.bf16 %v39_v1  ;;  %v1550_v7 = vunpack.c.h.bf16 %v39_v1  ;;  %v1552_v8 = vunpack.c.l.bf16 %v40_v2  ;;  %v1637_v48 = vld [vmem:[%s2500_s0] sm:$0xff]  ;;  %v1642_v49 = vld [vmem:[%s2500_s0 + $0x8] sm:$0xff] }
   0x3   :  { %v1554_v9 = vunpack.c.h.bf16 %v40_v2  ;;  %v1570_v16 = vunpack.c.l.bf16 %v41_v4  ;;  %v1572_v17 = vunpack.c.h.bf16 %v41_v4  ;;  %v1574_v18 = vunpack.c.l.bf16 %v42_v5  ;;  %2522 = vst [vmem:[#allocation4_spill] sm:$0xff] %v1637_v48  ;;  %2523 = vst [vmem:[#allocation5_spill] sm:$0xff] %v1642_v49  ;;  %v1655_v54 = vld [vmem:[%s2500_s0 + $0x20] sm:$0xff]  ;;  %v1663_v56 = vld [vmem:[%s2500_s0 + $0x28] sm:$0xff] }
   0x4   :  { %v1559_v12 = vsub.s32 0, %v1540_v3  ;;  %v1562_v13 = vsub.s32 2, %v1540_v3  ;;  %v1565_v14 = vsub.s32 4, %v1540_v3  ;;  %v1568_v15 = vsub.s32 6, %v1540_v3  ;;  %v35_v55 = vld [vmem:[%s2499_s1] sm:$0xff]  ;;  %v1668_v57 = vld [vmem:[%s2500_s0 + $0x30] sm:$0xff] }
   0x5   :  { %v1576_v19 = vunpack.c.h.bf16 %v42_v5  ;;  %2524 = vst [vmem:[#allocation6_spill] sm:$0xff] %v1668_v57  ;;  %v1673_v58 = vld [vmem:[%s2500_s0 + $0x38] sm:$0xff]  ;;  %v36_v0 = vld [vmem:[%s2499_s1 + $0x8] sm:$0xff]  ;;  %v37_v1 = vld [vmem:[%s2499_s1 + $0x10] sm:$0xff]  ;;  %v1686_v2 = vunpack.c.l.bf16 %v35_v55  ;;  %v719_v4 = vunpack.c.0.s8 %v1556_v11  ;;  %v1701_v11 = vunpack.c.h.bf16 %v35_v55 }
   0x6   :  { %2520 = vst [vmem:[#allocation2_spill] sm:$0xff] %v1562_v13  ;;  %2521 = vst [vmem:[#allocation3_spill] sm:$0xff] %v1565_v14  ;;  %v206_v20 = vrot.slane %v1548_v6, %v1559_v12  ;;  %v210_v21 = vrot.slane %v1548_v6, %v1562_v13  ;;  %v214_v22 = vrot.slane %v1548_v6, %v1565_v14  ;;  %v1696_v60 = vld [vmem:[%s2499_s1 + $0x18] sm:$0xff]  ;;  %v1703_v5 = vunpack.c.l.bf16 %v36_v0 }
   0x7   :  { %v218_v23 = vrot.slane %v1548_v6, %v1568_v15  ;;  %v222_v24 = vrot.slane %v1550_v7, %v1559_v12  ;;  %v226_v25 = vrot.slane %v1550_v7, %v1562_v13  ;;  %v230_v26 = vrot.slane %v1550_v7, %v1565_v14  ;;  %2525 = vst [vmem:[#allocation7_spill] sm:$0xff] %v1673_v58 }
   0x8   :  { %v234_v27 = vrot.slane %v1550_v7, %v1568_v15  ;;  %v238_v28 = vrot.slane %v1552_v8, %v1559_v12  ;;  %v242_v29 = vrot.slane %v1552_v8, %v1562_v13  ;;  %v246_v30 = vrot.slane %v1552_v8, %v1565_v14  ;;  %2526 = vst [vmem:[#allocation8_spill] sm:$0xff] %v1696_v60 }
   0x9   :  { %v250_v31 = vrot.slane %v1552_v8, %v1568_v15  ;;  %v254_v32 = vrot.slane %v1554_v9, %v1559_v12  ;;  %v258_v33 = vrot.slane %v1554_v9, %v1562_v13  ;;  %v262_v34 = vrot.slane %v1554_v9, %v1565_v14 }
   0xa   :  { %v266_v35 = vrot.slane %v1554_v9, %v1568_v15  ;;  %v270_v36 = vrot.slane %v1570_v16, %v1559_v12  ;;  %v274_v37 = vrot.slane %v1570_v16, %v1562_v13  ;;  %v278_v38 = vrot.slane %v1570_v16, %v1565_v14 }
   0xb   :  { %v282_v39 = vrot.slane %v1570_v16, %v1568_v15  ;;  %v286_v40 = vrot.slane %v1572_v17, %v1559_v12  ;;  %v290_v41 = vrot.slane %v1572_v17, %v1562_v13  ;;  %v294_v42 = vrot.slane %v1572_v17, %v1565_v14 }
   0xc   :  { %v298_v43 = vrot.slane %v1572_v17, %v1568_v15  ;;  %v302_v44 = vrot.slane %v1574_v18, %v1559_v12  ;;  %v306_v45 = vrot.slane %v1574_v18, %v1562_v13  ;;  %v310_v46 = vrot.slane %v1574_v18, %v1565_v14 }
   0xd   :  { %v314_v47 = vrot.slane %v1574_v18, %v1568_v15  ;;  %v318_v50 = vrot.slane %v1576_v19, %v1559_v12  ;;  %v322_v51 = vrot.slane %v1576_v19, %v1562_v13  ;;  %v1705_v10 = vunpack.c.h.bf16 %v36_v0 }
   0xe   :  { %v1707_v62 = vunpack.c.l.bf16 %v37_v1  ;;  %v1709_v61 = vunpack.c.h.bf16 %v37_v1  ;;  %v1712_v52 = vunpack.c.l.bf16 %v1696_v60  ;;  %v78_v59 = vrot.slane %v1686_v2, %v1559_v12 }
   0xf   :  { %v82_v63 = vrot.slane %v1686_v2, %v1562_v13  ;;  %v1719_v55 = vsub.s32 %v719_v4, %v1540_v3  ;;  %v1725_v0 = vrot.slane %v206_v20, %v1559_v12  ;;  %v1731_v1 = vrot.slane %v210_v21, %v1559_v12 }
  0x10   :  { %2527 = vst [vmem:[#allocation9_spill] sm:$0xff] %v1709_v61  ;;  %2528 = vst [vmem:[#allocation10_spill] sm:$0xff] %v1712_v52  ;;  %v1737_v53 = vrot.slane %v214_v22, %v1559_v12  ;;  %v1743_v3 = vrot.slane %v218_v23, %v1559_v12  ;;  %v1749_v20 = vrot.slane %v222_v24, %v1559_v12 }
  0x11   :  { %2529 = vst [vmem:[#allocation11_spill] sm:$0xff] %v1719_v55  ;;  %v1755_v21 = vrot.slane %v226_v25, %v1559_v12  ;;  %v1761_v22 = vrot.slane %v230_v26, %v1559_v12  ;;  %v1767_v6 = vrot.slane %v234_v27, %v1559_v12  ;;  %v1773_v23 = vrot.slane %v238_v28, %v1559_v12 }
  0x12   :  { %v1779_v24 = vrot.slane %v242_v29, %v1559_v12  ;;  %v1785_v25 = vrot.slane %v246_v30, %v1559_v12  ;;  %v1791_v7 = vrot.slane %v250_v31, %v1559_v12  ;;  %v1797_v26 = vrot.slane %v254_v32, %v1559_v12 }
  0x13   :  { %v1803_v27 = vrot.slane %v258_v33, %v1559_v12  ;;  %v1809_v28 = vrot.slane %v262_v34, %v1559_v12  ;;  %v1815_v8 = vrot.slane %v266_v35, %v1559_v12  ;;  %v1821_v29 = vrot.slane %v270_v36, %v1559_v12 }
  0x14   :  { %v1827_v30 = vrot.slane %v274_v37, %v1559_v12  ;;  %v1833_v31 = vrot.slane %v278_v38, %v1559_v12  ;;  %v1839_v9 = vrot.slane %v282_v39, %v1559_v12  ;;  %v1845_v32 = vrot.slane %v286_v40, %v1559_v12 }
  0x15   :  { %v1851_v33 = vrot.slane %v290_v41, %v1559_v12  ;;  %v1857_v34 = vrot.slane %v294_v42, %v1559_v12  ;;  %v1863_v16 = vrot.slane %v298_v43, %v1559_v12  ;;  %v1869_v35 = vrot.slane %v302_v44, %v1559_v12 }
  0x16   :  { %v1875_v36 = vrot.slane %v306_v45, %v1559_v12  ;;  %v1881_v37 = vrot.slane %v310_v46, %v1559_v12  ;;  %v1887_v17 = vrot.slane %v314_v47, %v1559_v12  ;;  %v1893_v38 = vrot.slane %v318_v50, %v1559_v12 }
  0x17   :  { %v1899_v39 = vrot.slane %v322_v51, %v1559_v12  ;;  %v2530_v40 = vrot.slane %v1576_v19, %v1565_v14  ;;  %v2531_v18 = vrot.slane %v1576_v19, %v1568_v15  ;;  %v86_v43 = vrot.slane %v1686_v2, %v1565_v14 }
  0x18   :  { %v90_v44 = vrot.slane %v1686_v2, %v1568_v15  ;;  %v94_v45 = vrot.slane %v1701_v11, %v1559_v12  ;;  %v98_v46 = vrot.slane %v1701_v11, %v1562_v13  ;;  %v102_v47 = vrot.slane %v1701_v11, %v1565_v14 }
  0x19   :  { %v1905_v41 = vrot.slane %v2530_v40, %v1559_v12  ;;  %v1911_v42 = vrot.slane %v2531_v18, %v1559_v12  ;;  %v106_v19 = vrot.slane %v1701_v11, %v1568_v15  ;;  %v110_v50 = vrot.slane %v1703_v5, %v1559_v12 }
  0x1a   :  { %v114_v51 = vrot.slane %v1703_v5, %v1562_v13  ;;  %v118_v2 = vrot.slane %v1703_v5, %v1565_v14  ;;  %v122_v4 = vrot.slane %v1703_v5, %v1568_v15  ;;  %v126_v40 = vrot.slane %v1705_v10, %v1559_v12 }
  0x1b   :  { %v130_v18 = vrot.slane %v1705_v10, %v1562_v13  ;;  %v134_v11 = vrot.slane %v1705_v10, %v1565_v14  ;;  %v138_v49 = vrot.slane %v1705_v10, %v1568_v15  ;;  %v142_v48 = vrot.slane %v1707_v62, %v1559_v12 }
  0x1c   :  { %v146_v60 = vrot.slane %v1707_v62, %v1562_v13  ;;  %v150_v5 = vrot.slane %v1707_v62, %v1565_v14  ;;  %v154_v52 = vrot.slane %v1707_v62, %v1568_v15  ;;  %v1950_v61 = vrot.slane %v78_v59, %v1559_v12 }
  0x1d   :  { %v1953_v58 = vrot.slane %v82_v63, %v1559_v12  ;;  %v1956_v10 = vrot.slane %v86_v43, %v1559_v12  ;;  %v1959_v57 = vrot.slane %v90_v44, %v1559_v12  ;;  %v1962_v13 = vrot.slane %v94_v45, %v1559_v12 }
  0x1e   :  { %v1965_v14 = vrot.slane %v98_v46, %v1559_v12  ;;  %v1968_v62 = vrot.slane %v102_v47, %v1559_v12  ;;  %v1971_v59 = vrot.slane %v106_v19, %v1559_v12  ;;  %v1974_v63 = vrot.slane %v110_v50, %v1559_v12 }
  0x1f   :  { %v1977_v43 = vrot.slane %v114_v51, %v1559_v12  ;;  %v1980_v44 = vrot.slane %v118_v2, %v1559_v12  ;;  %v1983_v45 = vrot.slane %v122_v4, %v1559_v12  ;;  %v1986_v46 = vrot.slane %v126_v40, %v1559_v12 }
  0x20   :  { %v1989_v47 = vrot.slane %v130_v18, %v1559_v12  ;;  %v1992_v19 = vrot.slane %v134_v11, %v1559_v12  ;;  %v1995_v50 = vrot.slane %v138_v49, %v1559_v12  ;;  %v1998_v51 = vrot.slane %v142_v48, %v1559_v12 }
  0x21   :  { %v851_v2 = vcombine.low %v1725_v0, %v1731_v1  ;;  %v2003_v4 = vrot.slane %v146_v60, %v1559_v12  ;;  %v2006_v40 = vrot.slane %v150_v5, %v1559_v12  ;;  %v2009_v18 = vrot.slane %v154_v52, %v1559_v12 }
  0x22   :  { %v852_v11 = vcombine.low %v1737_v53, %v1743_v3  ;;  %v715_v49 = vcombine.low %v1950_v61, %v1953_v58  ;;  %v868_v0 = vcombine.low %v1749_v20, %v1755_v21  ;;  %v869_v60 = vcombine.low %v1761_v22, %v1767_v6 }
  0x23   :  { %v859_v48 = vrot.slane %v851_v2, %v1719_v55  ;;  %v716_v1 = vcombine.low %v1956_v10, %v1959_v57  ;;  %v885_v5 = vcombine.low %v1773_v23, %v1779_v24  ;;  %v886_v53 = vcombine.low %v1785_v25, %v1791_v7 }
  0x24   :  { %v866_v52 = vrot.slane %v852_v11, %v1719_v55  ;;  %v876_v58 = vrot.slane %v868_v0, %v1719_v55  ;;  %v883_v61 = vrot.slane %v869_v60, %v1719_v55  ;;  %v902_v3 = vcombine.low %v1797_v26, %v1803_v27 }
  0x25   :  { %v903_v20 = vcombine.low %v1809_v28, %v1815_v8  ;;  %v893_v57 = vrot.slane %v885_v5, %v1719_v55  ;;  %v900_v22 = vrot.slane %v886_v53, %v1719_v55  ;;  %v919_v6 = vcombine.low %v1821_v29, %v1827_v30  ;;  %v2539_v5 = vld [vmem:[#allocation7_spill] sm:$0xff] }
  0x26   :  { %v867_v21 = vcombine.low %v859_v48, %v866_v52  ;;  %v884_v23 = vcombine.low %v876_v58, %v883_v61  ;;  %v910_v24 = vrot.slane %v902_v3, %v1719_v55  ;;  %v920_v7 = vcombine.low %v1833_v31, %v1839_v9 }
  0x27   :  { %v917_v25 = vrot.slane %v903_v20, %v1719_v55  ;;  %v901_v26 = vcombine.low %v893_v57, %v900_v22  ;;  %v927_v27 = vrot.slane %v919_v6, %v1719_v55  ;;  %v936_v28 = vcombine.low %v1845_v32, %v1851_v33  ;;  %v2543_v20 = vld [vmem:[#allocation2_spill] sm:$0xff]  ;;  %v2544_v6 = vld [vmem:[#allocation3_spill] sm:$0xff] }
  0x28   :  { %v937_v8 = vcombine.low %v1857_v34, %v1863_v16  ;;  %v934_v29 = vrot.slane %v920_v7, %v1719_v55  ;;  %v953_v30 = vcombine.low %v1869_v35, %v1875_v36  ;;  %v954_v2 = vcombine.low %v1881_v37, %v1887_v17 }
  0x29   :  { %v918_v10 = vcombine.low %v910_v24, %v917_v25  ;;  %v944_v31 = vrot.slane %v936_v28, %v1719_v55  ;;  %v970_v11 = vcombine.low %v1893_v38, %v1899_v39  ;;  %v971_v32 = vcombine.low %v1905_v41, %v1911_v42 }
  0x2a   :  { %v951_v9 = vrot.slane %v937_v8, %v1719_v55  ;;  %v732_v33 = vcombine.low %v1962_v13, %v1965_v14  ;;  %v935_v34 = vcombine.low %v927_v27, %v934_v29  ;;  %v961_v16 = vrot.slane %v953_v30, %v1719_v55  ;;  %v2124_v29 = vld [vmem:[%s2500_s0 + $0x10] sm:$0xff] }
  0x2b   :  { %v968_v35 = vrot.slane %v954_v2, %v1719_v55  ;;  %v733_v36 = vcombine.low %v1968_v62, %v1971_v59  ;;  %v978_v17 = vrot.slane %v970_v11, %v1719_v55  ;;  %v985_v48 = vrot.slane %v971_v32, %v1719_v55 }
  0x2c   :  { %v952_v37 = vcombine.low %v944_v31, %v951_v9  ;;  %v749_v38 = vcombine.low %v1974_v63, %v1977_v43  ;;  %v750_v39 = vcombine.low %v1980_v44, %v1983_v45  ;;  %v766_v13 = vcombine.low %v1986_v46, %v1989_v47 }
  0x2d   :  { %v969_v14 = vcombine.low %v961_v16, %v968_v35  ;;  %v723_v41 = vrot.slane %v715_v49, %v1719_v55  ;;  %v730_v42 = vrot.slane %v716_v1, %v1719_v55  ;;  %v767_v62 = vcombine.low %v1992_v19, %v1995_v50  ;;  %v2536_v49 = vld [vmem:[#allocation6_spill] sm:$0xff]  ;;  %v2546_v35 = vld [vmem:[#allocation8_spill] sm:$0xff] }
  0x2e   :  { %v986_v59 = vcombine.low %v978_v17, %v985_v48  ;;  %v2532_v0 = vunpack.c.l.bf16 %v1655_v54  ;;  %v2533_v63 = vunpack.c.h.bf16 %v1655_v54  ;;  %v2534_v44 = vunpack.c.l.bf16 %v1663_v56 }
  0x2f   :  { %v2535_v46 = vunpack.c.h.bf16 %v1663_v56  ;;  %v2537_v52 = vunpack.c.l.bf16 %v2536_v49  ;;  %v2538_v19 = vunpack.c.h.bf16 %v2536_v49  ;;  %v2540_v53 = vunpack.c.l.bf16 %v2539_v5  ;;  %v2542_v56 = vld [vmem:[#allocation9_spill] sm:$0xff] }
  0x30   :  { %v1011_v60 = vmul.f32 %v867_v21, %v2532_v0  ;;  %v1012_v43 = vmul.f32 %v884_v23, %v2533_v63  ;;  %v1013_v45 = vmul.f32 %v901_v26, %v2534_v44  ;;  %v2541_v54 = vunpack.c.h.bf16 %v2539_v5  ;;  %v2545_v26 = vld [vmem:[#allocation10_spill] sm:$0xff] }
  0x31   :  { %v2083_v47 = vmul.f32 %v918_v10, %v2535_v46  ;;  %v2087_v1 = vmul.f32 %v935_v34, %v2537_v52  ;;  %v2091_v50 = vmul.f32 %v952_v37, %v2538_v19  ;;  %v2095_v58 = vmul.f32 %v969_v14, %v2540_v53  ;;  %v2551_v19 = vld [vmem:[#allocation5_spill] sm:$0xff] }
  0x32   :  { %v2099_v61 = vmul.f32 %v986_v59, %v2541_v54  ;;  %v158_v3 = vrot.slane %v2542_v56, %v1559_v12  ;;  %v162_v21 = vrot.slane %v2542_v56, %v2543_v20  ;;  %v740_v57 = vrot.slane %v732_v33, %v1719_v55 }
  0x33   :  { %v747_v22 = vrot.slane %v733_v36, %v1719_v55  ;;  %v166_v23 = vrot.slane %v2542_v56, %v2544_v6  ;;  %v170_v24 = vrot.slane %v2542_v56, %v1568_v15  ;;  %v783_v25 = vcombine.low %v1998_v51, %v2003_v4 }
  0x34   :  { %v784_v7 = vcombine.low %v2006_v40, %v2009_v18  ;;  %v174_v27 = vrot.slane %v2545_v26, %v1559_v12  ;;  %v178_v28 = vrot.slane %v2545_v26, %v2543_v20  ;;  %v757_v8 = vrot.slane %v749_v38, %v1719_v55 }
  0x35   :  { %v764_v10 = vrot.slane %v750_v39, %v1719_v55  ;;  %v182_v51 = vrot.slane %v2545_v26, %v2544_v6  ;;  %v731_v4 = vcombine.low %v723_v41, %v730_v42  ;;  %v774_v40 = vrot.slane %v766_v13, %v1719_v55  ;;  %v2547_v13 = vld [vmem:[#allocation4_spill] sm:$0xff] }
  0x36   :  { %v781_v18 = vrot.slane %v767_v62, %v1719_v55  ;;  %v186_v30 = vrot.slane %v2545_v26, %v1568_v15  ;;  %v478_v2 = vrot.slane %v158_v3, %v1559_v12  ;;  %v482_v31 = vrot.slane %v162_v21, %v1559_v12 }
  0x37   :  { %v748_v9 = vcombine.low %v740_v57, %v747_v22  ;;  %v486_v11 = vrot.slane %v166_v23, %v1559_v12  ;;  %v490_v32 = vrot.slane %v170_v24, %v1559_v12  ;;  %v791_v33 = vrot.slane %v783_v25, %v1719_v55 }
  0x38   :  { %v798_v34 = vrot.slane %v784_v7, %v1719_v55  ;;  %v23_v16 = vunpack.c.l.bf16 %v2124_v29  ;;  %v2140_v36 = vunpack.c.h.bf16 %v2546_v35  ;;  %v2143_v37 = vrot.slane %v174_v27, %v1559_v12 }
  0x39   :  { %v765_v17 = vcombine.low %v757_v8, %v764_v10  ;;  %v2146_v48 = vrot.slane %v178_v28, %v1559_v12  ;;  %v2149_v38 = vrot.slane %v182_v51, %v1559_v12  ;;  %v782_v39 = vcombine.low %v774_v40, %v781_v18 }
  0x3a   :  { %v2548_v14 = vunpack.c.l.bf16 %v2547_v13  ;;  %v2154_v42 = vrot.slane %v186_v30, %v1559_v12  ;;  %v800_v62 = vcombine.low %v478_v2, %v482_v31  ;;  %v2549_v59 = vunpack.c.h.bf16 %v2547_v13 }
  0x3b   :  { %v1171_v63 = vcombine.high %v1011_v60, %v1011_v60  ;;  %v799_v44 = vcombine.low %v791_v33, %v798_v34  ;;  %v801_v46 = vcombine.low %v486_v11, %v490_v32  ;;  %v2159_v52 = vrot.slane %v1011_v60, %v1719_v55 }
  0x3c   :  { %v1003_v41 = vmul.f32 %v731_v4, %v2548_v14  ;;  %v1004_v0 = vmul.f32 %v748_v9, %v2549_v59  ;;  %v2552_v5 = vunpack.c.l.bf16 %v2551_v19  ;;  %v1188_v56 = vcombine.high %v1012_v43, %v1012_v43 }
  0x3d   :  { %2550 = vst [vmem:[#allocation6_spill] sm:$0xff] %v2159_v52  ;;  %v2164_v54 = vrot.slane %v1171_v63, %v1719_v55  ;;  %v2167_v3 = vrot.slane %v1012_v43, %v1719_v55  ;;  %v2553_v21 = vunpack.c.h.bf16 %v2551_v19  ;;  %v1205_v23 = vcombine.high %v1013_v45, %v1013_v45 }
  0x3e   :  { %v1035_v49 = vcombine.high %v1003_v41, %v1003_v41  ;;  %v1005_v53 = vmul.f32 %v765_v17, %v2552_v5  ;;  %v1042_v22 = vrot.slane %v1003_v41, %v1719_v55  ;;  %v2173_v24 = vrot.slane %v1013_v45, %v1719_v55 }
  0x3f   :  { %v1006_v57 = vmul.f32 %v782_v39, %v2553_v21  ;;  %v1052_v60 = vcombine.high %v1004_v0, %v1004_v0  ;;  %v1059_v25 = vrot.slane %v1004_v0, %v1719_v55  ;;  %v2177_v7 = vrot.slane %v1188_v56, %v1719_v55 }
  0x40   :  { %v1222_v26 = vcombine.high %v2083_v47, %v2083_v47  ;;  %v1049_v43 = vrot.slane %v1035_v49, %v1719_v55  ;;  %v2183_v27 = vrot.slane %v1205_v23, %v1719_v55  ;;  %v2187_v28 = vrot.slane %v2083_v47, %v1719_v55 }
  0x41   :  { %v1239_v45 = vcombine.high %v2087_v1, %v2087_v1  ;;  %v1069_v8 = vcombine.high %v1005_v53, %v1005_v53  ;;  %v2196_v51 = vrot.slane %v2087_v1, %v1719_v55  ;;  %v1256_v4 = vcombine.high %v2091_v50, %v2091_v50 }
  0x42   :  { %v2192_v10 = vrot.slane %v1222_v26, %v1719_v55  ;;  %v1050_v40 = vcombine.high %v1042_v22, %v1042_v22  ;;  %v1076_v18 = vrot.slane %v1005_v53, %v1719_v55  ;;  %v2206_v30 = vrot.slane %v2091_v50, %v1719_v55 }
  0x43   :  { %v2202_v47 = vrot.slane %v1239_v45, %v1719_v55  ;;  %v1086_v2 = vcombine.high %v1006_v57, %v1006_v57  ;;  %v2209_v31 = vrot.slane %v1006_v57, %v1719_v55  ;;  %v2212_v1 = vrot.slane %v1256_v4, %v1719_v55 }
  0x44   :  { %v1273_v9 = vcombine.high %v2095_v58, %v2095_v58  ;;  %v1051_v11 = vcombine.high %v1049_v43, %v1049_v43  ;;  %v1066_v32 = vrot.slane %v1052_v60, %v1719_v55  ;;  %v2219_v33 = vrot.slane %v2095_v58, %v1719_v55 }
  0x45   :  { %v1290_v50 = vcombine.high %v2099_v61, %v2099_v61  ;;  %v1083_v34 = vrot.slane %v1069_v8, %v1719_v55  ;;  %v2229_v17 = vrot.slane %v2099_v61, %v1719_v55  ;;  %v1372_v39 = vsel %vm1371_vm0, %v1042_v22, 0.0 }
  0x46   :  { %v2225_v35 = vrot.slane %v1273_v9, %v1719_v55  ;;  %v2233_v13 = vrot.slane %v800_v62, %v1719_v55  ;;  %v1373_v14 = vsel %vm1371_vm0, %v1050_v40, 0.0  ;;  %v1375_v41 = vsel %vm1371_vm0, %v1049_v43, 0.0 }
  0x47   :  { %v2236_v58 = vrot.slane %v1290_v50, %v1719_v55  ;;  %v2241_v59 = vrot.slane %v801_v46, %v1719_v55  ;;  %v2243_v0 = vmul.f32 %v799_v44, %v23_v16  ;;  %v1067_v63 = vcombine.high %v1059_v25, %v1059_v25 }
  0x48   :  { %v1374_v61 = vadd.f32 %v1373_v14, %v1372_v39  ;;  %v1084_v49 = vcombine.high %v1076_v18, %v1076_v18  ;;  %v2246_v19 = vrot.slane %v1086_v2, %v1719_v55  ;;  %v1377_v5 = vsel %vm1371_vm0, %v1051_v11, 0.0 }
  0x49   :  { %v1068_v53 = vcombine.high %v1066_v32, %v1066_v32  ;;  %v1085_v56 = vcombine.high %v1083_v34, %v1083_v34  ;;  %v1186_v21 = vcombine.high %v2159_v52, %v2159_v52  ;;  %v1187_v16 = vcombine.high %v2164_v54, %v2164_v54 }
  0x4a   :  { %v1376_v46 = vadd.f32 %v1375_v41, %v1374_v61  ;;  %v1203_v44 = vcombine.high %v2167_v3, %v2167_v3  ;;  %v1220_v57 = vcombine.high %v2173_v24, %v2173_v24  ;;  %v1379_v22 = vsel %vm1371_vm0, %v1059_v25, 0.0 }
  0x4b   :  { %v1204_v23 = vcombine.high %v2177_v7, %v2177_v7  ;;  %v1221_v60 = vcombine.high %v2183_v27, %v2183_v27  ;;  %v1237_v26 = vcombine.high %v2187_v28, %v2187_v28  ;;  %v1238_v45 = vcombine.high %v2192_v10, %v2192_v10 }
  0x4c   :  { %v1378_v43 = vadd.f32 %v1377_v5, %v1376_v46  ;;  %v1254_v8 = vcombine.high %v2196_v51, %v2196_v51  ;;  %v1255_v4 = vcombine.high %v2202_v47, %v2202_v47  ;;  %v1381_v25 = vsel %vm1371_vm0, %v1067_v63, 0.0 }
  0x4d   :  { %v1271_v40 = vcombine.high %v2206_v30, %v2206_v30  ;;  %v1272_v2 = vcombine.high %v2212_v1, %v2212_v1  ;;  %v1288_v9 = vcombine.high %v2219_v33, %v2219_v33  ;;  %v1289_v50 = vcombine.high %v2225_v35, %v2225_v35 }
  0x4e   :  { %v1380_v11 = vadd.f32 %v1379_v22, %v1378_v43  ;;  %v1305_v39 = vcombine.high %v2229_v17, %v2229_v17  ;;  %v1306_v14 = vcombine.high %v2236_v58, %v2236_v58  ;;  %v1383_v41 = vsel %vm1371_vm0, %v1066_v32, 0.0 }
  0x4f   :  { %v1385_v61 = vsel %vm1371_vm0, %v1068_v53, 0.0  ;;  %v1387_v5 = vsel %vm1371_vm0, %v1076_v18, 0.0  ;;  %v1389_v46 = vsel %vm1371_vm0, %v1084_v49, 0.0  ;;  %v1391_v22 = vsel %vm1371_vm0, %v1083_v34, 0.0 }
  0x50   :  { %v1382_v63 = vadd.f32 %v1381_v25, %v1380_v11  ;;  %v1393_v43 = vsel %vm1371_vm0, %v1085_v56, 0.0  ;;  %v2292_v62 = vsel %vm1371_vm0, %v1186_v21, 0.0  ;;  %v2296_v52 = vsel %vm1371_vm0, %v2164_v54, 0.0 }
  0x51   :  { %v2299_v32 = vsel %vm1371_vm0, %v1187_v16, 0.0  ;;  %v2303_v18 = vsel %vm1371_vm0, %v2167_v3, 0.0  ;;  %v2306_v49 = vsel %vm1371_vm0, %v1203_v44, 0.0  ;;  %v2310_v34 = vsel %vm1371_vm0, %v2177_v7, 0.0 }
  0x52   :  { %v1384_v55 = vadd.f32 %v1383_v41, %v1382_v63  ;;  %v2313_v53 = vsel %vm1371_vm0, %v1204_v23, 0.0  ;;  %v2317_v54 = vsel %vm1371_vm0, %v2173_v24, 0.0  ;;  %v2320_v56 = vsel %vm1371_vm0, %v1220_v57, 0.0 }
  0x53   :  { %v2324_v3 = vsel %vm1371_vm0, %v2183_v27, 0.0  ;;  %v2327_v16 = vsel %vm1371_vm0, %v1221_v60, 0.0  ;;  %v2331_v7 = vsel %vm1371_vm0, %v2187_v28, 0.0  ;;  %v2334_v44 = vsel %vm1371_vm0, %v1237_v26, 0.0 }
  0x54   :  { %v1386_v21 = vadd.f32 %v1385_v61, %v1384_v55  ;;  %v2338_v24 = vsel %vm1371_vm0, %v2192_v10, 0.0  ;;  %v2341_v55 = vsel %vm1371_vm0, %v1238_v45, 0.0  ;;  %v2345_v27 = vsel %vm1371_vm0, %v2196_v51, 0.0 }
  0x55   :  { %v2348_v23 = vsel %vm1371_vm0, %v1254_v8, 0.0  ;;  %v2352_v28 = vsel %vm1371_vm0, %v2202_v47, 0.0  ;;  %v2355_v60 = vsel %vm1371_vm0, %v1255_v4, 0.0  ;;  %v2359_v10 = vsel %vm1371_vm0, %v2206_v30, 0.0 }
  0x56   :  { %v1388_v57 = vadd.f32 %v1387_v5, %v1386_v21  ;;  %v2362_v26 = vsel %vm1371_vm0, %v1271_v40, 0.0  ;;  %v2366_v51 = vsel %vm1371_vm0, %v2212_v1, 0.0  ;;  %v2369_v45 = vsel %vm1371_vm0, %v1272_v2, 0.0  ;;  %v14_v5 = vld [vmem:[%s2500_s0 + $0x18] sm:$0xff] }
  0x57   :  { %v2373_v47 = vsel %vm1371_vm0, %v2219_v33, 0.0  ;;  %v2376_v4 = vsel %vm1371_vm0, %v1288_v9, 0.0  ;;  %v2380_v30 = vsel %vm1371_vm0, %v2225_v35, 0.0  ;;  %v2383_v25 = vsel %vm1371_vm0, %v1289_v50, 0.0 }
  0x58   :  { %v1390_v8 = vadd.f32 %v1389_v46, %v1388_v57  ;;  %v2387_v1 = vsel %vm1371_vm0, %v2229_v17, 0.0  ;;  %v2390_v40 = vsel %vm1371_vm0, %v1305_v39, 0.0  ;;  %v2394_v33 = vsel %vm1371_vm0, %v2236_v58, 0.0 }
  0x59   :  { %v24_v2 = vunpack.c.h.bf16 %v2124_v29  ;;  %v190_v35 = vrot.slane %v2140_v36, %v1559_v12  ;;  %v2400_v11 = vsel %vm1371_vm0, %v1306_v14, 0.0  ;;  %v194_v17 = vrot.slane %v2140_v36, %v2543_v20 }
  0x5a   :  { %v1392_v9 = vadd.f32 %v1391_v22, %v1390_v8  ;;  %v198_v50 = vrot.slane %v2140_v36, %v2544_v6  ;;  %v202_v39 = vrot.slane %v2140_v36, %v1568_v15  ;;  %v1395_v58 = vsel %vm1371_vm0, %v2209_v31, 0.0  ;;  %v2554_v15 = vld [vmem:[#allocation11_spill] sm:$0xff] }
  0x5b   :  { %v816_v29 = vcombine.low %v2233_v13, %v2241_v59  ;;  %v817_v41 = vcombine.low %v2143_v37, %v2146_v48  ;;  %v818_v14 = vcombine.low %v2149_v38, %v2154_v42  ;;  %v1102_v20 = vcombine.high %v2246_v19, %v2246_v19 }
  0x5c   :  { %v1394_v63 = vadd.f32 %v1393_v43, %v1392_v9  ;;  %v1103_v6 = vcombine.high %v2243_v0, %v2243_v0  ;;  %v1110_v36 = vrot.slane %v2243_v0, %v2554_v15  ;;  %v2555_v61 = vcombine.high %v2209_v31, %v2209_v31 }
  0x5d   :  { %v510_v37 = vrot.slane %v190_v35, %v1559_v12  ;;  %v514_v48 = vrot.slane %v194_v17, %v1559_v12  ;;  %v518_v38 = vrot.slane %v198_v50, %v1559_v12  ;;  %v1399_v42 = vsel %vm1371_vm0, %v2246_v19, 0.0 }
  0x5e   :  { %v1397_v13 = vsel %vm1371_vm0, %v2555_v61, 0.0  ;;  %v1396_v59 = vadd.f32 %v1395_v58, %v1394_v63  ;;  %v522_v0 = vrot.slane %v202_v39, %v1559_v12  ;;  %v825_v31 = vrot.slane %v817_v41, %v2554_v15 }
  0x5f   :  { %v832_v46 = vrot.slane %v818_v14, %v2554_v15  ;;  %v1008_v43 = vmul.f32 %v816_v29, %v24_v2  ;;  %v1117_v21 = vrot.slane %v1103_v6, %v2554_v15  ;;  %v1118_v57 = vcombine.high %v1110_v36, %v1110_v36 }
  0x60   :  { %v1398_v22 = vadd.f32 %v1397_v13, %v1396_v59  ;;  %v1401_v8 = vsel %vm1371_vm0, %v1102_v20, 0.0  ;;  %v25_v9 = vunpack.c.l.bf16 %v14_v5  ;;  %v1403_v19 = vsel %vm1371_vm0, %v1110_v36, 0.0 }
  0x61   :  { %v833_v17 = vcombine.low %v825_v31, %v832_v46  ;;  %v834_v50 = vcombine.low %v510_v37, %v514_v48  ;;  %v835_v58 = vcombine.low %v518_v38, %v522_v0  ;;  %v1119_v12 = vcombine.high %v1117_v21, %v1117_v21 }
  0x62   :  { %v1400_v35 = vadd.f32 %v1399_v42, %v1398_v22  ;;  %v1120_v39 = vcombine.high %v1008_v43, %v1008_v43  ;;  %v1127_v41 = vrot.slane %v1008_v43, %v2554_v15  ;;  %v1405_v14 = vsel %vm1371_vm0, %v1118_v57, 0.0 }
  0x63   :  { %v1407_v29 = vsel %vm1371_vm0, %v1117_v21, 0.0  ;;  %v842_v6 = vrot.slane %v834_v50, %v2554_v15  ;;  %v849_v20 = vrot.slane %v835_v58, %v2554_v15  ;;  %v1009_v13 = vmul.f32 %v833_v17, %v25_v9 }
  0x64   :  { %v1402_v63 = vadd.f32 %v1401_v8, %v1400_v35  ;;  %v1134_v36 = vrot.slane %v1120_v39, %v2554_v15  ;;  %v1135_v59 = vcombine.high %v1127_v41, %v1127_v41  ;;  %v1409_v37 = vsel %vm1371_vm0, %v1119_v12, 0.0 }
  0x65   :  { %v1411_v38 = vsel %vm1371_vm0, %v1127_v41, 0.0  ;;  %v26_v42 = vunpack.c.h.bf16 %v14_v5  ;;  %v850_v0 = vcombine.low %v842_v6, %v849_v20  ;;  %v1137_v22 = vcombine.high %v1009_v13, %v1009_v13 }
  0x66   :  { %v1404_v2 = vadd.f32 %v1403_v19, %v1402_v63  ;;  %v1136_v46 = vcombine.high %v1134_v36, %v1134_v36  ;;  %v1144_v43 = vrot.slane %v1009_v13, %v2554_v15  ;;  %v1413_v21 = vsel %vm1371_vm0, %v1135_v59, 0.0 }
  0x67   :  { %v1415_v8 = vsel %vm1371_vm0, %v1134_v36, 0.0  ;;  %v1010_v9 = vmul.f32 %v850_v0, %v26_v42  ;;  %v1151_v19 = vrot.slane %v1137_v22, %v2554_v15 }
  0x68   :  { %v1406_v61 = vadd.f32 %v1405_v14, %v1404_v2  ;;  %v1152_v17 = vcombine.high %v1144_v43, %v1144_v43  ;;  %v1417_v50 = vsel %vm1371_vm0, %v1136_v46, 0.0  ;;  %v1419_v5 = vsel %vm1371_vm0, %v1144_v43, 0.0  ;;  %v2556_v43 = vld [vmem:[#allocation6_spill] sm:$0xff] }
  0x69   :  { %v1153_v12 = vcombine.high %v1151_v19, %v1151_v19  ;;  %v1154_v39 = vcombine.high %v1010_v9, %v1010_v9  ;;  %v1161_v41 = vrot.slane %v1010_v9, %v2554_v15 }
  0x6a   :  { %v1408_v48 = vadd.f32 %v1407_v29, %v1406_v61  ;;  %v1421_v14 = vsel %vm1371_vm0, %v1152_v17, 0.0  ;;  %v1423_v29 = vsel %vm1371_vm0, %v1151_v19, 0.0 }
  0x6b   :  { %v1168_v20 = vrot.slane %v1154_v39, %v2554_v15  ;;  %v1169_v61 = vcombine.high %v1161_v41, %v1161_v41  ;;  %v1425_v13 = vsel %vm1371_vm0, %v1153_v12, 0.0  ;;  %v1427_v59 = vsel %vm1371_vm0, %v1161_v41, 0.0 }
  0x6c   :  { %v1410_v31 = vadd.f32 %v1409_v37, %v1408_v48  ;;  %v1435_v15 = vsel %vm1371_vm0, %v2556_v43, 0.0 }
  0x6d   :  { %v1170_v48 = vcombine.high %v1168_v20, %v1168_v20  ;;  %v1431_v0 = vsel %vm1371_vm0, %v1168_v20, 0.0 }
  0x6e   :  { %v1412_v57 = vadd.f32 %v1411_v38, %v1410_v31  ;;  %v1429_v38 = vsel %vm1371_vm0, %v1169_v61, 0.0 }
  0x6f   :  { %v1433_v46 = vsel %vm1371_vm0, %v1170_v48, 0.0 }
  0x70   :  { %v1414_v35 = vadd.f32 %v1413_v21, %v1412_v57 }
  0x72   :  { %v1416_v58 = vadd.f32 %v1415_v8, %v1414_v35 }
  0x74   :  { %v1418_v63 = vadd.f32 %v1417_v50, %v1416_v58 }
  0x76   :  { %v1420_v2 = vadd.f32 %v1419_v5, %v1418_v63 }
  0x78   :  { %v1422_v6 = vadd.f32 %v1421_v14, %v1420_v2 }
  0x7a   :  { %v1424_v36 = vadd.f32 %v1423_v29, %v1422_v6 }
  0x7c   :  { %v1426_v37 = vadd.f32 %v1425_v13, %v1424_v36 }
  0x7e   :  { %v1428_v42 = vadd.f32 %v1427_v59, %v1426_v37 }
  0x80   :  { %v1430_v31 = vadd.f32 %v1429_v38, %v1428_v42 }
  0x82   :  { %v1432_v22 = vadd.f32 %v1431_v0, %v1430_v31 }
  0x84   :  { %v1434_v21 = vadd.f32 %v1433_v46, %v1432_v22 }
  0x86   :  { %v1436_v57 = vadd.f32 %v1435_v15, %v1434_v21 }
  0x88   :  { %v1438_v8 = vadd.f32 %v2292_v62, %v1436_v57 }
  0x8a   :  { %v1440_v35 = vadd.f32 %v2296_v52, %v1438_v8 }
  0x8c   :  { %v1442_v9 = vadd.f32 %v2299_v32, %v1440_v35 }
  0x8e   :  { %v1444_v19 = vadd.f32 %v2303_v18, %v1442_v9 }
  0x90   :  { %v1446_v17 = vadd.f32 %v2306_v49, %v1444_v19 }
  0x92   :  { %v1448_v50 = vadd.f32 %v2310_v34, %v1446_v17 }
  0x94   :  { %v1450_v58 = vadd.f32 %v2313_v53, %v1448_v50 }
  0x96   :  { %v1452_v5 = vadd.f32 %v2317_v54, %v1450_v58 }
  0x98   :  { %v1454_v63 = vadd.f32 %v2320_v56, %v1452_v5 }
  0x9a   :  { %v1456_v12 = vadd.f32 %v2324_v3, %v1454_v63 }
  0x9c   :  { %v1458_v62 = vadd.f32 %v2327_v16, %v1456_v12 }
  0x9e   :  { %v1460_v52 = vadd.f32 %v2331_v7, %v1458_v62 }
  0xa0   :  { %v1462_v32 = vadd.f32 %v2334_v44, %v1460_v52 }
  0xa2   :  { %v1464_v18 = vadd.f32 %v2338_v24, %v1462_v32 }
  0xa4   :  { %v1466_v49 = vadd.f32 %v2341_v55, %v1464_v18 }
  0xa6   :  { %v1468_v34 = vadd.f32 %v2345_v27, %v1466_v49 }
  0xa8   :  { %v1470_v53 = vadd.f32 %v2348_v23, %v1468_v34 }
  0xaa   :  { %v1472_v54 = vadd.f32 %v2352_v28, %v1470_v53 }
  0xac   :  { %v1474_v56 = vadd.f32 %v2355_v60, %v1472_v54 }
  0xae   :  { %v1476_v3 = vadd.f32 %v2359_v10, %v1474_v56 }
  0xb0   :  { %v1478_v16 = vadd.f32 %v2362_v26, %v1476_v3 }
  0xb2   :  { %v1480_v7 = vadd.f32 %v2366_v51, %v1478_v16 }
  0xb4   :  { %v1482_v44 = vadd.f32 %v2369_v45, %v1480_v7 }
  0xb6   :  { %v1484_v24 = vadd.f32 %v2373_v47, %v1482_v44 }
  0xb8   :  { %v1486_v55 = vadd.f32 %v2376_v4, %v1484_v24 }
  0xba   :  { %v1488_v27 = vadd.f32 %v2380_v30, %v1486_v55 }
  0xbc   :  { %v1490_v23 = vadd.f32 %v2383_v25, %v1488_v27 }
  0xbe   :  { %v1492_v28 = vadd.f32 %v2387_v1, %v1490_v23 }
  0xc0   :  { %v1494_v60 = vadd.f32 %v2390_v40, %v1492_v28 }
  0xc2   :  { %v1496_v10 = vadd.f32 %v2394_v33, %v1494_v60 }
  0xc4   :  { %v1498_v26 = vadd.f32 %v2400_v11, %v1496_v10 }
  0xc6   :  { %1499 = vadd.xlane.f32.xlu0 %v1498_v26 }
 0x14f   :  { %v1500_v51 = vpop.xlane.xlu0 %1499 }
 0x150   :  { %v1501_v39 = vsub.f32 0.0, %v1500_v51 }
 0x152   :  { %v1502_v45 = vmul.f32 1.442695, %v1501_v39 }
 0x154   :  { %1514 = vpow2.f32 %v1502_v45 }
 0x161   :  { %v1515_v47 = vpop.eup %1514 }
 0x162   :  { %v1504_v41 = vadd.f32 1.0, %v1515_v47 }
 0x164   :  { %1516 = vrcp.f32 %v1504_v41 }
 0x171   :  { %v1517_v4 = vpop.eup %1516 }
 0x172   :  { %1508 = vst.msk [vmem:[%s2501_s2] sm:$0x3] %vm1507_vm1, %v1517_v4 }

// kernel: discriminator_forward.8
= control target key start
LH: loop header
LB: loop body
LE: loop exit
PB: predicated region body
PF: predicated region fallthrough
CT: control target
= control target key end

     0   :  { %s10392_s12 = smov 0   ;;  %s10394_s13 = smov 0   ;;  %s12617_s0 = inlined_call_operand.vmem [shape: bf16[32,4096], index: 0, kind: input, shape index: {}]   ;;  %s12618_s1 = inlined_call_operand.vmem [shape: bf16[4096,512], index: 1, kind: input, shape index: {}]   ;;  %s12619_s2 = inlined_call_operand.vmem [shape: f32[1,512], index: 2, kind: input, shape index: {}]   ;;  %s12620_s3 = inlined_call_operand.vmem [shape: bf16[32,512], index: 3, kind: output, shape index: {}]  }
   0x1   :  { %s10396_s14 = smov 0   ;;  %s10398_s15 = smov 0  }
   0x2   :  { %s10400_s16 = smov 0  }
   0x3 LB: > { %s22_s17 = sadd.s32 1, %s10366_s15  ;;  %s8921_s18 = sadd.s32 4294967295, %s10370_s16   ;;  %s10370_s16 = sphi %s10400_s16, %s13_s16   ;;  %s10366_s15 = sphi %s10398_s15, %s12663_s15   ;;  %s10362_s14 = sphi %s10396_s14, %s12662_s14   ;;  %s10358_s13 = sphi %s10394_s13, %s12661_s13   ;;  %s10354_s12 = sphi %s10392_s12, %s12660_s12  }
   0x4   : > { %p23_p0 = scmp.ge.s32.totalorder %s22_s17, 2  ;;  %p65_p1 = scmp.ne.s32.totalorder %s10358_s13, %s10354_s12 }
   0x5   : > { %p66_p2 = scmp.eq.s32.totalorder %s10370_s16, 0  ;;  %p123_p4 = scmp.eq.s32.totalorder %s8921_s18, 1 }
   0x6   : > { %s12665_s17 = smov (%p23_p0, %s22_s17), 0  ;;  %s58_s20 = sadd.s32 1, %s10358_s13 }
   0x7   : > { %p67_p3 = por %p66_p2, %p65_p1  ;;  %s55_s19 = ssub.s32 %s10366_s15, %s12665_s17 }
   0x8   : > { %p56_p5 = scmp.eq.s32.totalorder %s55_s19, 0  ;;  %p10427_p6 = por %p123_p4, %p65_p1 }
   0x9   : > { %p8925_p7 = scmp.ge.s32.totalorder %s10370_s16, 2 }
   0xa   : > { %s10432_s22 = scalar_select %p56_p5, %s10358_s13, %s58_s20  }
   0xb   : > { %155 = sbr.rel (%p8925_p7) target bundleno = 276 (0x114), region = 20 }
  0x10   : > { %158 = sbr.rel (!%p67_p3) target bundleno = 276 (0x114), region = 24  ;;  %s160_s23 = sand.u32 (%p67_p3), 1, %s10358_s13  }
  0x11   : > { %s9518_s24 = sshll.u32 (%p67_p3), %s10366_s15, 3  ;;  %s8926_s25 = sshll.u32 (%p67_p3), %s160_s23, 12 }
  0x12   : > { %s10440_s28 = scalar_lea.vmem (%p67_p3), %s12618_s1, %s9518_s24  ;;  %s10445_s29 = scalar_lea.vmem (%p67_p3), [#allocation2], %s8926_s25 }
  0x13   : > { %v1219_v0 = vld [vmem:[%s10440_s28] sm:$0xff] (%p67_p3)  ;;  %v1221_v1 = vld [vmem:[%s10440_s28 + $0x10] sm:$0xff] (%p67_p3) }
  0x14   : > { %v1223_v2 = vld [vmem:[%s10440_s28 + $0x20] sm:$0xff] (%p67_p3)  ;;  %1220 = vst [vmem:[%s10445_s29] sm:$0xff] (%p67_p3), %v1219_v0  ;;  %1222 = vst [vmem:[%s10445_s29 + $0x8] sm:$0xff] (%p67_p3), %v1221_v1  ;;  %v1225_v3 = vld [vmem:[%s10440_s28 + $0x30] sm:$0xff] (%p67_p3) }
  0x15   : > { %1224 = vst [vmem:[%s10445_s29 + $0x10] sm:$0xff] %v1223_v2  ;;  %v1227_v4 = vld [vmem:[%s10440_s28 + $0x40] sm:$0xff]  ;;  %v1229_v5 = vld [vmem:[%s10440_s28 + $0x50] sm:$0xff]  ;;  %1226 = vst [vmem:[%s10445_s29 + $0x18] sm:$0xff] %v1225_v3 }
  0x16   : > { %1228 = vst [vmem:[%s10445_s29 + $0x20] sm:$0xff] %v1227_v4  ;;  %1230 = vst [vmem:[%s10445_s29 + $0x28] sm:$0xff] %v1229_v5  ;;  %v1231_v6 = vld [vmem:[%s10440_s28 + $0x60] sm:$0xff]  ;;  %v1233_v7 = vld [vmem:[%s10440_s28 + $0x70] sm:$0xff] }
  0x17   : > { %v1235_v8 = vld [vmem:[%s10440_s28 + $0x80] sm:$0xff]  ;;  %1232 = vst [vmem:[%s10445_s29 + $0x30] sm:$0xff] %v1231_v6  ;;  %1234 = vst [vmem:[%s10445_s29 + $0x38] sm:$0xff] %v1233_v7  ;;  %v1237_v9 = vld [vmem:[%s10440_s28 + $0x90] sm:$0xff] }
  0x18   : > { %1236 = vst [vmem:[%s10445_s29 + $0x40] sm:$0xff] %v1235_v8  ;;  %v1239_v10 = vld [vmem:[%s10440_s28 + $0xa0] sm:$0xff]  ;;  %v1241_v11 = vld [vmem:[%s10440_s28 + $0xb0] sm:$0xff]  ;;  %1238 = vst [vmem:[%s10445_s29 + $0x48] sm:$0xff] %v1237_v9 }
  0x19   : > { %1240 = vst [vmem:[%s10445_s29 + $0x50] sm:$0xff] %v1239_v10  ;;  %1242 = vst [vmem:[%s10445_s29 + $0x58] sm:$0xff] %v1241_v11  ;;  %v1243_v12 = vld [vmem:[%s10440_s28 + $0xc0] sm:$0xff]  ;;  %v1245_v13 = vld [vmem:[%s10440_s28 + $0xd0] sm:$0xff] }
  0x1a   : > { %v1247_v14 = vld [vmem:[%s10440_s28 + $0xe0] sm:$0xff]  ;;  %1244 = vst [vmem:[%s10445_s29 + $0x60] sm:$0xff] %v1243_v12  ;;  %1246 = vst [vmem:[%s10445_s29 + $0x68] sm:$0xff] %v1245_v13  ;;  %v1249_v15 = vld [vmem:[%s10440_s28 + $0xf0] sm:$0xff] }
  0x1b   : > { %1248 = vst [vmem:[%s10445_s29 + $0x70] sm:$0xff] %v1247_v14  ;;  %v1251_v16 = vld [vmem:[%s10440_s28 + $0x100] sm:$0xff]  ;;  %v1253_v17 = vld [vmem:[%s10440_s28 + $0x110] sm:$0xff]  ;;  %1250 = vst [vmem:[%s10445_s29 + $0x78] sm:$0xff] %v1249_v15 }
  0x1c   : > { %1252 = vst [vmem:[%s10445_s29 + $0x80] sm:$0xff] %v1251_v16  ;;  %1254 = vst [vmem:[%s10445_s29 + $0x88] sm:$0xff] %v1253_v17  ;;  %v1255_v18 = vld [vmem:[%s10440_s28 + $0x120] sm:$0xff]  ;;  %v1257_v19 = vld [vmem:[%s10440_s28 + $0x130] sm:$0xff] }
  0x1d   : > { %v1259_v20 = vld [vmem:[%s10440_s28 + $0x140] sm:$0xff]  ;;  %1256 = vst [vmem:[%s10445_s29 + $0x90] sm:$0xff] %v1255_v18  ;;  %1258 = vst [vmem:[%s10445_s29 + $0x98] sm:$0xff] %v1257_v19  ;;  %v1261_v21 = vld [vmem:[%s10440_s28 + $0x150] sm:$0xff] }
  0x1e   : > { %1260 = vst [vmem:[%s10445_s29 + $0xa0] sm:$0xff] %v1259_v20  ;;  %v1263_v22 = vld [vmem:[%s10440_s28 + $0x160] sm:$0xff]  ;;  %v1265_v23 = vld [vmem:[%s10440_s28 + $0x170] sm:$0xff]  ;;  %1262 = vst [vmem:[%s10445_s29 + $0xa8] sm:$0xff] %v1261_v21 }
  0x1f   : > { %1264 = vst [vmem:[%s10445_s29 + $0xb0] sm:$0xff] %v1263_v22  ;;  %1266 = vst [vmem:[%s10445_s29 + $0xb8] sm:$0xff] %v1265_v23  ;;  %v1267_v24 = vld [vmem:[%s10440_s28 + $0x180] sm:$0xff]  ;;  %v1269_v25 = vld [vmem:[%s10440_s28 + $0x190] sm:$0xff] }
  0x20   : > { %v1271_v26 = vld [vmem:[%s10440_s28 + $0x1a0] sm:$0xff]  ;;  %1268 = vst [vmem:[%s10445_s29 + $0xc0] sm:$0xff] %v1267_v24  ;;  %1270 = vst [vmem:[%s10445_s29 + $0xc8] sm:$0xff] %v1269_v25  ;;  %v1273_v27 = vld [vmem:[%s10440_s28 + $0x1b0] sm:$0xff] }
  0x21   : > { %1272 = vst [vmem:[%s10445_s29 + $0xd0] sm:$0xff] %v1271_v26  ;;  %v1275_v28 = vld [vmem:[%s10440_s28 + $0x1c0] sm:$0xff]  ;;  %v1277_v29 = vld [vmem:[%s10440_s28 + $0x1d0] sm:$0xff]  ;;  %1274 = vst [vmem:[%s10445_s29 + $0xd8] sm:$0xff] %v1273_v27 }
  0x22   : > { %1276 = vst [vmem:[%s10445_s29 + $0xe0] sm:$0xff] %v1275_v28  ;;  %1278 = vst [vmem:[%s10445_s29 + $0xe8] sm:$0xff] %v1277_v29  ;;  %v1279_v30 = vld [vmem:[%s10440_s28 + $0x1e0] sm:$0xff]  ;;  %v1281_v31 = vld [vmem:[%s10440_s28 + $0x1f0] sm:$0xff] }
  0x23   : > { %v1283_v32 = vld [vmem:[%s10440_s28 + $0x200] sm:$0xff]  ;;  %1280 = vst [vmem:[%s10445_s29 + $0xf0] sm:$0xff] %v1279_v30  ;;  %1282 = vst [vmem:[%s10445_s29 + $0xf8] sm:$0xff] %v1281_v31  ;;  %v1285_v33 = vld [vmem:[%s10440_s28 + $0x210] sm:$0xff] }
  0x24   : > { %1284 = vst [vmem:[%s10445_s29 + $0x100] sm:$0xff] %v1283_v32  ;;  %v1287_v34 = vld [vmem:[%s10440_s28 + $0x220] sm:$0xff]  ;;  %v1289_v35 = vld [vmem:[%s10440_s28 + $0x230] sm:$0xff]  ;;  %1286 = vst [vmem:[%s10445_s29 + $0x108] sm:$0xff] %v1285_v33 }
  0x25   : > { %1288 = vst [vmem:[%s10445_s29 + $0x110] sm:$0xff] %v1287_v34  ;;  %1290 = vst [vmem:[%s10445_s29 + $0x118] sm:$0xff] %v1289_v35  ;;  %v1291_v36 = vld [vmem:[%s10440_s28 + $0x240] sm:$0xff]  ;;  %v1293_v37 = vld [vmem:[%s10440_s28 + $0x250] sm:$0xff] }
  0x26   : > { %v1295_v38 = vld [vmem:[%s10440_s28 + $0x260] sm:$0xff]  ;;  %1292 = vst [vmem:[%s10445_s29 + $0x120] sm:$0xff] %v1291_v36  ;;  %1294 = vst [vmem:[%s10445_s29 + $0x128] sm:$0xff] %v1293_v37  ;;  %v1297_v39 = vld [vmem:[%s10440_s28 + $0x270] sm:$0xff] }
  0x27   : > { %1296 = vst [vmem:[%s10445_s29 + $0x130] sm:$0xff] %v1295_v38  ;;  %v1299_v40 = vld [vmem:[%s10440_s28 + $0x280] sm:$0xff]  ;;  %v1301_v41 = vld [vmem:[%s10440_s28 + $0x290] sm:$0xff]  ;;  %1298 = vst [vmem:[%s10445_s29 + $0x138] sm:$0xff] %v1297_v39 }
  0x28   : > { %1300 = vst [vmem:[%s10445_s29 + $0x140] sm:$0xff] %v1299_v40  ;;  %1302 = vst [vmem:[%s10445_s29 + $0x148] sm:$0xff] %v1301_v41  ;;  %v1303_v42 = vld [vmem:[%s10440_s28 + $0x2a0] sm:$0xff]  ;;  %v1305_v43 = vld [vmem:[%s10440_s28 + $0x2b0] sm:$0xff] }
  0x29   : > { %v1307_v44 = vld [vmem:[%s10440_s28 + $0x2c0] sm:$0xff]  ;;  %1304 = vst [vmem:[%s10445_s29 + $0x150] sm:$0xff] %v1303_v42  ;;  %1306 = vst [vmem:[%s10445_s29 + $0x158] sm:$0xff] %v1305_v43  ;;  %v1309_v45 = vld [vmem:[%s10440_s28 + $0x2d0] sm:$0xff] }
  0x2a   : > { %1308 = vst [vmem:[%s10445_s29 + $0x160] sm:$0xff] %v1307_v44  ;;  %v1311_v46 = vld [vmem:[%s10440_s28 + $0x2e0] sm:$0xff]  ;;  %v1313_v47 = vld [vmem:[%s10440_s28 + $0x2f0] sm:$0xff]  ;;  %1310 = vst [vmem:[%s10445_s29 + $0x168] sm:$0xff] %v1309_v45 }
  0x2b   : > { %1312 = vst [vmem:[%s10445_s29 + $0x170] sm:$0xff] %v1311_v46  ;;  %1314 = vst [vmem:[%s10445_s29 + $0x178] sm:$0xff] %v1313_v47  ;;  %v1315_v48 = vld [vmem:[%s10440_s28 + $0x300] sm:$0xff]  ;;  %v1317_v49 = vld [vmem:[%s10440_s28 + $0x310] sm:$0xff] }
  0x2c   : > { %v1319_v50 = vld [vmem:[%s10440_s28 + $0x320] sm:$0xff]  ;;  %1316 = vst [vmem:[%s10445_s29 + $0x180] sm:$0xff] %v1315_v48  ;;  %1318 = vst [vmem:[%s10445_s29 + $0x188] sm:$0xff] %v1317_v49  ;;  %v1321_v51 = vld [vmem:[%s10440_s28 + $0x330] sm:$0xff] }
  0x2d   : > { %1320 = vst [vmem:[%s10445_s29 + $0x190] sm:$0xff] %v1319_v50  ;;  %v1323_v52 = vld [vmem:[%s10440_s28 + $0x340] sm:$0xff]  ;;  %v1325_v53 = vld [vmem:[%s10440_s28 + $0x350] sm:$0xff]  ;;  %1322 = vst [vmem:[%s10445_s29 + $0x198] sm:$0xff] %v1321_v51 }
  0x2e   : > { %1324 = vst [vmem:[%s10445_s29 + $0x1a0] sm:$0xff] %v1323_v52  ;;  %1326 = vst [vmem:[%s10445_s29 + $0x1a8] sm:$0xff] %v1325_v53  ;;  %v1327_v54 = vld [vmem:[%s10440_s28 + $0x360] sm:$0xff]  ;;  %v1329_v55 = vld [vmem:[%s10440_s28 + $0x370] sm:$0xff] }
  0x2f   : > { %v1331_v56 = vld [vmem:[%s10440_s28 + $0x380] sm:$0xff]  ;;  %1328 = vst [vmem:[%s10445_s29 + $0x1b0] sm:$0xff] %v1327_v54  ;;  %1330 = vst [vmem:[%s10445_s29 + $0x1b8] sm:$0xff] %v1329_v55  ;;  %v1333_v57 = vld [vmem:[%s10440_s28 + $0x390] sm:$0xff] }
  0x30   : > { %1332 = vst [vmem:[%s10445_s29 + $0x1c0] sm:$0xff] %v1331_v56  ;;  %v1335_v58 = vld [vmem:[%s10440_s28 + $0x3a0] sm:$0xff]  ;;  %v1337_v59 = vld [vmem:[%s10440_s28 + $0x3b0] sm:$0xff]  ;;  %1334 = vst [vmem:[%s10445_s29 + $0x1c8] sm:$0xff] %v1333_v57 }
  0x31   : > { %1336 = vst [vmem:[%s10445_s29 + $0x1d0] sm:$0xff] %v1335_v58  ;;  %1338 = vst [vmem:[%s10445_s29 + $0x1d8] sm:$0xff] %v1337_v59  ;;  %v1339_v60 = vld [vmem:[%s10440_s28 + $0x3c0] sm:$0xff]  ;;  %v1341_v61 = vld [vmem:[%s10440_s28 + $0x3d0] sm:$0xff] }
  0x32   : > { %v1343_v62 = vld [vmem:[%s10440_s28 + $0x3e0] sm:$0xff]  ;;  %1340 = vst [vmem:[%s10445_s29 + $0x1e0] sm:$0xff] %v1339_v60  ;;  %1342 = vst [vmem:[%s10445_s29 + $0x1e8] sm:$0xff] %v1341_v61  ;;  %v1345_v63 = vld [vmem:[%s10440_s28 + $0x3f0] sm:$0xff] }
  0x33   : > { %1344 = vst [vmem:[%s10445_s29 + $0x1f0] sm:$0xff] %v1343_v62  ;;  %v1347_v0 = vld [vmem:[%s10440_s28 + $0x400] sm:$0xff]  ;;  %v1349_v1 = vld [vmem:[%s10440_s28 + $0x410] sm:$0xff]  ;;  %1346 = vst [vmem:[%s10445_s29 + $0x1f8] sm:$0xff] %v1345_v63 }
  0x34   : > { %1348 = vst [vmem:[%s10445_s29 + $0x200] sm:$0xff] %v1347_v0  ;;  %1350 = vst [vmem:[%s10445_s29 + $0x208] sm:$0xff] %v1349_v1  ;;  %v1351_v2 = vld [vmem:[%s10440_s28 + $0x420] sm:$0xff]  ;;  %v1353_v3 = vld [vmem:[%s10440_s28 + $0x430] sm:$0xff] }
  0x35   : > { %v1355_v4 = vld [vmem:[%s10440_s28 + $0x440] sm:$0xff]  ;;  %1352 = vst [vmem:[%s10445_s29 + $0x210] sm:$0xff] %v1351_v2  ;;  %1354 = vst [vmem:[%s10445_s29 + $0x218] sm:$0xff] %v1353_v3  ;;  %v1357_v5 = vld [vmem:[%s10440_s28 + $0x450] sm:$0xff] }
  0x36   : > { %1356 = vst [vmem:[%s10445_s29 + $0x220] sm:$0xff] %v1355_v4  ;;  %v1359_v6 = vld [vmem:[%s10440_s28 + $0x460] sm:$0xff]  ;;  %v1361_v7 = vld [vmem:[%s10440_s28 + $0x470] sm:$0xff]  ;;  %1358 = vst [vmem:[%s10445_s29 + $0x228] sm:$0xff] %v1357_v5 }
  0x37   : > { %1360 = vst [vmem:[%s10445_s29 + $0x230] sm:$0xff] %v1359_v6  ;;  %1362 = vst [vmem:[%s10445_s29 + $0x238] sm:$0xff] %v1361_v7  ;;  %v1363_v8 = vld [vmem:[%s10440_s28 + $0x480] sm:$0xff]  ;;  %v1365_v9 = vld [vmem:[%s10440_s28 + $0x490] sm:$0xff] }
  0x38   : > { %v1367_v10 = vld [vmem:[%s10440_s28 + $0x4a0] sm:$0xff]  ;;  %1364 = vst [vmem:[%s10445_s29 + $0x240] sm:$0xff] %v1363_v8  ;;  %1366 = vst [vmem:[%s10445_s29 + $0x248] sm:$0xff] %v1365_v9  ;;  %v1369_v11 = vld [vmem:[%s10440_s28 + $0x4b0] sm:$0xff] }
  0x39   : > { %1368 = vst [vmem:[%s10445_s29 + $0x250] sm:$0xff] %v1367_v10  ;;  %v1371_v12 = vld [vmem:[%s10440_s28 + $0x4c0] sm:$0xff]  ;;  %v1373_v13 = vld [vmem:[%s10440_s28 + $0x4d0] sm:$0xff]  ;;  %1370 = vst [vmem:[%s10445_s29 + $0x258] sm:$0xff] %v1369_v11 }
  0x3a   : > { %1372 = vst [vmem:[%s10445_s29 + $0x260] sm:$0xff] %v1371_v12  ;;  %1374 = vst [vmem:[%s10445_s29 + $0x268] sm:$0xff] %v1373_v13  ;;  %v1375_v14 = vld [vmem:[%s10440_s28 + $0x4e0] sm:$0xff]  ;;  %v1377_v15 = vld [vmem:[%s10440_s28 + $0x4f0] sm:$0xff] }
  0x3b   : > { %v1379_v16 = vld [vmem:[%s10440_s28 + $0x500] sm:$0xff]  ;;  %1376 = vst [vmem:[%s10445_s29 + $0x270] sm:$0xff] %v1375_v14  ;;  %1378 = vst [vmem:[%s10445_s29 + $0x278] sm:$0xff] %v1377_v15  ;;  %v1381_v17 = vld [vmem:[%s10440_s28 + $0x510] sm:$0xff] }
  0x3c   : > { %1380 = vst [vmem:[%s10445_s29 + $0x280] sm:$0xff] %v1379_v16  ;;  %v1383_v18 = vld [vmem:[%s10440_s28 + $0x520] sm:$0xff]  ;;  %v1385_v19 = vld [vmem:[%s10440_s28 + $0x530] sm:$0xff]  ;;  %1382 = vst [vmem:[%s10445_s29 + $0x288] sm:$0xff] %v1381_v17 }
  0x3d   : > { %1384 = vst [vmem:[%s10445_s29 + $0x290] sm:$0xff] %v1383_v18  ;;  %1386 = vst [vmem:[%s10445_s29 + $0x298] sm:$0xff] %v1385_v19  ;;  %v1387_v20 = vld [vmem:[%s10440_s28 + $0x540] sm:$0xff]  ;;  %v1389_v21 = vld [vmem:[%s10440_s28 + $0x550] sm:$0xff] }
  0x3e   : > { %v1391_v22 = vld [vmem:[%s10440_s28 + $0x560] sm:$0xff]  ;;  %1388 = vst [vmem:[%s10445_s29 + $0x2a0] sm:$0xff] %v1387_v20  ;;  %1390 = vst [vmem:[%s10445_s29 + $0x2a8] sm:$0xff] %v1389_v21  ;;  %v1393_v23 = vld [vmem:[%s10440_s28 + $0x570] sm:$0xff] }
  0x3f   : > { %1392 = vst [vmem:[%s10445_s29 + $0x2b0] sm:$0xff] %v1391_v22  ;;  %v1395_v24 = vld [vmem:[%s10440_s28 + $0x580] sm:$0xff]  ;;  %v1397_v25 = vld [vmem:[%s10440_s28 + $0x590] sm:$0xff]  ;;  %1394 = vst [vmem:[%s10445_s29 + $0x2b8] sm:$0xff] %v1393_v23 }
  0x40   : > { %1396 = vst [vmem:[%s10445_s29 + $0x2c0] sm:$0xff] %v1395_v24  ;;  %1398 = vst [vmem:[%s10445_s29 + $0x2c8] sm:$0xff] %v1397_v25  ;;  %v1399_v26 = vld [vmem:[%s10440_s28 + $0x5a0] sm:$0xff]  ;;  %v1401_v27 = vld [vmem:[%s10440_s28 + $0x5b0] sm:$0xff] }
  0x41   : > { %v1403_v28 = vld [vmem:[%s10440_s28 + $0x5c0] sm:$0xff]  ;;  %1400 = vst [vmem:[%s10445_s29 + $0x2d0] sm:$0xff] %v1399_v26  ;;  %1402 = vst [vmem:[%s10445_s29 + $0x2d8] sm:$0xff] %v1401_v27  ;;  %v1405_v29 = vld [vmem:[%s10440_s28 + $0x5d0] sm:$0xff] }
  0x42   : > { %1404 = vst [vmem:[%s10445_s29 + $0x2e0] sm:$0xff] %v1403_v28  ;;  %v1407_v30 = vld [vmem:[%s10440_s28 + $0x5e0] sm:$0xff]  ;;  %v1409_v31 = vld [vmem:[%s10440_s28 + $0x5f0] sm:$0xff]  ;;  %1406 = vst [vmem:[%s10445_s29 + $0x2e8] sm:$0xff] %v1405_v29 }
  0x43   : > { %1408 = vst [vmem:[%s10445_s29 + $0x2f0] sm:$0xff] %v1407_v30  ;;  %1410 = vst [vmem:[%s10445_s29 + $0x2f8] sm:$0xff] %v1409_v31  ;;  %v1411_v32 = vld [vmem:[%s10440_s28 + $0x600] sm:$0xff]  ;;  %v1413_v33 = vld [vmem:[%s10440_s28 + $0x610] sm:$0xff] }
  0x44   : > { %v1415_v34 = vld [vmem:[%s10440_s28 + $0x620] sm:$0xff]  ;;  %1412 = vst [vmem:[%s10445_s29 + $0x300] sm:$0xff] %v1411_v32  ;;  %1414 = vst [vmem:[%s10445_s29 + $0x308] sm:$0xff] %v1413_v33  ;;  %v1417_v35 = vld [vmem:[%s10440_s28 + $0x630] sm:$0xff] }
  0x45   : > { %1416 = vst [vmem:[%s10445_s29 + $0x310] sm:$0xff] %v1415_v34  ;;  %v1419_v36 = vld [vmem:[%s10440_s28 + $0x640] sm:$0xff]  ;;  %v1421_v37 = vld [vmem:[%s10440_s28 + $0x650] sm:$0xff]  ;;  %1418 = vst [vmem:[%s10445_s29 + $0x318] sm:$0xff] %v1417_v35 }
  0x46   : > { %1420 = vst [vmem:[%s10445_s29 + $0x320] sm:$0xff] %v1419_v36  ;;  %1422 = vst [vmem:[%s10445_s29 + $0x328] sm:$0xff] %v1421_v37  ;;  %v1423_v38 = vld [vmem:[%s10440_s28 + $0x660] sm:$0xff]  ;;  %v1425_v39 = vld [vmem:[%s10440_s28 + $0x670] sm:$0xff] }
  0x47   : > { %v1427_v40 = vld [vmem:[%s10440_s28 + $0x680] sm:$0xff]  ;;  %1424 = vst [vmem:[%s10445_s29 + $0x330] sm:$0xff] %v1423_v38  ;;  %1426 = vst [vmem:[%s10445_s29 + $0x338] sm:$0xff] %v1425_v39  ;;  %v1429_v41 = vld [vmem:[%s10440_s28 + $0x690] sm:$0xff] }
  0x48   : > { %1428 = vst [vmem:[%s10445_s29 + $0x340] sm:$0xff] %v1427_v40  ;;  %v1431_v42 = vld [vmem:[%s10440_s28 + $0x6a0] sm:$0xff]  ;;  %v1433_v43 = vld [vmem:[%s10440_s28 + $0x6b0] sm:$0xff]  ;;  %1430 = vst [vmem:[%s10445_s29 + $0x348] sm:$0xff] %v1429_v41 }
  0x49   : > { %1432 = vst [vmem:[%s10445_s29 + $0x350] sm:$0xff] %v1431_v42  ;;  %1434 = vst [vmem:[%s10445_s29 + $0x358] sm:$0xff] %v1433_v43  ;;  %v1435_v44 = vld [vmem:[%s10440_s28 + $0x6c0] sm:$0xff]  ;;  %v1437_v45 = vld [vmem:[%s10440_s28 + $0x6d0] sm:$0xff] }
  0x4a   : > { %v1439_v46 = vld [vmem:[%s10440_s28 + $0x6e0] sm:$0xff]  ;;  %1436 = vst [vmem:[%s10445_s29 + $0x360] sm:$0xff] %v1435_v44  ;;  %1438 = vst [vmem:[%s10445_s29 + $0x368] sm:$0xff] %v1437_v45  ;;  %v1441_v47 = vld [vmem:[%s10440_s28 + $0x6f0] sm:$0xff] }
  0x4b   : > { %1440 = vst [vmem:[%s10445_s29 + $0x370] sm:$0xff] %v1439_v46  ;;  %v1443_v48 = vld [vmem:[%s10440_s28 + $0x700] sm:$0xff]  ;;  %v1445_v49 = vld [vmem:[%s10440_s28 + $0x710] sm:$0xff]  ;;  %1442 = vst [vmem:[%s10445_s29 + $0x378] sm:$0xff] %v1441_v47 }
  0x4c   : > { %1444 = vst [vmem:[%s10445_s29 + $0x380] sm:$0xff] %v1443_v48  ;;  %1446 = vst [vmem:[%s10445_s29 + $0x388] sm:$0xff] %v1445_v49  ;;  %v1447_v50 = vld [vmem:[%s10440_s28 + $0x720] sm:$0xff]  ;;  %v1449_v51 = vld [vmem:[%s10440_s28 + $0x730] sm:$0xff] }
  0x4d   : > { %v1451_v52 = vld [vmem:[%s10440_s28 + $0x740] sm:$0xff]  ;;  %1448 = vst [vmem:[%s10445_s29 + $0x390] sm:$0xff] %v1447_v50  ;;  %1450 = vst [vmem:[%s10445_s29 + $0x398] sm:$0xff] %v1449_v51  ;;  %v1453_v53 = vld [vmem:[%s10440_s28 + $0x750] sm:$0xff] }
  0x4e   : > { %1452 = vst [vmem:[%s10445_s29 + $0x3a0] sm:$0xff] %v1451_v52  ;;  %v1455_v54 = vld [vmem:[%s10440_s28 + $0x760] sm:$0xff]  ;;  %v1457_v55 = vld [vmem:[%s10440_s28 + $0x770] sm:$0xff]  ;;  %1454 = vst [vmem:[%s10445_s29 + $0x3a8] sm:$0xff] %v1453_v53 }
  0x4f   : > { %1456 = vst [vmem:[%s10445_s29 + $0x3b0] sm:$0xff] %v1455_v54  ;;  %1458 = vst [vmem:[%s10445_s29 + $0x3b8] sm:$0xff] %v1457_v55  ;;  %v1459_v56 = vld [vmem:[%s10440_s28 + $0x780] sm:$0xff]  ;;  %v1461_v57 = vld [vmem:[%s10440_s28 + $0x790] sm:$0xff] }
  0x50   : > { %v1463_v58 = vld [vmem:[%s10440_s28 + $0x7a0] sm:$0xff]  ;;  %1460 = vst [vmem:[%s10445_s29 + $0x3c0] sm:$0xff] %v1459_v56  ;;  %1462 = vst [vmem:[%s10445_s29 + $0x3c8] sm:$0xff] %v1461_v57  ;;  %v1465_v59 = vld [vmem:[%s10440_s28 + $0x7b0] sm:$0xff] }
  0x51   : > { %1464 = vst [vmem:[%s10445_s29 + $0x3d0] sm:$0xff] %v1463_v58  ;;  %v1467_v60 = vld [vmem:[%s10440_s28 + $0x7c0] sm:$0xff]  ;;  %v1469_v61 = vld [vmem:[%s10440_s28 + $0x7d0] sm:$0xff]  ;;  %1466 = vst [vmem:[%s10445_s29 + $0x3d8] sm:$0xff] %v1465_v59 }
  0x52   : > { %1468 = vst [vmem:[%s10445_s29 + $0x3e0] sm:$0xff] %v1467_v60  ;;  %1470 = vst [vmem:[%s10445_s29 + $0x3e8] sm:$0xff] %v1469_v61  ;;  %v1471_v62 = vld [vmem:[%s10440_s28 + $0x7e0] sm:$0xff]  ;;  %v1473_v63 = vld [vmem:[%s10440_s28 + $0x7f0] sm:$0xff] }
  0x53   : > { %v1475_v0 = vld [vmem:[%s10440_s28 + $0x800] sm:$0xff]  ;;  %1472 = vst [vmem:[%s10445_s29 + $0x3f0] sm:$0xff] %v1471_v62  ;;  %1474 = vst [vmem:[%s10445_s29 + $0x3f8] sm:$0xff] %v1473_v63  ;;  %v1477_v1 = vld [vmem:[%s10440_s28 + $0x810] sm:$0xff] }
  0x54   : > { %1476 = vst [vmem:[%s10445_s29 + $0x400] sm:$0xff] %v1475_v0  ;;  %v1479_v2 = vld [vmem:[%s10440_s28 + $0x820] sm:$0xff]  ;;  %v1481_v3 = vld [vmem:[%s10440_s28 + $0x830] sm:$0xff]  ;;  %1478 = vst [vmem:[%s10445_s29 + $0x408] sm:$0xff] %v1477_v1 }
  0x55   : > { %1480 = vst [vmem:[%s10445_s29 + $0x410] sm:$0xff] %v1479_v2  ;;  %1482 = vst [vmem:[%s10445_s29 + $0x418] sm:$0xff] %v1481_v3  ;;  %v1483_v4 = vld [vmem:[%s10440_s28 + $0x840] sm:$0xff]  ;;  %v1485_v5 = vld [vmem:[%s10440_s28 + $0x850] sm:$0xff] }
  0x56   : > { %v1487_v6 = vld [vmem:[%s10440_s28 + $0x860] sm:$0xff]  ;;  %1484 = vst [vmem:[%s10445_s29 + $0x420] sm:$0xff] %v1483_v4  ;;  %1486 = vst [vmem:[%s10445_s29 + $0x428] sm:$0xff] %v1485_v5  ;;  %v1489_v7 = vld [vmem:[%s10440_s28 + $0x870] sm:$0xff] }
  0x57   : > { %1488 = vst [vmem:[%s10445_s29 + $0x430] sm:$0xff] %v1487_v6  ;;  %v1491_v8 = vld [vmem:[%s10440_s28 + $0x880] sm:$0xff]  ;;  %v1493_v9 = vld [vmem:[%s10440_s28 + $0x890] sm:$0xff]  ;;  %1490 = vst [vmem:[%s10445_s29 + $0x438] sm:$0xff] %v1489_v7 }
  0x58   : > { %1492 = vst [vmem:[%s10445_s29 + $0x440] sm:$0xff] %v1491_v8  ;;  %1494 = vst [vmem:[%s10445_s29 + $0x448] sm:$0xff] %v1493_v9  ;;  %v1495_v10 = vld [vmem:[%s10440_s28 + $0x8a0] sm:$0xff]  ;;  %v1497_v11 = vld [vmem:[%s10440_s28 + $0x8b0] sm:$0xff] }
  0x59   : > { %v1499_v12 = vld [vmem:[%s10440_s28 + $0x8c0] sm:$0xff]  ;;  %1496 = vst [vmem:[%s10445_s29 + $0x450] sm:$0xff] %v1495_v10  ;;  %1498 = vst [vmem:[%s10445_s29 + $0x458] sm:$0xff] %v1497_v11  ;;  %v1501_v13 = vld [vmem:[%s10440_s28 + $0x8d0] sm:$0xff] }
  0x5a   : > { %1500 = vst [vmem:[%s10445_s29 + $0x460] sm:$0xff] %v1499_v12  ;;  %v1503_v14 = vld [vmem:[%s10440_s28 + $0x8e0] sm:$0xff]  ;;  %v1505_v15 = vld [vmem:[%s10440_s28 + $0x8f0] sm:$0xff]  ;;  %1502 = vst [vmem:[%s10445_s29 + $0x468] sm:$0xff] %v1501_v13 }
  0x5b   : > { %1504 = vst [vmem:[%s10445_s29 + $0x470] sm:$0xff] %v1503_v14  ;;  %1506 = vst [vmem:[%s10445_s29 + $0x478] sm:$0xff] %v1505_v15  ;;  %v1507_v16 = vld [vmem:[%s10440_s28 + $0x900] sm:$0xff]  ;;  %v1509_v17 = vld [vmem:[%s10440_s28 + $0x910] sm:$0xff] }
  0x5c   : > { %v1511_v18 = vld [vmem:[%s10440_s28 + $0x920] sm:$0xff]  ;;  %1508 = vst [vmem:[%s10445_s29 + $0x480] sm:$0xff] %v1507_v16  ;;  %1510 = vst [vmem:[%s10445_s29 + $0x488] sm:$0xff] %v1509_v17  ;;  %v1513_v19 = vld [vmem:[%s10440_s28 + $0x930] sm:$0xff] }
  0x5d   : > { %1512 = vst [vmem:[%s10445_s29 + $0x490] sm:$0xff] %v1511_v18  ;;  %v1515_v20 = vld [vmem:[%s10440_s28 + $0x940] sm:$0xff]  ;;  %v1517_v21 = vld [vmem:[%s10440_s28 + $0x950] sm:$0xff]  ;;  %1514 = vst [vmem:[%s10445_s29 + $0x498] sm:$0xff] %v1513_v19 }
  0x5e   : > { %1516 = vst [vmem:[%s10445_s29 + $0x4a0] sm:$0xff] %v1515_v20  ;;  %1518 = vst [vmem:[%s10445_s29 + $0x4a8] sm:$0xff] %v1517_v21  ;;  %v1519_v22 = vld [vmem:[%s10440_s28 + $0x960] sm:$0xff]  ;;  %v1521_v23 = vld [vmem:[%s10440_s28 + $0x970] sm:$0xff] }
  0x5f   : > { %v1523_v24 = vld [vmem:[%s10440_s28 + $0x980] sm:$0xff]  ;;  %1520 = vst [vmem:[%s10445_s29 + $0x4b0] sm:$0xff] %v1519_v22  ;;  %1522 = vst [vmem:[%s10445_s29 + $0x4b8] sm:$0xff] %v1521_v23  ;;  %v1525_v25 = vld [vmem:[%s10440_s28 + $0x990] sm:$0xff] }
  0x60   : > { %1524 = vst [vmem:[%s10445_s29 + $0x4c0] sm:$0xff] %v1523_v24  ;;  %v1527_v26 = vld [vmem:[%s10440_s28 + $0x9a0] sm:$0xff]  ;;  %v1529_v27 = vld [vmem:[%s10440_s28 + $0x9b0] sm:$0xff]  ;;  %1526 = vst [vmem:[%s10445_s29 + $0x4c8] sm:$0xff] %v1525_v25 }
  0x61   : > { %1528 = vst [vmem:[%s10445_s29 + $0x4d0] sm:$0xff] %v1527_v26  ;;  %1530 = vst [vmem:[%s10445_s29 + $0x4d8] sm:$0xff] %v1529_v27  ;;  %v1531_v28 = vld [vmem:[%s10440_s28 + $0x9c0] sm:$0xff]  ;;  %v1533_v29 = vld [vmem:[%s10440_s28 + $0x9d0] sm:$0xff] }
  0x62   : > { %v1535_v30 = vld [vmem:[%s10440_s28 + $0x9e0] sm:$0xff]  ;;  %1532 = vst [vmem:[%s10445_s29 + $0x4e0] sm:$0xff] %v1531_v28  ;;  %1534 = vst [vmem:[%s10445_s29 + $0x4e8] sm:$0xff] %v1533_v29  ;;  %v1537_v31 = vld [vmem:[%s10440_s28 + $0x9f0] sm:$0xff] }
  0x63   : > { %1536 = vst [vmem:[%s10445_s29 + $0x4f0] sm:$0xff] %v1535_v30  ;;  %v1539_v32 = vld [vmem:[%s10440_s28 + $0xa00] sm:$0xff]  ;;  %v1541_v33 = vld [vmem:[%s10440_s28 + $0xa10] sm:$0xff]  ;;  %1538 = vst [vmem:[%s10445_s29 + $0x4f8] sm:$0xff] %v1537_v31 }
  0x64   : > { %1540 = vst [vmem:[%s10445_s29 + $0x500] sm:$0xff] %v1539_v32  ;;  %1542 = vst [vmem:[%s10445_s29 + $0x508] sm:$0xff] %v1541_v33  ;;  %v1543_v34 = vld [vmem:[%s10440_s28 + $0xa20] sm:$0xff]  ;;  %v1545_v35 = vld [vmem:[%s10440_s28 + $0xa30] sm:$0xff] }
  0x65   : > { %v1547_v36 = vld [vmem:[%s10440_s28 + $0xa40] sm:$0xff]  ;;  %1544 = vst [vmem:[%s10445_s29 + $0x510] sm:$0xff] %v1543_v34  ;;  %1546 = vst [vmem:[%s10445_s29 + $0x518] sm:$0xff] %v1545_v35  ;;  %v1549_v37 = vld [vmem:[%s10440_s28 + $0xa50] sm:$0xff] }
  0x66   : > { %1548 = vst [vmem:[%s10445_s29 + $0x520] sm:$0xff] %v1547_v36  ;;  %v1551_v38 = vld [vmem:[%s10440_s28 + $0xa60] sm:$0xff]  ;;  %v1553_v39 = vld [vmem:[%s10440_s28 + $0xa70] sm:$0xff]  ;;  %1550 = vst [vmem:[%s10445_s29 + $0x528] sm:$0xff] %v1549_v37 }
  0x67   : > { %1552 = vst [vmem:[%s10445_s29 + $0x530] sm:$0xff] %v1551_v38  ;;  %1554 = vst [vmem:[%s10445_s29 + $0x538] sm:$0xff] %v1553_v39  ;;  %v1555_v40 = vld [vmem:[%s10440_s28 + $0xa80] sm:$0xff]  ;;  %v1557_v41 = vld [vmem:[%s10440_s28 + $0xa90] sm:$0xff] }
  0x68   : > { %v1559_v42 = vld [vmem:[%s10440_s28 + $0xaa0] sm:$0xff]  ;;  %1556 = vst [vmem:[%s10445_s29 + $0x540] sm:$0xff] %v1555_v40  ;;  %1558 = vst [vmem:[%s10445_s29 + $0x548] sm:$0xff] %v1557_v41  ;;  %v1561_v43 = vld [vmem:[%s10440_s28 + $0xab0] sm:$0xff] }
  0x69   : > { %1560 = vst [vmem:[%s10445_s29 + $0x550] sm:$0xff] %v1559_v42  ;;  %v1563_v44 = vld [vmem:[%s10440_s28 + $0xac0] sm:$0xff]  ;;  %v1565_v45 = vld [vmem:[%s10440_s28 + $0xad0] sm:$0xff]  ;;  %1562 = vst [vmem:[%s10445_s29 + $0x558] sm:$0xff] %v1561_v43 }
  0x6a   : > { %1564 = vst [vmem:[%s10445_s29 + $0x560] sm:$0xff] %v1563_v44  ;;  %1566 = vst [vmem:[%s10445_s29 + $0x568] sm:$0xff] %v1565_v45  ;;  %v1567_v46 = vld [vmem:[%s10440_s28 + $0xae0] sm:$0xff]  ;;  %v1569_v47 = vld [vmem:[%s10440_s28 + $0xaf0] sm:$0xff] }
  0x6b   : > { %v1571_v48 = vld [vmem:[%s10440_s28 + $0xb00] sm:$0xff]  ;;  %1568 = vst [vmem:[%s10445_s29 + $0x570] sm:$0xff] %v1567_v46  ;;  %1570 = vst [vmem:[%s10445_s29 + $0x578] sm:$0xff] %v1569_v47  ;;  %v1573_v49 = vld [vmem:[%s10440_s28 + $0xb10] sm:$0xff] }
  0x6c   : > { %1572 = vst [vmem:[%s10445_s29 + $0x580] sm:$0xff] %v1571_v48  ;;  %v1575_v50 = vld [vmem:[%s10440_s28 + $0xb20] sm:$0xff]  ;;  %v1577_v51 = vld [vmem:[%s10440_s28 + $0xb30] sm:$0xff]  ;;  %1574 = vst [vmem:[%s10445_s29 + $0x588] sm:$0xff] %v1573_v49 }
  0x6d   : > { %1576 = vst [vmem:[%s10445_s29 + $0x590] sm:$0xff] %v1575_v50  ;;  %1578 = vst [vmem:[%s10445_s29 + $0x598] sm:$0xff] %v1577_v51  ;;  %v1579_v52 = vld [vmem:[%s10440_s28 + $0xb40] sm:$0xff]  ;;  %v1581_v53 = vld [vmem:[%s10440_s28 + $0xb50] sm:$0xff] }
  0x6e   : > { %v1583_v54 = vld [vmem:[%s10440_s28 + $0xb60] sm:$0xff]  ;;  %1580 = vst [vmem:[%s10445_s29 + $0x5a0] sm:$0xff] %v1579_v52  ;;  %1582 = vst [vmem:[%s10445_s29 + $0x5a8] sm:$0xff] %v1581_v53  ;;  %v1585_v55 = vld [vmem:[%s10440_s28 + $0xb70] sm:$0xff] }
  0x6f   : > { %1584 = vst [vmem:[%s10445_s29 + $0x5b0] sm:$0xff] %v1583_v54  ;;  %v1587_v56 = vld [vmem:[%s10440_s28 + $0xb80] sm:$0xff]  ;;  %v1589_v57 = vld [vmem:[%s10440_s28 + $0xb90] sm:$0xff]  ;;  %1586 = vst [vmem:[%s10445_s29 + $0x5b8] sm:$0xff] %v1585_v55 }
  0x70   : > { %1588 = vst [vmem:[%s10445_s29 + $0x5c0] sm:$0xff] %v1587_v56  ;;  %1590 = vst [vmem:[%s10445_s29 + $0x5c8] sm:$0xff] %v1589_v57  ;;  %v1591_v58 = vld [vmem:[%s10440_s28 + $0xba0] sm:$0xff]  ;;  %v1593_v59 = vld [vmem:[%s10440_s28 + $0xbb0] sm:$0xff] }
  0x71   : > { %v1595_v60 = vld [vmem:[%s10440_s28 + $0xbc0] sm:$0xff]  ;;  %1592 = vst [vmem:[%s10445_s29 + $0x5d0] sm:$0xff] %v1591_v58  ;;  %1594 = vst [vmem:[%s10445_s29 + $0x5d8] sm:$0xff] %v1593_v59  ;;  %v1597_v61 = vld [vmem:[%s10440_s28 + $0xbd0] sm:$0xff] }
  0x72   : > { %1596 = vst [vmem:[%s10445_s29 + $0x5e0] sm:$0xff] %v1595_v60  ;;  %v1599_v62 = vld [vmem:[%s10440_s28 + $0xbe0] sm:$0xff]  ;;  %v1601_v63 = vld [vmem:[%s10440_s28 + $0xbf0] sm:$0xff]  ;;  %1598 = vst [vmem:[%s10445_s29 + $0x5e8] sm:$0xff] %v1597_v61 }
  0x73   : > { %1600 = vst [vmem:[%s10445_s29 + $0x5f0] sm:$0xff] %v1599_v62  ;;  %1602 = vst [vmem:[%s10445_s29 + $0x5f8] sm:$0xff] %v1601_v63  ;;  %v1603_v0 = vld [vmem:[%s10440_s28 + $0xc00] sm:$0xff]  ;;  %v1605_v1 = vld [vmem:[%s10440_s28 + $0xc10] sm:$0xff] }
  0x74   : > { %v1607_v2 = vld [vmem:[%s10440_s28 + $0xc20] sm:$0xff]  ;;  %1604 = vst [vmem:[%s10445_s29 + $0x600] sm:$0xff] %v1603_v0  ;;  %1606 = vst [vmem:[%s10445_s29 + $0x608] sm:$0xff] %v1605_v1  ;;  %v1609_v3 = vld [vmem:[%s10440_s28 + $0xc30] sm:$0xff] }
  0x75   : > { %1608 = vst [vmem:[%s10445_s29 + $0x610] sm:$0xff] %v1607_v2  ;;  %v1611_v4 = vld [vmem:[%s10440_s28 + $0xc40] sm:$0xff]  ;;  %v1613_v5 = vld [vmem:[%s10440_s28 + $0xc50] sm:$0xff]  ;;  %1610 = vst [vmem:[%s10445_s29 + $0x618] sm:$0xff] %v1609_v3 }
  0x76   : > { %1612 = vst [vmem:[%s10445_s29 + $0x620] sm:$0xff] %v1611_v4  ;;  %1614 = vst [vmem:[%s10445_s29 + $0x628] sm:$0xff] %v1613_v5  ;;  %v1615_v6 = vld [vmem:[%s10440_s28 + $0xc60] sm:$0xff]  ;;  %v1617_v7 = vld [vmem:[%s10440_s28 + $0xc70] sm:$0xff] }
  0x77   : > { %v1619_v8 = vld [vmem:[%s10440_s28 + $0xc80] sm:$0xff]  ;;  %1616 = vst [vmem:[%s10445_s29 + $0x630] sm:$0xff] %v1615_v6  ;;  %1618 = vst [vmem:[%s10445_s29 + $0x638] sm:$0xff] %v1617_v7  ;;  %v1621_v9 = vld [vmem:[%s10440_s28 + $0xc90] sm:$0xff] }
  0x78   : > { %1620 = vst [vmem:[%s10445_s29 + $0x640] sm:$0xff] %v1619_v8  ;;  %v1623_v10 = vld [vmem:[%s10440_s28 + $0xca0] sm:$0xff]  ;;  %v1625_v11 = vld [vmem:[%s10440_s28 + $0xcb0] sm:$0xff]  ;;  %1622 = vst [vmem:[%s10445_s29 + $0x648] sm:$0xff] %v1621_v9 }
  0x79   : > { %1624 = vst [vmem:[%s10445_s29 + $0x650] sm:$0xff] %v1623_v10  ;;  %1626 = vst [vmem:[%s10445_s29 + $0x658] sm:$0xff] %v1625_v11  ;;  %v1627_v12 = vld [vmem:[%s10440_s28 + $0xcc0] sm:$0xff]  ;;  %v1629_v13 = vld [vmem:[%s10440_s28 + $0xcd0] sm:$0xff] }
  0x7a   : > { %v1631_v14 = vld [vmem:[%s10440_s28 + $0xce0] sm:$0xff]  ;;  %1628 = vst [vmem:[%s10445_s29 + $0x660] sm:$0xff] %v1627_v12  ;;  %1630 = vst [vmem:[%s10445_s29 + $0x668] sm:$0xff] %v1629_v13  ;;  %v1633_v15 = vld [vmem:[%s10440_s28 + $0xcf0] sm:$0xff] }
  0x7b   : > { %1632 = vst [vmem:[%s10445_s29 + $0x670] sm:$0xff] %v1631_v14  ;;  %v1635_v16 = vld [vmem:[%s10440_s28 + $0xd00] sm:$0xff]  ;;  %v1637_v17 = vld [vmem:[%s10440_s28 + $0xd10] sm:$0xff]  ;;  %1634 = vst [vmem:[%s10445_s29 + $0x678] sm:$0xff] %v1633_v15 }
  0x7c   : > { %1636 = vst [vmem:[%s10445_s29 + $0x680] sm:$0xff] %v1635_v16  ;;  %1638 = vst [vmem:[%s10445_s29 + $0x688] sm:$0xff] %v1637_v17  ;;  %v1639_v18 = vld [vmem:[%s10440_s28 + $0xd20] sm:$0xff]  ;;  %v1641_v19 = vld [vmem:[%s10440_s28 + $0xd30] sm:$0xff] }
  0x7d   : > { %v1643_v20 = vld [vmem:[%s10440_s28 + $0xd40] sm:$0xff]  ;;  %1640 = vst [vmem:[%s10445_s29 + $0x690] sm:$0xff] %v1639_v18  ;;  %1642 = vst [vmem:[%s10445_s29 + $0x698] sm:$0xff] %v1641_v19  ;;  %v1645_v21 = vld [vmem:[%s10440_s28 + $0xd50] sm:$0xff] }
  0x7e   : > { %1644 = vst [vmem:[%s10445_s29 + $0x6a0] sm:$0xff] %v1643_v20  ;;  %v1647_v22 = vld [vmem:[%s10440_s28 + $0xd60] sm:$0xff]  ;;  %v1649_v23 = vld [vmem:[%s10440_s28 + $0xd70] sm:$0xff]  ;;  %1646 = vst [vmem:[%s10445_s29 + $0x6a8] sm:$0xff] %v1645_v21 }
  0x7f   : > { %1648 = vst [vmem:[%s10445_s29 + $0x6b0] sm:$0xff] %v1647_v22  ;;  %1650 = vst [vmem:[%s10445_s29 + $0x6b8] sm:$0xff] %v1649_v23  ;;  %v1651_v24 = vld [vmem:[%s10440_s28 + $0xd80] sm:$0xff]  ;;  %v1653_v25 = vld [vmem:[%s10440_s28 + $0xd90] sm:$0xff] }
  0x80   : > { %v1655_v26 = vld [vmem:[%s10440_s28 + $0xda0] sm:$0xff]  ;;  %1652 = vst [vmem:[%s10445_s29 + $0x6c0] sm:$0xff] %v1651_v24  ;;  %1654 = vst [vmem:[%s10445_s29 + $0x6c8] sm:$0xff] %v1653_v25  ;;  %v1657_v27 = vld [vmem:[%s10440_s28 + $0xdb0] sm:$0xff] }
  0x81   : > { %1656 = vst [vmem:[%s10445_s29 + $0x6d0] sm:$0xff] %v1655_v26  ;;  %v1659_v28 = vld [vmem:[%s10440_s28 + $0xdc0] sm:$0xff]  ;;  %v1661_v29 = vld [vmem:[%s10440_s28 + $0xdd0] sm:$0xff]  ;;  %1658 = vst [vmem:[%s10445_s29 + $0x6d8] sm:$0xff] %v1657_v27 }
  0x82   : > { %1660 = vst [vmem:[%s10445_s29 + $0x6e0] sm:$0xff] %v1659_v28  ;;  %1662 = vst [vmem:[%s10445_s29 + $0x6e8] sm:$0xff] %v1661_v29  ;;  %v1663_v30 = vld [vmem:[%s10440_s28 + $0xde0] sm:$0xff]  ;;  %v1665_v31 = vld [vmem:[%s10440_s28 + $0xdf0] sm:$0xff] }
  0x83   : > { %v1667_v32 = vld [vmem:[%s10440_s28 + $0xe00] sm:$0xff]  ;;  %1664 = vst [vmem:[%s10445_s29 + $0x6f0] sm:$0xff] %v1663_v30  ;;  %1666 = vst [vmem:[%s10445_s29 + $0x6f8] sm:$0xff] %v1665_v31  ;;  %v1669_v33 = vld [vmem:[%s10440_s28 + $0xe10] sm:$0xff] }
  0x84   : > { %1668 = vst [vmem:[%s10445_s29 + $0x700] sm:$0xff] %v1667_v32  ;;  %v1671_v34 = vld [vmem:[%s10440_s28 + $0xe20] sm:$0xff]  ;;  %v1673_v35 = vld [vmem:[%s10440_s28 + $0xe30] sm:$0xff]  ;;  %1670 = vst [vmem:[%s10445_s29 + $0x708] sm:$0xff] %v1669_v33 }
  0x85   : > { %1672 = vst [vmem:[%s10445_s29 + $0x710] sm:$0xff] %v1671_v34  ;;  %1674 = vst [vmem:[%s10445_s29 + $0x718] sm:$0xff] %v1673_v35  ;;  %v1675_v36 = vld [vmem:[%s10440_s28 + $0xe40] sm:$0xff]  ;;  %v1677_v37 = vld [vmem:[%s10440_s28 + $0xe50] sm:$0xff] }
  0x86   : > { %v1679_v38 = vld [vmem:[%s10440_s28 + $0xe60] sm:$0xff]  ;;  %1676 = vst [vmem:[%s10445_s29 + $0x720] sm:$0xff] %v1675_v36  ;;  %1678 = vst [vmem:[%s10445_s29 + $0x728] sm:$0xff] %v1677_v37  ;;  %v1681_v39 = vld [vmem:[%s10440_s28 + $0xe70] sm:$0xff] }
  0x87   : > { %1680 = vst [vmem:[%s10445_s29 + $0x730] sm:$0xff] %v1679_v38  ;;  %v1683_v40 = vld [vmem:[%s10440_s28 + $0xe80] sm:$0xff]  ;;  %v1685_v41 = vld [vmem:[%s10440_s28 + $0xe90] sm:$0xff]  ;;  %1682 = vst [vmem:[%s10445_s29 + $0x738] sm:$0xff] %v1681_v39 }
  0x88   : > { %1684 = vst [vmem:[%s10445_s29 + $0x740] sm:$0xff] %v1683_v40  ;;  %1686 = vst [vmem:[%s10445_s29 + $0x748] sm:$0xff] %v1685_v41  ;;  %v1687_v42 = vld [vmem:[%s10440_s28 + $0xea0] sm:$0xff]  ;;  %v1689_v43 = vld [vmem:[%s10440_s28 + $0xeb0] sm:$0xff] }
  0x89   : > { %v1691_v44 = vld [vmem:[%s10440_s28 + $0xec0] sm:$0xff]  ;;  %1688 = vst [vmem:[%s10445_s29 + $0x750] sm:$0xff] %v1687_v42  ;;  %1690 = vst [vmem:[%s10445_s29 + $0x758] sm:$0xff] %v1689_v43  ;;  %v1693_v45 = vld [vmem:[%s10440_s28 + $0xed0] sm:$0xff] }
  0x8a   : > { %1692 = vst [vmem:[%s10445_s29 + $0x760] sm:$0xff] %v1691_v44  ;;  %v1695_v46 = vld [vmem:[%s10440_s28 + $0xee0] sm:$0xff]  ;;  %v1697_v47 = vld [vmem:[%s10440_s28 + $0xef0] sm:$0xff]  ;;  %1694 = vst [vmem:[%s10445_s29 + $0x768] sm:$0xff] %v1693_v45 }
  0x8b   : > { %1696 = vst [vmem:[%s10445_s29 + $0x770] sm:$0xff] %v1695_v46  ;;  %1698 = vst [vmem:[%s10445_s29 + $0x778] sm:$0xff] %v1697_v47  ;;  %v1699_v48 = vld [vmem:[%s10440_s28 + $0xf00] sm:$0xff]  ;;  %v1701_v49 = vld [vmem:[%s10440_s28 + $0xf10] sm:$0xff] }
  0x8c   : > { %v1703_v50 = vld [vmem:[%s10440_s28 + $0xf20] sm:$0xff]  ;;  %1700 = vst [vmem:[%s10445_s29 + $0x780] sm:$0xff] %v1699_v48  ;;  %1702 = vst [vmem:[%s10445_s29 + $0x788] sm:$0xff] %v1701_v49  ;;  %v1705_v51 = vld [vmem:[%s10440_s28 + $0xf30] sm:$0xff] }
  0x8d   : > { %1704 = vst [vmem:[%s10445_s29 + $0x790] sm:$0xff] %v1703_v50  ;;  %v1707_v52 = vld [vmem:[%s10440_s28 + $0xf40] sm:$0xff]  ;;  %v1709_v53 = vld [vmem:[%s10440_s28 + $0xf50] sm:$0xff]  ;;  %1706 = vst [vmem:[%s10445_s29 + $0x798] sm:$0xff] %v1705_v51 }
  0x8e   : > { %1708 = vst [vmem:[%s10445_s29 + $0x7a0] sm:$0xff] %v1707_v52  ;;  %1710 = vst [vmem:[%s10445_s29 + $0x7a8] sm:$0xff] %v1709_v53  ;;  %v1711_v54 = vld [vmem:[%s10440_s28 + $0xf60] sm:$0xff]  ;;  %v1713_v55 = vld [vmem:[%s10440_s28 + $0xf70] sm:$0xff] }
  0x8f   : > { %v1715_v56 = vld [vmem:[%s10440_s28 + $0xf80] sm:$0xff]  ;;  %1712 = vst [vmem:[%s10445_s29 + $0x7b0] sm:$0xff] %v1711_v54  ;;  %1714 = vst [vmem:[%s10445_s29 + $0x7b8] sm:$0xff] %v1713_v55  ;;  %v1717_v57 = vld [vmem:[%s10440_s28 + $0xf90] sm:$0xff] }
  0x90   : > { %1716 = vst [vmem:[%s10445_s29 + $0x7c0] sm:$0xff] %v1715_v56  ;;  %v1719_v58 = vld [vmem:[%s10440_s28 + $0xfa0] sm:$0xff]  ;;  %v1721_v59 = vld [vmem:[%s10440_s28 + $0xfb0] sm:$0xff]  ;;  %1718 = vst [vmem:[%s10445_s29 + $0x7c8] sm:$0xff] %v1717_v57 }
  0x91   : > { %1720 = vst [vmem:[%s10445_s29 + $0x7d0] sm:$0xff] %v1719_v58  ;;  %1722 = vst [vmem:[%s10445_s29 + $0x7d8] sm:$0xff] %v1721_v59  ;;  %v1723_v60 = vld [vmem:[%s10440_s28 + $0xfc0] sm:$0xff]  ;;  %v1725_v61 = vld [vmem:[%s10440_s28 + $0xfd0] sm:$0xff] }
  0x92   : > { %v1727_v62 = vld [vmem:[%s10440_s28 + $0xfe0] sm:$0xff]  ;;  %1724 = vst [vmem:[%s10445_s29 + $0x7e0] sm:$0xff] %v1723_v60  ;;  %1726 = vst [vmem:[%s10445_s29 + $0x7e8] sm:$0xff] %v1725_v61  ;;  %v1729_v63 = vld [vmem:[%s10440_s28 + $0xff0] sm:$0xff] }
  0x93   : > { %1728 = vst [vmem:[%s10445_s29 + $0x7f0] sm:$0xff] %v1727_v62  ;;  %v1731_v0 = vld [vmem:[%s10440_s28 + $0x1000] sm:$0xff]  ;;  %v1733_v1 = vld [vmem:[%s10440_s28 + $0x1010] sm:$0xff]  ;;  %1730 = vst [vmem:[%s10445_s29 + $0x7f8] sm:$0xff] %v1729_v63 }
  0x94   : > { %1732 = vst [vmem:[%s10445_s29 + $0x800] sm:$0xff] %v1731_v0  ;;  %1734 = vst [vmem:[%s10445_s29 + $0x808] sm:$0xff] %v1733_v1  ;;  %v1735_v2 = vld [vmem:[%s10440_s28 + $0x1020] sm:$0xff]  ;;  %v1737_v3 = vld [vmem:[%s10440_s28 + $0x1030] sm:$0xff] }
  0x95   : > { %v1739_v4 = vld [vmem:[%s10440_s28 + $0x1040] sm:$0xff]  ;;  %1736 = vst [vmem:[%s10445_s29 + $0x810] sm:$0xff] %v1735_v2  ;;  %1738 = vst [vmem:[%s10445_s29 + $0x818] sm:$0xff] %v1737_v3  ;;  %v1741_v5 = vld [vmem:[%s10440_s28 + $0x1050] sm:$0xff] }
  0x96   : > { %1740 = vst [vmem:[%s10445_s29 + $0x820] sm:$0xff] %v1739_v4  ;;  %v1743_v6 = vld [vmem:[%s10440_s28 + $0x1060] sm:$0xff]  ;;  %v1745_v7 = vld [vmem:[%s10440_s28 + $0x1070] sm:$0xff]  ;;  %1742 = vst [vmem:[%s10445_s29 + $0x828] sm:$0xff] %v1741_v5 }
  0x97   : > { %1744 = vst [vmem:[%s10445_s29 + $0x830] sm:$0xff] %v1743_v6  ;;  %1746 = vst [vmem:[%s10445_s29 + $0x838] sm:$0xff] %v1745_v7  ;;  %v1747_v8 = vld [vmem:[%s10440_s28 + $0x1080] sm:$0xff]  ;;  %v1749_v9 = vld [vmem:[%s10440_s28 + $0x1090] sm:$0xff] }
  0x98   : > { %v1751_v10 = vld [vmem:[%s10440_s28 + $0x10a0] sm:$0xff]  ;;  %1748 = vst [vmem:[%s10445_s29 + $0x840] sm:$0xff] %v1747_v8  ;;  %1750 = vst [vmem:[%s10445_s29 + $0x848] sm:$0xff] %v1749_v9  ;;  %v1753_v11 = vld [vmem:[%s10440_s28 + $0x10b0] sm:$0xff] }
  0x99   : > { %1752 = vst [vmem:[%s10445_s29 + $0x850] sm:$0xff] %v1751_v10  ;;  %v1755_v12 = vld [vmem:[%s10440_s28 + $0x10c0] sm:$0xff]  ;;  %v1757_v13 = vld [vmem:[%s10440_s28 + $0x10d0] sm:$0xff]  ;;  %1754 = vst [vmem:[%s10445_s29 + $0x858] sm:$0xff] %v1753_v11 }
  0x9a   : > { %1756 = vst [vmem:[%s10445_s29 + $0x860] sm:$0xff] %v1755_v12  ;;  %1758 = vst [vmem:[%s10445_s29 + $0x868] sm:$0xff] %v1757_v13  ;;  %v1759_v14 = vld [vmem:[%s10440_s28 + $0x10e0] sm:$0xff]  ;;  %v1761_v15 = vld [vmem:[%s10440_s28 + $0x10f0] sm:$0xff] }
  0x9b   : > { %v1763_v16 = vld [vmem:[%s10440_s28 + $0x1100] sm:$0xff]  ;;  %1760 = vst [vmem:[%s10445_s29 + $0x870] sm:$0xff] %v1759_v14  ;;  %1762 = vst [vmem:[%s10445_s29 + $0x878] sm:$0xff] %v1761_v15  ;;  %v1765_v17 = vld [vmem:[%s10440_s28 + $0x1110] sm:$0xff] }
  0x9c   : > { %1764 = vst [vmem:[%s10445_s29 + $0x880] sm:$0xff] %v1763_v16  ;;  %v1767_v18 = vld [vmem:[%s10440_s28 + $0x1120] sm:$0xff]  ;;  %v1769_v19 = vld [vmem:[%s10440_s28 + $0x1130] sm:$0xff]  ;;  %1766 = vst [vmem:[%s10445_s29 + $0x888] sm:$0xff] %v1765_v17 }
  0x9d   : > { %1768 = vst [vmem:[%s10445_s29 + $0x890] sm:$0xff] %v1767_v18  ;;  %1770 = vst [vmem:[%s10445_s29 + $0x898] sm:$0xff] %v1769_v19  ;;  %v1771_v20 = vld [vmem:[%s10440_s28 + $0x1140] sm:$0xff]  ;;  %v1773_v21 = vld [vmem:[%s10440_s28 + $0x1150] sm:$0xff] }
  0x9e   : > { %v1775_v22 = vld [vmem:[%s10440_s28 + $0x1160] sm:$0xff]  ;;  %1772 = vst [vmem:[%s10445_s29 + $0x8a0] sm:$0xff] %v1771_v20  ;;  %1774 = vst [vmem:[%s10445_s29 + $0x8a8] sm:$0xff] %v1773_v21  ;;  %v1777_v23 = vld [vmem:[%s10440_s28 + $0x1170] sm:$0xff] }
  0x9f   : > { %1776 = vst [vmem:[%s10445_s29 + $0x8b0] sm:$0xff] %v1775_v22  ;;  %v1779_v24 = vld [vmem:[%s10440_s28 + $0x1180] sm:$0xff]  ;;  %v1781_v25 = vld [vmem:[%s10440_s28 + $0x1190] sm:$0xff]  ;;  %1778 = vst [vmem:[%s10445_s29 + $0x8b8] sm:$0xff] %v1777_v23 }
  0xa0   : > { %1780 = vst [vmem:[%s10445_s29 + $0x8c0] sm:$0xff] %v1779_v24  ;;  %1782 = vst [vmem:[%s10445_s29 + $0x8c8] sm:$0xff] %v1781_v25  ;;  %v1783_v26 = vld [vmem:[%s10440_s28 + $0x11a0] sm:$0xff]  ;;  %v1785_v27 = vld [vmem:[%s10440_s28 + $0x11b0] sm:$0xff] }
  0xa1   : > { %v1787_v28 = vld [vmem:[%s10440_s28 + $0x11c0] sm:$0xff]  ;;  %1784 = vst [vmem:[%s10445_s29 + $0x8d0] sm:$0xff] %v1783_v26  ;;  %1786 = vst [vmem:[%s10445_s29 + $0x8d8] sm:$0xff] %v1785_v27  ;;  %v1789_v29 = vld [vmem:[%s10440_s28 + $0x11d0] sm:$0xff] }
  0xa2   : > { %1788 = vst [vmem:[%s10445_s29 + $0x8e0] sm:$0xff] %v1787_v28  ;;  %v1791_v30 = vld [vmem:[%s10440_s28 + $0x11e0] sm:$0xff]  ;;  %v1793_v31 = vld [vmem:[%s10440_s28 + $0x11f0] sm:$0xff]  ;;  %1790 = vst [vmem:[%s10445_s29 + $0x8e8] sm:$0xff] %v1789_v29 }
  0xa3   : > { %1792 = vst [vmem:[%s10445_s29 + $0x8f0] sm:$0xff] %v1791_v30  ;;  %1794 = vst [vmem:[%s10445_s29 + $0x8f8] sm:$0xff] %v1793_v31  ;;  %v1795_v32 = vld [vmem:[%s10440_s28 + $0x1200] sm:$0xff]  ;;  %v1797_v33 = vld [vmem:[%s10440_s28 + $0x1210] sm:$0xff] }
  0xa4   : > { %v1799_v34 = vld [vmem:[%s10440_s28 + $0x1220] sm:$0xff]  ;;  %1796 = vst [vmem:[%s10445_s29 + $0x900] sm:$0xff] %v1795_v32  ;;  %1798 = vst [vmem:[%s10445_s29 + $0x908] sm:$0xff] %v1797_v33  ;;  %v1801_v35 = vld [vmem:[%s10440_s28 + $0x1230] sm:$0xff] }
  0xa5   : > { %1800 = vst [vmem:[%s10445_s29 + $0x910] sm:$0xff] %v1799_v34  ;;  %v1803_v36 = vld [vmem:[%s10440_s28 + $0x1240] sm:$0xff]  ;;  %v1805_v37 = vld [vmem:[%s10440_s28 + $0x1250] sm:$0xff]  ;;  %1802 = vst [vmem:[%s10445_s29 + $0x918] sm:$0xff] %v1801_v35 }
  0xa6   : > { %1804 = vst [vmem:[%s10445_s29 + $0x920] sm:$0xff] %v1803_v36  ;;  %1806 = vst [vmem:[%s10445_s29 + $0x928] sm:$0xff] %v1805_v37  ;;  %v1807_v38 = vld [vmem:[%s10440_s28 + $0x1260] sm:$0xff]  ;;  %v1809_v39 = vld [vmem:[%s10440_s28 + $0x1270] sm:$0xff] }
  0xa7   : > { %v1811_v40 = vld [vmem:[%s10440_s28 + $0x1280] sm:$0xff]  ;;  %1808 = vst [vmem:[%s10445_s29 + $0x930] sm:$0xff] %v1807_v38  ;;  %1810 = vst [vmem:[%s10445_s29 + $0x938] sm:$0xff] %v1809_v39  ;;  %v1813_v41 = vld [vmem:[%s10440_s28 + $0x1290] sm:$0xff] }
  0xa8   : > { %1812 = vst [vmem:[%s10445_s29 + $0x940] sm:$0xff] %v1811_v40  ;;  %v1815_v42 = vld [vmem:[%s10440_s28 + $0x12a0] sm:$0xff]  ;;  %v1817_v43 = vld [vmem:[%s10440_s28 + $0x12b0] sm:$0xff]  ;;  %1814 = vst [vmem:[%s10445_s29 + $0x948] sm:$0xff] %v1813_v41 }
  0xa9   : > { %1816 = vst [vmem:[%s10445_s29 + $0x950] sm:$0xff] %v1815_v42  ;;  %1818 = vst [vmem:[%s10445_s29 + $0x958] sm:$0xff] %v1817_v43  ;;  %v1819_v44 = vld [vmem:[%s10440_s28 + $0x12c0] sm:$0xff]  ;;  %v1821_v45 = vld [vmem:[%s10440_s28 + $0x12d0] sm:$0xff] }
  0xaa   : > { %v1823_v46 = vld [vmem:[%s10440_s28 + $0x12e0] sm:$0xff]  ;;  %1820 = vst [vmem:[%s10445_s29 + $0x960] sm:$0xff] %v1819_v44  ;;  %1822 = vst [vmem:[%s10445_s29 + $0x968] sm:$0xff] %v1821_v45  ;;  %v1825_v47 = vld [vmem:[%s10440_s28 + $0x12f0] sm:$0xff] }
  0xab   : > { %1824 = vst [vmem:[%s10445_s29 + $0x970] sm:$0xff] %v1823_v46  ;;  %v1827_v48 = vld [vmem:[%s10440_s28 + $0x1300] sm:$0xff]  ;;  %v1829_v49 = vld [vmem:[%s10440_s28 + $0x1310] sm:$0xff]  ;;  %1826 = vst [vmem:[%s10445_s29 + $0x978] sm:$0xff] %v1825_v47 }
  0xac   : > { %1828 = vst [vmem:[%s10445_s29 + $0x980] sm:$0xff] %v1827_v48  ;;  %1830 = vst [vmem:[%s10445_s29 + $0x988] sm:$0xff] %v1829_v49  ;;  %v1831_v50 = vld [vmem:[%s10440_s28 + $0x1320] sm:$0xff]  ;;  %v1833_v51 = vld [vmem:[%s10440_s28 + $0x1330] sm:$0xff] }
  0xad   : > { %v1835_v52 = vld [vmem:[%s10440_s28 + $0x1340] sm:$0xff]  ;;  %1832 = vst [vmem:[%s10445_s29 + $0x990] sm:$0xff] %v1831_v50  ;;  %1834 = vst [vmem:[%s10445_s29 + $0x998] sm:$0xff] %v1833_v51  ;;  %v1837_v53 = vld [vmem:[%s10440_s28 + $0x1350] sm:$0xff] }
  0xae   : > { %1836 = vst [vmem:[%s10445_s29 + $0x9a0] sm:$0xff] %v1835_v52  ;;  %v1839_v54 = vld [vmem:[%s10440_s28 + $0x1360] sm:$0xff]  ;;  %v1841_v55 = vld [vmem:[%s10440_s28 + $0x1370] sm:$0xff]  ;;  %1838 = vst [vmem:[%s10445_s29 + $0x9a8] sm:$0xff] %v1837_v53 }
  0xaf   : > { %1840 = vst [vmem:[%s10445_s29 + $0x9b0] sm:$0xff] %v1839_v54  ;;  %1842 = vst [vmem:[%s10445_s29 + $0x9b8] sm:$0xff] %v1841_v55  ;;  %v1843_v56 = vld [vmem:[%s10440_s28 + $0x1380] sm:$0xff]  ;;  %v1845_v57 = vld [vmem:[%s10440_s28 + $0x1390] sm:$0xff] }
  0xb0   : > { %v1847_v58 = vld [vmem:[%s10440_s28 + $0x13a0] sm:$0xff]  ;;  %1844 = vst [vmem:[%s10445_s29 + $0x9c0] sm:$0xff] %v1843_v56  ;;  %1846 = vst [vmem:[%s10445_s29 + $0x9c8] sm:$0xff] %v1845_v57  ;;  %v1849_v59 = vld [vmem:[%s10440_s28 + $0x13b0] sm:$0xff] }
  0xb1   : > { %1848 = vst [vmem:[%s10445_s29 + $0x9d0] sm:$0xff] %v1847_v58  ;;  %v1851_v60 = vld [vmem:[%s10440_s28 + $0x13c0] sm:$0xff]  ;;  %v1853_v61 = vld [vmem:[%s10440_s28 + $0x13d0] sm:$0xff]  ;;  %1850 = vst [vmem:[%s10445_s29 + $0x9d8] sm:$0xff] %v1849_v59 }
  0xb2   : > { %1852 = vst [vmem:[%s10445_s29 + $0x9e0] sm:$0xff] %v1851_v60  ;;  %1854 = vst [vmem:[%s10445_s29 + $0x9e8] sm:$0xff] %v1853_v61  ;;  %v1855_v62 = vld [vmem:[%s10440_s28 + $0x13e0] sm:$0xff]  ;;  %v1857_v63 = vld [vmem:[%s10440_s28 + $0x13f0] sm:$0xff] }
  0xb3   : > { %v1859_v0 = vld [vmem:[%s10440_s28 + $0x1400] sm:$0xff]  ;;  %1856 = vst [vmem:[%s10445_s29 + $0x9f0] sm:$0xff] %v1855_v62  ;;  %1858 = vst [vmem:[%s10445_s29 + $0x9f8] sm:$0xff] %v1857_v63  ;;  %v1861_v1 = vld [vmem:[%s10440_s28 + $0x1410] sm:$0xff] }
  0xb4   : > { %1860 = vst [vmem:[%s10445_s29 + $0xa00] sm:$0xff] %v1859_v0  ;;  %v1863_v2 = vld [vmem:[%s10440_s28 + $0x1420] sm:$0xff]  ;;  %v1865_v3 = vld [vmem:[%s10440_s28 + $0x1430] sm:$0xff]  ;;  %1862 = vst [vmem:[%s10445_s29 + $0xa08] sm:$0xff] %v1861_v1 }
  0xb5   : > { %1864 = vst [vmem:[%s10445_s29 + $0xa10] sm:$0xff] %v1863_v2  ;;  %1866 = vst [vmem:[%s10445_s29 + $0xa18] sm:$0xff] %v1865_v3  ;;  %v1867_v4 = vld [vmem:[%s10440_s28 + $0x1440] sm:$0xff]  ;;  %v1869_v5 = vld [vmem:[%s10440_s28 + $0x1450] sm:$0xff] }
  0xb6   : > { %v1871_v6 = vld [vmem:[%s10440_s28 + $0x1460] sm:$0xff]  ;;  %1868 = vst [vmem:[%s10445_s29 + $0xa20] sm:$0xff] %v1867_v4  ;;  %1870 = vst [vmem:[%s10445_s29 + $0xa28] sm:$0xff] %v1869_v5  ;;  %v1873_v7 = vld [vmem:[%s10440_s28 + $0x1470] sm:$0xff] }
  0xb7   : > { %1872 = vst [vmem:[%s10445_s29 + $0xa30] sm:$0xff] %v1871_v6  ;;  %v1875_v8 = vld [vmem:[%s10440_s28 + $0x1480] sm:$0xff]  ;;  %v1877_v9 = vld [vmem:[%s10440_s28 + $0x1490] sm:$0xff]  ;;  %1874 = vst [vmem:[%s10445_s29 + $0xa38] sm:$0xff] %v1873_v7 }
  0xb8   : > { %1876 = vst [vmem:[%s10445_s29 + $0xa40] sm:$0xff] %v1875_v8  ;;  %1878 = vst [vmem:[%s10445_s29 + $0xa48] sm:$0xff] %v1877_v9  ;;  %v1879_v10 = vld [vmem:[%s10440_s28 + $0x14a0] sm:$0xff]  ;;  %v1881_v11 = vld [vmem:[%s10440_s28 + $0x14b0] sm:$0xff] }
  0xb9   : > { %v1883_v12 = vld [vmem:[%s10440_s28 + $0x14c0] sm:$0xff]  ;;  %1880 = vst [vmem:[%s10445_s29 + $0xa50] sm:$0xff] %v1879_v10  ;;  %1882 = vst [vmem:[%s10445_s29 + $0xa58] sm:$0xff] %v1881_v11  ;;  %v1885_v13 = vld [vmem:[%s10440_s28 + $0x14d0] sm:$0xff] }
  0xba   : > { %1884 = vst [vmem:[%s10445_s29 + $0xa60] sm:$0xff] %v1883_v12  ;;  %v1887_v14 = vld [vmem:[%s10440_s28 + $0x14e0] sm:$0xff]  ;;  %v1889_v15 = vld [vmem:[%s10440_s28 + $0x14f0] sm:$0xff]  ;;  %1886 = vst [vmem:[%s10445_s29 + $0xa68] sm:$0xff] %v1885_v13 }
  0xbb   : > { %1888 = vst [vmem:[%s10445_s29 + $0xa70] sm:$0xff] %v1887_v14  ;;  %1890 = vst [vmem:[%s10445_s29 + $0xa78] sm:$0xff] %v1889_v15  ;;  %v1891_v16 = vld [vmem:[%s10440_s28 + $0x1500] sm:$0xff]  ;;  %v1893_v17 = vld [vmem:[%s10440_s28 + $0x1510] sm:$0xff] }
  0xbc   : > { %v1895_v18 = vld [vmem:[%s10440_s28 + $0x1520] sm:$0xff]  ;;  %1892 = vst [vmem:[%s10445_s29 + $0xa80] sm:$0xff] %v1891_v16  ;;  %1894 = vst [vmem:[%s10445_s29 + $0xa88] sm:$0xff] %v1893_v17  ;;  %v1897_v19 = vld [vmem:[%s10440_s28 + $0x1530] sm:$0xff] }
  0xbd   : > { %1896 = vst [vmem:[%s10445_s29 + $0xa90] sm:$0xff] %v1895_v18  ;;  %v1899_v20 = vld [vmem:[%s10440_s28 + $0x1540] sm:$0xff]  ;;  %v1901_v21 = vld [vmem:[%s10440_s28 + $0x1550] sm:$0xff]  ;;  %1898 = vst [vmem:[%s10445_s29 + $0xa98] sm:$0xff] %v1897_v19 }
  0xbe   : > { %1900 = vst [vmem:[%s10445_s29 + $0xaa0] sm:$0xff] %v1899_v20  ;;  %1902 = vst [vmem:[%s10445_s29 + $0xaa8] sm:$0xff] %v1901_v21  ;;  %v1903_v22 = vld [vmem:[%s10440_s28 + $0x1560] sm:$0xff]  ;;  %v1905_v23 = vld [vmem:[%s10440_s28 + $0x1570] sm:$0xff] }
  0xbf   : > { %v1907_v24 = vld [vmem:[%s10440_s28 + $0x1580] sm:$0xff]  ;;  %1904 = vst [vmem:[%s10445_s29 + $0xab0] sm:$0xff] %v1903_v22  ;;  %1906 = vst [vmem:[%s10445_s29 + $0xab8] sm:$0xff] %v1905_v23  ;;  %v1909_v25 = vld [vmem:[%s10440_s28 + $0x1590] sm:$0xff] }
  0xc0   : > { %1908 = vst [vmem:[%s10445_s29 + $0xac0] sm:$0xff] %v1907_v24  ;;  %v1911_v26 = vld [vmem:[%s10440_s28 + $0x15a0] sm:$0xff]  ;;  %v1913_v27 = vld [vmem:[%s10440_s28 + $0x15b0] sm:$0xff]  ;;  %1910 = vst [vmem:[%s10445_s29 + $0xac8] sm:$0xff] %v1909_v25 }
  0xc1   : > { %1912 = vst [vmem:[%s10445_s29 + $0xad0] sm:$0xff] %v1911_v26  ;;  %1914 = vst [vmem:[%s10445_s29 + $0xad8] sm:$0xff] %v1913_v27  ;;  %v1915_v28 = vld [vmem:[%s10440_s28 + $0x15c0] sm:$0xff]  ;;  %v1917_v29 = vld [vmem:[%s10440_s28 + $0x15d0] sm:$0xff] }
  0xc2   : > { %v1919_v30 = vld [vmem:[%s10440_s28 + $0x15e0] sm:$0xff]  ;;  %1916 = vst [vmem:[%s10445_s29 + $0xae0] sm:$0xff] %v1915_v28  ;;  %1918 = vst [vmem:[%s10445_s29 + $0xae8] sm:$0xff] %v1917_v29  ;;  %v1921_v31 = vld [vmem:[%s10440_s28 + $0x15f0] sm:$0xff] }
  0xc3   : > { %1920 = vst [vmem:[%s10445_s29 + $0xaf0] sm:$0xff] %v1919_v30  ;;  %v1923_v32 = vld [vmem:[%s10440_s28 + $0x1600] sm:$0xff]  ;;  %v1925_v33 = vld [vmem:[%s10440_s28 + $0x1610] sm:$0xff]  ;;  %1922 = vst [vmem:[%s10445_s29 + $0xaf8] sm:$0xff] %v1921_v31 }
  0xc4   : > { %1924 = vst [vmem:[%s10445_s29 + $0xb00] sm:$0xff] %v1923_v32  ;;  %1926 = vst [vmem:[%s10445_s29 + $0xb08] sm:$0xff] %v1925_v33  ;;  %v1927_v34 = vld [vmem:[%s10440_s28 + $0x1620] sm:$0xff]  ;;  %v1929_v35 = vld [vmem:[%s10440_s28 + $0x1630] sm:$0xff] }
  0xc5   : > { %v1931_v36 = vld [vmem:[%s10440_s28 + $0x1640] sm:$0xff]  ;;  %1928 = vst [vmem:[%s10445_s29 + $0xb10] sm:$0xff] %v1927_v34  ;;  %1930 = vst [vmem:[%s10445_s29 + $0xb18] sm:$0xff] %v1929_v35  ;;  %v1933_v37 = vld [vmem:[%s10440_s28 + $0x1650] sm:$0xff] }
  0xc6   : > { %1932 = vst [vmem:[%s10445_s29 + $0xb20] sm:$0xff] %v1931_v36  ;;  %v1935_v38 = vld [vmem:[%s10440_s28 + $0x1660] sm:$0xff]  ;;  %v1937_v39 = vld [vmem:[%s10440_s28 + $0x1670] sm:$0xff]  ;;  %1934 = vst [vmem:[%s10445_s29 + $0xb28] sm:$0xff] %v1933_v37 }
  0xc7   : > { %1936 = vst [vmem:[%s10445_s29 + $0xb30] sm:$0xff] %v1935_v38  ;;  %1938 = vst [vmem:[%s10445_s29 + $0xb38] sm:$0xff] %v1937_v39  ;;  %v1939_v40 = vld [vmem:[%s10440_s28 + $0x1680] sm:$0xff]  ;;  %v1941_v41 = vld [vmem:[%s10440_s28 + $0x1690] sm:$0xff] }
  0xc8   : > { %v1943_v42 = vld [vmem:[%s10440_s28 + $0x16a0] sm:$0xff]  ;;  %1940 = vst [vmem:[%s10445_s29 + $0xb40] sm:$0xff] %v1939_v40  ;;  %1942 = vst [vmem:[%s10445_s29 + $0xb48] sm:$0xff] %v1941_v41  ;;  %v1945_v43 = vld [vmem:[%s10440_s28 + $0x16b0] sm:$0xff] }
  0xc9   : > { %1944 = vst [vmem:[%s10445_s29 + $0xb50] sm:$0xff] %v1943_v42  ;;  %v1947_v44 = vld [vmem:[%s10440_s28 + $0x16c0] sm:$0xff]  ;;  %v1949_v45 = vld [vmem:[%s10440_s28 + $0x16d0] sm:$0xff]  ;;  %1946 = vst [vmem:[%s10445_s29 + $0xb58] sm:$0xff] %v1945_v43 }
  0xca   : > { %1948 = vst [vmem:[%s10445_s29 + $0xb60] sm:$0xff] %v1947_v44  ;;  %1950 = vst [vmem:[%s10445_s29 + $0xb68] sm:$0xff] %v1949_v45  ;;  %v1951_v46 = vld [vmem:[%s10440_s28 + $0x16e0] sm:$0xff]  ;;  %v1953_v47 = vld [vmem:[%s10440_s28 + $0x16f0] sm:$0xff] }
  0xcb   : > { %v1955_v48 = vld [vmem:[%s10440_s28 + $0x1700] sm:$0xff]  ;;  %1952 = vst [vmem:[%s10445_s29 + $0xb70] sm:$0xff] %v1951_v46  ;;  %1954 = vst [vmem:[%s10445_s29 + $0xb78] sm:$0xff] %v1953_v47  ;;  %v1957_v49 = vld [vmem:[%s10440_s28 + $0x1710] sm:$0xff] }
  0xcc   : > { %1956 = vst [vmem:[%s10445_s29 + $0xb80] sm:$0xff] %v1955_v48  ;;  %v1959_v50 = vld [vmem:[%s10440_s28 + $0x1720] sm:$0xff]  ;;  %v1961_v51 = vld [vmem:[%s10440_s28 + $0x1730] sm:$0xff]  ;;  %1958 = vst [vmem:[%s10445_s29 + $0xb88] sm:$0xff] %v1957_v49 }
  0xcd   : > { %1960 = vst [vmem:[%s10445_s29 + $0xb90] sm:$0xff] %v1959_v50  ;;  %1962 = vst [vmem:[%s10445_s29 + $0xb98] sm:$0xff] %v1961_v51  ;;  %v1963_v52 = vld [vmem:[%s10440_s28 + $0x1740] sm:$0xff]  ;;  %v1965_v53 = vld [vmem:[%s10440_s28 + $0x1750] sm:$0xff] }
  0xce   : > { %v1967_v54 = vld [vmem:[%s10440_s28 + $0x1760] sm:$0xff]  ;;  %1964 = vst [vmem:[%s10445_s29 + $0xba0] sm:$0xff] %v1963_v52  ;;  %1966 = vst [vmem:[%s10445_s29 + $0xba8] sm:$0xff] %v1965_v53  ;;  %v1969_v55 = vld [vmem:[%s10440_s28 + $0x1770] sm:$0xff] }
  0xcf   : > { %1968 = vst [vmem:[%s10445_s29 + $0xbb0] sm:$0xff] %v1967_v54  ;;  %v1971_v56 = vld [vmem:[%s10440_s28 + $0x1780] sm:$0xff]  ;;  %v1973_v57 = vld [vmem:[%s10440_s28 + $0x1790] sm:$0xff]  ;;  %1970 = vst [vmem:[%s10445_s29 + $0xbb8] sm:$0xff] %v1969_v55 }
  0xd0   : > { %1972 = vst [vmem:[%s10445_s29 + $0xbc0] sm:$0xff] %v1971_v56  ;;  %1974 = vst [vmem:[%s10445_s29 + $0xbc8] sm:$0xff] %v1973_v57  ;;  %v1975_v58 = vld [vmem:[%s10440_s28 + $0x17a0] sm:$0xff]  ;;  %v1977_v59 = vld [vmem:[%s10440_s28 + $0x17b0] sm:$0xff] }
  0xd1   : > { %v1979_v60 = vld [vmem:[%s10440_s28 + $0x17c0] sm:$0xff]  ;;  %1976 = vst [vmem:[%s10445_s29 + $0xbd0] sm:$0xff] %v1975_v58  ;;  %1978 = vst [vmem:[%s10445_s29 + $0xbd8] sm:$0xff] %v1977_v59  ;;  %v1981_v61 = vld [vmem:[%s10440_s28 + $0x17d0] sm:$0xff] }
  0xd2   : > { %1980 = vst [vmem:[%s10445_s29 + $0xbe0] sm:$0xff] %v1979_v60  ;;  %v1983_v62 = vld [vmem:[%s10440_s28 + $0x17e0] sm:$0xff]  ;;  %v1985_v63 = vld [vmem:[%s10440_s28 + $0x17f0] sm:$0xff]  ;;  %1982 = vst [vmem:[%s10445_s29 + $0xbe8] sm:$0xff] %v1981_v61 }
  0xd3   : > { %1984 = vst [vmem:[%s10445_s29 + $0xbf0] sm:$0xff] %v1983_v62  ;;  %1986 = vst [vmem:[%s10445_s29 + $0xbf8] sm:$0xff] %v1985_v63  ;;  %v1987_v0 = vld [vmem:[%s10440_s28 + $0x1800] sm:$0xff]  ;;  %v1989_v1 = vld [vmem:[%s10440_s28 + $0x1810] sm:$0xff] }
  0xd4   : > { %v1991_v2 = vld [vmem:[%s10440_s28 + $0x1820] sm:$0xff]  ;;  %1988 = vst [vmem:[%s10445_s29 + $0xc00] sm:$0xff] %v1987_v0  ;;  %1990 = vst [vmem:[%s10445_s29 + $0xc08] sm:$0xff] %v1989_v1  ;;  %v1993_v3 = vld [vmem:[%s10440_s28 + $0x1830] sm:$0xff] }
  0xd5   : > { %1992 = vst [vmem:[%s10445_s29 + $0xc10] sm:$0xff] %v1991_v2  ;;  %v1995_v4 = vld [vmem:[%s10440_s28 + $0x1840] sm:$0xff]  ;;  %v1997_v5 = vld [vmem:[%s10440_s28 + $0x1850] sm:$0xff]  ;;  %1994 = vst [vmem:[%s10445_s29 + $0xc18] sm:$0xff] %v1993_v3 }
  0xd6   : > { %1996 = vst [vmem:[%s10445_s29 + $0xc20] sm:$0xff] %v1995_v4  ;;  %1998 = vst [vmem:[%s10445_s29 + $0xc28] sm:$0xff] %v1997_v5  ;;  %v1999_v6 = vld [vmem:[%s10440_s28 + $0x1860] sm:$0xff]  ;;  %v2001_v7 = vld [vmem:[%s10440_s28 + $0x1870] sm:$0xff] }
  0xd7   : > { %v2003_v8 = vld [vmem:[%s10440_s28 + $0x1880] sm:$0xff]  ;;  %2000 = vst [vmem:[%s10445_s29 + $0xc30] sm:$0xff] %v1999_v6  ;;  %2002 = vst [vmem:[%s10445_s29 + $0xc38] sm:$0xff] %v2001_v7  ;;  %v2005_v9 = vld [vmem:[%s10440_s28 + $0x1890] sm:$0xff] }
  0xd8   : > { %2004 = vst [vmem:[%s10445_s29 + $0xc40] sm:$0xff] %v2003_v8  ;;  %v2007_v10 = vld [vmem:[%s10440_s28 + $0x18a0] sm:$0xff]  ;;  %v2009_v11 = vld [vmem:[%s10440_s28 + $0x18b0] sm:$0xff]  ;;  %2006 = vst [vmem:[%s10445_s29 + $0xc48] sm:$0xff] %v2005_v9 }
  0xd9   : > { %2008 = vst [vmem:[%s10445_s29 + $0xc50] sm:$0xff] %v2007_v10  ;;  %2010 = vst [vmem:[%s10445_s29 + $0xc58] sm:$0xff] %v2009_v11  ;;  %v2011_v12 = vld [vmem:[%s10440_s28 + $0x18c0] sm:$0xff]  ;;  %v2013_v13 = vld [vmem:[%s10440_s28 + $0x18d0] sm:$0xff] }
  0xda   : > { %v2015_v14 = vld [vmem:[%s10440_s28 + $0x18e0] sm:$0xff]  ;;  %2012 = vst [vmem:[%s10445_s29 + $0xc60] sm:$0xff] %v2011_v12  ;;  %2014 = vst [vmem:[%s10445_s29 + $0xc68] sm:$0xff] %v2013_v13  ;;  %v2017_v15 = vld [vmem:[%s10440_s28 + $0x18f0] sm:$0xff] }
  0xdb   : > { %2016 = vst [vmem:[%s10445_s29 + $0xc70] sm:$0xff] %v2015_v14  ;;  %v2019_v16 = vld [vmem:[%s10440_s28 + $0x1900] sm:$0xff]  ;;  %v2021_v17 = vld [vmem:[%s10440_s28 + $0x1910] sm:$0xff]  ;;  %2018 = vst [vmem:[%s10445_s29 + $0xc78] sm:$0xff] %v2017_v15 }
  0xdc   : > { %2020 = vst [vmem:[%s10445_s29 + $0xc80] sm:$0xff] %v2019_v16  ;;  %2022 = vst [vmem:[%s10445_s29 + $0xc88] sm:$0xff] %v2021_v17  ;;  %v2023_v18 = vld [vmem:[%s10440_s28 + $0x1920] sm:$0xff]  ;;  %v2025_v19 = vld [vmem:[%s10440_s28 + $0x1930] sm:$0xff] }
  0xdd   : > { %v2027_v20 = vld [vmem:[%s10440_s28 + $0x1940] sm:$0xff]  ;;  %2024 = vst [vmem:[%s10445_s29 + $0xc90] sm:$0xff] %v2023_v18  ;;  %2026 = vst [vmem:[%s10445_s29 + $0xc98] sm:$0xff] %v2025_v19  ;;  %v2029_v21 = vld [vmem:[%s10440_s28 + $0x1950] sm:$0xff] }
  0xde   : > { %2028 = vst [vmem:[%s10445_s29 + $0xca0] sm:$0xff] %v2027_v20  ;;  %v2031_v22 = vld [vmem:[%s10440_s28 + $0x1960] sm:$0xff]  ;;  %v2033_v23 = vld [vmem:[%s10440_s28 + $0x1970] sm:$0xff]  ;;  %2030 = vst [vmem:[%s10445_s29 + $0xca8] sm:$0xff] %v2029_v21 }
  0xdf   : > { %2032 = vst [vmem:[%s10445_s29 + $0xcb0] sm:$0xff] %v2031_v22  ;;  %2034 = vst [vmem:[%s10445_s29 + $0xcb8] sm:$0xff] %v2033_v23  ;;  %v2035_v24 = vld [vmem:[%s10440_s28 + $0x1980] sm:$0xff]  ;;  %v2037_v25 = vld [vmem:[%s10440_s28 + $0x1990] sm:$0xff] }
  0xe0   : > { %v2039_v26 = vld [vmem:[%s10440_s28 + $0x19a0] sm:$0xff]  ;;  %2036 = vst [vmem:[%s10445_s29 + $0xcc0] sm:$0xff] %v2035_v24  ;;  %2038 = vst [vmem:[%s10445_s29 + $0xcc8] sm:$0xff] %v2037_v25  ;;  %v2041_v27 = vld [vmem:[%s10440_s28 + $0x19b0] sm:$0xff] }
  0xe1   : > { %2040 = vst [vmem:[%s10445_s29 + $0xcd0] sm:$0xff] %v2039_v26  ;;  %v2043_v28 = vld [vmem:[%s10440_s28 + $0x19c0] sm:$0xff]  ;;  %v2045_v29 = vld [vmem:[%s10440_s28 + $0x19d0] sm:$0xff]  ;;  %2042 = vst [vmem:[%s10445_s29 + $0xcd8] sm:$0xff] %v2041_v27 }
  0xe2   : > { %2044 = vst [vmem:[%s10445_s29 + $0xce0] sm:$0xff] %v2043_v28  ;;  %2046 = vst [vmem:[%s10445_s29 + $0xce8] sm:$0xff] %v2045_v29  ;;  %v2047_v30 = vld [vmem:[%s10440_s28 + $0x19e0] sm:$0xff]  ;;  %v2049_v31 = vld [vmem:[%s10440_s28 + $0x19f0] sm:$0xff] }
  0xe3   : > { %v2051_v32 = vld [vmem:[%s10440_s28 + $0x1a00] sm:$0xff]  ;;  %2048 = vst [vmem:[%s10445_s29 + $0xcf0] sm:$0xff] %v2047_v30  ;;  %2050 = vst [vmem:[%s10445_s29 + $0xcf8] sm:$0xff] %v2049_v31  ;;  %v2053_v33 = vld [vmem:[%s10440_s28 + $0x1a10] sm:$0xff] }
  0xe4   : > { %2052 = vst [vmem:[%s10445_s29 + $0xd00] sm:$0xff] %v2051_v32  ;;  %v2055_v34 = vld [vmem:[%s10440_s28 + $0x1a20] sm:$0xff]  ;;  %v2057_v35 = vld [vmem:[%s10440_s28 + $0x1a30] sm:$0xff]  ;;  %2054 = vst [vmem:[%s10445_s29 + $0xd08] sm:$0xff] %v2053_v33 }
  0xe5   : > { %2056 = vst [vmem:[%s10445_s29 + $0xd10] sm:$0xff] %v2055_v34  ;;  %2058 = vst [vmem:[%s10445_s29 + $0xd18] sm:$0xff] %v2057_v35  ;;  %v2059_v36 = vld [vmem:[%s10440_s28 + $0x1a40] sm:$0xff]  ;;  %v2061_v37 = vld [vmem:[%s10440_s28 + $0x1a50] sm:$0xff] }
  0xe6   : > { %v2063_v38 = vld [vmem:[%s10440_s28 + $0x1a60] sm:$0xff]  ;;  %2060 = vst [vmem:[%s10445_s29 + $0xd20] sm:$0xff] %v2059_v36  ;;  %2062 = vst [vmem:[%s10445_s29 + $0xd28] sm:$0xff] %v2061_v37  ;;  %v2065_v39 = vld [vmem:[%s10440_s28 + $0x1a70] sm:$0xff] }
  0xe7   : > { %2064 = vst [vmem:[%s10445_s29 + $0xd30] sm:$0xff] %v2063_v38  ;;  %v2067_v40 = vld [vmem:[%s10440_s28 + $0x1a80] sm:$0xff]  ;;  %v2069_v41 = vld [vmem:[%s10440_s28 + $0x1a90] sm:$0xff]  ;;  %2066 = vst [vmem:[%s10445_s29 + $0xd38] sm:$0xff] %v2065_v39 }
  0xe8   : > { %2068 = vst [vmem:[%s10445_s29 + $0xd40] sm:$0xff] %v2067_v40  ;;  %2070 = vst [vmem:[%s10445_s29 + $0xd48] sm:$0xff] %v2069_v41  ;;  %v2071_v42 = vld [vmem:[%s10440_s28 + $0x1aa0] sm:$0xff]  ;;  %v2073_v43 = vld [vmem:[%s10440_s28 + $0x1ab0] sm:$0xff] }
  0xe9   : > { %v2075_v44 = vld [vmem:[%s10440_s28 + $0x1ac0] sm:$0xff]  ;;  %2072 = vst [vmem:[%s10445_s29 + $0xd50] sm:$0xff] %v2071_v42  ;;  %2074 = vst [vmem:[%s10445_s29 + $0xd58] sm:$0xff] %v2073_v43  ;;  %v2077_v45 = vld [vmem:[%s10440_s28 + $0x1ad0] sm:$0xff] }
  0xea   : > { %2076 = vst [vmem:[%s10445_s29 + $0xd60] sm:$0xff] %v2075_v44  ;;  %v2079_v46 = vld [vmem:[%s10440_s28 + $0x1ae0] sm:$0xff]  ;;  %v2081_v47 = vld [vmem:[%s10440_s28 + $0x1af0] sm:$0xff]  ;;  %2078 = vst [vmem:[%s10445_s29 + $0xd68] sm:$0xff] %v2077_v45 }
  0xeb   : > { %2080 = vst [vmem:[%s10445_s29 + $0xd70] sm:$0xff] %v2079_v46  ;;  %2082 = vst [vmem:[%s10445_s29 + $0xd78] sm:$0xff] %v2081_v47  ;;  %v2083_v48 = vld [vmem:[%s10440_s28 + $0x1b00] sm:$0xff]  ;;  %v2085_v49 = vld [vmem:[%s10440_s28 + $0x1b10] sm:$0xff] }
  0xec   : > { %v2087_v50 = vld [vmem:[%s10440_s28 + $0x1b20] sm:$0xff]  ;;  %2084 = vst [vmem:[%s10445_s29 + $0xd80] sm:$0xff] %v2083_v48  ;;  %2086 = vst [vmem:[%s10445_s29 + $0xd88] sm:$0xff] %v2085_v49  ;;  %v2089_v51 = vld [vmem:[%s10440_s28 + $0x1b30] sm:$0xff] }
  0xed   : > { %2088 = vst [vmem:[%s10445_s29 + $0xd90] sm:$0xff] %v2087_v50  ;;  %v2091_v52 = vld [vmem:[%s10440_s28 + $0x1b40] sm:$0xff]  ;;  %v2093_v53 = vld [vmem:[%s10440_s28 + $0x1b50] sm:$0xff]  ;;  %2090 = vst [vmem:[%s10445_s29 + $0xd98] sm:$0xff] %v2089_v51 }
  0xee   : > { %2092 = vst [vmem:[%s10445_s29 + $0xda0] sm:$0xff] %v2091_v52  ;;  %2094 = vst [vmem:[%s10445_s29 + $0xda8] sm:$0xff] %v2093_v53  ;;  %v2095_v54 = vld [vmem:[%s10440_s28 + $0x1b60] sm:$0xff]  ;;  %v2097_v55 = vld [vmem:[%s10440_s28 + $0x1b70] sm:$0xff] }
  0xef   : > { %v2099_v56 = vld [vmem:[%s10440_s28 + $0x1b80] sm:$0xff]  ;;  %2096 = vst [vmem:[%s10445_s29 + $0xdb0] sm:$0xff] %v2095_v54  ;;  %2098 = vst [vmem:[%s10445_s29 + $0xdb8] sm:$0xff] %v2097_v55  ;;  %v2101_v57 = vld [vmem:[%s10440_s28 + $0x1b90] sm:$0xff] }
  0xf0   : > { %2100 = vst [vmem:[%s10445_s29 + $0xdc0] sm:$0xff] %v2099_v56  ;;  %v2103_v58 = vld [vmem:[%s10440_s28 + $0x1ba0] sm:$0xff]  ;;  %v2105_v59 = vld [vmem:[%s10440_s28 + $0x1bb0] sm:$0xff]  ;;  %2102 = vst [vmem:[%s10445_s29 + $0xdc8] sm:$0xff] %v2101_v57 }
  0xf1   : > { %2104 = vst [vmem:[%s10445_s29 + $0xdd0] sm:$0xff] %v2103_v58  ;;  %2106 = vst [vmem:[%s10445_s29 + $0xdd8] sm:$0xff] %v2105_v59  ;;  %v2107_v60 = vld [vmem:[%s10440_s28 + $0x1bc0] sm:$0xff]  ;;  %v2109_v61 = vld [vmem:[%s10440_s28 + $0x1bd0] sm:$0xff] }
  0xf2   : > { %v2111_v62 = vld [vmem:[%s10440_s28 + $0x1be0] sm:$0xff]  ;;  %2108 = vst [vmem:[%s10445_s29 + $0xde0] sm:$0xff] %v2107_v60  ;;  %2110 = vst [vmem:[%s10445_s29 + $0xde8] sm:$0xff] %v2109_v61  ;;  %v2113_v63 = vld [vmem:[%s10440_s28 + $0x1bf0] sm:$0xff] }
  0xf3   : > { %2112 = vst [vmem:[%s10445_s29 + $0xdf0] sm:$0xff] %v2111_v62  ;;  %v2115_v0 = vld [vmem:[%s10440_s28 + $0x1c00] sm:$0xff]  ;;  %v2117_v1 = vld [vmem:[%s10440_s28 + $0x1c10] sm:$0xff]  ;;  %2114 = vst [vmem:[%s10445_s29 + $0xdf8] sm:$0xff] %v2113_v63 }
  0xf4   : > { %2116 = vst [vmem:[%s10445_s29 + $0xe00] sm:$0xff] %v2115_v0  ;;  %2118 = vst [vmem:[%s10445_s29 + $0xe08] sm:$0xff] %v2117_v1  ;;  %v2119_v2 = vld [vmem:[%s10440_s28 + $0x1c20] sm:$0xff]  ;;  %v2121_v3 = vld [vmem:[%s10440_s28 + $0x1c30] sm:$0xff] }
  0xf5   : > { %v2123_v4 = vld [vmem:[%s10440_s28 + $0x1c40] sm:$0xff]  ;;  %2120 = vst [vmem:[%s10445_s29 + $0xe10] sm:$0xff] %v2119_v2  ;;  %2122 = vst [vmem:[%s10445_s29 + $0xe18] sm:$0xff] %v2121_v3  ;;  %v2125_v5 = vld [vmem:[%s10440_s28 + $0x1c50] sm:$0xff] }
  0xf6   : > { %2124 = vst [vmem:[%s10445_s29 + $0xe20] sm:$0xff] %v2123_v4  ;;  %v2127_v6 = vld [vmem:[%s10440_s28 + $0x1c60] sm:$0xff]  ;;  %v2129_v7 = vld [vmem:[%s10440_s28 + $0x1c70] sm:$0xff]  ;;  %2126 = vst [vmem:[%s10445_s29 + $0xe28] sm:$0xff] %v2125_v5 }
  0xf7   : > { %2128 = vst [vmem:[%s10445_s29 + $0xe30] sm:$0xff] %v2127_v6  ;;  %2130 = vst [vmem:[%s10445_s29 + $0xe38] sm:$0xff] %v2129_v7  ;;  %v2131_v8 = vld [vmem:[%s10440_s28 + $0x1c80] sm:$0xff]  ;;  %v2133_v9 = vld [vmem:[%s10440_s28 + $0x1c90] sm:$0xff] }
  0xf8   : > { %v2135_v10 = vld [vmem:[%s10440_s28 + $0x1ca0] sm:$0xff]  ;;  %2132 = vst [vmem:[%s10445_s29 + $0xe40] sm:$0xff] %v2131_v8  ;;  %2134 = vst [vmem:[%s10445_s29 + $0xe48] sm:$0xff] %v2133_v9  ;;  %v2137_v11 = vld [vmem:[%s10440_s28 + $0x1cb0] sm:$0xff] }
  0xf9   : > { %2136 = vst [vmem:[%s10445_s29 + $0xe50] sm:$0xff] %v2135_v10  ;;  %v2139_v12 = vld [vmem:[%s10440_s28 + $0x1cc0] sm:$0xff]  ;;  %v2141_v13 = vld [vmem:[%s10440_s28 + $0x1cd0] sm:$0xff]  ;;  %2138 = vst [vmem:[%s10445_s29 + $0xe58] sm:$0xff] %v2137_v11 }
  0xfa   : > { %2140 = vst [vmem:[%s10445_s29 + $0xe60] sm:$0xff] %v2139_v12  ;;  %2142 = vst [vmem:[%s10445_s29 + $0xe68] sm:$0xff] %v2141_v13  ;;  %v2143_v14 = vld [vmem:[%s10440_s28 + $0x1ce0] sm:$0xff]  ;;  %v2145_v15 = vld [vmem:[%s10440_s28 + $0x1cf0] sm:$0xff] }
  0xfb   : > { %v2147_v16 = vld [vmem:[%s10440_s28 + $0x1d00] sm:$0xff]  ;;  %2144 = vst [vmem:[%s10445_s29 + $0xe70] sm:$0xff] %v2143_v14  ;;  %2146 = vst [vmem:[%s10445_s29 + $0xe78] sm:$0xff] %v2145_v15  ;;  %v2149_v17 = vld [vmem:[%s10440_s28 + $0x1d10] sm:$0xff] }
  0xfc   : > { %2148 = vst [vmem:[%s10445_s29 + $0xe80] sm:$0xff] %v2147_v16  ;;  %v2151_v18 = vld [vmem:[%s10440_s28 + $0x1d20] sm:$0xff]  ;;  %v2153_v19 = vld [vmem:[%s10440_s28 + $0x1d30] sm:$0xff]  ;;  %2150 = vst [vmem:[%s10445_s29 + $0xe88] sm:$0xff] %v2149_v17 }
  0xfd   : > { %2152 = vst [vmem:[%s10445_s29 + $0xe90] sm:$0xff] %v2151_v18  ;;  %2154 = vst [vmem:[%s10445_s29 + $0xe98] sm:$0xff] %v2153_v19  ;;  %v2155_v20 = vld [vmem:[%s10440_s28 + $0x1d40] sm:$0xff]  ;;  %v2157_v21 = vld [vmem:[%s10440_s28 + $0x1d50] sm:$0xff] }
  0xfe   : > { %v2159_v22 = vld [vmem:[%s10440_s28 + $0x1d60] sm:$0xff]  ;;  %2156 = vst [vmem:[%s10445_s29 + $0xea0] sm:$0xff] %v2155_v20  ;;  %2158 = vst [vmem:[%s10445_s29 + $0xea8] sm:$0xff] %v2157_v21  ;;  %v2161_v23 = vld [vmem:[%s10440_s28 + $0x1d70] sm:$0xff] }
  0xff   : > { %2160 = vst [vmem:[%s10445_s29 + $0xeb0] sm:$0xff] %v2159_v22  ;;  %v2163_v24 = vld [vmem:[%s10440_s28 + $0x1d80] sm:$0xff]  ;;  %v2165_v25 = vld [vmem:[%s10440_s28 + $0x1d90] sm:$0xff]  ;;  %2162 = vst [vmem:[%s10445_s29 + $0xeb8] sm:$0xff] %v2161_v23 }
 0x100   : > { %2164 = vst [vmem:[%s10445_s29 + $0xec0] sm:$0xff] %v2163_v24  ;;  %2166 = vst [vmem:[%s10445_s29 + $0xec8] sm:$0xff] %v2165_v25  ;;  %v2167_v26 = vld [vmem:[%s10440_s28 + $0x1da0] sm:$0xff]  ;;  %v2169_v27 = vld [vmem:[%s10440_s28 + $0x1db0] sm:$0xff] }
 0x101   : > { %v2171_v28 = vld [vmem:[%s10440_s28 + $0x1dc0] sm:$0xff]  ;;  %2168 = vst [vmem:[%s10445_s29 + $0xed0] sm:$0xff] %v2167_v26  ;;  %2170 = vst [vmem:[%s10445_s29 + $0xed8] sm:$0xff] %v2169_v27  ;;  %v2173_v29 = vld [vmem:[%s10440_s28 + $0x1dd0] sm:$0xff] }
 0x102   : > { %2172 = vst [vmem:[%s10445_s29 + $0xee0] sm:$0xff] %v2171_v28  ;;  %v2175_v30 = vld [vmem:[%s10440_s28 + $0x1de0] sm:$0xff]  ;;  %v2177_v31 = vld [vmem:[%s10440_s28 + $0x1df0] sm:$0xff]  ;;  %2174 = vst [vmem:[%s10445_s29 + $0xee8] sm:$0xff] %v2173_v29 }
 0x103   : > { %2176 = vst [vmem:[%s10445_s29 + $0xef0] sm:$0xff] %v2175_v30  ;;  %2178 = vst [vmem:[%s10445_s29 + $0xef8] sm:$0xff] %v2177_v31  ;;  %v2179_v32 = vld [vmem:[%s10440_s28 + $0x1e00] sm:$0xff]  ;;  %v2181_v33 = vld [vmem:[%s10440_s28 + $0x1e10] sm:$0xff] }
 0x104   : > { %v2183_v34 = vld [vmem:[%s10440_s28 + $0x1e20] sm:$0xff]  ;;  %2180 = vst [vmem:[%s10445_s29 + $0xf00] sm:$0xff] %v2179_v32  ;;  %2182 = vst [vmem:[%s10445_s29 + $0xf08] sm:$0xff] %v2181_v33  ;;  %v2185_v35 = vld [vmem:[%s10440_s28 + $0x1e30] sm:$0xff] }
 0x105   : > { %2184 = vst [vmem:[%s10445_s29 + $0xf10] sm:$0xff] %v2183_v34  ;;  %v2187_v36 = vld [vmem:[%s10440_s28 + $0x1e40] sm:$0xff]  ;;  %v2189_v37 = vld [vmem:[%s10440_s28 + $0x1e50] sm:$0xff]  ;;  %2186 = vst [vmem:[%s10445_s29 + $0xf18] sm:$0xff] %v2185_v35 }
 0x106   : > { %2188 = vst [vmem:[%s10445_s29 + $0xf20] sm:$0xff] %v2187_v36  ;;  %2190 = vst [vmem:[%s10445_s29 + $0xf28] sm:$0xff] %v2189_v37  ;;  %v2191_v38 = vld [vmem:[%s10440_s28 + $0x1e60] sm:$0xff]  ;;  %v2193_v39 = vld [vmem:[%s10440_s28 + $0x1e70] sm:$0xff] }
 0x107   : > { %v2195_v40 = vld [vmem:[%s10440_s28 + $0x1e80] sm:$0xff]  ;;  %2192 = vst [vmem:[%s10445_s29 + $0xf30] sm:$0xff] %v2191_v38  ;;  %2194 = vst [vmem:[%s10445_s29 + $0xf38] sm:$0xff] %v2193_v39  ;;  %v2197_v41 = vld [vmem:[%s10440_s28 + $0x1e90] sm:$0xff] }
 0x108   : > { %2196 = vst [vmem:[%s10445_s29 + $0xf40] sm:$0xff] %v2195_v40  ;;  %v2199_v42 = vld [vmem:[%s10440_s28 + $0x1ea0] sm:$0xff]  ;;  %v2201_v43 = vld [vmem:[%s10440_s28 + $0x1eb0] sm:$0xff]  ;;  %2198 = vst [vmem:[%s10445_s29 + $0xf48] sm:$0xff] %v2197_v41 }
 0x109   : > { %2200 = vst [vmem:[%s10445_s29 + $0xf50] sm:$0xff] %v2199_v42  ;;  %2202 = vst [vmem:[%s10445_s29 + $0xf58] sm:$0xff] %v2201_v43  ;;  %v2203_v44 = vld [vmem:[%s10440_s28 + $0x1ec0] sm:$0xff]  ;;  %v2205_v45 = vld [vmem:[%s10440_s28 + $0x1ed0] sm:$0xff] }
 0x10a   : > { %v2207_v46 = vld [vmem:[%s10440_s28 + $0x1ee0] sm:$0xff]  ;;  %2204 = vst [vmem:[%s10445_s29 + $0xf60] sm:$0xff] %v2203_v44  ;;  %2206 = vst [vmem:[%s10445_s29 + $0xf68] sm:$0xff] %v2205_v45  ;;  %v2209_v47 = vld [vmem:[%s10440_s28 + $0x1ef0] sm:$0xff] }
 0x10b   : > { %2208 = vst [vmem:[%s10445_s29 + $0xf70] sm:$0xff] %v2207_v46  ;;  %v2211_v48 = vld [vmem:[%s10440_s28 + $0x1f00] sm:$0xff]  ;;  %v2213_v49 = vld [vmem:[%s10440_s28 + $0x1f10] sm:$0xff]  ;;  %2210 = vst [vmem:[%s10445_s29 + $0xf78] sm:$0xff] %v2209_v47 }
 0x10c   : > { %2212 = vst [vmem:[%s10445_s29 + $0xf80] sm:$0xff] %v2211_v48  ;;  %2214 = vst [vmem:[%s10445_s29 + $0xf88] sm:$0xff] %v2213_v49  ;;  %v2215_v50 = vld [vmem:[%s10440_s28 + $0x1f20] sm:$0xff]  ;;  %v2217_v51 = vld [vmem:[%s10440_s28 + $0x1f30] sm:$0xff] }
 0x10d   : > { %v2219_v52 = vld [vmem:[%s10440_s28 + $0x1f40] sm:$0xff]  ;;  %2216 = vst [vmem:[%s10445_s29 + $0xf90] sm:$0xff] %v2215_v50  ;;  %2218 = vst [vmem:[%s10445_s29 + $0xf98] sm:$0xff] %v2217_v51  ;;  %v2221_v53 = vld [vmem:[%s10440_s28 + $0x1f50] sm:$0xff] }
 0x10e   : > { %2220 = vst [vmem:[%s10445_s29 + $0xfa0] sm:$0xff] %v2219_v52  ;;  %v2223_v54 = vld [vmem:[%s10440_s28 + $0x1f60] sm:$0xff]  ;;  %v2225_v55 = vld [vmem:[%s10440_s28 + $0x1f70] sm:$0xff]  ;;  %2222 = vst [vmem:[%s10445_s29 + $0xfa8] sm:$0xff] %v2221_v53 }
 0x10f   : > { %2224 = vst [vmem:[%s10445_s29 + $0xfb0] sm:$0xff] %v2223_v54  ;;  %2226 = vst [vmem:[%s10445_s29 + $0xfb8] sm:$0xff] %v2225_v55  ;;  %v2227_v56 = vld [vmem:[%s10440_s28 + $0x1f80] sm:$0xff]  ;;  %v2229_v57 = vld [vmem:[%s10440_s28 + $0x1f90] sm:$0xff] }
 0x110   : > { %v2231_v58 = vld [vmem:[%s10440_s28 + $0x1fa0] sm:$0xff]  ;;  %2228 = vst [vmem:[%s10445_s29 + $0xfc0] sm:$0xff] %v2227_v56  ;;  %2230 = vst [vmem:[%s10445_s29 + $0xfc8] sm:$0xff] %v2229_v57  ;;  %v2233_v59 = vld [vmem:[%s10440_s28 + $0x1fb0] sm:$0xff] }
 0x111   : > { %2232 = vst [vmem:[%s10445_s29 + $0xfd0] sm:$0xff] %v2231_v58  ;;  %v2235_v60 = vld [vmem:[%s10440_s28 + $0x1fc0] sm:$0xff]  ;;  %v2237_v61 = vld [vmem:[%s10440_s28 + $0x1fd0] sm:$0xff]  ;;  %2234 = vst [vmem:[%s10445_s29 + $0xfd8] sm:$0xff] %v2233_v59 }
 0x112   : > { %2236 = vst [vmem:[%s10445_s29 + $0xfe0] sm:$0xff] %v2235_v60  ;;  %2238 = vst [vmem:[%s10445_s29 + $0xfe8] sm:$0xff] %v2237_v61  ;;  %v2239_v62 = vld [vmem:[%s10440_s28 + $0x1fe0] sm:$0xff]  ;;  %v2241_v63 = vld [vmem:[%s10440_s28 + $0x1ff0] sm:$0xff] }
 0x113   : > { %2240 = vst [vmem:[%s10445_s29 + $0xff0] sm:$0xff] %v2239_v62  ;;  %2242 = vst [vmem:[%s10445_s29 + $0xff8] sm:$0xff] %v2241_v63 }
 0x114 PF: > { %p8929_p8 = scmp.ge.s32.totalorder %s10370_s16, 1  ;;  %p4340_p9 = scmp.lt.s32.totalorder %s10370_s16, 3 }
 0x116   : > { %p4341_p10 = pnand %p8929_p8, %p4340_p9 }
 0x118   : > { %4344 = sbr.rel (%p4341_p10) target bundleno = 1027 (0x403), region = 80 }
 0x11d   : > { %s4347_s30 = sand.u32 1, %s10354_s12   ;;  %v11474_v0 = vld [vmem:[%s12617_s0] sm:$0xff]  ;;  %v11484_v2 = vld [vmem:[%s12617_s0 + $0x8] sm:$0xff] }
 0x11e   : > { %v11479_v1 = vld [vmem:[%s12617_s0 + $0x80] sm:$0xff]  ;;  %s8930_s10 = sshll.u32 %s4347_s30, 12  ;;  %v11495_v5 = vld [vmem:[%s12617_s0 + $0x88] sm:$0xff] }
 0x11f   : > { %v8933_v3 = vcombine.low %v11474_v0, %v11479_v1  ;;  %v8934_v4 = vcombine.high %v11474_v0, %v11479_v1  ;;  %v8935_v6 = vcombine.low %v11484_v2, %v11495_v5  ;;  %v8936_v7 = vcombine.high %v11484_v2, %v11495_v5  ;;  %s11501_s19 = scalar_lea.vmem [#allocation2], %s8930_s10  ;;  %s8932_s10 = sshll.u32 %s10362_s14, 1 }
 0x120   : > { %v9564_v8 = vld [vmem:[%s11501_s19 + $0x74] ss:$8 sps:$4 sm:$0xff]   ;;  %v9568_v10 = vld [vmem:[%s11501_s19 + $0x70] ss:$8 sps:$4 sm:$0xff]   ;;  %v9570_v12 = vld [vmem:[%s11501_s19 + $0x64] ss:$8 sps:$4 sm:$0xff]  }
 0x121   : > { %7894 = vmatprep.mubr.bf16.mxu0 %v8934_v4  ;;  %v9566_v9 = vld [vmem:[%s11501_s19 + $0x174] ss:$8 sps:$4 sm:$0xff]   ;;  %7947 = vmatprep.mubr.bf16.mxu1 %v8936_v7  ;;  %v9569_v11 = vld [vmem:[%s11501_s19 + $0x170] ss:$8 sps:$4 sm:$0xff]   ;;  %v9572_v13 = vld [vmem:[%s11501_s19 + $0x164] ss:$8 sps:$4 sm:$0xff]  }
 0x122   : > { %7862 = vmatprep.subr.bf16.mxu0 %v9564_v8  ;;  %7915 = vmatprep.subr.bf16.mxu1 %v9566_v9  ;;  %v9574_v14 = vld [vmem:[%s11501_s19 + $0x60] ss:$8 sps:$4 sm:$0xff]   ;;  %v9576_v16 = vld [vmem:[%s11501_s19 + $0x54] ss:$8 sps:$4 sm:$0xff]   ;;  %v9580_v18 = vld [vmem:[%s11501_s19 + $0x50] ss:$8 sps:$4 sm:$0xff]  }
 0x123   : > { %7863 = vmatpush1.bf16.msra.mxu0 %v9568_v10  ;;  %7916 = vmatpush1.bf16.msra.mxu1 %v9569_v11  ;;  %v9575_v15 = vld [vmem:[%s11501_s19 + $0x160] ss:$8 sps:$4 sm:$0xff]   ;;  %v9578_v17 = vld [vmem:[%s11501_s19 + $0x154] ss:$8 sps:$4 sm:$0xff]   ;;  %v9581_v19 = vld [vmem:[%s11501_s19 + $0x150] ss:$8 sps:$4 sm:$0xff]  }
 0x124   : > { %7864 = vmatprep.subr.bf16.mxu0 %v9570_v12  ;;  %7917 = vmatprep.subr.bf16.mxu1 %v9572_v13  ;;  %v9582_v20 = vld [vmem:[%s11501_s19 + $0x44] ss:$8 sps:$4 sm:$0xff]   ;;  %v9586_v22 = vld [vmem:[%s11501_s19 + $0x40] ss:$8 sps:$4 sm:$0xff]   ;;  %v9588_v24 = vld [vmem:[%s11501_s19 + $0x34] ss:$8 sps:$4 sm:$0xff]  }
 0x125   : > { %v9584_v21 = vld [vmem:[%s11501_s19 + $0x144] ss:$8 sps:$4 sm:$0xff]   ;;  %v9587_v23 = vld [vmem:[%s11501_s19 + $0x140] ss:$8 sps:$4 sm:$0xff]   ;;  %v9590_v25 = vld [vmem:[%s11501_s19 + $0x134] ss:$8 sps:$4 sm:$0xff]  }
 0x126   : > { %v9592_v26 = vld [vmem:[%s11501_s19 + $0x30] ss:$8 sps:$4 sm:$0xff]   ;;  %v9594_v28 = vld [vmem:[%s11501_s19 + $0x24] ss:$8 sps:$4 sm:$0xff]   ;;  %v9598_v30 = vld [vmem:[%s11501_s19 + $0x20] ss:$8 sps:$4 sm:$0xff]  }
 0x127   : > { %7865 = vmatpush1.bf16.msra.mxu0 %v9574_v14  ;;  %7918 = vmatpush1.bf16.msra.mxu1 %v9575_v15  ;;  %v9593_v27 = vld [vmem:[%s11501_s19 + $0x130] ss:$8 sps:$4 sm:$0xff]   ;;  %v9596_v29 = vld [vmem:[%s11501_s19 + $0x124] ss:$8 sps:$4 sm:$0xff]   ;;  %v9599_v31 = vld [vmem:[%s11501_s19 + $0x120] ss:$8 sps:$4 sm:$0xff]  }
 0x128   : > { %7866 = vmatprep.subr.bf16.mxu0 %v9576_v16  ;;  %7919 = vmatprep.subr.bf16.mxu1 %v9578_v17  ;;  %v9600_v32 = vld [vmem:[%s11501_s19 + $0x14] ss:$8 sps:$4 sm:$0xff]   ;;  %v9604_v34 = vld [vmem:[%s11501_s19 + $0x10] ss:$8 sps:$4 sm:$0xff]   ;;  %v9606_v36 = vld [vmem:[%s11501_s19 + $0x4] ss:$8 sps:$4 sm:$0xff]  }
 0x129   : > { %v9602_v33 = vld [vmem:[%s11501_s19 + $0x114] ss:$8 sps:$4 sm:$0xff]   ;;  %v9605_v35 = vld [vmem:[%s11501_s19 + $0x110] ss:$8 sps:$4 sm:$0xff]   ;;  %v9608_v37 = vld [vmem:[%s11501_s19 + $0x104] ss:$8 sps:$4 sm:$0xff]  }
 0x12a   : > { %v9610_v38 = vld [vmem:[%s11501_s19] ss:$8 sps:$4 sm:$0xff]   ;;  %v9612_v40 = vld [vmem:[%s11501_s19 + $0xf4] ss:$8 sps:$4 sm:$0xff]   ;;  %v9616_v42 = vld [vmem:[%s11501_s19 + $0xf0] ss:$8 sps:$4 sm:$0xff]  }
 0x12b   : > { %7867 = vmatpush1.bf16.msra.mxu0 %v9580_v18  ;;  %7920 = vmatpush1.bf16.msra.mxu1 %v9581_v19  ;;  %v9611_v39 = vld [vmem:[%s11501_s19 + $0x100] ss:$8 sps:$4 sm:$0xff]   ;;  %v9614_v41 = vld [vmem:[%s11501_s19 + $0x1f4] ss:$8 sps:$4 sm:$0xff]   ;;  %v9617_v43 = vld [vmem:[%s11501_s19 + $0x1f0] ss:$8 sps:$4 sm:$0xff]  }
 0x12c   : > { %7868 = vmatprep.subr.bf16.mxu0 %v9582_v20  ;;  %7921 = vmatprep.subr.bf16.mxu1 %v9584_v21  ;;  %v9618_v44 = vld [vmem:[%s11501_s19 + $0xe4] ss:$8 sps:$4 sm:$0xff]   ;;  %v9622_v46 = vld [vmem:[%s11501_s19 + $0xe0] ss:$8 sps:$4 sm:$0xff]   ;;  %v9624_v48 = vld [vmem:[%s11501_s19 + $0xd4] ss:$8 sps:$4 sm:$0xff]  }
 0x12d   : > { %v9620_v45 = vld [vmem:[%s11501_s19 + $0x1e4] ss:$8 sps:$4 sm:$0xff]   ;;  %v9623_v47 = vld [vmem:[%s11501_s19 + $0x1e0] ss:$8 sps:$4 sm:$0xff]   ;;  %v9626_v49 = vld [vmem:[%s11501_s19 + $0x1d4] ss:$8 sps:$4 sm:$0xff]  }
 0x12e   : > { %v9628_v50 = vld [vmem:[%s11501_s19 + $0xd0] ss:$8 sps:$4 sm:$0xff]   ;;  %v9630_v52 = vld [vmem:[%s11501_s19 + $0xc4] ss:$8 sps:$4 sm:$0xff]   ;;  %v9634_v54 = vld [vmem:[%s11501_s19 + $0xc0] ss:$8 sps:$4 sm:$0xff]  }
 0x12f   : > { %7869 = vmatpush1.bf16.msra.mxu0 %v9586_v22  ;;  %7922 = vmatpush1.bf16.msra.mxu1 %v9587_v23  ;;  %v9629_v51 = vld [vmem:[%s11501_s19 + $0x1d0] ss:$8 sps:$4 sm:$0xff]   ;;  %v9632_v53 = vld [vmem:[%s11501_s19 + $0x1c4] ss:$8 sps:$4 sm:$0xff]   ;;  %v9635_v55 = vld [vmem:[%s11501_s19 + $0x1c0] ss:$8 sps:$4 sm:$0xff]  }
 0x130   : > { %7870 = vmatprep.subr.bf16.mxu0 %v9588_v24  ;;  %7923 = vmatprep.subr.bf16.mxu1 %v9590_v25  ;;  %v9636_v56 = vld [vmem:[%s11501_s19 + $0xb4] ss:$8 sps:$4 sm:$0xff]   ;;  %v9640_v58 = vld [vmem:[%s11501_s19 + $0xb0] ss:$8 sps:$4 sm:$0xff]   ;;  %v9642_v60 = vld [vmem:[%s11501_s19 + $0xa4] ss:$8 sps:$4 sm:$0xff]  }
 0x131   : > { %v9638_v57 = vld [vmem:[%s11501_s19 + $0x1b4] ss:$8 sps:$4 sm:$0xff]   ;;  %v9641_v59 = vld [vmem:[%s11501_s19 + $0x1b0] ss:$8 sps:$4 sm:$0xff]   ;;  %v9644_v61 = vld [vmem:[%s11501_s19 + $0x1a4] ss:$8 sps:$4 sm:$0xff]  }
 0x132   : > { %v9646_v62 = vld [vmem:[%s11501_s19 + $0xa0] ss:$8 sps:$4 sm:$0xff]   ;;  %v9648_v4 = vld [vmem:[%s11501_s19 + $0x94] ss:$8 sps:$4 sm:$0xff]   ;;  %v9652_v8 = vld [vmem:[%s11501_s19 + $0x90] ss:$8 sps:$4 sm:$0xff]  }
 0x133   : > { %7871 = vmatpush1.bf16.msra.mxu0 %v9592_v26  ;;  %7924 = vmatpush1.bf16.msra.mxu1 %v9593_v27  ;;  %v9647_v63 = vld [vmem:[%s11501_s19 + $0x1a0] ss:$8 sps:$4 sm:$0xff]   ;;  %v9650_v7 = vld [vmem:[%s11501_s19 + $0x194] ss:$8 sps:$4 sm:$0xff]   ;;  %v9653_v9 = vld [vmem:[%s11501_s19 + $0x190] ss:$8 sps:$4 sm:$0xff]  }
 0x134   : > { %7872 = vmatprep.subr.bf16.mxu0 %v9594_v28  ;;  %7925 = vmatprep.subr.bf16.mxu1 %v9596_v29  ;;  %v9654_v10 = vld [vmem:[%s11501_s19 + $0x84] ss:$8 sps:$4 sm:$0xff]   ;;  %v9658_v12 = vld [vmem:[%s11501_s19 + $0x80] ss:$8 sps:$4 sm:$0xff]   ;;  %v9662_v14 = vld [vmem:[%s11501_s19 + $0x274] ss:$8 sps:$4 sm:$0xff]  }
 0x135   : > { %v9656_v11 = vld [vmem:[%s11501_s19 + $0x184] ss:$8 sps:$4 sm:$0xff]   ;;  %v9659_v13 = vld [vmem:[%s11501_s19 + $0x180] ss:$8 sps:$4 sm:$0xff]   ;;  %v9665_v15 = vld [vmem:[%s11501_s19 + $0x374] ss:$8 sps:$4 sm:$0xff]  }
 0x136   : > { %v4426_v16 = vld [vmem:[%s12617_s0 + $0x100] sm:$0xff]  ;;  %v4427_v18 = vld [vmem:[%s12617_s0 + $0x108] sm:$0xff]  ;;  %v9660_v20 = vld [vmem:[%s11501_s19 + $0x270] ss:$8 sps:$4 sm:$0xff]   ;;  %p4388_p11 = scmp.lt.s32.totalorder %s8932_s10, 3 }
 0x137   : > { %7873 = vmatpush1.bf16.msra.mxu0 %v9598_v30  ;;  %7926 = vmatpush1.bf16.msra.mxu1 %v9599_v31  ;;  %v4442_v17 = vld [vmem:[%s12617_s0 + $0x180] sm:$0xff]  ;;  %v4443_v19 = vld [vmem:[%s12617_s0 + $0x188] sm:$0xff]  ;;  %v9663_v21 = vld [vmem:[%s11501_s19 + $0x370] ss:$8 sps:$4 sm:$0xff]  }
 0x138   : > { %7874 = vmatprep.subr.bf16.mxu0 %v9600_v32  ;;  %7927 = vmatprep.subr.bf16.mxu1 %v9602_v33  ;;  %v9668_v22 = vld [vmem:[%s11501_s19 + $0x264] ss:$8 sps:$4 sm:$0xff]   ;;  %v8966_v24 = vcombine.high %v4426_v16, %v4442_v17  ;;  %v8968_v25 = vcombine.high %v4427_v18, %v4443_v19  ;;  %v9666_v26 = vld [vmem:[%s11501_s19 + $0x260] ss:$8 sps:$4 sm:$0xff]   ;;  %v9674_v28 = vld [vmem:[%s11501_s19 + $0x254] ss:$8 sps:$4 sm:$0xff]   ;;  %v8967_v2 = vcombine.low %v4427_v18, %v4443_v19 }
 0x139   : > { %v9671_v23 = vld [vmem:[%s11501_s19 + $0x364] ss:$8 sps:$4 sm:$0xff]   ;;  %v9669_v27 = vld [vmem:[%s11501_s19 + $0x360] ss:$8 sps:$4 sm:$0xff]   ;;  %v9677_v29 = vld [vmem:[%s11501_s19 + $0x354] ss:$8 sps:$4 sm:$0xff]  }
 0x13a   : > { %v9672_v0 = vld [vmem:[%s11501_s19 + $0x250] ss:$8 sps:$4 sm:$0xff]   ;;  %v9680_v5 = vld [vmem:[%s11501_s19 + $0x244] ss:$8 sps:$4 sm:$0xff]   ;;  %v9678_v30 = vld [vmem:[%s11501_s19 + $0x240] ss:$8 sps:$4 sm:$0xff]  }
 0x13b   : > { %7875 = vmatpush1.bf16.msra.mxu0 %v9604_v34  ;;  %7928 = vmatpush1.bf16.msra.mxu1 %v9605_v35  ;;  %v9675_v1 = vld [vmem:[%s11501_s19 + $0x350] ss:$8 sps:$4 sm:$0xff]   ;;  %v9681_v31 = vld [vmem:[%s11501_s19 + $0x340] ss:$8 sps:$4 sm:$0xff]   ;;  %v9686_v32 = vld [vmem:[%s11501_s19 + $0x234] ss:$8 sps:$4 sm:$0xff]  }
 0x13c   : > { %7876 = vmatprep.subr.bf16.mxu0 %v9606_v36  ;;  %7929 = vmatprep.subr.bf16.mxu1 %v9608_v37  ;;  %v9689_v33 = vld [vmem:[%s11501_s19 + $0x334] ss:$8 sps:$4 sm:$0xff]   ;;  %v9684_v34 = vld [vmem:[%s11501_s19 + $0x230] ss:$8 sps:$4 sm:$0xff]   ;;  %v9692_v36 = vld [vmem:[%s11501_s19 + $0x224] ss:$8 sps:$4 sm:$0xff]  }
 0x13d   : > { %v9687_v35 = vld [vmem:[%s11501_s19 + $0x330] ss:$8 sps:$4 sm:$0xff]   ;;  %v9695_v37 = vld [vmem:[%s11501_s19 + $0x324] ss:$8 sps:$4 sm:$0xff]   ;;  %v9738_v18 = vld [vmem:[%s11501_s19 + $0x2a0] ss:$8 sps:$4 sm:$0xff]  }
 0x13e   : > { %v9741_v19 = vld [vmem:[%s11501_s19 + $0x3a0] ss:$8 sps:$4 sm:$0xff]   ;;  %s12667_s10 = smov (!%p4388_p11, %s8932_s10), 3 }
 0x13f   : > { %7877 = vmatpush1.bf16.msra.mxu0 %v9610_v38  ;;  %7930 = vmatpush1.bf16.msra.mxu1 %v9611_v39  ;;  %v11610_v38 = vld [vmem:[%s12617_s0 + $0x10] sm:$0xff]  ;;  %v9690_v39 = vld [vmem:[%s11501_s19 + $0x220] ss:$8 sps:$4 sm:$0xff]   ;;  %s4390_s20 = scalar_lea.vmem %s12619_s2, %s12667_s10 }
 0x140   : > { %7878 = vmatprep.subr.bf16.mxu0 %v9612_v40  ;;  %7931 = vmatprep.subr.bf16.mxu1 %v9614_v41  ;;  %v9693_v40 = vld [vmem:[%s11501_s19 + $0x320] ss:$8 sps:$4 sm:$0xff]   ;;  %v9698_v41 = vld [vmem:[%s11501_s19 + $0x214] ss:$8 sps:$4 sm:$0xff]  }
 0x143   : > { %7879 = vmatpush2.bf16.msra.mxu0 %v9616_v42  ;;  %7932 = vmatpush2.bf16.msra.mxu1 %v9617_v43  ;;  %v9701_v42 = vld [vmem:[%s11501_s19 + $0x314] ss:$8 sps:$4 sm:$0xff]  }
 0x144   : > { %7880 = vmatprep.subr.bf16.mxu0 %v9618_v44  ;;  %7933 = vmatprep.subr.bf16.mxu1 %v9620_v45  ;;  %v11619_v43 = vld [vmem:[%s12617_s0 + $0x90] sm:$0xff]  ;;  %v11624_v44 = vld [vmem:[%s12617_s0 + $0x18] sm:$0xff] }
 0x145   : > { %v8938_v45 = vcombine.high %v11610_v38, %v11619_v43 }
 0x147   : > { %7881 = vmatpush2.bf16.msra.mxu0 %v9622_v46  ;;  %7934 = vmatpush2.bf16.msra.mxu1 %v9623_v47  ;;  %v11631_v46 = vld [vmem:[%s12617_s0 + $0x98] sm:$0xff] }
 0x148   : > { %7882 = vmatprep.subr.bf16.mxu0 %v9624_v48  ;;  %7935 = vmatprep.subr.bf16.mxu1 %v9626_v49  ;;  %v9696_v47 = vld [vmem:[%s11501_s19 + $0x210] ss:$8 sps:$4 sm:$0xff]   ;;  %v8940_v48 = vcombine.high %v11624_v44, %v11631_v46 }
 0x149   : > { %v9699_v49 = vld [vmem:[%s11501_s19 + $0x310] ss:$8 sps:$4 sm:$0xff]  }
 0x14b   : > { %7883 = vmatpush2.bf16.msra.mxu0 %v9628_v50  ;;  %7936 = vmatpush2.bf16.msra.mxu1 %v9629_v51  ;;  %v9704_v50 = vld [vmem:[%s11501_s19 + $0x204] ss:$8 sps:$4 sm:$0xff]  }
 0x14c   : > { %7884 = vmatprep.subr.bf16.mxu0 %v9630_v52  ;;  %7937 = vmatprep.subr.bf16.mxu1 %v9632_v53  ;;  %v9707_v51 = vld [vmem:[%s11501_s19 + $0x304] ss:$8 sps:$4 sm:$0xff]   ;;  %v9702_v52 = vld [vmem:[%s11501_s19 + $0x200] ss:$8 sps:$4 sm:$0xff]  }
 0x14d   : > { %v9705_v53 = vld [vmem:[%s11501_s19 + $0x300] ss:$8 sps:$4 sm:$0xff]  }
 0x14f   : > { %7885 = vmatpush2.bf16.msra.mxu0 %v9634_v54  ;;  %7938 = vmatpush2.bf16.msra.mxu1 %v9635_v55  ;;  %v9710_v54 = vld [vmem:[%s11501_s19 + $0x2f4] ss:$8 sps:$4 sm:$0xff]  }
 0x150   : > { %7886 = vmatprep.subr.bf16.mxu0 %v9636_v56  ;;  %7939 = vmatprep.subr.bf16.mxu1 %v9638_v57  ;;  %v9713_v55 = vld [vmem:[%s11501_s19 + $0x3f4] ss:$8 sps:$4 sm:$0xff]   ;;  %v9708_v56 = vld [vmem:[%s11501_s19 + $0x2f0] ss:$8 sps:$4 sm:$0xff]  }
 0x151   : > { %v9711_v57 = vld [vmem:[%s11501_s19 + $0x3f0] ss:$8 sps:$4 sm:$0xff]  }
 0x153   : > { %7887 = vmatpush2.bf16.msra.mxu0 %v9640_v58  ;;  %7940 = vmatpush2.bf16.msra.mxu1 %v9641_v59  ;;  %v9716_v58 = vld [vmem:[%s11501_s19 + $0x2e4] ss:$8 sps:$4 sm:$0xff]  }
 0x154   : > { %7888 = vmatprep.subr.bf16.mxu0 %v9642_v60  ;;  %7941 = vmatprep.subr.bf16.mxu1 %v9644_v61  ;;  %v9719_v59 = vld [vmem:[%s11501_s19 + $0x3e4] ss:$8 sps:$4 sm:$0xff]   ;;  %v9714_v60 = vld [vmem:[%s11501_s19 + $0x2e0] ss:$8 sps:$4 sm:$0xff]  }
 0x155   : > { %v9717_v61 = vld [vmem:[%s11501_s19 + $0x3e0] ss:$8 sps:$4 sm:$0xff]  }
 0x157   : > { %7889 = vmatpush2.bf16.msra.mxu0 %v9646_v62  ;;  %7942 = vmatpush2.bf16.msra.mxu1 %v9647_v63  ;;  %v9722_v62 = vld [vmem:[%s11501_s19 + $0x2d4] ss:$8 sps:$4 sm:$0xff]  }
 0x158   : > { %7890 = vmatprep.subr.bf16.mxu0 %v9648_v4  ;;  %7943 = vmatprep.subr.bf16.mxu1 %v9650_v7  ;;  %v9725_v63 = vld [vmem:[%s11501_s19 + $0x3d4] ss:$8 sps:$4 sm:$0xff]   ;;  %v9720_v4 = vld [vmem:[%s11501_s19 + $0x2d0] ss:$8 sps:$4 sm:$0xff]  }
 0x159   : > { %v9723_v7 = vld [vmem:[%s11501_s19 + $0x3d0] ss:$8 sps:$4 sm:$0xff]  }
 0x15b   : > { %7891 = vmatpush2.bf16.msra.mxu0 %v9652_v8  ;;  %7944 = vmatpush2.bf16.msra.mxu1 %v9653_v9  ;;  %v9728_v8 = vld [vmem:[%s11501_s19 + $0x2c4] ss:$8 sps:$4 sm:$0xff]  }
 0x15c   : > { %7892 = vmatprep.subr.bf16.mxu0 %v9654_v10  ;;  %7945 = vmatprep.subr.bf16.mxu1 %v9656_v11  ;;  %v9731_v9 = vld [vmem:[%s11501_s19 + $0x3c4] ss:$8 sps:$4 sm:$0xff]   ;;  %v9726_v10 = vld [vmem:[%s11501_s19 + $0x2c0] ss:$8 sps:$4 sm:$0xff]  }
 0x15d   : > { %v9729_v11 = vld [vmem:[%s11501_s19 + $0x3c0] ss:$8 sps:$4 sm:$0xff]  }
 0x15f   : > { %7893 = vmatpush2.bf16.msra.mxu0 %v9658_v12  ;;  %7946 = vmatpush2.bf16.msra.mxu1 %v9659_v13  ;;  %v9734_v12 = vld [vmem:[%s11501_s19 + $0x2b4] ss:$8 sps:$4 sm:$0xff]  }
 0x160   : > { %7968 = vmatprep.subr.bf16.mxu0 %v9662_v14  ;;  %8021 = vmatprep.subr.bf16.mxu1 %v9665_v15  ;;  %v9737_v13 = vld [vmem:[%s11501_s19 + $0x3b4] ss:$8 sps:$4 sm:$0xff]   ;;  %v9732_v14 = vld [vmem:[%s11501_s19 + $0x2b0] ss:$8 sps:$4 sm:$0xff]  }
 0x161   : > { %v9735_v15 = vld [vmem:[%s11501_s19 + $0x3b0] ss:$8 sps:$4 sm:$0xff]  }
 0x162   : > { %7895 = vmatmul.mubr.bf16.vlgmr.msra.gmra.mxu0 %v8933_v3  ;;  %7948 = vmatmul.mubr.bf16.vlgmr.msra.gmra.mxu1 %v8935_v6  ;;  %v8965_v3 = vcombine.low %v4426_v16, %v4442_v17  ;;  %v9683_v6 = vld [vmem:[%s11501_s19 + $0x344] ss:$8 sps:$4 sm:$0xff]  }
 0x163   : > { %7969 = vmatpush1.bf16.msra.mxu0 %v9660_v20  ;;  %8022 = vmatpush1.bf16.msra.mxu1 %v9663_v21  ;;  %v9740_v16 = vld [vmem:[%s11501_s19 + $0x2a4] ss:$8 sps:$4 sm:$0xff]   ;;  %v9746_v20 = vld [vmem:[%s11501_s19 + $0x294] ss:$8 sps:$4 sm:$0xff]  }
 0x164   : > { %7970 = vmatprep.subr.bf16.mxu0 %v9668_v22  ;;  %8023 = vmatprep.subr.bf16.mxu1 %v9671_v23  ;;  %v9743_v17 = vld [vmem:[%s11501_s19 + $0x3a4] ss:$8 sps:$4 sm:$0xff]   ;;  %v9749_v21 = vld [vmem:[%s11501_s19 + $0x394] ss:$8 sps:$4 sm:$0xff]   ;;  %v9744_v22 = vld [vmem:[%s11501_s19 + $0x290] ss:$8 sps:$4 sm:$0xff]  }
 0x165   : > { %7904 = vmatprep.mubr.bf16.mxu0 %v8966_v24  ;;  %7957 = vmatprep.mubr.bf16.mxu1 %v8968_v25  ;;  %v9747_v23 = vld [vmem:[%s11501_s19 + $0x390] ss:$8 sps:$4 sm:$0xff]   ;;  %v9752_v24 = vld [vmem:[%s11501_s19 + $0x284] ss:$8 sps:$4 sm:$0xff]  }
 0x166   : > { %v9755_v25 = vld [vmem:[%s11501_s19 + $0x384] ss:$8 sps:$4 sm:$0xff]  }
 0x167   : > { %7971 = vmatpush1.bf16.msra.mxu0 %v9666_v26  ;;  %8024 = vmatpush1.bf16.msra.mxu1 %v9669_v27  ;;  %v9750_v26 = vld [vmem:[%s11501_s19 + $0x280] ss:$8 sps:$4 sm:$0xff]  }
 0x168   : > { %7972 = vmatprep.subr.bf16.mxu0 %v9674_v28  ;;  %8025 = vmatprep.subr.bf16.mxu1 %v9677_v29  ;;  %v9753_v27 = vld [vmem:[%s11501_s19 + $0x380] ss:$8 sps:$4 sm:$0xff]   ;;  %v9758_v28 = vld [vmem:[%s11501_s19 + $0x474] ss:$8 sps:$4 sm:$0xff]  }
 0x169   : > { %v9761_v29 = vld [vmem:[%s11501_s19 + $0x574] ss:$8 sps:$4 sm:$0xff]  }
 0x16a   : > { %7905 = vmatmul.mubr.bf16.gmra.mxu0 %v8965_v3  ;;  %7958 = vmatmul.mubr.bf16.gmra.mxu1 %v8967_v2  ;;  %v4444_v3 = vld [vmem:[%s12617_s0 + $0x190] sm:$0xff]  ;;  %v8937_v2 = vcombine.low %v11610_v38, %v11619_v43 }
 0x16b   : > { %7973 = vmatpush1.bf16.msra.mxu0 %v9672_v0  ;;  %8026 = vmatpush1.bf16.msra.mxu1 %v9675_v1  ;;  %v4428_v0 = vld [vmem:[%s12617_s0 + $0x110] sm:$0xff] }
 0x16c   : > { %7974 = vmatprep.subr.bf16.mxu0 %v9680_v5  ;;  %8027 = vmatprep.subr.bf16.mxu1 %v9683_v6  ;;  %v9756_v1 = vld [vmem:[%s11501_s19 + $0x470] ss:$8 sps:$4 sm:$0xff]   ;;  %v8939_v5 = vcombine.low %v11624_v44, %v11631_v46  ;;  %v9770_v38 = vld [vmem:[%s11501_s19 + $0x454] ss:$8 sps:$4 sm:$0xff]   ;;  %v11712_v44 = vld [vmem:[%s12617_s0 + $0x28] sm:$0xff] }
 0x16d   : > { %8000 = vmatprep.mubr.bf16.mxu0 %v8938_v45  ;;  %8053 = vmatprep.mubr.bf16.mxu1 %v8940_v48  ;;  %v4429_v6 = vld [vmem:[%s12617_s0 + $0x118] sm:$0xff]  ;;  %v11717_v45 = vld [vmem:[%s12617_s0 + $0xa8] sm:$0xff] }
 0x16e   : > { %v9768_v46 = vld [vmem:[%s11501_s19 + $0x450] ss:$8 sps:$4 sm:$0xff]   ;;  %v9776_v48 = vld [vmem:[%s11501_s19 + $0x444] ss:$8 sps:$4 sm:$0xff]  }
 0x16f   : > { %7975 = vmatpush1.bf16.msra.mxu0 %v9678_v30  ;;  %8028 = vmatpush1.bf16.msra.mxu1 %v9681_v31  ;;  %v4445_v30 = vld [vmem:[%s12617_s0 + $0x198] sm:$0xff] }
 0x170   : > { %7976 = vmatprep.subr.bf16.mxu0 %v9686_v32  ;;  %8029 = vmatprep.subr.bf16.mxu1 %v9689_v33  ;;  %v9759_v31 = vld [vmem:[%s11501_s19 + $0x570] ss:$8 sps:$4 sm:$0xff]   ;;  %v9764_v32 = vld [vmem:[%s11501_s19 + $0x464] ss:$8 sps:$4 sm:$0xff]   ;;  %v8971_v43 = vcombine.low %v4429_v6, %v4445_v30 }
 0x171   : > { %v9767_v33 = vld [vmem:[%s11501_s19 + $0x564] ss:$8 sps:$4 sm:$0xff]  }
 0x173   : > { %7977 = vmatpush1.bf16.msra.mxu0 %v9684_v34  ;;  %8030 = vmatpush1.bf16.msra.mxu1 %v9687_v35  ;;  %v8970_v34 = vcombine.high %v4428_v0, %v4444_v3  ;;  %v8972_v35 = vcombine.high %v4429_v6, %v4445_v30  ;;  %v9837_v6 = vld [vmem:[%s11501_s19 + $0x5a0] ss:$8 sps:$4 sm:$0xff]   ;;  %v9842_v30 = vld [vmem:[%s11501_s19 + $0x494] ss:$8 sps:$4 sm:$0xff]  }
 0x174   : > { %7978 = vmatprep.subr.bf16.mxu0 %v9692_v36  ;;  %8031 = vmatprep.subr.bf16.mxu1 %v9695_v37  ;;  %v9762_v36 = vld [vmem:[%s11501_s19 + $0x460] ss:$8 sps:$4 sm:$0xff]  }
 0x175   : > { %v9765_v37 = vld [vmem:[%s11501_s19 + $0x560] ss:$8 sps:$4 sm:$0xff]  }
 0x177   : > { %7979 = vmatpush1.bf16.msra.mxu0 %v9690_v39  ;;  %8032 = vmatpush1.bf16.msra.mxu1 %v9693_v40  ;;  %v9773_v39 = vld [vmem:[%s11501_s19 + $0x554] ss:$8 sps:$4 sm:$0xff]   ;;  %v11702_v40 = vld [vmem:[%s12617_s0 + $0x20] sm:$0xff] }
 0x178   : > { %7980 = vmatprep.subr.bf16.mxu0 %v9698_v41  ;;  %8033 = vmatprep.subr.bf16.mxu1 %v9701_v42  ;;  %v11707_v41 = vld [vmem:[%s12617_s0 + $0xa0] sm:$0xff]  ;;  %v8969_v42 = vcombine.low %v4428_v0, %v4444_v3  ;;  %v9828_v0 = vld [vmem:[%s11501_s19 + $0x4b0] ss:$8 sps:$4 sm:$0xff]  }
 0x179   : > { %v9836_v3 = vld [vmem:[%s11501_s19 + $0x4a4] ss:$8 sps:$4 sm:$0xff]  }
 0x17b   : > { %7981 = vmatpush1.bf16.msra.mxu0 %v9696_v47  ;;  %8034 = vmatpush1.bf16.msra.mxu1 %v9699_v49  ;;  %v9771_v47 = vld [vmem:[%s11501_s19 + $0x550] ss:$8 sps:$4 sm:$0xff]   ;;  %v9779_v49 = vld [vmem:[%s11501_s19 + $0x544] ss:$8 sps:$4 sm:$0xff]  }
 0x17c   : > { %7982 = vmatprep.subr.bf16.mxu0 %v9704_v50  ;;  %8035 = vmatprep.subr.bf16.mxu1 %v9707_v51  ;;  %v8942_v50 = vcombine.high %v11702_v40, %v11707_v41  ;;  %v8944_v51 = vcombine.high %v11712_v44, %v11717_v45 }
 0x17f   : > { %7983 = vmatpush1.bf16.msra.mxu0 %v9702_v52  ;;  %8036 = vmatpush1.bf16.msra.mxu1 %v9705_v53  ;;  %v9774_v52 = vld [vmem:[%s11501_s19 + $0x440] ss:$8 sps:$4 sm:$0xff]  }
 0x180   : > { %7984 = vmatprep.subr.bf16.mxu0 %v9710_v54  ;;  %8037 = vmatprep.subr.bf16.mxu1 %v9713_v55  ;;  %v9777_v53 = vld [vmem:[%s11501_s19 + $0x540] ss:$8 sps:$4 sm:$0xff]   ;;  %v9782_v54 = vld [vmem:[%s11501_s19 + $0x434] ss:$8 sps:$4 sm:$0xff]  }
 0x181   : > { %v9785_v55 = vld [vmem:[%s11501_s19 + $0x534] ss:$8 sps:$4 sm:$0xff]  }
 0x183   : > { %7985 = vmatpush2.bf16.msra.mxu0 %v9708_v56  ;;  %8038 = vmatpush2.bf16.msra.mxu1 %v9711_v57  ;;  %v9780_v56 = vld [vmem:[%s11501_s19 + $0x430] ss:$8 sps:$4 sm:$0xff]  }
 0x184   : > { %7986 = vmatprep.subr.bf16.mxu0 %v9716_v58  ;;  %8039 = vmatprep.subr.bf16.mxu1 %v9719_v59  ;;  %v9783_v57 = vld [vmem:[%s11501_s19 + $0x530] ss:$8 sps:$4 sm:$0xff]   ;;  %v9788_v58 = vld [vmem:[%s11501_s19 + $0x424] ss:$8 sps:$4 sm:$0xff]  }
 0x185   : > { %v9791_v59 = vld [vmem:[%s11501_s19 + $0x524] ss:$8 sps:$4 sm:$0xff]  }
 0x187   : > { %7987 = vmatpush2.bf16.msra.mxu0 %v9714_v60  ;;  %8040 = vmatpush2.bf16.msra.mxu1 %v9717_v61  ;;  %v9786_v60 = vld [vmem:[%s11501_s19 + $0x420] ss:$8 sps:$4 sm:$0xff]  }
 0x188   : > { %7988 = vmatprep.subr.bf16.mxu0 %v9722_v62  ;;  %8041 = vmatprep.subr.bf16.mxu1 %v9725_v63  ;;  %v9789_v61 = vld [vmem:[%s11501_s19 + $0x520] ss:$8 sps:$4 sm:$0xff]   ;;  %v9794_v62 = vld [vmem:[%s11501_s19 + $0x414] ss:$8 sps:$4 sm:$0xff]  }
 0x189   : > { %v9797_v63 = vld [vmem:[%s11501_s19 + $0x514] ss:$8 sps:$4 sm:$0xff]  }
 0x18b   : > { %7989 = vmatpush2.bf16.msra.mxu0 %v9720_v4  ;;  %8042 = vmatpush2.bf16.msra.mxu1 %v9723_v7  ;;  %v9792_v4 = vld [vmem:[%s11501_s19 + $0x410] ss:$8 sps:$4 sm:$0xff]  }
 0x18c   : > { %7990 = vmatprep.subr.bf16.mxu0 %v9728_v8  ;;  %8043 = vmatprep.subr.bf16.mxu1 %v9731_v9  ;;  %v9795_v7 = vld [vmem:[%s11501_s19 + $0x510] ss:$8 sps:$4 sm:$0xff]   ;;  %v9800_v8 = vld [vmem:[%s11501_s19 + $0x404] ss:$8 sps:$4 sm:$0xff]  }
 0x18d   : > { %v9803_v9 = vld [vmem:[%s11501_s19 + $0x504] ss:$8 sps:$4 sm:$0xff]  }
 0x18f   : > { %7991 = vmatpush2.bf16.msra.mxu0 %v9726_v10  ;;  %8044 = vmatpush2.bf16.msra.mxu1 %v9729_v11  ;;  %v9798_v10 = vld [vmem:[%s11501_s19 + $0x400] ss:$8 sps:$4 sm:$0xff]  }
 0x190   : > { %7992 = vmatprep.subr.bf16.mxu0 %v9734_v12  ;;  %8045 = vmatprep.subr.bf16.mxu1 %v9737_v13  ;;  %v9801_v11 = vld [vmem:[%s11501_s19 + $0x500] ss:$8 sps:$4 sm:$0xff]   ;;  %v9806_v12 = vld [vmem:[%s11501_s19 + $0x4f4] ss:$8 sps:$4 sm:$0xff]  }
 0x191   : > { %v9809_v13 = vld [vmem:[%s11501_s19 + $0x5f4] ss:$8 sps:$4 sm:$0xff]  }
 0x193   : > { %7993 = vmatpush2.bf16.msra.mxu0 %v9732_v14  ;;  %8046 = vmatpush2.bf16.msra.mxu1 %v9735_v15  ;;  %v9804_v14 = vld [vmem:[%s11501_s19 + $0x4f0] ss:$8 sps:$4 sm:$0xff]  }
 0x194   : > { %7994 = vmatprep.subr.bf16.mxu0 %v9740_v16  ;;  %8047 = vmatprep.subr.bf16.mxu1 %v9743_v17  ;;  %v9807_v15 = vld [vmem:[%s11501_s19 + $0x5f0] ss:$8 sps:$4 sm:$0xff]   ;;  %v9812_v16 = vld [vmem:[%s11501_s19 + $0x4e4] ss:$8 sps:$4 sm:$0xff]  }
 0x195   : > { %v9815_v17 = vld [vmem:[%s11501_s19 + $0x5e4] ss:$8 sps:$4 sm:$0xff]  }
 0x197   : > { %7995 = vmatpush2.bf16.msra.mxu0 %v9738_v18  ;;  %8048 = vmatpush2.bf16.msra.mxu1 %v9741_v19  ;;  %v9810_v18 = vld [vmem:[%s11501_s19 + $0x4e0] ss:$8 sps:$4 sm:$0xff]  }
 0x198   : > { %7996 = vmatprep.subr.bf16.mxu0 %v9746_v20  ;;  %8049 = vmatprep.subr.bf16.mxu1 %v9749_v21  ;;  %v9813_v19 = vld [vmem:[%s11501_s19 + $0x5e0] ss:$8 sps:$4 sm:$0xff]   ;;  %v9818_v20 = vld [vmem:[%s11501_s19 + $0x4d4] ss:$8 sps:$4 sm:$0xff]  }
 0x199   : > { %v9821_v21 = vld [vmem:[%s11501_s19 + $0x5d4] ss:$8 sps:$4 sm:$0xff]  }
 0x19b   : > { %7997 = vmatpush2.bf16.msra.mxu0 %v9744_v22  ;;  %8050 = vmatpush2.bf16.msra.mxu1 %v9747_v23  ;;  %v9816_v22 = vld [vmem:[%s11501_s19 + $0x4d0] ss:$8 sps:$4 sm:$0xff]  }
 0x19c   : > { %7998 = vmatprep.subr.bf16.mxu0 %v9752_v24  ;;  %8051 = vmatprep.subr.bf16.mxu1 %v9755_v25  ;;  %v9819_v23 = vld [vmem:[%s11501_s19 + $0x5d0] ss:$8 sps:$4 sm:$0xff]   ;;  %v9824_v24 = vld [vmem:[%s11501_s19 + $0x4c4] ss:$8 sps:$4 sm:$0xff]  }
 0x19d   : > { %v9827_v25 = vld [vmem:[%s11501_s19 + $0x5c4] ss:$8 sps:$4 sm:$0xff]  }
 0x19f   : > { %7999 = vmatpush2.bf16.msra.mxu0 %v9750_v26  ;;  %8052 = vmatpush2.bf16.msra.mxu1 %v9753_v27  ;;  %v9822_v26 = vld [vmem:[%s11501_s19 + $0x4c0] ss:$8 sps:$4 sm:$0xff]  }
 0x1a0   : > { %8074 = vmatprep.subr.bf16.mxu0 %v9758_v28  ;;  %8127 = vmatprep.subr.bf16.mxu1 %v9761_v29  ;;  %v9825_v27 = vld [vmem:[%s11501_s19 + $0x5c0] ss:$8 sps:$4 sm:$0xff]   ;;  %v9830_v28 = vld [vmem:[%s11501_s19 + $0x4b4] ss:$8 sps:$4 sm:$0xff]  }
 0x1a1   : > { %v9833_v29 = vld [vmem:[%s11501_s19 + $0x5b4] ss:$8 sps:$4 sm:$0xff]  }
 0x1a2   : > { %8001 = vmatmul.mubr.bf16.vlgmr.msra.gmra.mxu0 %v8937_v2  ;;  %8054 = vmatmul.mubr.bf16.vlgmr.msra.gmra.mxu1 %v8939_v5  ;;  %v9839_v2 = vld [vmem:[%s11501_s19 + $0x5a4] ss:$8 sps:$4 sm:$0xff]   ;;  %v9834_v5 = vld [vmem:[%s11501_s19 + $0x4a0] ss:$8 sps:$4 sm:$0xff]  }
 0x1a3   : > { %8075 = vmatpush1.bf16.msra.mxu0 %v9756_v1  ;;  %8128 = vmatpush1.bf16.msra.mxu1 %v9759_v31  ;;  %v9831_v1 = vld [vmem:[%s11501_s19 + $0x5b0] ss:$8 sps:$4 sm:$0xff]   ;;  %v9845_v31 = vld [vmem:[%s11501_s19 + $0x594] ss:$8 sps:$4 sm:$0xff]  }
 0x1a4   : > { %8076 = vmatprep.subr.bf16.mxu0 %v9764_v32  ;;  %8129 = vmatprep.subr.bf16.mxu1 %v9767_v33  ;;  %v9840_v32 = vld [vmem:[%s11501_s19 + $0x490] ss:$8 sps:$4 sm:$0xff]  }
 0x1a5   : > { %8010 = vmatprep.mubr.bf16.mxu0 %v8970_v34  ;;  %8063 = vmatprep.mubr.bf16.mxu1 %v8972_v35  ;;  %v9843_v33 = vld [vmem:[%s11501_s19 + $0x590] ss:$8 sps:$4 sm:$0xff]   ;;  %v9848_v34 = vld [vmem:[%s11501_s19 + $0x484] ss:$8 sps:$4 sm:$0xff]  }
 0x1a6   : > { %v9851_v35 = vld [vmem:[%s11501_s19 + $0x584] ss:$8 sps:$4 sm:$0xff]  }
 0x1a7   : > { %8077 = vmatpush1.bf16.msra.mxu0 %v9762_v36  ;;  %8130 = vmatpush1.bf16.msra.mxu1 %v9765_v37  ;;  %v9846_v36 = vld [vmem:[%s11501_s19 + $0x480] ss:$8 sps:$4 sm:$0xff]  }
 0x1a8   : > { %8078 = vmatprep.subr.bf16.mxu0 %v9770_v38  ;;  %8131 = vmatprep.subr.bf16.mxu1 %v9773_v39  ;;  %v9849_v37 = vld [vmem:[%s11501_s19 + $0x580] ss:$8 sps:$4 sm:$0xff]   ;;  %v9854_v38 = vld [vmem:[%s11501_s19 + $0x674] ss:$8 sps:$4 sm:$0xff]  }
 0x1a9   : > { %v9857_v39 = vld [vmem:[%s11501_s19 + $0x774] ss:$8 sps:$4 sm:$0xff]  }
 0x1aa   : > { %8011 = vmatmul.mubr.bf16.gmra.mxu0 %v8969_v42  ;;  %8064 = vmatmul.mubr.bf16.gmra.mxu1 %v8971_v43  ;;  %v9852_v42 = vld [vmem:[%s11501_s19 + $0x670] ss:$8 sps:$4 sm:$0xff]  }
 0x1ab   : > { %8079 = vmatpush1.bf16.msra.mxu0 %v9768_v46  ;;  %8132 = vmatpush1.bf16.msra.mxu1 %v9771_v47  ;;  %v9855_v43 = vld [vmem:[%s11501_s19 + $0x770] ss:$8 sps:$4 sm:$0xff]   ;;  %v4430_v46 = vld [vmem:[%s12617_s0 + $0x120] sm:$0xff] }
 0x1ac   : > { %8080 = vmatprep.subr.bf16.mxu0 %v9776_v48  ;;  %8133 = vmatprep.subr.bf16.mxu1 %v9779_v49  ;;  %v4446_v47 = vld [vmem:[%s12617_s0 + $0x1a0] sm:$0xff]  ;;  %v8941_v48 = vcombine.low %v11702_v40, %v11707_v41  ;;  %v8943_v49 = vcombine.low %v11712_v44, %v11717_v45 }
 0x1ad   : > { %8106 = vmatprep.mubr.bf16.mxu0 %v8942_v50  ;;  %8159 = vmatprep.mubr.bf16.mxu1 %v8944_v51  ;;  %v4431_v50 = vld [vmem:[%s12617_s0 + $0x128] sm:$0xff]  ;;  %v8974_v41 = vcombine.high %v4430_v46, %v4446_v47 }
 0x1ae   : > { %v4447_v51 = vld [vmem:[%s12617_s0 + $0x1a8] sm:$0xff] }
 0x1af   : > { %8081 = vmatpush1.bf16.msra.mxu0 %v9774_v52  ;;  %8134 = vmatpush1.bf16.msra.mxu1 %v9777_v53  ;;  %v9860_v52 = vld [vmem:[%s11501_s19 + $0x664] ss:$8 sps:$4 sm:$0xff]   ;;  %v8976_v44 = vcombine.high %v4431_v50, %v4447_v51  ;;  %v9858_v45 = vld [vmem:[%s11501_s19 + $0x660] ss:$8 sps:$4 sm:$0xff]  }
 0x1b0   : > { %8082 = vmatprep.subr.bf16.mxu0 %v9782_v54  ;;  %8135 = vmatprep.subr.bf16.mxu1 %v9785_v55  ;;  %v9863_v40 = vld [vmem:[%s11501_s19 + $0x764] ss:$8 sps:$4 sm:$0xff]   ;;  %v9861_v53 = vld [vmem:[%s11501_s19 + $0x760] ss:$8 sps:$4 sm:$0xff]   ;;  %v9866_v54 = vld [vmem:[%s11501_s19 + $0x654] ss:$8 sps:$4 sm:$0xff]  }
 0x1b1   : > { %v9869_v55 = vld [vmem:[%s11501_s19 + $0x754] ss:$8 sps:$4 sm:$0xff]  }
 0x1b3   : > { %8083 = vmatpush1.bf16.msra.mxu0 %v9780_v56  ;;  %8136 = vmatpush1.bf16.msra.mxu1 %v9783_v57  ;;  %v9864_v56 = vld [vmem:[%s11501_s19 + $0x650] ss:$8 sps:$4 sm:$0xff]  }
 0x1b4   : > { %8084 = vmatprep.subr.bf16.mxu0 %v9788_v58  ;;  %8137 = vmatprep.subr.bf16.mxu1 %v9791_v59  ;;  %v9867_v57 = vld [vmem:[%s11501_s19 + $0x750] ss:$8 sps:$4 sm:$0xff]  }
 0x1b5   : > { %v11808_v58 = vld [vmem:[%s12617_s0 + $0x30] sm:$0xff] }
 0x1b6   : > { %v11813_v59 = vld [vmem:[%s12617_s0 + $0xb0] sm:$0xff] }
 0x1b7   : > { %8085 = vmatpush1.bf16.msra.mxu0 %v9786_v60  ;;  %8138 = vmatpush1.bf16.msra.mxu1 %v9789_v61  ;;  %v8973_v60 = vcombine.low %v4430_v46, %v4446_v47  ;;  %v8975_v61 = vcombine.low %v4431_v50, %v4447_v51  ;;  %v9932_v46 = vld [vmem:[%s11501_s19 + $0x6a4] ss:$8 sps:$4 sm:$0xff]   ;;  %v9938_v50 = vld [vmem:[%s11501_s19 + $0x694] ss:$8 sps:$4 sm:$0xff]   ;;  %v4972_v51 = vlaneseq }
 0x1b8   : > { %8086 = vmatprep.subr.bf16.mxu0 %v9794_v62  ;;  %8139 = vmatprep.subr.bf16.mxu1 %v9797_v63  ;;  %v11818_v62 = vld [vmem:[%s12617_s0 + $0x38] sm:$0xff]  ;;  %v9935_v47 = vld [vmem:[%s11501_s19 + $0x7a4] ss:$8 sps:$4 sm:$0xff]  }
 0x1b9   : > { %v11823_v63 = vld [vmem:[%s12617_s0 + $0xb8] sm:$0xff] }
 0x1bb   : > { %8087 = vmatpush1.bf16.msra.mxu0 %v9792_v4  ;;  %8140 = vmatpush1.bf16.msra.mxu1 %v9795_v7  ;;  %v9872_v4 = vld [vmem:[%s11501_s19 + $0x644] ss:$8 sps:$4 sm:$0xff]  }
 0x1bc   : > { %8088 = vmatprep.subr.bf16.mxu0 %v9800_v8  ;;  %8141 = vmatprep.subr.bf16.mxu1 %v9803_v9  ;;  %v9875_v7 = vld [vmem:[%s11501_s19 + $0x744] ss:$8 sps:$4 sm:$0xff]   ;;  %v8946_v8 = vcombine.high %v11808_v58, %v11813_v59  ;;  %v8948_v9 = vcombine.high %v11818_v62, %v11823_v63 }
 0x1bf   : > { %8089 = vmatpush1.bf16.msra.mxu0 %v9798_v10  ;;  %8142 = vmatpush1.bf16.msra.mxu1 %v9801_v11  ;;  %v9870_v10 = vld [vmem:[%s11501_s19 + $0x640] ss:$8 sps:$4 sm:$0xff]  }
 0x1c0   : > { %8090 = vmatprep.subr.bf16.mxu0 %v9806_v12  ;;  %8143 = vmatprep.subr.bf16.mxu1 %v9809_v13  ;;  %v9873_v11 = vld [vmem:[%s11501_s19 + $0x740] ss:$8 sps:$4 sm:$0xff]   ;;  %v9878_v12 = vld [vmem:[%s11501_s19 + $0x634] ss:$8 sps:$4 sm:$0xff]  }
 0x1c1   : > { %v9881_v13 = vld [vmem:[%s11501_s19 + $0x734] ss:$8 sps:$4 sm:$0xff]  }
 0x1c3   : > { %8091 = vmatpush2.bf16.msra.mxu0 %v9804_v14  ;;  %8144 = vmatpush2.bf16.msra.mxu1 %v9807_v15  ;;  %v9876_v14 = vld [vmem:[%s11501_s19 + $0x630] ss:$8 sps:$4 sm:$0xff]  }
 0x1c4   : > { %8092 = vmatprep.subr.bf16.mxu0 %v9812_v16  ;;  %8145 = vmatprep.subr.bf16.mxu1 %v9815_v17  ;;  %v9879_v15 = vld [vmem:[%s11501_s19 + $0x730] ss:$8 sps:$4 sm:$0xff]   ;;  %v9884_v16 = vld [vmem:[%s11501_s19 + $0x624] ss:$8 sps:$4 sm:$0xff]  }
 0x1c5   : > { %v9887_v17 = vld [vmem:[%s11501_s19 + $0x724] ss:$8 sps:$4 sm:$0xff]  }
 0x1c7   : > { %8093 = vmatpush2.bf16.msra.mxu0 %v9810_v18  ;;  %8146 = vmatpush2.bf16.msra.mxu1 %v9813_v19  ;;  %v9882_v18 = vld [vmem:[%s11501_s19 + $0x620] ss:$8 sps:$4 sm:$0xff]  }
 0x1c8   : > { %8094 = vmatprep.subr.bf16.mxu0 %v9818_v20  ;;  %8147 = vmatprep.subr.bf16.mxu1 %v9821_v21  ;;  %v9885_v19 = vld [vmem:[%s11501_s19 + $0x720] ss:$8 sps:$4 sm:$0xff]   ;;  %v9890_v20 = vld [vmem:[%s11501_s19 + $0x614] ss:$8 sps:$4 sm:$0xff]  }
 0x1c9   : > { %v9893_v21 = vld [vmem:[%s11501_s19 + $0x714] ss:$8 sps:$4 sm:$0xff]  }
 0x1cb   : > { %8095 = vmatpush2.bf16.msra.mxu0 %v9816_v22  ;;  %8148 = vmatpush2.bf16.msra.mxu1 %v9819_v23  ;;  %v9888_v22 = vld [vmem:[%s11501_s19 + $0x610] ss:$8 sps:$4 sm:$0xff]  }
 0x1cc   : > { %8096 = vmatprep.subr.bf16.mxu0 %v9824_v24  ;;  %8149 = vmatprep.subr.bf16.mxu1 %v9827_v25  ;;  %v9891_v23 = vld [vmem:[%s11501_s19 + $0x710] ss:$8 sps:$4 sm:$0xff]   ;;  %v9896_v24 = vld [vmem:[%s11501_s19 + $0x604] ss:$8 sps:$4 sm:$0xff]  }
 0x1cd   : > { %v9899_v25 = vld [vmem:[%s11501_s19 + $0x704] ss:$8 sps:$4 sm:$0xff]  }
 0x1cf   : > { %8097 = vmatpush2.bf16.msra.mxu0 %v9822_v26  ;;  %8150 = vmatpush2.bf16.msra.mxu1 %v9825_v27  ;;  %v9894_v26 = vld [vmem:[%s11501_s19 + $0x600] ss:$8 sps:$4 sm:$0xff]  }
 0x1d0   : > { %8098 = vmatprep.subr.bf16.mxu0 %v9830_v28  ;;  %8151 = vmatprep.subr.bf16.mxu1 %v9833_v29  ;;  %v9897_v27 = vld [vmem:[%s11501_s19 + $0x700] ss:$8 sps:$4 sm:$0xff]   ;;  %v9902_v28 = vld [vmem:[%s11501_s19 + $0x6f4] ss:$8 sps:$4 sm:$0xff]  }
 0x1d1   : > { %v9905_v29 = vld [vmem:[%s11501_s19 + $0x7f4] ss:$8 sps:$4 sm:$0xff]  }
 0x1d3   : > { %8099 = vmatpush2.bf16.msra.mxu0 %v9828_v0  ;;  %8152 = vmatpush2.bf16.msra.mxu1 %v9831_v1  ;;  %v9900_v0 = vld [vmem:[%s11501_s19 + $0x6f0] ss:$8 sps:$4 sm:$0xff]  }
 0x1d4   : > { %8100 = vmatprep.subr.bf16.mxu0 %v9836_v3  ;;  %8153 = vmatprep.subr.bf16.mxu1 %v9839_v2  ;;  %v9903_v1 = vld [vmem:[%s11501_s19 + $0x7f0] ss:$8 sps:$4 sm:$0xff]   ;;  %v9908_v3 = vld [vmem:[%s11501_s19 + $0x6e4] ss:$8 sps:$4 sm:$0xff]  }
 0x1d5   : > { %v9911_v2 = vld [vmem:[%s11501_s19 + $0x7e4] ss:$8 sps:$4 sm:$0xff]  }
 0x1d7   : > { %8101 = vmatpush2.bf16.msra.mxu0 %v9834_v5  ;;  %8154 = vmatpush2.bf16.msra.mxu1 %v9837_v6  ;;  %v9906_v5 = vld [vmem:[%s11501_s19 + $0x6e0] ss:$8 sps:$4 sm:$0xff]  }
 0x1d8   : > { %8102 = vmatprep.subr.bf16.mxu0 %v9842_v30  ;;  %8155 = vmatprep.subr.bf16.mxu1 %v9845_v31  ;;  %v9909_v6 = vld [vmem:[%s11501_s19 + $0x7e0] ss:$8 sps:$4 sm:$0xff]   ;;  %v9914_v30 = vld [vmem:[%s11501_s19 + $0x6d4] ss:$8 sps:$4 sm:$0xff]  }
 0x1d9   : > { %v9917_v31 = vld [vmem:[%s11501_s19 + $0x7d4] ss:$8 sps:$4 sm:$0xff]  }
 0x1db   : > { %8103 = vmatpush2.bf16.msra.mxu0 %v9840_v32  ;;  %8156 = vmatpush2.bf16.msra.mxu1 %v9843_v33  ;;  %v9912_v32 = vld [vmem:[%s11501_s19 + $0x6d0] ss:$8 sps:$4 sm:$0xff]  }
 0x1dc   : > { %8104 = vmatprep.subr.bf16.mxu0 %v9848_v34  ;;  %8157 = vmatprep.subr.bf16.mxu1 %v9851_v35  ;;  %v9915_v33 = vld [vmem:[%s11501_s19 + $0x7d0] ss:$8 sps:$4 sm:$0xff]   ;;  %v9920_v34 = vld [vmem:[%s11501_s19 + $0x6c4] ss:$8 sps:$4 sm:$0xff]  }
 0x1dd   : > { %v9923_v35 = vld [vmem:[%s11501_s19 + $0x7c4] ss:$8 sps:$4 sm:$0xff]  }
 0x1df   : > { %8105 = vmatpush2.bf16.msra.mxu0 %v9846_v36  ;;  %8158 = vmatpush2.bf16.msra.mxu1 %v9849_v37  ;;  %v9918_v36 = vld [vmem:[%s11501_s19 + $0x6c0] ss:$8 sps:$4 sm:$0xff]  }
 0x1e0   : > { %8180 = vmatprep.subr.bf16.mxu0 %v9854_v38  ;;  %8233 = vmatprep.subr.bf16.mxu1 %v9857_v39  ;;  %v9921_v37 = vld [vmem:[%s11501_s19 + $0x7c0] ss:$8 sps:$4 sm:$0xff]   ;;  %v9926_v38 = vld [vmem:[%s11501_s19 + $0x6b4] ss:$8 sps:$4 sm:$0xff]  }
 0x1e1   : > { %v9929_v39 = vld [vmem:[%s11501_s19 + $0x7b4] ss:$8 sps:$4 sm:$0xff]  }
 0x1e2   : > { %8107 = vmatmul.mubr.bf16.vlgmr.msra.gmra.mxu0 %v8941_v48  ;;  %8160 = vmatmul.mubr.bf16.vlgmr.msra.gmra.mxu1 %v8943_v49  ;;  %v9930_v48 = vld [vmem:[%s11501_s19 + $0x6a0] ss:$8 sps:$4 sm:$0xff]  }
 0x1e3   : > { %8181 = vmatpush1.bf16.msra.mxu0 %v9852_v42  ;;  %8234 = vmatpush1.bf16.msra.mxu1 %v9855_v43  ;;  %v9924_v42 = vld [vmem:[%s11501_s19 + $0x6b0] ss:$8 sps:$4 sm:$0xff]   ;;  %v9933_v49 = vld [vmem:[%s11501_s19 + $0x7a0] ss:$8 sps:$4 sm:$0xff]  }
 0x1e4   : > { %8182 = vmatprep.subr.bf16.mxu0 %v9860_v52  ;;  %8235 = vmatprep.subr.bf16.mxu1 %v9863_v40  ;;  %v9927_v43 = vld [vmem:[%s11501_s19 + $0x7b0] ss:$8 sps:$4 sm:$0xff]   ;;  %v9941_v52 = vld [vmem:[%s11501_s19 + $0x794] ss:$8 sps:$4 sm:$0xff]  }
 0x1e5   : > { %8116 = vmatprep.mubr.bf16.mxu0 %v8974_v41  ;;  %8169 = vmatprep.mubr.bf16.mxu1 %v8976_v44  ;;  %v9936_v40 = vld [vmem:[%s11501_s19 + $0x690] ss:$8 sps:$4 sm:$0xff]   ;;  %v9944_v44 = vld [vmem:[%s11501_s19 + $0x684] ss:$8 sps:$4 sm:$0xff]  }
 0x1e6   : > { %v9939_v41 = vld [vmem:[%s11501_s19 + $0x790] ss:$8 sps:$4 sm:$0xff]  }
 0x1e7   : > { %8183 = vmatpush1.bf16.msra.mxu0 %v9858_v45  ;;  %8236 = vmatpush1.bf16.msra.mxu1 %v9861_v53  ;;  %v4973_v45 = vshrl.u32 %v4972_v51, 7  ;;  %v9947_v53 = vld [vmem:[%s11501_s19 + $0x784] ss:$8 sps:$4 sm:$0xff]   ;;  %v9974_v51 = vld [vmem:[%s11501_s19 + $0x834] ss:$8 sps:$4 sm:$0xff]  }
 0x1e8   : > { %8184 = vmatprep.subr.bf16.mxu0 %v9866_v54  ;;  %8237 = vmatprep.subr.bf16.mxu1 %v9869_v55  ;;  %v9942_v54 = vld [vmem:[%s11501_s19 + $0x680] ss:$8 sps:$4 sm:$0xff]  }
 0x1e9   : > { %v9945_v55 = vld [vmem:[%s11501_s19 + $0x780] ss:$8 sps:$4 sm:$0xff]  }
 0x1ea   : > { %8117 = vmatmul.mubr.bf16.gmra.mxu0 %v8973_v60  ;;  %8170 = vmatmul.mubr.bf16.gmra.mxu1 %v8975_v61  ;;  %v9950_v60 = vld [vmem:[%s11501_s19 + $0x874] ss:$8 sps:$4 sm:$0xff]  }
 0x1eb   : > { %8185 = vmatpush1.bf16.msra.mxu0 %v9864_v56  ;;  %8238 = vmatpush1.bf16.msra.mxu1 %v9867_v57  ;;  %v4970_v56 = vld [vmem:[%s4390_s20] sm:$0x3]  ;;  %v4974_v57 = vsub.s32 0, %v4973_v45  ;;  %v9953_v61 = vld [vmem:[%s11501_s19 + $0x974] ss:$8 sps:$4 sm:$0xff]  }
 0x1ec   : > { %8186 = vmatprep.subr.bf16.mxu0 %v9872_v4  ;;  %8239 = vmatprep.subr.bf16.mxu1 %v9875_v7  ;;  %v9948_v4 = vld [vmem:[%s11501_s19 + $0x870] ss:$8 sps:$4 sm:$0xff]  }
 0x1ed   : > { %8212 = vmatprep.mubr.bf16.mxu0 %v8946_v8  ;;  %8265 = vmatprep.mubr.bf16.mxu1 %v8948_v9  ;;  %v9951_v7 = vld [vmem:[%s11501_s19 + $0x970] ss:$8 sps:$4 sm:$0xff]   ;;  %v4978_v8 = vsub.s32 1, %v4973_v45 }
 0x1ee   : > { %v4432_v9 = vld [vmem:[%s12617_s0 + $0x130] sm:$0xff] }
 0x1ef   : > { %8187 = vmatpush1.bf16.msra.mxu0 %v9870_v10  ;;  %8240 = vmatpush1.bf16.msra.mxu1 %v9873_v11  ;;  %v4448_v10 = vld [vmem:[%s12617_s0 + $0x1b0] sm:$0xff]  ;;  %v8945_v11 = vcombine.low %v11808_v58, %v11813_v59  ;;  %v9959_v58 = vld [vmem:[%s11501_s19 + $0x964] ss:$8 sps:$4 sm:$0xff]   ;;  %v11909_v59 = vrot.slane %v4970_v56, %v4978_v8 }
 0x1f0   : > { %8188 = vmatprep.subr.bf16.mxu0 %v9878_v12  ;;  %8241 = vmatprep.subr.bf16.mxu1 %v9881_v13  ;;  %v8947_v12 = vcombine.low %v11818_v62, %v11823_v63  ;;  %v4433_v13 = vld [vmem:[%s12617_s0 + $0x138] sm:$0xff]  ;;  %v8978_v62 = vcombine.high %v4432_v9, %v4448_v10 }
 0x1f3   : > { %8189 = vmatpush1.bf16.msra.mxu0 %v9876_v14  ;;  %8242 = vmatpush1.bf16.msra.mxu1 %v9879_v15  ;;  %v4449_v14 = vld [vmem:[%s12617_s0 + $0x1b8] sm:$0xff]  ;;  %v11905_v15 = vrot.slane %v4970_v56, %v4974_v57 }
 0x1f4   : > { %8190 = vmatprep.subr.bf16.mxu0 %v9884_v16  ;;  %8243 = vmatprep.subr.bf16.mxu1 %v9887_v17  ;;  %v9956_v16 = vld [vmem:[%s11501_s19 + $0x864] ss:$8 sps:$4 sm:$0xff]   ;;  %v8980_v63 = vcombine.high %v4433_v13, %v4449_v14  ;;  %v9975_v57 = vld [vmem:[%s11501_s19 + $0x930] ss:$8 sps:$4 sm:$0xff]  }
 0x1f7   : > { %8191 = vmatpush1.bf16.msra.mxu0 %v9882_v18  ;;  %8244 = vmatpush1.bf16.msra.mxu1 %v9885_v19  ;;  %v9954_v19 = vld [vmem:[%s11501_s19 + $0x860] ss:$8 sps:$4 sm:$0xff]  }
 0x1f8   : > { %8192 = vmatprep.subr.bf16.mxu0 %v9890_v20  ;;  %8245 = vmatprep.subr.bf16.mxu1 %v9893_v21  ;;  %v9957_v20 = vld [vmem:[%s11501_s19 + $0x960] ss:$8 sps:$4 sm:$0xff]  }
 0x1fb   : > { %8193 = vmatpush1.bf16.msra.mxu0 %v9888_v22  ;;  %8246 = vmatpush1.bf16.msra.mxu1 %v9891_v23  ;;  %v9962_v22 = vld [vmem:[%s11501_s19 + $0x854] ss:$8 sps:$4 sm:$0xff]  }
 0x1fc   : > { %8194 = vmatprep.subr.bf16.mxu0 %v9896_v24  ;;  %8247 = vmatprep.subr.bf16.mxu1 %v9899_v25  ;;  %v9965_v25 = vld [vmem:[%s11501_s19 + $0x954] ss:$8 sps:$4 sm:$0xff]  }
 0x1ff   : > { %8195 = vmatpush1.bf16.msra.mxu0 %v9894_v26  ;;  %8248 = vmatpush1.bf16.msra.mxu1 %v9897_v27 }
 0x200   : > { %8196 = vmatprep.subr.bf16.mxu0 %v9902_v28  ;;  %8249 = vmatprep.subr.bf16.mxu1 %v9905_v29  ;;  %v9960_v28 = vld [vmem:[%s11501_s19 + $0x850] ss:$8 sps:$4 sm:$0xff]  }
 0x201   : > { %v9963_v29 = vld [vmem:[%s11501_s19 + $0x950] ss:$8 sps:$4 sm:$0xff]  }
 0x203   : > { %8197 = vmatpush2.bf16.msra.mxu0 %v9900_v0  ;;  %8250 = vmatpush2.bf16.msra.mxu1 %v9903_v1  ;;  %v11924_v0 = vld [vmem:[%s12617_s0 + $0x40] sm:$0xff] }
 0x204   : > { %8198 = vmatprep.subr.bf16.mxu0 %v9908_v3  ;;  %8251 = vmatprep.subr.bf16.mxu1 %v9911_v2  ;;  %v11929_v1 = vld [vmem:[%s12617_s0 + $0xc0] sm:$0xff] }
 0x207   : > { %8199 = vmatpush2.bf16.msra.mxu0 %v9906_v5  ;;  %8252 = vmatpush2.bf16.msra.mxu1 %v9909_v6  ;;  %v8977_v5 = vcombine.low %v4432_v9, %v4448_v10  ;;  %v8979_v6 = vcombine.low %v4433_v13, %v4449_v14  ;;  %v9981_v13 = vld [vmem:[%s11501_s19 + $0x920] ss:$8 sps:$4 sm:$0xff]   ;;  %v9986_v14 = vld [vmem:[%s11501_s19 + $0x814] ss:$8 sps:$4 sm:$0xff]  }
 0x208   : > { %8200 = vmatprep.subr.bf16.mxu0 %v9914_v30  ;;  %8253 = vmatprep.subr.bf16.mxu1 %v9917_v31  ;;  %v11934_v30 = vld [vmem:[%s12617_s0 + $0x48] sm:$0xff] }
 0x209   : > { %v11939_v31 = vld [vmem:[%s12617_s0 + $0xc8] sm:$0xff] }
 0x20b   : > { %8201 = vmatpush2.bf16.msra.mxu0 %v9912_v32  ;;  %8254 = vmatpush2.bf16.msra.mxu1 %v9915_v33 }
 0x20c   : > { %8202 = vmatprep.subr.bf16.mxu0 %v9920_v34  ;;  %8255 = vmatprep.subr.bf16.mxu1 %v9923_v35  ;;  %v9968_v34 = vld [vmem:[%s11501_s19 + $0x844] ss:$8 sps:$4 sm:$0xff]  }
 0x20f   : > { %8203 = vmatpush2.bf16.msra.mxu0 %v9918_v36  ;;  %8256 = vmatpush2.bf16.msra.mxu1 %v9921_v37  ;;  %v9971_v37 = vld [vmem:[%s11501_s19 + $0x944] ss:$8 sps:$4 sm:$0xff]  }
 0x210   : > { %8204 = vmatprep.subr.bf16.mxu0 %v9926_v38  ;;  %8257 = vmatprep.subr.bf16.mxu1 %v9929_v39 }
 0x213   : > { %8205 = vmatpush2.bf16.msra.mxu0 %v9924_v42  ;;  %8258 = vmatpush2.bf16.msra.mxu1 %v9927_v43  ;;  %v8950_v42 = vcombine.high %v11924_v0, %v11929_v1  ;;  %v8952_v43 = vcombine.high %v11934_v30, %v11939_v31 }
 0x214   : > { %8206 = vmatprep.subr.bf16.mxu0 %v9932_v46  ;;  %8259 = vmatprep.subr.bf16.mxu1 %v9935_v47  ;;  %v9966_v46 = vld [vmem:[%s11501_s19 + $0x840] ss:$8 sps:$4 sm:$0xff]  }
 0x215   : > { %v9969_v47 = vld [vmem:[%s11501_s19 + $0x940] ss:$8 sps:$4 sm:$0xff]  }
 0x217   : > { %8207 = vmatpush2.bf16.msra.mxu0 %v9930_v48  ;;  %8260 = vmatpush2.bf16.msra.mxu1 %v9933_v49 }
 0x218   : > { %8208 = vmatprep.subr.bf16.mxu0 %v9938_v50  ;;  %8261 = vmatprep.subr.bf16.mxu1 %v9941_v52 }
 0x21b   : > { %8209 = vmatpush2.bf16.msra.mxu0 %v9936_v40  ;;  %8262 = vmatpush2.bf16.msra.mxu1 %v9939_v41  ;;  %v9977_v40 = vld [vmem:[%s11501_s19 + $0x934] ss:$8 sps:$4 sm:$0xff]  }
 0x21c   : > { %8210 = vmatprep.subr.bf16.mxu0 %v9944_v44  ;;  %8263 = vmatprep.subr.bf16.mxu1 %v9947_v53 }
 0x21f   : > { %8211 = vmatpush2.bf16.msra.mxu0 %v9942_v54  ;;  %8264 = vmatpush2.bf16.msra.mxu1 %v9945_v55  ;;  %v9972_v54 = vld [vmem:[%s11501_s19 + $0x830] ss:$8 sps:$4 sm:$0xff]  }
 0x220   : > { %8286 = vmatprep.subr.bf16.mxu0 %v9950_v60  ;;  %8339 = vmatprep.subr.bf16.mxu1 %v9953_v61 }
 0x222   : > { %v7896_v17 = vpop.f32.mrf.mxu0  ;;  %v7949_v18 = vpop.f32.mrf.mxu1  ;;  %8213 = vmatmul.mubr.bf16.vlgmr.msra.gmra.mxu0 %v8945_v11  ;;  %8266 = vmatmul.mubr.bf16.vlgmr.msra.gmra.mxu1 %v8947_v12  ;;  %v9978_v12 = vld [vmem:[%s11501_s19 + $0x820] ss:$8 sps:$4 sm:$0xff]  }
 0x223   : > { %v7897_v21 = vadd.f32 %v7896_v17, %v11905_v15  ;;  %8287 = vmatpush1.bf16.msra.mxu0 %v9948_v4  ;;  %8340 = vmatpush1.bf16.msra.mxu1 %v9951_v7  ;;  %v9980_v4 = vld [vmem:[%s11501_s19 + $0x824] ss:$8 sps:$4 sm:$0xff]   ;;  %v9990_v17 = vld [vmem:[%s11501_s19 + $0x800] ss:$8 sps:$4 sm:$0xff]  }
 0x224   : > { %v7898_v23 = vpop.f32.mrf.mxu0  ;;  %v7951_v24 = vpop.f32.mrf.mxu1  ;;  %8288 = vmatprep.subr.bf16.mxu0 %v9956_v16  ;;  %8341 = vmatprep.subr.bf16.mxu1 %v9959_v58  ;;  %v9983_v7 = vld [vmem:[%s11501_s19 + $0x924] ss:$8 sps:$4 sm:$0xff]   ;;  %v9989_v16 = vld [vmem:[%s11501_s19 + $0x914] ss:$8 sps:$4 sm:$0xff]   ;;  %v9984_v58 = vld [vmem:[%s11501_s19 + $0x810] ss:$8 sps:$4 sm:$0xff]  }
 0x225   : > { %v11916_v26 = vadd.f32 %v7949_v18, %v7897_v21  ;;  %v7899_v27 = vadd.f32 %v7898_v23, %v11909_v59  ;;  %8222 = vmatprep.mubr.bf16.mxu0 %v8978_v62  ;;  %8275 = vmatprep.mubr.bf16.mxu1 %v8980_v63  ;;  %v9992_v62 = vld [vmem:[%s11501_s19 + $0x804] ss:$8 sps:$4 sm:$0xff]   ;;  %v9993_v18 = vld [vmem:[%s11501_s19 + $0x900] ss:$8 sps:$4 sm:$0xff]   ;;  %v9996_v21 = vld [vmem:[%s11501_s19 + $0x8f0] ss:$8 sps:$4 sm:$0xff]  }
 0x226   : > { %v7900_v3 = vpop.f32.mrf.mxu0  ;;  %v7953_v2 = vpop.f32.mrf.mxu1  ;;  %v9995_v63 = vld [vmem:[%s11501_s19 + $0x904] ss:$8 sps:$4 sm:$0xff]  }
 0x227   : > { %v11941_v32 = vadd.f32 %v7951_v24, %v7899_v27  ;;  %v7901_v33 = vadd.f32 %v7900_v3, %v11905_v15  ;;  %8289 = vmatpush1.bf16.msra.mxu0 %v9954_v19  ;;  %8342 = vmatpush1.bf16.msra.mxu1 %v9957_v20  ;;  %v9998_v19 = vld [vmem:[%s11501_s19 + $0x8f4] ss:$8 sps:$4 sm:$0xff]   ;;  %v10004_v23 = vld [vmem:[%s11501_s19 + $0x8e4] ss:$8 sps:$4 sm:$0xff]   ;;  %v10005_v27 = vld [vmem:[%s11501_s19 + $0x9e0] ss:$8 sps:$4 sm:$0xff]  }
 0x228   : > { %v7902_v35 = vpop.f32.mrf.mxu0  ;;  %v7955_v36 = vpop.f32.mrf.mxu1  ;;  %8290 = vmatprep.subr.bf16.mxu0 %v9962_v22  ;;  %8343 = vmatprep.subr.bf16.mxu1 %v9965_v25  ;;  %v10001_v20 = vld [vmem:[%s11501_s19 + $0x9f4] ss:$8 sps:$4 sm:$0xff]   ;;  %v9999_v22 = vld [vmem:[%s11501_s19 + $0x9f0] ss:$8 sps:$4 sm:$0xff]   ;;  %v10007_v24 = vld [vmem:[%s11501_s19 + $0x9e4] ss:$8 sps:$4 sm:$0xff]  }
 0x229   : > { %v11946_v38 = vadd.f32 %v7953_v2, %v7901_v33  ;;  %v7903_v39 = vadd.f32 %v7902_v35, %v11909_v59  ;;  %v10002_v25 = vld [vmem:[%s11501_s19 + $0x8e0] ss:$8 sps:$4 sm:$0xff]   ;;  %v10008_v3 = vld [vmem:[%s11501_s19 + $0x8d0] ss:$8 sps:$4 sm:$0xff]   ;;  %v10022_v35 = vld [vmem:[%s11501_s19 + $0x8b4] ss:$8 sps:$4 sm:$0xff]  }
 0x22a   : > { %8223 = vmatmul.mubr.bf16.gmra.mxu0 %v8977_v5  ;;  %8276 = vmatmul.mubr.bf16.gmra.mxu1 %v8979_v6  ;;  %v7906_v48 = vpop.f32.mrf.mxu0  ;;  %v7959_v49 = vpop.f32.mrf.mxu1  ;;  %v10011_v2 = vld [vmem:[%s11501_s19 + $0x9d0] ss:$8 sps:$4 sm:$0xff]   ;;  %v10016_v5 = vld [vmem:[%s11501_s19 + $0x8c4] ss:$8 sps:$4 sm:$0xff]   ;;  %v10014_v33 = vld [vmem:[%s11501_s19 + $0x8c0] ss:$8 sps:$4 sm:$0xff]  }
 0x22b   : > { %v11955_v50 = vadd.f32 %v7955_v36, %v7903_v39  ;;  %8291 = vmatpush1.bf16.msra.mxu0 %v9960_v28  ;;  %8344 = vmatpush1.bf16.msra.mxu1 %v9963_v29  ;;  %v7907_v52 = vadd.f32 %v7906_v48, %v11905_v15  ;;  %v10010_v28 = vld [vmem:[%s11501_s19 + $0x8d4] ss:$8 sps:$4 sm:$0xff]   ;;  %v10019_v6 = vld [vmem:[%s11501_s19 + $0x9c4] ss:$8 sps:$4 sm:$0xff]   ;;  %v10023_v39 = vld [vmem:[%s11501_s19 + $0x9b0] ss:$8 sps:$4 sm:$0xff]  }
 0x22c   : > { %8292 = vmatprep.subr.bf16.mxu0 %v9968_v34  ;;  %8345 = vmatprep.subr.bf16.mxu1 %v9971_v37  ;;  %v7908_v41 = vpop.f32.mrf.mxu0  ;;  %v7961_v44 = vpop.f32.mrf.mxu1  ;;  %v10013_v29 = vld [vmem:[%s11501_s19 + $0x9d4] ss:$8 sps:$4 sm:$0xff]   ;;  %v10017_v34 = vld [vmem:[%s11501_s19 + $0x9c0] ss:$8 sps:$4 sm:$0xff]   ;;  %v10020_v37 = vld [vmem:[%s11501_s19 + $0x8b0] ss:$8 sps:$4 sm:$0xff]  }
 0x22d   : > { %v7909_v45 = vadd.f32 %v7908_v41, %v11909_v59  ;;  %v11961_v53 = vadd.f32 %v7959_v49, %v7907_v52  ;;  %8318 = vmatprep.mubr.bf16.mxu0 %v8950_v42  ;;  %8371 = vmatprep.mubr.bf16.mxu1 %v8952_v43  ;;  %v10025_v36 = vld [vmem:[%s11501_s19 + $0x9b4] ss:$8 sps:$4 sm:$0xff]   ;;  %v10028_v42 = vld [vmem:[%s11501_s19 + $0x8a4] ss:$8 sps:$4 sm:$0xff]   ;;  %v10035_v52 = vld [vmem:[%s11501_s19 + $0x990] ss:$8 sps:$4 sm:$0xff]  }
 0x22e   : > { %v7910_v55 = vpop.f32.mrf.mxu0  ;;  %v7963_v56 = vpop.f32.mrf.mxu1  ;;  %v10031_v43 = vld [vmem:[%s11501_s19 + $0x9a4] ss:$8 sps:$4 sm:$0xff]   ;;  %v10034_v48 = vld [vmem:[%s11501_s19 + $0x894] ss:$8 sps:$4 sm:$0xff]  }
 0x22f   : > { %8293 = vmatpush1.bf16.msra.mxu0 %v9966_v46  ;;  %8346 = vmatpush1.bf16.msra.mxu1 %v9969_v47  ;;  %v7911_v60 = vadd.f32 %v7910_v55, %v11905_v15  ;;  %v11966_v61 = vadd.f32 %v7961_v44, %v7909_v45  ;;  %v10026_v46 = vld [vmem:[%s11501_s19 + $0x8a0] ss:$8 sps:$4 sm:$0xff]   ;;  %v10037_v49 = vld [vmem:[%s11501_s19 + $0x994] ss:$8 sps:$4 sm:$0xff]   ;;  %v10043_v41 = vld [vmem:[%s11501_s19 + $0x984] ss:$8 sps:$4 sm:$0xff]  }
 0x230   : > { %8294 = vmatprep.subr.bf16.mxu0 %v9974_v51  ;;  %8347 = vmatprep.subr.bf16.mxu1 %v9977_v40  ;;  %v7912_v8 = vpop.f32.mrf.mxu0  ;;  %v7965_v9 = vpop.f32.mrf.mxu1  ;;  %v10029_v47 = vld [vmem:[%s11501_s19 + $0x9a0] ss:$8 sps:$4 sm:$0xff]   ;;  %v10032_v51 = vld [vmem:[%s11501_s19 + $0x890] ss:$8 sps:$4 sm:$0xff]   ;;  %v10040_v40 = vld [vmem:[%s11501_s19 + $0x884] ss:$8 sps:$4 sm:$0xff]  }
 0x231   : > { %v7913_v10 = vadd.f32 %v7912_v8, %v11909_v59  ;;  %v11971_v11 = vadd.f32 %v7963_v56, %v7911_v60  ;;  %v9987_v59 = vld [vmem:[%s11501_s19 + $0x910] ss:$8 sps:$4 sm:$0xff]   ;;  %v10038_v44 = vld [vmem:[%s11501_s19 + $0x880] ss:$8 sps:$4 sm:$0xff]   ;;  %v10049_v55 = vld [vmem:[%s11501_s19 + $0xb74] ss:$8 sps:$4 sm:$0xff]   ;;  %v8949_v60 = vcombine.low %v11924_v0, %v11929_v1 }
 0x232   : > { %v10041_v45 = vld [vmem:[%s11501_s19 + $0x980] ss:$8 sps:$4 sm:$0xff]   ;;  %v10052_v0 = vld [vmem:[%s11501_s19 + $0xa64] ss:$8 sps:$4 sm:$0xff]  }
 0x233   : > { %8295 = vmatpush1.bf16.msra.mxu0 %v9972_v54  ;;  %8348 = vmatpush1.bf16.msra.mxu1 %v9975_v57  ;;  %v11976_v15 = vadd.f32 %v7965_v9, %v7913_v10  ;;  %v10046_v54 = vld [vmem:[%s11501_s19 + $0xa74] ss:$8 sps:$4 sm:$0xff]   ;;  %v4434_v56 = vld [vmem:[%s12617_s0 + $0x140] sm:$0xff]  ;;  %v10044_v57 = vld [vmem:[%s11501_s19 + $0xa70] ss:$8 sps:$4 sm:$0xff]  }
 0x234   : > { %8296 = vmatprep.subr.bf16.mxu0 %v9980_v4  ;;  %8349 = vmatprep.subr.bf16.mxu1 %v9983_v7  ;;  %v8951_v4 = vcombine.low %v11934_v30, %v11939_v31  ;;  %v4450_v7 = vld [vmem:[%s12617_s0 + $0x1c0] sm:$0xff]  ;;  %v4435_v8 = vld [vmem:[%s12617_s0 + $0x148] sm:$0xff]  ;;  %v10047_v10 = vld [vmem:[%s11501_s19 + $0xb70] ss:$8 sps:$4 sm:$0xff]  }
 0x235   : > { %v4451_v9 = vld [vmem:[%s12617_s0 + $0x1c8] sm:$0xff] }
 0x236   : > { %v10055_v1 = vld [vmem:[%s11501_s19 + $0xb64] ss:$8 sps:$4 sm:$0xff]   ;;  %v10050_v30 = vld [vmem:[%s11501_s19 + $0xa60] ss:$8 sps:$4 sm:$0xff]  }
 0x237   : > { %8297 = vmatpush1.bf16.msra.mxu0 %v9978_v12  ;;  %8350 = vmatpush1.bf16.msra.mxu1 %v9981_v13  ;;  %v10053_v31 = vld [vmem:[%s11501_s19 + $0xb60] ss:$8 sps:$4 sm:$0xff]   ;;  %v8982_v12 = vcombine.high %v4434_v56, %v4450_v7  ;;  %v8984_v13 = vcombine.high %v4435_v8, %v4451_v9 }
 0x238   : > { %8298 = vmatprep.subr.bf16.mxu0 %v9986_v14  ;;  %8351 = vmatprep.subr.bf16.mxu1 %v9989_v16 }
 0x23b   : > { %8299 = vmatpush1.bf16.msra.mxu0 %v9984_v58  ;;  %8352 = vmatpush1.bf16.msra.mxu1 %v9987_v59 }
 0x23c   : > { %8300 = vmatprep.subr.bf16.mxu0 %v9992_v62  ;;  %8353 = vmatprep.subr.bf16.mxu1 %v9995_v63  ;;  %v10058_v63 = vld [vmem:[%s11501_s19 + $0xa54] ss:$8 sps:$4 sm:$0xff]  }
 0x23f   : > { %8301 = vmatpush1.bf16.msra.mxu0 %v9990_v17  ;;  %8354 = vmatpush1.bf16.msra.mxu1 %v9993_v18  ;;  %v10061_v17 = vld [vmem:[%s11501_s19 + $0xb54] ss:$8 sps:$4 sm:$0xff]  }
 0x240   : > { %8302 = vmatprep.subr.bf16.mxu0 %v9998_v19  ;;  %8355 = vmatprep.subr.bf16.mxu1 %v10001_v20  ;;  %v10056_v20 = vld [vmem:[%s11501_s19 + $0xa50] ss:$8 sps:$4 sm:$0xff]  }
 0x243   : > { %8303 = vmatpush2.bf16.msra.mxu0 %v9996_v21  ;;  %8356 = vmatpush2.bf16.msra.mxu1 %v9999_v22  ;;  %v10059_v21 = vld [vmem:[%s11501_s19 + $0xb50] ss:$8 sps:$4 sm:$0xff]  }
 0x244   : > { %8304 = vmatprep.subr.bf16.mxu0 %v10004_v23  ;;  %8357 = vmatprep.subr.bf16.mxu1 %v10007_v24  ;;  %v12057_v22 = vld [vmem:[%s12617_s0 + $0xd0] sm:$0xff] }
 0x247   : > { %8305 = vmatpush2.bf16.msra.mxu0 %v10002_v25  ;;  %8358 = vmatpush2.bf16.msra.mxu1 %v10005_v27  ;;  %v8981_v25 = vcombine.low %v4434_v56, %v4450_v7  ;;  %v12062_v27 = vld [vmem:[%s12617_s0 + $0x58] sm:$0xff] }
 0x248   : > { %8306 = vmatprep.subr.bf16.mxu0 %v10010_v28  ;;  %8359 = vmatprep.subr.bf16.mxu1 %v10013_v29  ;;  %v12067_v28 = vld [vmem:[%s12617_s0 + $0xd8] sm:$0xff] }
 0x24b   : > { %8307 = vmatpush2.bf16.msra.mxu0 %v10008_v3  ;;  %8360 = vmatpush2.bf16.msra.mxu1 %v10011_v2 }
 0x24c   : > { %8308 = vmatprep.subr.bf16.mxu0 %v10016_v5  ;;  %8361 = vmatprep.subr.bf16.mxu1 %v10019_v6  ;;  %v10064_v6 = vld [vmem:[%s11501_s19 + $0xa44] ss:$8 sps:$4 sm:$0xff]  }
 0x24f   : > { %8309 = vmatpush2.bf16.msra.mxu0 %v10014_v33  ;;  %8362 = vmatpush2.bf16.msra.mxu1 %v10017_v34  ;;  %v10067_v33 = vld [vmem:[%s11501_s19 + $0xb44] ss:$8 sps:$4 sm:$0xff]  }
 0x250   : > { %8310 = vmatprep.subr.bf16.mxu0 %v10022_v35  ;;  %8363 = vmatprep.subr.bf16.mxu1 %v10025_v36  ;;  %v10062_v36 = vld [vmem:[%s11501_s19 + $0xa40] ss:$8 sps:$4 sm:$0xff]  }
 0x253   : > { %8311 = vmatpush2.bf16.msra.mxu0 %v10020_v37  ;;  %8364 = vmatpush2.bf16.msra.mxu1 %v10023_v39  ;;  %v10065_v37 = vld [vmem:[%s11501_s19 + $0xb40] ss:$8 sps:$4 sm:$0xff]  }
 0x254   : > { %8312 = vmatprep.subr.bf16.mxu0 %v10028_v42  ;;  %8365 = vmatprep.subr.bf16.mxu1 %v10031_v43 }
 0x257   : > { %8313 = vmatpush2.bf16.msra.mxu0 %v10026_v46  ;;  %8366 = vmatpush2.bf16.msra.mxu1 %v10029_v47 }
 0x258   : > { %8314 = vmatprep.subr.bf16.mxu0 %v10034_v48  ;;  %8367 = vmatprep.subr.bf16.mxu1 %v10037_v49  ;;  %v10070_v49 = vld [vmem:[%s11501_s19 + $0xa34] ss:$8 sps:$4 sm:$0xff]  }
 0x25b   : > { %8315 = vmatpush2.bf16.msra.mxu0 %v10032_v51  ;;  %8368 = vmatpush2.bf16.msra.mxu1 %v10035_v52  ;;  %v10073_v51 = vld [vmem:[%s11501_s19 + $0xb34] ss:$8 sps:$4 sm:$0xff]  }
 0x25c   : > { %8316 = vmatprep.subr.bf16.mxu0 %v10040_v40  ;;  %8369 = vmatprep.subr.bf16.mxu1 %v10043_v41  ;;  %v10068_v41 = vld [vmem:[%s11501_s19 + $0xa30] ss:$8 sps:$4 sm:$0xff]  }
 0x25f   : > { %8317 = vmatpush2.bf16.msra.mxu0 %v10038_v44  ;;  %8370 = vmatpush2.bf16.msra.mxu1 %v10041_v45  ;;  %v10071_v44 = vld [vmem:[%s11501_s19 + $0xb30] ss:$8 sps:$4 sm:$0xff]  }
 0x260   : > { %8392 = vmatprep.subr.bf16.mxu0 %v10046_v54  ;;  %8445 = vmatprep.subr.bf16.mxu1 %v10049_v55 }
 0x262   : > { %v8002_v14 = vpop.f32.mrf.mxu0  ;;  %v8055_v16 = vpop.f32.mrf.mxu1  ;;  %8319 = vmatmul.mubr.bf16.vlgmr.msra.gmra.mxu0 %v8949_v60  ;;  %8372 = vmatmul.mubr.bf16.vlgmr.msra.gmra.mxu1 %v8951_v4  ;;  %v10079_v60 = vld [vmem:[%s11501_s19 + $0xb24] ss:$8 sps:$4 sm:$0xff]  }
 0x263   : > { %v8003_v58 = vadd.f32 %v8002_v14, %v11916_v26  ;;  %8393 = vmatpush1.bf16.msra.mxu0 %v10044_v57  ;;  %8446 = vmatpush1.bf16.msra.mxu1 %v10047_v10  ;;  %v12052_v26 = vld [vmem:[%s12617_s0 + $0x50] sm:$0xff]  ;;  %v10076_v57 = vld [vmem:[%s11501_s19 + $0xa24] ss:$8 sps:$4 sm:$0xff]  }
 0x264   : > { %v8004_v59 = vpop.f32.mrf.mxu0  ;;  %v8057_v62 = vpop.f32.mrf.mxu1  ;;  %8394 = vmatprep.subr.bf16.mxu0 %v10052_v0  ;;  %8447 = vmatprep.subr.bf16.mxu1 %v10055_v1  ;;  %v8954_v39 = vcombine.high %v12052_v26, %v12057_v22  ;;  %v10082_v10 = vld [vmem:[%s11501_s19 + $0xa14] ss:$8 sps:$4 sm:$0xff]   ;;  %v10083_v1 = vld [vmem:[%s11501_s19 + $0xb10] ss:$8 sps:$4 sm:$0xff]  }
 0x265   : > { %v12044_v18 = vadd.f32 %v8055_v16, %v8003_v58  ;;  %v8005_v19 = vadd.f32 %v8004_v59, %v11941_v32  ;;  %8328 = vmatprep.mubr.bf16.mxu0 %v8982_v12  ;;  %8381 = vmatprep.mubr.bf16.mxu1 %v8984_v13  ;;  %v8983_v32 = vcombine.low %v4435_v8, %v4451_v9  ;;  %v10074_v8 = vld [vmem:[%s11501_s19 + $0xa20] ss:$8 sps:$4 sm:$0xff]   ;;  %v10085_v0 = vld [vmem:[%s11501_s19 + $0xb14] ss:$8 sps:$4 sm:$0xff]   ;;  %v10092_v58 = vld [vmem:[%s11501_s19 + $0xaf0] ss:$8 sps:$4 sm:$0xff]  }
 0x266   : > { %v8006_v23 = vpop.f32.mrf.mxu0  ;;  %v8059_v24 = vpop.f32.mrf.mxu1  ;;  %v10077_v9 = vld [vmem:[%s11501_s19 + $0xb20] ss:$8 sps:$4 sm:$0xff]   ;;  %v10094_v14 = vld [vmem:[%s11501_s19 + $0xaf4] ss:$8 sps:$4 sm:$0xff]   ;;  %v10095_v59 = vld [vmem:[%s11501_s19 + $0xbf0] ss:$8 sps:$4 sm:$0xff]  }
 0x267   : > { %v12069_v29 = vadd.f32 %v8057_v62, %v8005_v19  ;;  %v8007_v3 = vadd.f32 %v8006_v23, %v11946_v38  ;;  %8395 = vmatpush1.bf16.msra.mxu0 %v10050_v30  ;;  %8448 = vmatpush1.bf16.msra.mxu1 %v10053_v31  ;;  %v8956_v38 = vcombine.high %v12062_v27, %v12067_v28  ;;  %v10088_v30 = vld [vmem:[%s11501_s19 + $0xa04] ss:$8 sps:$4 sm:$0xff]   ;;  %v10086_v12 = vld [vmem:[%s11501_s19 + $0xa00] ss:$8 sps:$4 sm:$0xff]   ;;  %v10097_v16 = vld [vmem:[%s11501_s19 + $0xbf4] ss:$8 sps:$4 sm:$0xff]  }
 0x268   : > { %v8008_v2 = vpop.f32.mrf.mxu0  ;;  %v8061_v5 = vpop.f32.mrf.mxu1  ;;  %8396 = vmatprep.subr.bf16.mxu0 %v10058_v63  ;;  %8449 = vmatprep.subr.bf16.mxu1 %v10061_v17  ;;  %v10091_v31 = vld [vmem:[%s11501_s19 + $0xb04] ss:$8 sps:$4 sm:$0xff]   ;;  %v10089_v13 = vld [vmem:[%s11501_s19 + $0xb00] ss:$8 sps:$4 sm:$0xff]   ;;  %v10104_v23 = vld [vmem:[%s11501_s19 + $0xad0] ss:$8 sps:$4 sm:$0xff]  }
 0x269   : > { %v12074_v34 = vadd.f32 %v8059_v24, %v8007_v3  ;;  %v8009_v35 = vadd.f32 %v8008_v2, %v11955_v50  ;;  %v10100_v62 = vld [vmem:[%s11501_s19 + $0xae4] ss:$8 sps:$4 sm:$0xff]   ;;  %v10098_v17 = vld [vmem:[%s11501_s19 + $0xae0] ss:$8 sps:$4 sm:$0xff]   ;;  %v10107_v24 = vld [vmem:[%s11501_s19 + $0xbd0] ss:$8 sps:$4 sm:$0xff]  }
 0x26a   : > { %v8012_v42 = vpop.f32.mrf.mxu0  ;;  %8329 = vmatmul.mubr.bf16.gmra.mxu0 %v8981_v25  ;;  %v8065_v43 = vpop.f32.mrf.mxu1  ;;  %8382 = vmatmul.mubr.bf16.gmra.mxu1 %v8983_v32  ;;  %v10103_v63 = vld [vmem:[%s11501_s19 + $0xbe4] ss:$8 sps:$4 sm:$0xff]   ;;  %v10101_v19 = vld [vmem:[%s11501_s19 + $0xbe0] ss:$8 sps:$4 sm:$0xff]  }
 0x26b   : > { %v12083_v46 = vadd.f32 %v8061_v5, %v8009_v35  ;;  %v8013_v50 = vadd.f32 %v8012_v42, %v11961_v53  ;;  %8397 = vmatpush1.bf16.msra.mxu0 %v10056_v20  ;;  %8450 = vmatpush1.bf16.msra.mxu1 %v10059_v21  ;;  %v10106_v20 = vld [vmem:[%s11501_s19 + $0xad4] ss:$8 sps:$4 sm:$0xff]   ;;  %v10112_v25 = vld [vmem:[%s11501_s19 + $0xac4] ss:$8 sps:$4 sm:$0xff]   ;;  %v10110_v3 = vld [vmem:[%s11501_s19 + $0xac0] ss:$8 sps:$4 sm:$0xff]  }
 0x26c   : > { %v8014_v47 = vpop.f32.mrf.mxu0  ;;  %v8067_v48 = vpop.f32.mrf.mxu1  ;;  %8398 = vmatprep.subr.bf16.mxu0 %v10064_v6  ;;  %8451 = vmatprep.subr.bf16.mxu1 %v10067_v33  ;;  %v10109_v21 = vld [vmem:[%s11501_s19 + $0xbd4] ss:$8 sps:$4 sm:$0xff]   ;;  %v10115_v32 = vld [vmem:[%s11501_s19 + $0xbc4] ss:$8 sps:$4 sm:$0xff]   ;;  %v10113_v2 = vld [vmem:[%s11501_s19 + $0xbc0] ss:$8 sps:$4 sm:$0xff]  }
 0x26d   : > { %v8015_v52 = vadd.f32 %v8014_v47, %v11966_v61  ;;  %v12089_v40 = vadd.f32 %v8065_v43, %v8013_v50  ;;  %8424 = vmatprep.mubr.bf16.mxu0 %v8954_v39  ;;  %8477 = vmatprep.mubr.bf16.mxu1 %v8956_v38  ;;  %v10118_v5 = vld [vmem:[%s11501_s19 + $0xab4] ss:$8 sps:$4 sm:$0xff]   ;;  %v10116_v33 = vld [vmem:[%s11501_s19 + $0xab0] ss:$8 sps:$4 sm:$0xff]   ;;  %v10122_v39 = vld [vmem:[%s11501_s19 + $0xaa0] ss:$8 sps:$4 sm:$0xff]  }
 0x26e   : > { %v8016_v45 = vpop.f32.mrf.mxu0  ;;  %v8069_v53 = vpop.f32.mrf.mxu1  ;;  %v10121_v6 = vld [vmem:[%s11501_s19 + $0xbb4] ss:$8 sps:$4 sm:$0xff]   ;;  %v10119_v35 = vld [vmem:[%s11501_s19 + $0xbb0] ss:$8 sps:$4 sm:$0xff]   ;;  %v10125_v38 = vld [vmem:[%s11501_s19 + $0xba0] ss:$8 sps:$4 sm:$0xff]  }
 0x26f   : > { %v8017_v54 = vadd.f32 %v8016_v45, %v11971_v11  ;;  %v12094_v55 = vadd.f32 %v8067_v48, %v8015_v52  ;;  %8399 = vmatpush1.bf16.msra.mxu0 %v10062_v36  ;;  %8452 = vmatpush1.bf16.msra.mxu1 %v10065_v37  ;;  %v10124_v36 = vld [vmem:[%s11501_s19 + $0xaa4] ss:$8 sps:$4 sm:$0xff]   ;;  %v10130_v42 = vld [vmem:[%s11501_s19 + $0xa94] ss:$8 sps:$4 sm:$0xff]   ;;  %v10128_v50 = vld [vmem:[%s11501_s19 + $0xa90] ss:$8 sps:$4 sm:$0xff]  }
 0x270   : > { %v8018_v61 = vpop.f32.mrf.mxu0  ;;  %v8071_v56 = vpop.f32.mrf.mxu1  ;;  %8400 = vmatprep.subr.bf16.mxu0 %v10070_v49  ;;  %8453 = vmatprep.subr.bf16.mxu1 %v10073_v51  ;;  %v10127_v37 = vld [vmem:[%s11501_s19 + $0xba4] ss:$8 sps:$4 sm:$0xff]   ;;  %v10133_v43 = vld [vmem:[%s11501_s19 + $0xb94] ss:$8 sps:$4 sm:$0xff]   ;;  %v10131_v47 = vld [vmem:[%s11501_s19 + $0xb90] ss:$8 sps:$4 sm:$0xff]  }
 0x271   : > { %v8019_v4 = vadd.f32 %v8018_v61, %v11976_v15  ;;  %v12099_v7 = vadd.f32 %v8069_v53, %v8017_v54  ;;  %v10080_v15 = vld [vmem:[%s11501_s19 + $0xa10] ss:$8 sps:$4 sm:$0xff]   ;;  %v10136_v48 = vld [vmem:[%s11501_s19 + $0xa84] ss:$8 sps:$4 sm:$0xff]   ;;  %v10134_v51 = vld [vmem:[%s11501_s19 + $0xa80] ss:$8 sps:$4 sm:$0xff]   ;;  %v8953_v53 = vcombine.low %v12052_v26, %v12057_v22  ;;  %v8955_v54 = vcombine.low %v12062_v27, %v12067_v28 }
 0x272   : > { %v10139_v49 = vld [vmem:[%s11501_s19 + $0xb84] ss:$8 sps:$4 sm:$0xff]   ;;  %v10137_v52 = vld [vmem:[%s11501_s19 + $0xb80] ss:$8 sps:$4 sm:$0xff]   ;;  %v4436_v45 = vld [vmem:[%s12617_s0 + $0x150] sm:$0xff] }
 0x273   : > { %v12101_v11 = vadd.f32 %v8071_v56, %v8019_v4  ;;  %8401 = vmatpush1.bf16.msra.mxu0 %v10068_v41  ;;  %8454 = vmatpush1.bf16.msra.mxu1 %v10071_v44  ;;  %v10142_v41 = vld [vmem:[%s11501_s19 + $0xc74] ss:$8 sps:$4 sm:$0xff]   ;;  %v10140_v26 = vld [vmem:[%s11501_s19 + $0xc70] ss:$8 sps:$4 sm:$0xff]   ;;  %v10148_v27 = vld [vmem:[%s11501_s19 + $0xc64] ss:$8 sps:$4 sm:$0xff]  }
 0x274   : > { %8402 = vmatprep.subr.bf16.mxu0 %v10076_v57  ;;  %8455 = vmatprep.subr.bf16.mxu1 %v10079_v60  ;;  %v10145_v44 = vld [vmem:[%s11501_s19 + $0xd74] ss:$8 sps:$4 sm:$0xff]   ;;  %v10143_v22 = vld [vmem:[%s11501_s19 + $0xd70] ss:$8 sps:$4 sm:$0xff]   ;;  %v10151_v28 = vld [vmem:[%s11501_s19 + $0xd64] ss:$8 sps:$4 sm:$0xff]  }
 0x275   : > { %v4452_v61 = vld [vmem:[%s12617_s0 + $0x1d0] sm:$0xff]  ;;  %v4437_v56 = vld [vmem:[%s12617_s0 + $0x158] sm:$0xff] }
 0x276   : > { %v4453_v57 = vld [vmem:[%s12617_s0 + $0x1d8] sm:$0xff]  ;;  %v8986_v60 = vcombine.high %v4436_v45, %v4452_v61 }
 0x277   : > { %8403 = vmatpush1.bf16.msra.mxu0 %v10074_v8  ;;  %8456 = vmatpush1.bf16.msra.mxu1 %v10077_v9  ;;  %v8988_v4 = vcombine.high %v4437_v56, %v4453_v57  ;;  %v10146_v8 = vld [vmem:[%s11501_s19 + $0xc60] ss:$8 sps:$4 sm:$0xff]  }
 0x278   : > { %8404 = vmatprep.subr.bf16.mxu0 %v10082_v10  ;;  %8457 = vmatprep.subr.bf16.mxu1 %v10085_v0  ;;  %v10149_v9 = vld [vmem:[%s11501_s19 + $0xd60] ss:$8 sps:$4 sm:$0xff]   ;;  %v10154_v10 = vld [vmem:[%s11501_s19 + $0xc54] ss:$8 sps:$4 sm:$0xff]  }
 0x279   : > { %v10157_v0 = vld [vmem:[%s11501_s19 + $0xd54] ss:$8 sps:$4 sm:$0xff]  }
 0x27b   : > { %8405 = vmatpush1.bf16.msra.mxu0 %v10080_v15  ;;  %8458 = vmatpush1.bf16.msra.mxu1 %v10083_v1  ;;  %v12174_v15 = vld [vmem:[%s12617_s0 + $0x60] sm:$0xff]  ;;  %v8985_v1 = vcombine.low %v4436_v45, %v4452_v61  ;;  %v10200_v45 = vld [vmem:[%s11501_s19 + $0xcd0] ss:$8 sps:$4 sm:$0xff]  }
 0x27c   : > { %8406 = vmatprep.subr.bf16.mxu0 %v10088_v30  ;;  %8459 = vmatprep.subr.bf16.mxu1 %v10091_v31  ;;  %v8987_v30 = vcombine.low %v4437_v56, %v4453_v57  ;;  %v12179_v31 = vld [vmem:[%s12617_s0 + $0xe0] sm:$0xff] }
 0x27d   : > { %v10211_v61 = vld [vmem:[%s11501_s19 + $0xdc4] ss:$8 sps:$4 sm:$0xff]   ;;  %v10206_v56 = vld [vmem:[%s11501_s19 + $0xcc0] ss:$8 sps:$4 sm:$0xff]  }
 0x27e   : > { %v10209_v57 = vld [vmem:[%s11501_s19 + $0xdc0] ss:$8 sps:$4 sm:$0xff]  }
 0x27f   : > { %8407 = vmatpush1.bf16.msra.mxu0 %v10086_v12  ;;  %8460 = vmatpush1.bf16.msra.mxu1 %v10089_v13  ;;  %v12184_v12 = vld [vmem:[%s12617_s0 + $0x68] sm:$0xff] }
 0x280   : > { %8408 = vmatprep.subr.bf16.mxu0 %v10094_v14  ;;  %8461 = vmatprep.subr.bf16.mxu1 %v10097_v16  ;;  %v12189_v13 = vld [vmem:[%s12617_s0 + $0xe8] sm:$0xff]  ;;  %v10152_v14 = vld [vmem:[%s11501_s19 + $0xc50] ss:$8 sps:$4 sm:$0xff]  }
 0x281   : > { %v10155_v16 = vld [vmem:[%s11501_s19 + $0xd50] ss:$8 sps:$4 sm:$0xff]  }
 0x283   : > { %8409 = vmatpush2.bf16.msra.mxu0 %v10092_v58  ;;  %8462 = vmatpush2.bf16.msra.mxu1 %v10095_v59  ;;  %v10160_v58 = vld [vmem:[%s11501_s19 + $0xc44] ss:$8 sps:$4 sm:$0xff]  }
 0x284   : > { %8410 = vmatprep.subr.bf16.mxu0 %v10100_v62  ;;  %8463 = vmatprep.subr.bf16.mxu1 %v10103_v63  ;;  %v10163_v59 = vld [vmem:[%s11501_s19 + $0xd44] ss:$8 sps:$4 sm:$0xff]   ;;  %v8958_v62 = vcombine.high %v12174_v15, %v12179_v31  ;;  %v8960_v63 = vcombine.high %v12184_v12, %v12189_v13 }
 0x287   : > { %8411 = vmatpush2.bf16.msra.mxu0 %v10098_v17  ;;  %8464 = vmatpush2.bf16.msra.mxu1 %v10101_v19  ;;  %v10158_v17 = vld [vmem:[%s11501_s19 + $0xc40] ss:$8 sps:$4 sm:$0xff]  }
 0x288   : > { %8412 = vmatprep.subr.bf16.mxu0 %v10106_v20  ;;  %8465 = vmatprep.subr.bf16.mxu1 %v10109_v21  ;;  %v10161_v19 = vld [vmem:[%s11501_s19 + $0xd40] ss:$8 sps:$4 sm:$0xff]   ;;  %v10166_v20 = vld [vmem:[%s11501_s19 + $0xc34] ss:$8 sps:$4 sm:$0xff]  }
 0x289   : > { %v10169_v21 = vld [vmem:[%s11501_s19 + $0xd34] ss:$8 sps:$4 sm:$0xff]  }
 0x28b   : > { %8413 = vmatpush2.bf16.msra.mxu0 %v10104_v23  ;;  %8466 = vmatpush2.bf16.msra.mxu1 %v10107_v24  ;;  %v10164_v23 = vld [vmem:[%s11501_s19 + $0xc30] ss:$8 sps:$4 sm:$0xff]  }
 0x28c   : > { %8414 = vmatprep.subr.bf16.mxu0 %v10112_v25  ;;  %8467 = vmatprep.subr.bf16.mxu1 %v10115_v32  ;;  %v10167_v24 = vld [vmem:[%s11501_s19 + $0xd30] ss:$8 sps:$4 sm:$0xff]   ;;  %v10172_v25 = vld [vmem:[%s11501_s19 + $0xc24] ss:$8 sps:$4 sm:$0xff]  }
 0x28d   : > { %v10175_v32 = vld [vmem:[%s11501_s19 + $0xd24] ss:$8 sps:$4 sm:$0xff]  }
 0x28f   : > { %8415 = vmatpush2.bf16.msra.mxu0 %v10110_v3  ;;  %8468 = vmatpush2.bf16.msra.mxu1 %v10113_v2  ;;  %v10170_v3 = vld [vmem:[%s11501_s19 + $0xc20] ss:$8 sps:$4 sm:$0xff]  }
 0x290   : > { %8416 = vmatprep.subr.bf16.mxu0 %v10118_v5  ;;  %8469 = vmatprep.subr.bf16.mxu1 %v10121_v6  ;;  %v10173_v2 = vld [vmem:[%s11501_s19 + $0xd20] ss:$8 sps:$4 sm:$0xff]   ;;  %v10178_v5 = vld [vmem:[%s11501_s19 + $0xc14] ss:$8 sps:$4 sm:$0xff]  }
 0x291   : > { %v10181_v6 = vld [vmem:[%s11501_s19 + $0xd14] ss:$8 sps:$4 sm:$0xff]  }
 0x293   : > { %8417 = vmatpush2.bf16.msra.mxu0 %v10116_v33  ;;  %8470 = vmatpush2.bf16.msra.mxu1 %v10119_v35  ;;  %v10176_v33 = vld [vmem:[%s11501_s19 + $0xc10] ss:$8 sps:$4 sm:$0xff]  }
 0x294   : > { %8418 = vmatprep.subr.bf16.mxu0 %v10124_v36  ;;  %8471 = vmatprep.subr.bf16.mxu1 %v10127_v37  ;;  %v10179_v35 = vld [vmem:[%s11501_s19 + $0xd10] ss:$8 sps:$4 sm:$0xff]   ;;  %v10184_v36 = vld [vmem:[%s11501_s19 + $0xc04] ss:$8 sps:$4 sm:$0xff]  }
 0x295   : > { %v10187_v37 = vld [vmem:[%s11501_s19 + $0xd04] ss:$8 sps:$4 sm:$0xff]  }
 0x297   : > { %8419 = vmatpush2.bf16.msra.mxu0 %v10122_v39  ;;  %8472 = vmatpush2.bf16.msra.mxu1 %v10125_v38  ;;  %v10182_v39 = vld [vmem:[%s11501_s19 + $0xc00] ss:$8 sps:$4 sm:$0xff]  }
 0x298   : > { %8420 = vmatprep.subr.bf16.mxu0 %v10130_v42  ;;  %8473 = vmatprep.subr.bf16.mxu1 %v10133_v43  ;;  %v10185_v38 = vld [vmem:[%s11501_s19 + $0xd00] ss:$8 sps:$4 sm:$0xff]   ;;  %v10190_v42 = vld [vmem:[%s11501_s19 + $0xcf4] ss:$8 sps:$4 sm:$0xff]  }
 0x299   : > { %v10193_v43 = vld [vmem:[%s11501_s19 + $0xdf4] ss:$8 sps:$4 sm:$0xff]  }
 0x29b   : > { %8421 = vmatpush2.bf16.msra.mxu0 %v10128_v50  ;;  %8474 = vmatpush2.bf16.msra.mxu1 %v10131_v47  ;;  %v10188_v50 = vld [vmem:[%s11501_s19 + $0xcf0] ss:$8 sps:$4 sm:$0xff]  }
 0x29c   : > { %8422 = vmatprep.subr.bf16.mxu0 %v10136_v48  ;;  %8475 = vmatprep.subr.bf16.mxu1 %v10139_v49  ;;  %v10191_v47 = vld [vmem:[%s11501_s19 + $0xdf0] ss:$8 sps:$4 sm:$0xff]   ;;  %v10196_v48 = vld [vmem:[%s11501_s19 + $0xce4] ss:$8 sps:$4 sm:$0xff]  }
 0x29d   : > { %v10199_v49 = vld [vmem:[%s11501_s19 + $0xde4] ss:$8 sps:$4 sm:$0xff]  }
 0x29f   : > { %8423 = vmatpush2.bf16.msra.mxu0 %v10134_v51  ;;  %8476 = vmatpush2.bf16.msra.mxu1 %v10137_v52  ;;  %v10194_v51 = vld [vmem:[%s11501_s19 + $0xce0] ss:$8 sps:$4 sm:$0xff]  }
 0x2a0   : > { %8498 = vmatprep.subr.bf16.mxu0 %v10142_v41  ;;  %8551 = vmatprep.subr.bf16.mxu1 %v10145_v44  ;;  %v10197_v52 = vld [vmem:[%s11501_s19 + $0xde0] ss:$8 sps:$4 sm:$0xff]   ;;  %v10202_v41 = vld [vmem:[%s11501_s19 + $0xcd4] ss:$8 sps:$4 sm:$0xff]  }
 0x2a1   : > { %v10205_v44 = vld [vmem:[%s11501_s19 + $0xdd4] ss:$8 sps:$4 sm:$0xff]  }
 0x2a2   : > { %8425 = vmatmul.mubr.bf16.vlgmr.msra.gmra.mxu0 %v8953_v53  ;;  %8478 = vmatmul.mubr.bf16.vlgmr.msra.gmra.mxu1 %v8955_v54  ;;  %v10203_v53 = vld [vmem:[%s11501_s19 + $0xdd0] ss:$8 sps:$4 sm:$0xff]   ;;  %v10208_v54 = vld [vmem:[%s11501_s19 + $0xcc4] ss:$8 sps:$4 sm:$0xff]  }
 0x2a3   : > { %8499 = vmatpush1.bf16.msra.mxu0 %v10140_v26  ;;  %8552 = vmatpush1.bf16.msra.mxu1 %v10143_v22  ;;  %v10214_v26 = vld [vmem:[%s11501_s19 + $0xcb4] ss:$8 sps:$4 sm:$0xff]  }
 0x2a4   : > { %8500 = vmatprep.subr.bf16.mxu0 %v10148_v27  ;;  %8553 = vmatprep.subr.bf16.mxu1 %v10151_v28  ;;  %v10217_v22 = vld [vmem:[%s11501_s19 + $0xdb4] ss:$8 sps:$4 sm:$0xff]   ;;  %v10212_v27 = vld [vmem:[%s11501_s19 + $0xcb0] ss:$8 sps:$4 sm:$0xff]  }
 0x2a5   : > { %8434 = vmatprep.mubr.bf16.mxu0 %v8986_v60  ;;  %8487 = vmatprep.mubr.bf16.mxu1 %v8988_v4  ;;  %v10215_v28 = vld [vmem:[%s11501_s19 + $0xdb0] ss:$8 sps:$4 sm:$0xff]   ;;  %v10220_v60 = vld [vmem:[%s11501_s19 + $0xca4] ss:$8 sps:$4 sm:$0xff]  }
 0x2a6   : > { %v10223_v4 = vld [vmem:[%s11501_s19 + $0xda4] ss:$8 sps:$4 sm:$0xff]  }
 0x2a7   : > { %8501 = vmatpush1.bf16.msra.mxu0 %v10146_v8  ;;  %8554 = vmatpush1.bf16.msra.mxu1 %v10149_v9  ;;  %v10218_v8 = vld [vmem:[%s11501_s19 + $0xca0] ss:$8 sps:$4 sm:$0xff]  }
 0x2a8   : > { %8502 = vmatprep.subr.bf16.mxu0 %v10154_v10  ;;  %8555 = vmatprep.subr.bf16.mxu1 %v10157_v0  ;;  %v10221_v9 = vld [vmem:[%s11501_s19 + $0xda0] ss:$8 sps:$4 sm:$0xff]   ;;  %v10226_v10 = vld [vmem:[%s11501_s19 + $0xc94] ss:$8 sps:$4 sm:$0xff]  }
 0x2a9   : > { %v10229_v0 = vld [vmem:[%s11501_s19 + $0xd94] ss:$8 sps:$4 sm:$0xff]  }
 0x2aa   : > { %8435 = vmatmul.mubr.bf16.gmra.mxu0 %v8985_v1  ;;  %8488 = vmatmul.mubr.bf16.gmra.mxu1 %v8987_v30  ;;  %v10224_v1 = vld [vmem:[%s11501_s19 + $0xc90] ss:$8 sps:$4 sm:$0xff]  }
 0x2ab   : > { %8503 = vmatpush1.bf16.msra.mxu0 %v10152_v14  ;;  %8556 = vmatpush1.bf16.msra.mxu1 %v10155_v16  ;;  %v10227_v30 = vld [vmem:[%s11501_s19 + $0xd90] ss:$8 sps:$4 sm:$0xff]   ;;  %v10232_v14 = vld [vmem:[%s11501_s19 + $0xc84] ss:$8 sps:$4 sm:$0xff]  }
 0x2ac   : > { %8504 = vmatprep.subr.bf16.mxu0 %v10160_v58  ;;  %8557 = vmatprep.subr.bf16.mxu1 %v10163_v59  ;;  %v10235_v16 = vld [vmem:[%s11501_s19 + $0xd84] ss:$8 sps:$4 sm:$0xff]   ;;  %v10230_v58 = vld [vmem:[%s11501_s19 + $0xc80] ss:$8 sps:$4 sm:$0xff]  }
 0x2ad   : > { %8530 = vmatprep.mubr.bf16.mxu0 %v8958_v62  ;;  %8583 = vmatprep.mubr.bf16.mxu1 %v8960_v63  ;;  %v10233_v59 = vld [vmem:[%s11501_s19 + $0xd80] ss:$8 sps:$4 sm:$0xff]   ;;  %v10238_v62 = vld [vmem:[%s11501_s19 + $0xe74] ss:$8 sps:$4 sm:$0xff]  }
 0x2ae   : > { %v10241_v63 = vld [vmem:[%s11501_s19 + $0xf74] ss:$8 sps:$4 sm:$0xff]  }
 0x2af   : > { %8505 = vmatpush1.bf16.msra.mxu0 %v10158_v17  ;;  %8558 = vmatpush1.bf16.msra.mxu1 %v10161_v19  ;;  %v4438_v17 = vld [vmem:[%s12617_s0 + $0x160] sm:$0xff]  ;;  %v8957_v19 = vcombine.low %v12174_v15, %v12179_v31  ;;  %v10236_v15 = vld [vmem:[%s11501_s19 + $0xe70] ss:$8 sps:$4 sm:$0xff]  }
 0x2b0   : > { %8506 = vmatprep.subr.bf16.mxu0 %v10166_v20  ;;  %8559 = vmatprep.subr.bf16.mxu1 %v10169_v21  ;;  %v8959_v20 = vcombine.low %v12184_v12, %v12189_v13  ;;  %v4454_v21 = vld [vmem:[%s12617_s0 + $0x1e0] sm:$0xff]  ;;  %v10239_v31 = vld [vmem:[%s11501_s19 + $0xf70] ss:$8 sps:$4 sm:$0xff]  }
 0x2b1   : > { %v10244_v12 = vld [vmem:[%s11501_s19 + $0xe64] ss:$8 sps:$4 sm:$0xff]  }
 0x2b2   : > { %v10247_v13 = vld [vmem:[%s11501_s19 + $0xf64] ss:$8 sps:$4 sm:$0xff]  }
 0x2b3   : > { %8507 = vmatpush1.bf16.msra.mxu0 %v10164_v23  ;;  %8560 = vmatpush1.bf16.msra.mxu1 %v10167_v24  ;;  %v4439_v23 = vld [vmem:[%s12617_s0 + $0x168] sm:$0xff] }
 0x2b4   : > { %8508 = vmatprep.subr.bf16.mxu0 %v10172_v25  ;;  %8561 = vmatprep.subr.bf16.mxu1 %v10175_v32  ;;  %v4455_v24 = vld [vmem:[%s12617_s0 + $0x1e8] sm:$0xff]  ;;  %v8990_v25 = vcombine.high %v4438_v17, %v4454_v21 }
 0x2b5   : > { %v8992_v32 = vcombine.high %v4439_v23, %v4455_v24 }
 0x2b7   : > { %8509 = vmatpush1.bf16.msra.mxu0 %v10170_v3  ;;  %8562 = vmatpush1.bf16.msra.mxu1 %v10173_v2  ;;  %v10242_v3 = vld [vmem:[%s11501_s19 + $0xe60] ss:$8 sps:$4 sm:$0xff]  }
 0x2b8   : > { %8510 = vmatprep.subr.bf16.mxu0 %v10178_v5  ;;  %8563 = vmatprep.subr.bf16.mxu1 %v10181_v6  ;;  %v10245_v2 = vld [vmem:[%s11501_s19 + $0xf60] ss:$8 sps:$4 sm:$0xff]   ;;  %v10250_v5 = vld [vmem:[%s11501_s19 + $0xe54] ss:$8 sps:$4 sm:$0xff]  }
 0x2b9   : > { %v10253_v6 = vld [vmem:[%s11501_s19 + $0xf54] ss:$8 sps:$4 sm:$0xff]  }
 0x2bb   : > { %8511 = vmatpush1.bf16.msra.mxu0 %v10176_v33  ;;  %8564 = vmatpush1.bf16.msra.mxu1 %v10179_v35  ;;  %v12278_v33 = vld [vmem:[%s12617_s0 + $0x70] sm:$0xff]  ;;  %v8989_v35 = vcombine.low %v4438_v17, %v4454_v21  ;;  %v10307_v21 = vld [vmem:[%s11501_s19 + $0xfc4] ss:$8 sps:$4 sm:$0xff]  }
 0x2bc   : > { %8512 = vmatprep.subr.bf16.mxu0 %v10184_v36  ;;  %8565 = vmatprep.subr.bf16.mxu1 %v10187_v37  ;;  %v8991_v36 = vcombine.low %v4439_v23, %v4455_v24  ;;  %v12283_v37 = vld [vmem:[%s12617_s0 + $0xf0] sm:$0xff]  ;;  %v10302_v23 = vld [vmem:[%s11501_s19 + $0xec0] ss:$8 sps:$4 sm:$0xff]  }
 0x2bd   : > { %v10296_v17 = vld [vmem:[%s11501_s19 + $0xed0] ss:$8 sps:$4 sm:$0xff]   ;;  %v10305_v24 = vld [vmem:[%s11501_s19 + $0xfc0] ss:$8 sps:$4 sm:$0xff]  }
 0x2bf   : > { %8513 = vmatpush1.bf16.msra.mxu0 %v10182_v39  ;;  %8566 = vmatpush1.bf16.msra.mxu1 %v10185_v38  ;;  %v12288_v39 = vld [vmem:[%s12617_s0 + $0x78] sm:$0xff] }
 0x2c0   : > { %8514 = vmatprep.subr.bf16.mxu0 %v10190_v42  ;;  %8567 = vmatprep.subr.bf16.mxu1 %v10193_v43  ;;  %v12293_v38 = vld [vmem:[%s12617_s0 + $0xf8] sm:$0xff] }
 0x2c1   : > { %v10248_v42 = vld [vmem:[%s11501_s19 + $0xe50] ss:$8 sps:$4 sm:$0xff]  }
 0x2c2   : > { %v10251_v43 = vld [vmem:[%s11501_s19 + $0xf50] ss:$8 sps:$4 sm:$0xff]  }
 0x2c3   : > { %8515 = vmatpush2.bf16.msra.mxu0 %v10188_v50  ;;  %8568 = vmatpush2.bf16.msra.mxu1 %v10191_v47  ;;  %v10256_v50 = vld [vmem:[%s11501_s19 + $0xe44] ss:$8 sps:$4 sm:$0xff]  }
 0x2c4   : > { %8516 = vmatprep.subr.bf16.mxu0 %v10196_v48  ;;  %8569 = vmatprep.subr.bf16.mxu1 %v10199_v49  ;;  %v10259_v47 = vld [vmem:[%s11501_s19 + $0xf44] ss:$8 sps:$4 sm:$0xff]   ;;  %v8962_v48 = vcombine.high %v12278_v33, %v12283_v37  ;;  %v8964_v49 = vcombine.high %v12288_v39, %v12293_v38 }
 0x2c7   : > { %8517 = vmatpush2.bf16.msra.mxu0 %v10194_v51  ;;  %8570 = vmatpush2.bf16.msra.mxu1 %v10197_v52  ;;  %v10254_v51 = vld [vmem:[%s11501_s19 + $0xe40] ss:$8 sps:$4 sm:$0xff]  }
 0x2c8   : > { %8518 = vmatprep.subr.bf16.mxu0 %v10202_v41  ;;  %8571 = vmatprep.subr.bf16.mxu1 %v10205_v44  ;;  %v10257_v52 = vld [vmem:[%s11501_s19 + $0xf40] ss:$8 sps:$4 sm:$0xff]   ;;  %v10262_v41 = vld [vmem:[%s11501_s19 + $0xe34] ss:$8 sps:$4 sm:$0xff]  }
 0x2c9   : > { %v10265_v44 = vld [vmem:[%s11501_s19 + $0xf34] ss:$8 sps:$4 sm:$0xff]  }
 0x2cb   : > { %8519 = vmatpush2.bf16.msra.mxu0 %v10200_v45  ;;  %8572 = vmatpush2.bf16.msra.mxu1 %v10203_v53  ;;  %v10260_v45 = vld [vmem:[%s11501_s19 + $0xe30] ss:$8 sps:$4 sm:$0xff]  }
 0x2cc   : > { %8520 = vmatprep.subr.bf16.mxu0 %v10208_v54  ;;  %8573 = vmatprep.subr.bf16.mxu1 %v10211_v61  ;;  %v10263_v53 = vld [vmem:[%s11501_s19 + $0xf30] ss:$8 sps:$4 sm:$0xff]   ;;  %v10268_v54 = vld [vmem:[%s11501_s19 + $0xe24] ss:$8 sps:$4 sm:$0xff]  }
 0x2cd   : > { %v10271_v61 = vld [vmem:[%s11501_s19 + $0xf24] ss:$8 sps:$4 sm:$0xff]  }
 0x2cf   : > { %8521 = vmatpush2.bf16.msra.mxu0 %v10206_v56  ;;  %8574 = vmatpush2.bf16.msra.mxu1 %v10209_v57  ;;  %v10266_v56 = vld [vmem:[%s11501_s19 + $0xe20] ss:$8 sps:$4 sm:$0xff]  }
 0x2d0   : > { %8522 = vmatprep.subr.bf16.mxu0 %v10214_v26  ;;  %8575 = vmatprep.subr.bf16.mxu1 %v10217_v22  ;;  %v10269_v57 = vld [vmem:[%s11501_s19 + $0xf20] ss:$8 sps:$4 sm:$0xff]   ;;  %v10274_v26 = vld [vmem:[%s11501_s19 + $0xe14] ss:$8 sps:$4 sm:$0xff]  }
 0x2d1   : > { %v10277_v22 = vld [vmem:[%s11501_s19 + $0xf14] ss:$8 sps:$4 sm:$0xff]  }
 0x2d3   : > { %8523 = vmatpush2.bf16.msra.mxu0 %v10212_v27  ;;  %8576 = vmatpush2.bf16.msra.mxu1 %v10215_v28  ;;  %v10272_v27 = vld [vmem:[%s11501_s19 + $0xe10] ss:$8 sps:$4 sm:$0xff]  }
 0x2d4   : > { %8524 = vmatprep.subr.bf16.mxu0 %v10220_v60  ;;  %8577 = vmatprep.subr.bf16.mxu1 %v10223_v4  ;;  %v10275_v28 = vld [vmem:[%s11501_s19 + $0xf10] ss:$8 sps:$4 sm:$0xff]   ;;  %v10280_v60 = vld [vmem:[%s11501_s19 + $0xe04] ss:$8 sps:$4 sm:$0xff]  }
 0x2d5   : > { %v10283_v4 = vld [vmem:[%s11501_s19 + $0xf04] ss:$8 sps:$4 sm:$0xff]  }
 0x2d7   : > { %8525 = vmatpush2.bf16.msra.mxu0 %v10218_v8  ;;  %8578 = vmatpush2.bf16.msra.mxu1 %v10221_v9  ;;  %v10278_v8 = vld [vmem:[%s11501_s19 + $0xe00] ss:$8 sps:$4 sm:$0xff]  }
 0x2d8   : > { %8526 = vmatprep.subr.bf16.mxu0 %v10226_v10  ;;  %8579 = vmatprep.subr.bf16.mxu1 %v10229_v0  ;;  %v10281_v9 = vld [vmem:[%s11501_s19 + $0xf00] ss:$8 sps:$4 sm:$0xff]   ;;  %v10286_v10 = vld [vmem:[%s11501_s19 + $0xef4] ss:$8 sps:$4 sm:$0xff]  }
 0x2d9   : > { %v10289_v0 = vld [vmem:[%s11501_s19 + $0xff4] ss:$8 sps:$4 sm:$0xff]  }
 0x2db   : > { %8527 = vmatpush2.bf16.msra.mxu0 %v10224_v1  ;;  %8580 = vmatpush2.bf16.msra.mxu1 %v10227_v30  ;;  %v10284_v1 = vld [vmem:[%s11501_s19 + $0xef0] ss:$8 sps:$4 sm:$0xff]  }
 0x2dc   : > { %8528 = vmatprep.subr.bf16.mxu0 %v10232_v14  ;;  %8581 = vmatprep.subr.bf16.mxu1 %v10235_v16  ;;  %v10287_v30 = vld [vmem:[%s11501_s19 + $0xff0] ss:$8 sps:$4 sm:$0xff]   ;;  %v10292_v14 = vld [vmem:[%s11501_s19 + $0xee4] ss:$8 sps:$4 sm:$0xff]  }
 0x2dd   : > { %v10295_v16 = vld [vmem:[%s11501_s19 + $0xfe4] ss:$8 sps:$4 sm:$0xff]  }
 0x2df   : > { %8529 = vmatpush2.bf16.msra.mxu0 %v10230_v58  ;;  %8582 = vmatpush2.bf16.msra.mxu1 %v10233_v59  ;;  %v10290_v58 = vld [vmem:[%s11501_s19 + $0xee0] ss:$8 sps:$4 sm:$0xff]  }
 0x2e0   : > { %8604 = vmatprep.subr.bf16.mxu0 %v10238_v62  ;;  %8657 = vmatprep.subr.bf16.mxu1 %v10241_v63  ;;  %v10293_v59 = vld [vmem:[%s11501_s19 + $0xfe0] ss:$8 sps:$4 sm:$0xff]   ;;  %v10298_v62 = vld [vmem:[%s11501_s19 + $0xed4] ss:$8 sps:$4 sm:$0xff]  }
 0x2e1   : > { %v10301_v63 = vld [vmem:[%s11501_s19 + $0xfd4] ss:$8 sps:$4 sm:$0xff]  }
 0x2e2   : > { %8531 = vmatmul.mubr.bf16.vlgmr.msra.gmra.mxu0 %v8957_v19  ;;  %8584 = vmatmul.mubr.bf16.vlgmr.msra.gmra.mxu1 %v8959_v20  ;;  %v10299_v19 = vld [vmem:[%s11501_s19 + $0xfd0] ss:$8 sps:$4 sm:$0xff]   ;;  %v10304_v20 = vld [vmem:[%s11501_s19 + $0xec4] ss:$8 sps:$4 sm:$0xff]  }
 0x2e3   : > { %8605 = vmatpush1.bf16.msra.mxu0 %v10236_v15  ;;  %8658 = vmatpush1.bf16.msra.mxu1 %v10239_v31  ;;  %v10310_v15 = vld [vmem:[%s11501_s19 + $0xeb4] ss:$8 sps:$4 sm:$0xff]  }
 0x2e4   : > { %8606 = vmatprep.subr.bf16.mxu0 %v10244_v12  ;;  %8659 = vmatprep.subr.bf16.mxu1 %v10247_v13  ;;  %v10313_v31 = vld [vmem:[%s11501_s19 + $0xfb4] ss:$8 sps:$4 sm:$0xff]   ;;  %v10308_v12 = vld [vmem:[%s11501_s19 + $0xeb0] ss:$8 sps:$4 sm:$0xff]  }
 0x2e5   : > { %8540 = vmatprep.mubr.bf16.mxu0 %v8990_v25  ;;  %8593 = vmatprep.mubr.bf16.mxu1 %v8992_v32  ;;  %v10311_v13 = vld [vmem:[%s11501_s19 + $0xfb0] ss:$8 sps:$4 sm:$0xff]   ;;  %v10316_v25 = vld [vmem:[%s11501_s19 + $0xea4] ss:$8 sps:$4 sm:$0xff]  }
 0x2e6   : > { %v10319_v32 = vld [vmem:[%s11501_s19 + $0xfa4] ss:$8 sps:$4 sm:$0xff]  }
 0x2e7   : > { %8607 = vmatpush1.bf16.msra.mxu0 %v10242_v3  ;;  %8660 = vmatpush1.bf16.msra.mxu1 %v10245_v2  ;;  %v10314_v3 = vld [vmem:[%s11501_s19 + $0xea0] ss:$8 sps:$4 sm:$0xff]  }
 0x2e8   : > { %8608 = vmatprep.subr.bf16.mxu0 %v10250_v5  ;;  %8661 = vmatprep.subr.bf16.mxu1 %v10253_v6  ;;  %v10317_v2 = vld [vmem:[%s11501_s19 + $0xfa0] ss:$8 sps:$4 sm:$0xff]   ;;  %v10322_v5 = vld [vmem:[%s11501_s19 + $0xe94] ss:$8 sps:$4 sm:$0xff]  }
 0x2e9   : > { %v10325_v6 = vld [vmem:[%s11501_s19 + $0xf94] ss:$8 sps:$4 sm:$0xff]  }
 0x2ea   : > { %8541 = vmatmul.mubr.bf16.gmra.mxu0 %v8989_v35  ;;  %8594 = vmatmul.mubr.bf16.gmra.mxu1 %v8991_v36  ;;  %v10320_v35 = vld [vmem:[%s11501_s19 + $0xe90] ss:$8 sps:$4 sm:$0xff]  }
 0x2eb   : > { %8609 = vmatpush1.bf16.msra.mxu0 %v10248_v42  ;;  %8662 = vmatpush1.bf16.msra.mxu1 %v10251_v43  ;;  %v10323_v36 = vld [vmem:[%s11501_s19 + $0xf90] ss:$8 sps:$4 sm:$0xff]   ;;  %v10328_v42 = vld [vmem:[%s11501_s19 + $0xe84] ss:$8 sps:$4 sm:$0xff]  }
 0x2ec   : > { %8610 = vmatprep.subr.bf16.mxu0 %v10256_v50  ;;  %8663 = vmatprep.subr.bf16.mxu1 %v10259_v47  ;;  %v10331_v43 = vld [vmem:[%s11501_s19 + $0xf84] ss:$8 sps:$4 sm:$0xff]   ;;  %v10326_v50 = vld [vmem:[%s11501_s19 + $0xe80] ss:$8 sps:$4 sm:$0xff]  }
 0x2ed   : > { %8636 = vmatprep.mubr.bf16.mxu0 %v8962_v48  ;;  %8689 = vmatprep.mubr.bf16.mxu1 %v8964_v49  ;;  %v10329_v47 = vld [vmem:[%s11501_s19 + $0xf80] ss:$8 sps:$4 sm:$0xff]   ;;  %v4440_v48 = vld [vmem:[%s12617_s0 + $0x170] sm:$0xff]  ;;  %s8931_s19 = sshll.u32 %s4347_s30, 5  ;;  %s9523_s30 = sshll.u32 (%p10427_p6), %s10362_s14, 3 }
 0x2ee   : > { %v4456_v49 = vld [vmem:[%s12617_s0 + $0x1f0] sm:$0xff]  ;;  %s12585_s12 = scalar_lea.vmem [#allocation3], %s8931_s19  ;;  %s8774_s29 = scalar_lea.vmem (%p10427_p6), %s12620_s3, %s9523_s30 }
 0x2ef   : > { %8611 = vmatpush1.bf16.msra.mxu0 %v10254_v51  ;;  %8664 = vmatpush1.bf16.msra.mxu1 %v10257_v52  ;;  %v4441_v51 = vld [vmem:[%s12617_s0 + $0x178] sm:$0xff] }
 0x2f0   : > { %8612 = vmatprep.subr.bf16.mxu0 %v10262_v41  ;;  %8665 = vmatprep.subr.bf16.mxu1 %v10265_v44  ;;  %v4457_v52 = vld [vmem:[%s12617_s0 + $0x1f8] sm:$0xff]  ;;  %v8961_v41 = vcombine.low %v12278_v33, %v12283_v37  ;;  %v8963_v44 = vcombine.low %v12288_v39, %v12293_v38  ;;  %v12375_v37 = vpop.f32.mrf.mxu1 }
 0x2f2   : > { %v12379_v38 = vpop.f32.mrf.mxu1 }
 0x2f3   : > { %8613 = vmatpush1.bf16.msra.mxu0 %v10260_v45  ;;  %8666 = vmatpush1.bf16.msra.mxu1 %v10263_v53  ;;  %v8994_v45 = vcombine.high %v4440_v48, %v4456_v49  ;;  %v8996_v53 = vcombine.high %v4441_v51, %v4457_v52 }
 0x2f4   : > { %8614 = vmatprep.subr.bf16.mxu0 %v10268_v54  ;;  %8667 = vmatprep.subr.bf16.mxu1 %v10271_v61  ;;  %v8993_v54 = vcombine.low %v4440_v48, %v4456_v49  ;;  %v8995_v61 = vcombine.low %v4441_v51, %v4457_v52 }
 0x2f7   : > { %8615 = vmatpush1.bf16.msra.mxu0 %v10266_v56  ;;  %8668 = vmatpush1.bf16.msra.mxu1 %v10269_v57  ;;  %v12369_v56 = vpop.f32.mrf.mxu0 }
 0x2f8   : > { %8616 = vmatprep.subr.bf16.mxu0 %v10274_v26  ;;  %8669 = vmatprep.subr.bf16.mxu1 %v10277_v22  ;;  %v12383_v22 = vpop.f32.mrf.mxu1 }
 0x2f9   : > { %v12371_v57 = vpop.f32.mrf.mxu0 }
 0x2fb   : > { %8617 = vmatpush1.bf16.msra.mxu0 %v10272_v27  ;;  %8670 = vmatpush1.bf16.msra.mxu1 %v10275_v28  ;;  %v12373_v33 = vpop.f32.mrf.mxu0  ;;  %v12387_v28 = vpop.f32.mrf.mxu1 }
 0x2fc   : > { %8618 = vmatprep.subr.bf16.mxu0 %v10280_v60  ;;  %8671 = vmatprep.subr.bf16.mxu1 %v10283_v4 }
 0x2fd   : > { %v12377_v39 = vpop.f32.mrf.mxu0  ;;  %v12389_v60 = vpop.f32.mrf.mxu1 }
 0x2ff   : > { %8619 = vmatpush1.bf16.msra.mxu0 %v10278_v8  ;;  %8672 = vmatpush1.bf16.msra.mxu1 %v10281_v9  ;;  %v12381_v26 = vpop.f32.mrf.mxu0  ;;  %v12393_v8 = vpop.f32.mrf.mxu1 }
 0x300   : > { %8620 = vmatprep.subr.bf16.mxu0 %v10286_v10  ;;  %8673 = vmatprep.subr.bf16.mxu1 %v10289_v0 }
 0x301   : > { %v12385_v27 = vpop.f32.mrf.mxu0  ;;  %v12397_v0 = vpop.f32.mrf.mxu1 }
 0x303   : > { %8621 = vmatpush2.bf16.msra.mxu0 %v10284_v1  ;;  %8674 = vmatpush2.bf16.msra.mxu1 %v10287_v30  ;;  %v12391_v4 = vpop.f32.mrf.mxu0  ;;  %v12399_v30 = vpop.f32.mrf.mxu1 }
 0x304   : > { %8622 = vmatprep.subr.bf16.mxu0 %v10292_v14  ;;  %8675 = vmatprep.subr.bf16.mxu1 %v10295_v16 }
 0x305   : > { %v12395_v9 = vpop.f32.mrf.mxu0  ;;  %v12401_v14 = vpop.f32.mrf.mxu1 }
 0x307   : > { %8623 = vmatpush2.bf16.msra.mxu0 %v10290_v58  ;;  %8676 = vmatpush2.bf16.msra.mxu1 %v10293_v59  ;;  %v8214_v10 = vpop.f32.mrf.mxu0  ;;  %v12405_v58 = vpop.f32.mrf.mxu1 }
 0x308   : > { %8624 = vmatprep.subr.bf16.mxu0 %v10298_v62  ;;  %8677 = vmatprep.subr.bf16.mxu1 %v10301_v63 }
 0x309   : > { %v8216_v1 = vpop.f32.mrf.mxu0  ;;  %v12409_v62 = vpop.f32.mrf.mxu1 }
 0x30b   : > { %8625 = vmatpush2.bf16.msra.mxu0 %v10296_v17  ;;  %8678 = vmatpush2.bf16.msra.mxu1 %v10299_v19  ;;  %v12403_v16 = vpop.f32.mrf.mxu0  ;;  %v12413_v17 = vpop.f32.mrf.mxu1 }
 0x30c   : > { %8626 = vmatprep.subr.bf16.mxu0 %v10304_v20  ;;  %8679 = vmatprep.subr.bf16.mxu1 %v10307_v21 }
 0x30d   : > { %v12407_v59 = vpop.f32.mrf.mxu0  ;;  %v12417_v20 = vpop.f32.mrf.mxu1 }
 0x30f   : > { %8627 = vmatpush2.bf16.msra.mxu0 %v10302_v23  ;;  %8680 = vmatpush2.bf16.msra.mxu1 %v10305_v24  ;;  %v12411_v63 = vpop.f32.mrf.mxu0  ;;  %v12421_v23 = vpop.f32.mrf.mxu1 }
 0x310   : > { %8628 = vmatprep.subr.bf16.mxu0 %v10310_v15  ;;  %8681 = vmatprep.subr.bf16.mxu1 %v10313_v31 }
 0x311   : > { %v12415_v19 = vpop.f32.mrf.mxu0  ;;  %v12425_v15 = vpop.f32.mrf.mxu1 }
 0x313   : > { %8629 = vmatpush2.bf16.msra.mxu0 %v10308_v12  ;;  %8682 = vmatpush2.bf16.msra.mxu1 %v10311_v13  ;;  %v12419_v21 = vpop.f32.mrf.mxu0  ;;  %v12427_v12 = vpop.f32.mrf.mxu1 }
 0x314   : > { %8630 = vmatprep.subr.bf16.mxu0 %v10316_v25  ;;  %8683 = vmatprep.subr.bf16.mxu1 %v10319_v32  ;;  %12622 = vst [vmem:[#allocation4_spill] sm:$0xff] %v12427_v12 }
 0x315   : > { %v12423_v24 = vpop.f32.mrf.mxu0 }
 0x317   : > { %8631 = vmatpush2.bf16.msra.mxu0 %v10314_v3  ;;  %8684 = vmatpush2.bf16.msra.mxu1 %v10317_v2 }
 0x318   : > { %8632 = vmatprep.subr.bf16.mxu0 %v10322_v5  ;;  %8685 = vmatprep.subr.bf16.mxu1 %v10325_v6 }
 0x31b   : > { %8633 = vmatpush2.bf16.msra.mxu0 %v10320_v35  ;;  %8686 = vmatpush2.bf16.msra.mxu1 %v10323_v36 }
 0x31c   : > { %8634 = vmatprep.subr.bf16.mxu0 %v10328_v42  ;;  %8687 = vmatprep.subr.bf16.mxu1 %v10331_v43 }
 0x31f   : > { %8635 = vmatpush2.bf16.msra.mxu0 %v10326_v50  ;;  %8688 = vmatpush2.bf16.msra.mxu1 %v10329_v47 }
 0x322   : > { %8637 = vmatmul.mubr.bf16.vlgmr.msra.gmra.mxu0 %v8961_v41  ;;  %8690 = vmatmul.mubr.bf16.vlgmr.msra.gmra.mxu1 %v8963_v44  ;;  %v8320_v31 = vpop.f32.mrf.mxu0  ;;  %v12429_v25 = vpop.f32.mrf.mxu1 }
 0x323   : > { %8646 = vmatprep.mubr.bf16.mxu0 %v8994_v45  ;;  %8699 = vmatprep.mubr.bf16.mxu1 %v8996_v53 }
 0x324   : > { %v8322_v13 = vpop.f32.mrf.mxu0  ;;  %v12433_v3 = vpop.f32.mrf.mxu1 }
 0x326   : > { %v12431_v32 = vpop.f32.mrf.mxu0  ;;  %v12437_v5 = vpop.f32.mrf.mxu1 }
 0x328   : > { %v12435_v2 = vpop.f32.mrf.mxu0  ;;  %v12441_v35 = vpop.f32.mrf.mxu1 }
 0x32a   : > { %8647 = vmatmul.mubr.bf16.gmra.mxu0 %v8993_v54  ;;  %8700 = vmatmul.mubr.bf16.gmra.mxu1 %v8995_v61  ;;  %v12439_v6 = vpop.f32.mrf.mxu0  ;;  %v12445_v42 = vpop.f32.mrf.mxu1 }
 0x32b   : > { %12623 = vst [vmem:[#allocation5_spill] sm:$0xff] %v12445_v42 }
 0x32c   : > { %v12443_v36 = vpop.f32.mrf.mxu0  ;;  %v12449_v50 = vpop.f32.mrf.mxu1 }
 0x32d   : > { %12625 = vst [vmem:[#allocation7_spill] sm:$0xff] %v12449_v50 }
 0x32e   : > { %v12447_v43 = vpop.f32.mrf.mxu0  ;;  %v12453_v48 = vpop.f32.mrf.mxu1 }
 0x32f   : > { %12624 = vst [vmem:[#allocation6_spill] sm:$0xff] %v12447_v43  ;;  %12627 = vst [vmem:[#allocation9_spill] sm:$0xff] %v12453_v48 }
 0x330   : > { %v12451_v47 = vpop.f32.mrf.mxu0  ;;  %v12455_v51 = vpop.f32.mrf.mxu1 }
 0x331   : > { %12626 = vst [vmem:[#allocation8_spill] sm:$0xff] %v12451_v47  ;;  %12628 = vst [vmem:[#allocation10_spill] sm:$0xff] %v12455_v51 }
 0x362   : > { %v8426_v49 = vpop.f32.mrf.mxu0  ;;  %v12457_v52 = vpop.f32.mrf.mxu1 }
 0x364   : > { %v12459_v41 = vpop.f32.mrf.mxu0  ;;  %v12461_v44 = vpop.f32.mrf.mxu1 }
 0x365   : > { %12629 = vst [vmem:[#allocation11_spill] sm:$0xff] %v12461_v44 }
 0x366   : > { %v12463_v45 = vpop.f32.mrf.mxu0  ;;  %v12465_v53 = vpop.f32.mrf.mxu1 }
 0x367   : > { %12630 = vst [vmem:[#allocation12_spill] sm:$0xff] %v12465_v53 }
 0x368   : > { %v12467_v54 = vpop.f32.mrf.mxu0  ;;  %v12469_v61 = vpop.f32.mrf.mxu1 }
 0x369   : > { %12631 = vst [vmem:[#allocation13_spill] sm:$0xff] %v12467_v54  ;;  %12632 = vst [vmem:[#allocation14_spill] sm:$0xff] %v12469_v61  ;;  %v8109_v61 = vadd.f32 %v12369_v56, %v12044_v18  ;;  %v8115_v18 = vadd.f32 %v12377_v39, %v12083_v46  ;;  %v8119_v56 = vadd.f32 %v12381_v26, %v12089_v40 }
 0x36a   : > { %v12471_v47 = vpop.f32.mrf.mxu0  ;;  %v12473_v48 = vpop.f32.mrf.mxu1  ;;  %v8123_v40 = vadd.f32 %v12391_v4, %v12099_v7 }
 0x36b   : > { %12633 = vst [vmem:[#allocation15_spill] sm:$0xff] %v12473_v48  ;;  %v8111_v48 = vadd.f32 %v12371_v57, %v12069_v29  ;;  %v8172_v46 = vadd.f32 %v12389_v60, %v8119_v56  ;;  %v8125_v60 = vadd.f32 %v12395_v9, %v12101_v11  ;;  %v12644_v56 = vld [vmem:[#allocation4_spill] sm:$0xff] }
 0x36c   : > { %v12475_v50 = vpop.f32.mrf.mxu0  ;;  %v12477_v51 = vpop.f32.mrf.mxu1  ;;  %v8176_v7 = vadd.f32 %v12397_v0, %v8123_v40 }
 0x36d   : > { %12634 = vst [vmem:[#allocation16_spill] sm:$0xff] %v12475_v50  ;;  %12635 = vst [vmem:[#allocation17_spill] sm:$0xff] %v12477_v51  ;;  %v8162_v51 = vadd.f32 %v12375_v37, %v8109_v61  ;;  %v8178_v9 = vadd.f32 %v12399_v30, %v8125_v60 }
 0x36e   : > { %v12479_v12 = vpop.f32.mrf.mxu0  ;;  %v12481_v43 = vpop.f32.mrf.mxu1 }
 0x36f   : > { %12636 = vst [vmem:[#allocation18_spill] sm:$0xff] %v12479_v12  ;;  %12637 = vst [vmem:[#allocation19_spill] sm:$0xff] %v12481_v43  ;;  %v8113_v43 = vadd.f32 %v12373_v33, %v12074_v34  ;;  %v8121_v34 = vadd.f32 %v12385_v27, %v12094_v55 }
 0x370   : > { %v12483_v44 = vpop.f32.mrf.mxu0  ;;  %v12485_v42 = vpop.f32.mrf.mxu1 }
 0x371   : > { %12638 = vst [vmem:[#allocation20_spill] sm:$0xff] %v12483_v44  ;;  %12639 = vst [vmem:[#allocation21_spill] sm:$0xff] %v12485_v42  ;;  %v8164_v42 = vadd.f32 %v12379_v38, %v8111_v48  ;;  %v8215_v44 = vadd.f32 %v8214_v10, %v8162_v51  ;;  %v8166_v29 = vadd.f32 %v12383_v22, %v8113_v43 }
 0x372   : > { %v8168_v10 = vadd.f32 %v12387_v28, %v8115_v18  ;;  %v8174_v27 = vadd.f32 %v12393_v8, %v8121_v34  ;;  %v12647_v34 = vld [vmem:[#allocation12_spill] sm:$0xff]  ;;  %v12653_v60 = vld [vmem:[#allocation15_spill] sm:$0xff] }
 0x373   : > { %v8217_v57 = vadd.f32 %v8216_v1, %v8164_v42  ;;  %v8268_v33 = vadd.f32 %v12401_v14, %v8215_v44  ;;  %v8219_v38 = vadd.f32 %v12403_v16, %v8166_v29  ;;  %v8225_v42 = vadd.f32 %v12411_v63, %v8172_v46  ;;  %v12642_v44 = vld [vmem:[#allocation6_spill] sm:$0xff]  ;;  %v12645_v29 = vld [vmem:[#allocation13_spill] sm:$0xff] }
 0x374   : > { %v8221_v1 = vadd.f32 %v12407_v59, %v8168_v10  ;;  %v12649_v46 = vld [vmem:[#allocation9_spill] sm:$0xff] }
 0x375   : > { %v8270_v26 = vadd.f32 %v12405_v58, %v8217_v57  ;;  %v8321_v22 = vadd.f32 %v8320_v31, %v8268_v33  ;;  %v8272_v14 = vadd.f32 %v12409_v62, %v8219_v38  ;;  %v8227_v58 = vadd.f32 %v12415_v19, %v8174_v27  ;;  %v12646_v57 = vld [vmem:[#allocation7_spill] sm:$0xff]  ;;  %v12648_v38 = vld [vmem:[#allocation8_spill] sm:$0xff] }
 0x376   : > { %v8274_v31 = vadd.f32 %v12413_v17, %v8221_v1  ;;  %v8278_v8 = vadd.f32 %v12417_v20, %v8225_v42  ;;  %v8229_v62 = vadd.f32 %v12419_v21, %v8176_v7  ;;  %v8231_v21 = vadd.f32 %v12423_v24, %v8178_v9 }
 0x377   : > { %v8323_v28 = vadd.f32 %v8322_v13, %v8270_v26  ;;  %v8374_v59 = vadd.f32 %v12429_v25, %v8321_v22  ;;  %v8325_v63 = vadd.f32 %v12431_v32, %v8272_v14  ;;  %v8280_v25 = vadd.f32 %v12421_v23, %v8227_v58  ;;  %v12654_v58 = vld [vmem:[#allocation18_spill] sm:$0xff] }
 0x378   : > { %v8327_v0 = vadd.f32 %v12435_v2, %v8274_v31  ;;  %v8331_v43 = vadd.f32 %v12439_v6, %v8278_v8  ;;  %v8282_v32 = vadd.f32 %v12425_v15, %v8229_v62  ;;  %v8284_v15 = vadd.f32 %v12644_v56, %v8231_v21  ;;  %v12655_v62 = vld [vmem:[#allocation10_spill] sm:$0xff] }
 0x379   : > { %v8376_v13 = vadd.f32 %v12433_v3, %v8323_v28  ;;  %v8427_v11 = vadd.f32 %v8426_v49, %v8374_v59  ;;  %v8378_v17 = vadd.f32 %v12437_v5, %v8325_v63  ;;  %v8333_v3 = vadd.f32 %v12443_v36, %v8280_v25  ;;  %v12641_v49 = vld [vmem:[#allocation5_spill] sm:$0xff] }
 0x37a   : > { %v8380_v6 = vadd.f32 %v12441_v35, %v8327_v0  ;;  %v8384_v51 = vadd.f32 %v12641_v49, %v8331_v43  ;;  %v8335_v23 = vadd.f32 %v12642_v44, %v8282_v32  ;;  %v8337_v10 = vadd.f32 %v12648_v38, %v8284_v15  ;;  %v12656_v25 = vld [vmem:[#allocation17_spill] sm:$0xff]  ;;  %v12657_v32 = vld [vmem:[#allocation20_spill] sm:$0xff] }
 0x37b   : > { %v8429_v20 = vadd.f32 %v12459_v41, %v8376_v13  ;;  %v8480_v30 = vadd.f32 %v12457_v52, %v8427_v11  ;;  %v8431_v2 = vadd.f32 %v12463_v45, %v8378_v17  ;;  %v12643_v41 = vld [vmem:[#allocation11_spill] sm:$0xff]  ;;  %v8386_v45 = vadd.f32 %v12646_v57, %v8333_v3  ;;  %v12659_v15 = vld [vmem:[#allocation21_spill] sm:$0xff] }
 0x37c   : > { %v8433_v36 = vadd.f32 %v12645_v29, %v8380_v6  ;;  %v8437_v52 = vadd.f32 %v12471_v47, %v8384_v51  ;;  %v8388_v40 = vadd.f32 %v12649_v46, %v8335_v23  ;;  %v12652_v47 = vld [vmem:[#allocation14_spill] sm:$0xff]  ;;  %v8390_v13 = vadd.f32 %v12655_v62, %v8337_v10 }
 0x37d   : > { %v8482_v18 = vadd.f32 %v12643_v41, %v8429_v20  ;;  %v8484_v35 = vadd.f32 %v12647_v34, %v8431_v2 }
 0x37e   : > { %v8486_v28 = vadd.f32 %v12652_v47, %v8433_v36  ;;  %v8490_v7 = vadd.f32 %v12653_v60, %v8437_v52  ;;  %v8441_v59 = vadd.f32 %v12654_v58, %v8388_v40  ;;  %v8443_v3 = vadd.f32 %v12657_v32, %v8390_v13 }
 0x380   : > { %v8496_v29 = vadd.f32 %v12659_v15, %v8443_v3 }
 0x3a2   : > { %v8532_v53 = vpop.f32.mrf.mxu0  ;;  %v12489_v54 = vpop.f32.mrf.mxu1 }
 0x3a3   : > { %12640 = vst [vmem:[#allocation22_spill] sm:$0xff] %v12489_v54  ;;  %v8533_v24 = vadd.f32 %v8532_v53, %v8480_v30  ;;  %v12650_v53 = vld [vmem:[#allocation16_spill] sm:$0xff]  ;;  %v12658_v30 = vld [vmem:[#allocation19_spill] sm:$0xff] }
 0x3a4   : > { %v12493_v50 = vpop.f32.mrf.mxu0  ;;  %v12498_v12 = vpop.f32.mrf.mxu1  ;;  %v8439_v1 = vadd.f32 %v12650_v53, %v8386_v45  ;;  %v8494_v2 = vadd.f32 %v12658_v30, %v8441_v59 }
 0x3a5   : > { %v8535_v33 = vadd.f32 %v12493_v50, %v8482_v18 }
 0x3a6   : > { %v12505_v54 = vpop.f32.mrf.mxu0  ;;  %v12508_v37 = vpop.f32.mrf.mxu1 }
 0x3a7   : > { %v8537_v14 = vadd.f32 %v12505_v54, %v8484_v35  ;;  %v8588_v31 = vadd.f32 %v12498_v12, %v8535_v33  ;;  %v8492_v54 = vadd.f32 %v12656_v25, %v8439_v1 }
 0x3a8   : > { %v8538_v39 = vpop.f32.mrf.mxu0  ;;  %v12521_v55 = vpop.f32.mrf.mxu1 }
 0x3a9   : > { %v8539_v11 = vadd.f32 %v8538_v39, %v8486_v28  ;;  %v8590_v17 = vadd.f32 %v12508_v37, %v8537_v14 }
 0x3aa   : > { %v8542_v4 = vpop.f32.mrf.mxu0  ;;  %v12528_v16 = vpop.f32.mrf.mxu1  ;;  %v12651_v42 = vld [vmem:[#allocation22_spill] sm:$0xff] }
 0x3ab   : > { %v8586_v27 = vadd.f32 %v12651_v42, %v8533_v24  ;;  %v8543_v9 = vadd.f32 %v8542_v4, %v8490_v7  ;;  %v8592_v4 = vadd.f32 %v12521_v55, %v8539_v11 }
 0x3ac   : > { %v8544_v19 = vpop.f32.mrf.mxu0  ;;  %v12540_v48 = vpop.f32.mrf.mxu1 }
 0x3ad   : > { %v8545_v49 = vadd.f32 %v8544_v19, %v8492_v54  ;;  %v8596_v23 = vadd.f32 %v12528_v16, %v8543_v9 }
 0x3ae   : > { %v8546_v61 = vpop.f32.mrf.mxu0  ;;  %v12553_v5 = vpop.f32.mrf.mxu1 }
 0x3af   : > { %v8547_v18 = vadd.f32 %v8546_v61, %v8494_v2  ;;  %v8598_v57 = vadd.f32 %v12540_v48, %v8545_v49 }
 0x3b0   : > { %v8548_v26 = vpop.f32.mrf.mxu0  ;;  %v12564_v22 = vpop.f32.mrf.mxu1 }
 0x3b1   : > { %v8549_v16 = vadd.f32 %v8548_v26, %v8496_v29  ;;  %v8600_v61 = vadd.f32 %v12553_v5, %v8547_v18 }
 0x3b3   : > { %v8602_v47 = vadd.f32 %v12564_v22, %v8549_v16 }
 0x3e2   : > { %v8638_v50 = vpop.f32.mrf.mxu0  ;;  %v8691_v63 = vpop.f32.mrf.mxu1 }
 0x3e3   : > { %v8639_v8 = vadd.f32 %v8638_v50, %v8586_v27 }
 0x3e4   : > { %v8640_v0 = vpop.f32.mrf.mxu0  ;;  %v8693_v43 = vpop.f32.mrf.mxu1 }
 0x3e5   : > { %v8692_v20 = vadd.f32 %v8691_v63, %v8639_v8  ;;  %v8641_v21 = vadd.f32 %v8640_v0, %v8588_v31 }
 0x3e6   : > { %v8642_v6 = vpop.f32.mrf.mxu0  ;;  %v8695_v12 = vpop.f32.mrf.mxu1 }
 0x3e7   : > { %v8718_v51 = vmul.f32 0.2, %v8692_v20  ;;  %v8694_v44 = vadd.f32 %v8693_v43, %v8641_v21  ;;  %v8643_v39 = vadd.f32 %v8642_v6, %v8590_v17  ;;  %vm8710_vm0 = vcmp.gt.f32.partialorder %v8692_v20, 0.0 }
 0x3e8   : > { %v8644_v37 = vpop.f32.mrf.mxu0  ;;  %v8697_v41 = vpop.f32.mrf.mxu1 }
 0x3e9   : > { %vm8711_vm1 = vcmp.gt.f32.partialorder %v8694_v44, 0.0  ;;  %v8719_v24 = vmul.f32 0.2, %v8694_v44  ;;  %v8696_v56 = vadd.f32 %v8695_v12, %v8643_v39  ;;  %v8645_v36 = vadd.f32 %v8644_v37, %v8592_v4 }
 0x3ea   : > { %v8648_v19 = vpop.f32.mrf.mxu0  ;;  %v8701_v52 = vpop.f32.mrf.mxu1  ;;  %v8726_v45 = vsel %vm8710_vm0, %v8692_v20, %v8718_v51 }
 0x3eb   : > { %v8727_v55 = vsel %vm8711_vm1, %v8694_v44, %v8719_v24  ;;  %v8649_v34 = vadd.f32 %v8648_v19, %v8596_v23  ;;  %v8720_v33 = vmul.f32 0.2, %v8696_v56  ;;  %v8698_v38 = vadd.f32 %v8697_v41, %v8645_v36 }
 0x3ec   : > { %v9519_v35 = vpack.c.bf16 %v8727_v55, %v8726_v45  ;;  %v8650_v10 = vpop.f32.mrf.mxu0  ;;  %v8703_v46 = vpop.f32.mrf.mxu1  ;;  %vm8712_vm2 = vcmp.gt.f32.partialorder %v8696_v56, 0.0 }
 0x3ed   : > { %v8702_v40 = vadd.f32 %v8701_v52, %v8649_v34  ;;  %v8651_v53 = vadd.f32 %v8650_v10, %v8598_v57  ;;  %vm8713_vm3 = vcmp.gt.f32.partialorder %v8698_v38, 0.0  ;;  %v8721_v48 = vmul.f32 0.2, %v8698_v38 }
 0x3ee   : > { %8758 = vst [vmem:[%s12585_s12] sm:$0xff] %v9519_v35  ;;  %v8652_v1 = vpop.f32.mrf.mxu0  ;;  %v8705_v14 = vpop.f32.mrf.mxu1  ;;  %v8728_v28 = vsel %vm8712_vm2, %v8696_v56, %v8720_v33 }
 0x3ef   : > { %v8722_v42 = vmul.f32 0.2, %v8702_v40  ;;  %v8704_v26 = vadd.f32 %v8703_v46, %v8651_v53  ;;  %v8653_v27 = vadd.f32 %v8652_v1, %v8600_v61  ;;  %v8729_v60 = vsel %vm8713_vm3, %v8698_v38, %v8721_v48 }
 0x3f0   : > { %vm8714_vm4 = vcmp.gt.f32.partialorder %v8702_v40, 0.0  ;;  %v8654_v5 = vpop.f32.mrf.mxu0  ;;  %v9520_v7 = vpack.c.bf16 %v8729_v60, %v8728_v28  ;;  %v8707_v8 = vpop.f32.mrf.mxu1 }
 0x3f1   : > { %vm8715_vm5 = vcmp.gt.f32.partialorder %v8704_v26, 0.0  ;;  %v8723_v58 = vmul.f32 0.2, %v8704_v26  ;;  %v8706_v59 = vadd.f32 %v8705_v14, %v8653_v27  ;;  %v8655_v50 = vadd.f32 %v8654_v5, %v8602_v47 }
 0x3f2   : > { %8759 = vst [vmem:[%s12585_s12 + $0x8] sm:$0xff] %v9520_v7  ;;  %v8730_v63 = vsel %vm8714_vm4, %v8702_v40, %v8722_v42 }
 0x3f3   : > { %v8731_v31 = vsel %vm8715_vm5, %v8704_v26, %v8723_v58  ;;  %v8724_v13 = vmul.f32 0.2, %v8706_v59  ;;  %v8708_v11 = vadd.f32 %v8707_v8, %v8655_v50  ;;  %vm8716_vm6 = vcmp.gt.f32.partialorder %v8706_v59, 0.0 }
 0x3f4   : > { %v9521_v62 = vpack.c.bf16 %v8731_v31, %v8730_v63 }
 0x3f5   : > { %vm8717_vm7 = vcmp.gt.f32.partialorder %v8708_v11, 0.0  ;;  %v8725_v22 = vmul.f32 0.2, %v8708_v11  ;;  %v8732_v9 = vsel %vm8716_vm6, %v8706_v59, %v8724_v13  ;;  %v8809_v25 = vld [vmem:[%s12585_s12] sm:$0xff] (%p10427_p6) }
 0x3f6   : > { %8760 = vst [vmem:[%s12585_s12 + $0x10] sm:$0xff] %v9521_v62  ;;  %8768 = sbr.rel (!%p10427_p6) target bundleno = 1027 (0x403), region = 88  ;;  %8810 = vst [vmem:[%s8774_s29] sm:$0xff] (%p10427_p6), %v8809_v25 }
 0x3f7   : > { %v8733_v0 = vsel %vm8717_vm7, %v8708_v11, %v8725_v22 }
 0x3f8   : > { %v9522_v43 = vpack.c.bf16 %v8733_v0, %v8732_v9 }
 0x3f9   : > { %v8811_v54 = vld [vmem:[%s12585_s12 + $0x8] sm:$0xff] (%p10427_p6) }
 0x3fa   : > { %8761 = vst [vmem:[%s12585_s12 + $0x18] sm:$0xff] %v9522_v43  ;;  %8812 = vst [vmem:[%s8774_s29 + $0x10] sm:$0xff] (%p10427_p6), %v8811_v54 }
 0x3fd   : > { %v8813_v17 = vld [vmem:[%s12585_s12 + $0x10] sm:$0xff] }
 0x3fe   : > { %8814 = vst [vmem:[%s8774_s29 + $0x20] sm:$0xff] %v8813_v17 }
 0x401   : > { %v8815_v20 = vld [vmem:[%s12585_s12 + $0x18] sm:$0xff] }
 0x402   : > { %8816 = vst [vmem:[%s8774_s29 + $0x30] sm:$0xff] %v8815_v20 }
 0x403 PF: > { %s13_s16 = sadd.s32 1, %s10370_s16   ;;  %s12660_s12 = smov %s10358_s13 }
 0x404   : > { %p10_p12 = scmp.ge.s32.totalorder %s13_s16, 4   ;;  %s12661_s13 = smov %s10432_s22 }
 0x405   : > { %s12662_s14 = smov %s10366_s15  ;;  %s12663_s15 = smov %s12665_s17 }
 0x406   :  { %12 = sbr.rel (!%p10_p12) target bundleno = 3 (0x3), region = 169 }

</bundles_post_ra>
